<compile_context>
chip_gen: v7x
topology: tpu7x:2x2x1
jax: 0.10.0
libtpu: 0.0.40
codegen_flags: <defaults>
</compile_context>

<pallas_src>
import functools
import numpy as np
import jax
import jax.numpy as jnp
from jax import lax
from jax.experimental import pallas as pl
from jax.experimental.pallas import tpu as pltpu


def _unet_up_block_kernel(x_ref, br_ref, wt_ref, bt_ref, w1e_ref, b1e_ref,
                          w2_ref, b2_ref, out_ref, cat_pad, patch,
                          *, relu_slope):
    f32 = jnp.float32
    bf16 = jnp.bfloat16

    H, W, Cin = x_ref.shape[1], x_ref.shape[2], x_ref.shape[3]
    Cout = b2_ref.shape[1]
    H2, W2 = 2 * H, 2 * W
    N = H2 * W2

    def lrelu(v):
        return jnp.where(v >= 0, v, relu_slope * v)

    # ---- zero only the 1-pixel border of the padded concat buffer ----------
    # (interior is fully rewritten every grid step; border stays zero)
    cat_pad[0:1, :, :] = jnp.zeros((1, W2 + 2, Cin), f32)
    cat_pad[H2 + 1:H2 + 2, :, :] = jnp.zeros((1, W2 + 2, Cin), f32)
    cat_pad[:, 0:1, :] = jnp.zeros((H2 + 2, 1, Cin), f32)
    cat_pad[:, W2 + 1:W2 + 2, :] = jnp.zeros((H2 + 2, 1, Cin), f32)

    # ---- ConvTranspose2d(k=2, s=2): one matmul; columns packed as (ki,kj,o) --
    xf = x_ref[0].reshape(H * W, Cin).astype(bf16)
    y = jnp.dot(xf, wt_ref[...], preferred_element_type=f32) + bt_ref[...]

    # interleave the four (ki,kj) phases onto the 2x grid (broadcast + parity
    # select: no strided stores, no lane-dim-changing reshapes)
    def phase(k):                               # -> (H, W, Cout)
        return y[:, k * Cout:(k + 1) * Cout].reshape(H, W, Cout)

    def dup_w(v):                               # (H, W, C) -> (H, 2W, C)
        return jnp.broadcast_to(v[:, :, None, :],
                                (H, W, 2, Cout)).reshape(H, W2, Cout)

    def dup_h(v):                               # (H, 2W, C) -> (2H, 2W, C)
        return jnp.broadcast_to(v[:, None, :, :],
                                (H, 2, W2, Cout)).reshape(H2, W2, Cout)

    col_even = (lax.broadcasted_iota(jnp.int32, (H, W2, Cout), 1) % 2) == 0
    row0 = jnp.where(col_even, dup_w(phase(0)), dup_w(phase(1)))   # ki = 0
    row1 = jnp.where(col_even, dup_w(phase(2)), dup_w(phase(3)))   # ki = 1
    row_even = (lax.broadcasted_iota(jnp.int32, (H2, W2, Cout), 0) % 2) == 0
    up = jnp.where(row_even, dup_h(row0), dup_h(row1))             # (2H,2W,Cout)

    # ---- concat([up, bridge], channel) into the single padded buffer -------
    cat_pad[1:H2 + 1, 1:W2 + 1, :Cout] = up
    cat_pad[1:H2 + 1, 1:W2 + 1, Cout:] = br_ref[0].astype(f32)

    # ---- conv_1 (3x3, pad 1) + identity (1x1) in one im2col matmul ---------
    for idx in range(9):
        ky, kx = idx // 3, idx % 3
        patch[:, idx * Cin:(idx + 1) * Cin] = (
            cat_pad[ky:ky + H2, kx:kx + W2, :].reshape(N, Cin))
    r1 = jnp.dot(patch[...].astype(bf16), w1e_ref[...],
                 preferred_element_type=f32) + b1e_ref[...]
    t = lrelu(r1[:, :Cout])                     # conv_1 + LeakyReLU
    ident = r1[:, Cout:]                        # identity 1x1 conv (+ bias)

    # ---- conv_2 (3x3, pad 1): reuse cat_pad / patch; the conv_2 weights are
    #      zero-padded over the stale bridge channels so they contribute 0.
    cat_pad[1:H2 + 1, 1:W2 + 1, :Cout] = t.reshape(H2, W2, Cout)
    for idx in range(9):
        ky, kx = idx // 3, idx % 3
        patch[:, idx * Cin:(idx + 1) * Cin] = (
            cat_pad[ky:ky + H2, kx:kx + W2, :].reshape(N, Cin))
    r2 = jnp.dot(patch[...].astype(bf16), w2_ref[...],
                 preferred_element_type=f32) + b2_ref[...]
    r2 = lrelu(r2)

    out_ref[0] = (r2 + ident).reshape(H2, W2, Cout)


def unet_up_block_forward(x_nchw, bridge_nchw, params, relu_slope=0.2):
    x_nchw = x_nchw.astype(jnp.float32)
    bridge_nchw = bridge_nchw.astype(jnp.float32)
    B, Cin, H, W = x_nchw.shape
    Cb = bridge_nchw.shape[1]
    Cout = params["bt"].shape[0]
    H2, W2 = 2 * H, 2 * W
    assert Cout + Cb == Cin, "concat channels must equal in_size of UNetConvBlock"

    # boundary glue: NCHW -> NHWC
    x = jnp.transpose(x_nchw, (0, 2, 3, 1))                               # f32
    bridge = jnp.transpose(bridge_nchw, (0, 2, 3, 1)).astype(jnp.bfloat16)

    # ConvTranspose2d weight: torch (Cin, Cout, 2, 2) -> (Cin, (ki,kj,o)) bf16
    wt = jnp.transpose(params["Wt"], (0, 2, 3, 1)).reshape(Cin, 4 * Cout)
    wt = wt.astype(jnp.bfloat16)
    bt = jnp.tile(params["bt"], 4).reshape(1, 4 * Cout).astype(jnp.float32)

    # conv_1 (3x3) + identity (1x1, center tap) folded into one (9*Cin, 2*Cout)
    w1 = jnp.transpose(params["W1"], (2, 3, 1, 0)).reshape(9 * Cin, Cout)
    wid = params["Wid"][:, :, 0, 0].T                                    # (Cin, Cout)
    wid_ext = jnp.zeros((9 * Cin, Cout), jnp.float32).at[4 * Cin:5 * Cin, :].set(wid)
    w1e = jnp.concatenate([w1, wid_ext], axis=1).astype(jnp.bfloat16)
    b1e = jnp.concatenate([params["b1"], params["bid"]]).reshape(1, 2 * Cout)
    b1e = b1e.astype(jnp.float32)

    # conv_2 (3x3): zero-pad the input-channel axis up to Cin so the padded
    # concat scratch can be reused verbatim for the second conv.
    w2t = jnp.transpose(params["W2"], (2, 3, 1, 0))                       # (3,3,Cout,Cout)
    w2p = jnp.zeros((3, 3, Cin, Cout), jnp.float32).at[:, :, :Cout, :].set(w2t)
    w2p = w2p.reshape(9 * Cin, Cout).astype(jnp.bfloat16)
    b2 = params["b2"].reshape(1, Cout).astype(jnp.float32)

    N = H2 * W2
    out_nhwc = pl.pallas_call(
        functools.partial(_unet_up_block_kernel, relu_slope=relu_slope),
        grid=(B,),
        in_specs=[
            pl.BlockSpec((1, H, W, Cin), lambda b: (b, 0, 0, 0)),
            pl.BlockSpec((1, H2, W2, Cb), lambda b: (b, 0, 0, 0)),
            pl.BlockSpec((Cin, 4 * Cout), lambda b: (0, 0)),
            pl.BlockSpec((1, 4 * Cout), lambda b: (0, 0)),
            pl.BlockSpec((9 * Cin, 2 * Cout), lambda b: (0, 0)),
            pl.BlockSpec((1, 2 * Cout), lambda b: (0, 0)),
            pl.BlockSpec((9 * Cin, Cout), lambda b: (0, 0)),
            pl.BlockSpec((1, Cout), lambda b: (0, 0)),
        ],
        out_specs=pl.BlockSpec((1, H2, W2, Cout), lambda b: (b, 0, 0, 0)),
        out_shape=jax.ShapeDtypeStruct((B, H2, W2, Cout), jnp.float32),
        scratch_shapes=[
            pltpu.VMEM((H2 + 2, W2 + 2, Cin), jnp.float32),   # padded concat / t
            pltpu.VMEM((N, 9 * Cin), jnp.float32),            # shared im2col buffer
        ],
        compiler_params=pltpu.CompilerParams(
            dimension_semantics=("parallel",),
            vmem_limit_bytes=32 * 1024 * 1024),
    )(x, bridge, wt, bt, w1e, b1e, w2p, b2)

    return jnp.transpose(out_nhwc, (0, 3, 1, 2))              # back to NCHW


# ---------------------------------------------------------------------------
# Independent numpy reference (PyTorch NCHW semantics) for validation
# ---------------------------------------------------------------------------
def _ref_forward_np(x, bridge, p, relu_slope):
    x = np.asarray(x, np.float64)
    bridge = np.asarray(bridge, np.float64)
    Wt = np.asarray(p["Wt"], np.float64)
    bt = np.asarray(p["bt"], np.float64)
    B, Cin, H, W = x.shape
    Cout = bt.shape[0]
    up = np.zeros((B, Cout, 2 * H, 2 * W))
    for ki in range(2):
        for kj in range(2):
            up[:, :, ki::2, kj::2] = np.einsum("bcij,co->boij", x, Wt[:, :, ki, kj])
    up += bt[None, :, None, None]
    cat = np.concatenate([up, bridge], axis=1)

    def conv3(inp, w, b):
        Bq, C, Hq, Wq = inp.shape
        O = w.shape[0]
        pad = np.pad(inp, ((0, 0), (0, 0), (1, 1), (1, 1)))
        out = np.zeros((Bq, O, Hq, Wq))
        for ky in range(3):
            for kx in range(3):
                out += np.einsum("bchw,oc->bohw",
                                 pad[:, :, ky:ky + Hq, kx:kx + Wq], w[:, :, ky, kx])
        return out + b[None, :, None, None]

    lrelu = lambda v: np.where(v >= 0, v, relu_slope * v)
    t = lrelu(conv3(cat, np.asarray(p["W1"], np.float64), np.asarray(p["b1"], np.float64)))
    t = lrelu(conv3(t, np.asarray(p["W2"], np.float64), np.asarray(p["b2"], np.float64)))
    ident = np.einsum("bchw,oc->bohw", cat, np.asarray(p["Wid"], np.float64)[:, :, 0, 0])
    ident += np.asarray(p["bid"], np.float64)[None, :, None, None]
    return t + ident


if __name__ == "__main__":
    in_size, out_size = 8, 4          # UNetUpBlock(in_size=8, out_size=4, relu_slope=0.2)
    relu_slope = 0.2
    B, H, W = 2, 8, 8                 # x spatial; bridge is 2H x 2W

    key = jax.random.PRNGKey(0)
    ks = jax.random.split(key, 10)
    params = {
        # ConvTranspose2d(in_size, out_size, 2, 2, bias=True): weight [Cin, Cout, 2, 2]
        "Wt": jax.random.normal(ks[0], (in_size, out_size, 2, 2), jnp.float32) * 0.1,
        "bt": jax.random.normal(ks[1], (out_size,), jnp.float32) * 0.1,
        # conv_1: Conv2d(in_size, out_size, 3, padding=1, bias=True)
        "W1": jax.random.normal(ks[2], (out_size, in_size, 3, 3), jnp.float32) * 0.1,
        "b1": jax.random.normal(ks[3], (out_size,), jnp.float32) * 0.1,
        # conv_2: Conv2d(out_size, out_size, 3, padding=1, bias=True)
        "W2": jax.random.normal(ks[4], (out_size, out_size, 3, 3), jnp.float32) * 0.1,
        "b2": jax.random.normal(ks[5], (out_size,), jnp.float32) * 0.1,
        # identity: Conv2d(in_size, out_size, 1, 1, 0) (bias=True by default)
        "Wid": jax.random.normal(ks[6], (out_size, in_size, 1, 1), jnp.float32) * 0.1,
        "bid": jax.random.normal(ks[7], (out_size,), jnp.float32) * 0.1,
    }

    x = jax.random.normal(ks[8], (B, in_size, H, W), jnp.float32)
    bridge = jax.random.normal(ks[9], (B, in_size - out_size, 2 * H, 2 * W), jnp.float32)

    out = unet_up_block_forward(x, bridge, params, relu_slope)
    out = jax.block_until_ready(out)

    ref = _ref_forward_np(x, bridge, params, relu_slope)
    assert out.shape == ref.shape, (out.shape, ref.shape)
    # bf16 matmul operands with f32 accumulation -> loose-ish tolerance
    np.testing.assert_allclose(np.asarray(out), ref, rtol=5e-2, atol=5e-2)

    print("KERNEL_OK")
</pallas_src>

<mosaic_0001>
module attributes {stable_mosaic.version = 11 : i64} {
  func.func @_unet_up_block_kernel(%arg0: i32, %arg1: memref<1x8x8x8xf32, #tpu.memory_space<vmem>>, %arg2: memref<1x16x16x4xbf16, #tpu.memory_space<vmem>>, %arg3: memref<8x16xbf16, #tpu.memory_space<vmem>>, %arg4: memref<1x16xf32, #tpu.memory_space<vmem>>, %arg5: memref<72x8xbf16, #tpu.memory_space<vmem>>, %arg6: memref<1x8xf32, #tpu.memory_space<vmem>>, %arg7: memref<72x4xbf16, #tpu.memory_space<vmem>>, %arg8: memref<1x4xf32, #tpu.memory_space<vmem>>, %arg9: memref<1x16x16x4xf32, #tpu.memory_space<vmem>>, %arg10: memref<18x18x8xf32, #tpu.memory_space<vmem>>, %arg11: memref<256x72xf32, #tpu.memory_space<vmem>>) attributes {dimension_semantics = [#tpu.dimension_semantics<parallel>], iteration_bounds = array<i64: 2>, scalar_prefetch = 0 : i64, scratch_operands = 2 : i64, tpu.core_type = #tpu.core_type<tc>, window_params = [{transform_indices = @transform_0, window_bounds = array<i64: 1, 8, 8, 8>}, {transform_indices = @transform_1, window_bounds = array<i64: 1, 16, 16, 4>}, {pipeline_mode = #tpu.pipeline_mode<synchronous>, transform_indices = @transform_2, window_bounds = array<i64: 8, 16>}, {pipeline_mode = #tpu.pipeline_mode<synchronous>, transform_indices = @transform_3, window_bounds = array<i64: 1, 16>}, {pipeline_mode = #tpu.pipeline_mode<synchronous>, transform_indices = @transform_4, window_bounds = array<i64: 72, 8>}, {pipeline_mode = #tpu.pipeline_mode<synchronous>, transform_indices = @transform_5, window_bounds = array<i64: 1, 8>}, {pipeline_mode = #tpu.pipeline_mode<synchronous>, transform_indices = @transform_6, window_bounds = array<i64: 72, 4>}, {pipeline_mode = #tpu.pipeline_mode<synchronous>, transform_indices = @transform_7, window_bounds = array<i64: 1, 4>}, {transform_indices = @transform_8, window_bounds = array<i64: 1, 16, 16, 4>}]} {
    %cst = arith.constant 0.000000e+00 : f32
    %0 = vector.broadcast %cst : f32 to vector<1x18x8xf32>
    %c0 = arith.constant 0 : index
    %c0_0 = arith.constant 0 : index
    %c0_1 = arith.constant 0 : index
    %1 = vector.load %arg10[%c0, %c0_0, %c0_1] : memref<18x18x8xf32, #tpu.memory_space<vmem>>, vector<1x18x8xf32>
    tpu.vector_store %arg10[%c0, %c0_0, %c0_1], %0 {strides = array<i32>} : memref<18x18x8xf32, #tpu.memory_space<vmem>>, vector<1x18x8xf32>,
    %cst_2 = arith.constant 0.000000e+00 : f32
    %2 = vector.broadcast %cst_2 : f32 to vector<1x18x8xf32>
    %c17 = arith.constant 17 : index
    %c0_3 = arith.constant 0 : index
    %c0_4 = arith.constant 0 : index
    %3 = vector.load %arg10[%c17, %c0_3, %c0_4] : memref<18x18x8xf32, #tpu.memory_space<vmem>>, vector<1x18x8xf32>
    tpu.vector_store %arg10[%c17, %c0_3, %c0_4], %2 {strides = array<i32>} : memref<18x18x8xf32, #tpu.memory_space<vmem>>, vector<1x18x8xf32>,
    %cst_5 = arith.constant 0.000000e+00 : f32
    %4 = vector.broadcast %cst_5 : f32 to vector<18x1x8xf32>
    %c0_6 = arith.constant 0 : index
    %c0_7 = arith.constant 0 : index
    %c0_8 = arith.constant 0 : index
    %5 = vector.load %arg10[%c0_6, %c0_7, %c0_8] : memref<18x18x8xf32, #tpu.memory_space<vmem>>, vector<18x1x8xf32>
    tpu.vector_store %arg10[%c0_6, %c0_7, %c0_8], %4 {strides = array<i32>} : memref<18x18x8xf32, #tpu.memory_space<vmem>>, vector<18x1x8xf32>,
    %cst_9 = arith.constant 0.000000e+00 : f32
    %6 = vector.broadcast %cst_9 : f32 to vector<18x1x8xf32>
    %c0_10 = arith.constant 0 : index
    %c17_11 = arith.constant 17 : index
    %c0_12 = arith.constant 0 : index
    %7 = vector.load %arg10[%c0_10, %c17_11, %c0_12] : memref<18x18x8xf32, #tpu.memory_space<vmem>>, vector<18x1x8xf32>
    tpu.vector_store %arg10[%c0_10, %c17_11, %c0_12], %6 {strides = array<i32>} : memref<18x18x8xf32, #tpu.memory_space<vmem>>, vector<18x1x8xf32>,
    %c0_13 = arith.constant 0 : index
    %c0_14 = arith.constant 0 : index
    %c0_15 = arith.constant 0 : index
    %c0_16 = arith.constant 0 : index
    %8 = vector.load %arg1[%c0_13, %c0_14, %c0_15, %c0_16] : memref<1x8x8x8xf32, #tpu.memory_space<vmem>>, vector<1x8x8x8xf32>
    %9 = vector.shape_cast %8 : vector<1x8x8x8xf32> to vector<8x8x8xf32>
    %10 = vector.shape_cast %9 : vector<8x8x8xf32> to vector<64x8xf32>
    %11 = arith.truncf %10 : vector<64x8xf32> to vector<64x8xbf16>
    %c0_17 = arith.constant 0 : index
    %c0_18 = arith.constant 0 : index
    %12 = vector.load %arg3[%c0_17, %c0_18] : memref<8x16xbf16, #tpu.memory_space<vmem>>, vector<8x16xbf16>
    %cst_19 = arith.constant dense<0.000000e+00> : vector<64x16xf32>
    %13 = tpu.matmul %11, %12, %cst_19 {dimension_numbers = #tpu.dot_dimension_numbers<[1], [0], [0], [1], [0, 0, 1, 1], [], []>} : vector<64x8xbf16>, vector<8x16xbf16>, vector<64x16xf32> -> vector<64x16xf32>
    %c0_20 = arith.constant 0 : index
    %c0_21 = arith.constant 0 : index
    %14 = vector.load %arg4[%c0_20, %c0_21] : memref<1x16xf32, #tpu.memory_space<vmem>>, vector<1x16xf32>
    %15 = vector.broadcast %14 : vector<1x16xf32> to vector<64x16xf32>
    %16 = arith.addf %13, %15 : vector<64x16xf32>
    %17 = tpu.iota {dimensions = array<i32: 1>} : vector<8x16x4xi32>
    %c2_i32 = arith.constant 2 : i32
    %c0_i32 = arith.constant 0 : i32
    %18 = arith.cmpi eq, %c2_i32, %c0_i32 : i32
    %c1_i32 = arith.constant 1 : i32
    %19 = arith.select %18, %c1_i32, %c2_i32 : i32
    %20 = vector.broadcast %19 : i32 to vector<8x16x4xi32>
    %21 = arith.remsi %17, %20 : vector<8x16x4xi32>
    %c0_i32_22 = arith.constant 0 : i32
    %22 = vector.broadcast %c0_i32_22 : i32 to vector<8x16x4xi32>
    %23 = arith.cmpi ne, %21, %22 : vector<8x16x4xi32>
    %c0_i32_23 = arith.constant 0 : i32
    %24 = vector.broadcast %c0_i32_23 : i32 to vector<8x16x4xi32>
    %25 = arith.cmpi slt, %21, %24 : vector<8x16x4xi32>
    %c0_i32_24 = arith.constant 0 : i32
    %26 = arith.cmpi slt, %19, %c0_i32_24 : i32
    %27 = vector.broadcast %26 : i1 to vector<8x16x4xi1>
    %28 = vector.broadcast %27 : vector<8x16x4xi1> to vector<8x16x4xi1>
    %29 = arith.xori %25, %28 : vector<8x16x4xi1>
    %30 = arith.andi %29, %23 : vector<8x16x4xi1>
    %31 = vector.broadcast %19 : i32 to vector<8x16x4xi32>
    %32 = arith.addi %21, %31 : vector<8x16x4xi32>
    %33 = arith.select %30, %32, %21 : vector<8x16x4xi1>, vector<8x16x4xi32>
    %c0_i32_25 = arith.constant 0 : i32
    %34 = vector.broadcast %c0_i32_25 : i32 to vector<8x16x4xi32>
    %35 = arith.cmpi eq, %33, %34 : vector<8x16x4xi32>
    %36 = vector.extract_strided_slice %16 {offsets = [0, 0], sizes = [64, 4], strides = [1, 1]} : vector<64x16xf32> to vector<64x4xf32>
    %37 = vector.shape_cast %36 : vector<64x4xf32> to vector<8x8x4xf32>
    %38 = vector.shape_cast %37 : vector<8x8x4xf32> to vector<8x8x1x4xf32>
    %39 = vector.shape_cast %38 : vector<8x8x1x4xf32> to vector<8x8x1x4xf32>
    %40 = vector.broadcast %39 : vector<8x8x1x4xf32> to vector<8x8x2x4xf32>
    %41 = vector.shape_cast %40 : vector<8x8x2x4xf32> to vector<8x16x4xf32>
    %42 = vector.extract_strided_slice %16 {offsets = [0, 4], sizes = [64, 4], strides = [1, 1]} : vector<64x16xf32> to vector<64x4xf32>
    %43 = vector.shape_cast %42 : vector<64x4xf32> to vector<8x8x4xf32>
    %44 = vector.shape_cast %43 : vector<8x8x4xf32> to vector<8x8x1x4xf32>
    %45 = vector.shape_cast %44 : vector<8x8x1x4xf32> to vector<8x8x1x4xf32>
    %46 = vector.broadcast %45 : vector<8x8x1x4xf32> to vector<8x8x2x4xf32>
    %47 = vector.shape_cast %46 : vector<8x8x2x4xf32> to vector<8x16x4xf32>
    %48 = arith.select %35, %41, %47 : vector<8x16x4xi1>, vector<8x16x4xf32>
    %49 = vector.extract_strided_slice %16 {offsets = [0, 8], sizes = [64, 4], strides = [1, 1]} : vector<64x16xf32> to vector<64x4xf32>
    %50 = vector.shape_cast %49 : vector<64x4xf32> to vector<8x8x4xf32>
    %51 = vector.shape_cast %50 : vector<8x8x4xf32> to vector<8x8x1x4xf32>
    %52 = vector.shape_cast %51 : vector<8x8x1x4xf32> to vector<8x8x1x4xf32>
    %53 = vector.broadcast %52 : vector<8x8x1x4xf32> to vector<8x8x2x4xf32>
    %54 = vector.shape_cast %53 : vector<8x8x2x4xf32> to vector<8x16x4xf32>
    %55 = vector.extract_strided_slice %16 {offsets = [0, 12], sizes = [64, 4], strides = [1, 1]} : vector<64x16xf32> to vector<64x4xf32>
    %56 = vector.shape_cast %55 : vector<64x4xf32> to vector<8x8x4xf32>
    %57 = vector.shape_cast %56 : vector<8x8x4xf32> to vector<8x8x1x4xf32>
    %58 = vector.shape_cast %57 : vector<8x8x1x4xf32> to vector<8x8x1x4xf32>
    %59 = vector.broadcast %58 : vector<8x8x1x4xf32> to vector<8x8x2x4xf32>
    %60 = vector.shape_cast %59 : vector<8x8x2x4xf32> to vector<8x16x4xf32>
    %61 = arith.select %35, %54, %60 : vector<8x16x4xi1>, vector<8x16x4xf32>
    %62 = tpu.iota {dimensions = array<i32: 0>} : vector<16x16x4xi32>
    %c2_i32_26 = arith.constant 2 : i32
    %c0_i32_27 = arith.constant 0 : i32
    %63 = arith.cmpi eq, %c2_i32_26, %c0_i32_27 : i32
    %c1_i32_28 = arith.constant 1 : i32
    %64 = arith.select %63, %c1_i32_28, %c2_i32_26 : i32
    %65 = vector.broadcast %64 : i32 to vector<16x16x4xi32>
    %66 = arith.remsi %62, %65 : vector<16x16x4xi32>
    %c0_i32_29 = arith.constant 0 : i32
    %67 = vector.broadcast %c0_i32_29 : i32 to vector<16x16x4xi32>
    %68 = arith.cmpi ne, %66, %67 : vector<16x16x4xi32>
    %c0_i32_30 = arith.constant 0 : i32
    %69 = vector.broadcast %c0_i32_30 : i32 to vector<16x16x4xi32>
    %70 = arith.cmpi slt, %66, %69 : vector<16x16x4xi32>
    %c0_i32_31 = arith.constant 0 : i32
    %71 = arith.cmpi slt, %64, %c0_i32_31 : i32
    %72 = vector.broadcast %71 : i1 to vector<16x16x4xi1>
    %73 = vector.broadcast %72 : vector<16x16x4xi1> to vector<16x16x4xi1>
    %74 = arith.xori %70, %73 : vector<16x16x4xi1>
    %75 = arith.andi %74, %68 : vector<16x16x4xi1>
    %76 = vector.broadcast %64 : i32 to vector<16x16x4xi32>
    %77 = arith.addi %66, %76 : vector<16x16x4xi32>
    %78 = arith.select %75, %77, %66 : vector<16x16x4xi1>, vector<16x16x4xi32>
    %c0_i32_32 = arith.constant 0 : i32
    %79 = vector.broadcast %c0_i32_32 : i32 to vector<16x16x4xi32>
    %80 = arith.cmpi eq, %78, %79 : vector<16x16x4xi32>
    %81 = vector.shape_cast %48 : vector<8x16x4xf32> to vector<8x1x16x4xf32>
    %82 = vector.shape_cast %81 : vector<8x1x16x4xf32> to vector<8x1x16x4xf32>
    %83 = vector.broadcast %82 : vector<8x1x16x4xf32> to vector<8x2x16x4xf32>
    %84 = vector.shape_cast %83 : vector<8x2x16x4xf32> to vector<16x16x4xf32>
    %85 = vector.shape_cast %61 : vector<8x16x4xf32> to vector<8x1x16x4xf32>
    %86 = vector.shape_cast %85 : vector<8x1x16x4xf32> to vector<8x1x16x4xf32>
    %87 = vector.broadcast %86 : vector<8x1x16x4xf32> to vector<8x2x16x4xf32>
    %88 = vector.shape_cast %87 : vector<8x2x16x4xf32> to vector<16x16x4xf32>
    %89 = arith.select %80, %84, %88 : vector<16x16x4xi1>, vector<16x16x4xf32>
    %c1 = arith.constant 1 : index
    %c1_33 = arith.constant 1 : index
    %c0_34 = arith.constant 0 : index
    %90 = vector.load %arg10[%c1, %c1_33, %c0_34] : memref<18x18x8xf32, #tpu.memory_space<vmem>>, vector<16x16x4xf32>
    tpu.vector_store %arg10[%c1, %c1_33, %c0_34], %89 {strides = array<i32>} : memref<18x18x8xf32, #tpu.memory_space<vmem>>, vector<16x16x4xf32>,
    %c0_35 = arith.constant 0 : index
    %c0_36 = arith.constant 0 : index
    %c0_37 = arith.constant 0 : index
    %c0_38 = arith.constant 0 : index
    %91 = vector.load %arg2[%c0_35, %c0_36, %c0_37, %c0_38] : memref<1x16x16x4xbf16, #tpu.memory_space<vmem>>, vector<1x16x16x4xbf16>
    %92 = vector.shape_cast %91 : vector<1x16x16x4xbf16> to vector<16x16x4xbf16>
    %93 = arith.extf %92 : vector<16x16x4xbf16> to vector<16x16x4xf32>
    %c1_39 = arith.constant 1 : index
    %c1_40 = arith.constant 1 : index
    %c4 = arith.constant 4 : index
    %94 = vector.load %arg10[%c1_39, %c1_40, %c4] : memref<18x18x8xf32, #tpu.memory_space<vmem>>, vector<16x16x4xf32>
    tpu.vector_store %arg10[%c1_39, %c1_40, %c4], %93 {strides = array<i32>} : memref<18x18x8xf32, #tpu.memory_space<vmem>>, vector<16x16x4xf32>,
    %c0_41 = arith.constant 0 : index
    %c0_42 = arith.constant 0 : index
    %c0_43 = arith.constant 0 : index
    %95 = vector.load %arg10[%c0_41, %c0_42, %c0_43] : memref<18x18x8xf32, #tpu.memory_space<vmem>>, vector<16x16x8xf32>
    %96 = vector.shape_cast %95 : vector<16x16x8xf32> to vector<256x8xf32>
    %c0_44 = arith.constant 0 : index
    %c0_45 = arith.constant 0 : index
    %97 = vector.load %arg11[%c0_44, %c0_45] : memref<256x72xf32, #tpu.memory_space<vmem>>, vector<256x8xf32>
    tpu.vector_store %arg11[%c0_44, %c0_45], %96 {strides = array<i32>} : memref<256x72xf32, #tpu.memory_space<vmem>>, vector<256x8xf32>,
    %c0_46 = arith.constant 0 : index
    %c1_47 = arith.constant 1 : index
    %c0_48 = arith.constant 0 : index
    %98 = vector.load %arg10[%c0_46, %c1_47, %c0_48] : memref<18x18x8xf32, #tpu.memory_space<vmem>>, vector<16x16x8xf32>
    %99 = vector.shape_cast %98 : vector<16x16x8xf32> to vector<256x8xf32>
    %c0_49 = arith.constant 0 : index
    %c8 = arith.constant 8 : index
    %100 = vector.load %arg11[%c0_49, %c8] : memref<256x72xf32, #tpu.memory_space<vmem>>, vector<256x8xf32>
    tpu.vector_store %arg11[%c0_49, %c8], %99 {strides = array<i32>} : memref<256x72xf32, #tpu.memory_space<vmem>>, vector<256x8xf32>,
    %c0_50 = arith.constant 0 : index
    %c2 = arith.constant 2 : index
    %c0_51 = arith.constant 0 : index
    %101 = vector.load %arg10[%c0_50, %c2, %c0_51] : memref<18x18x8xf32, #tpu.memory_space<vmem>>, vector<16x16x8xf32>
    %102 = vector.shape_cast %101 : vector<16x16x8xf32> to vector<256x8xf32>
    %c0_52 = arith.constant 0 : index
    %c16 = arith.constant 16 : index
    %103 = vector.load %arg11[%c0_52, %c16] : memref<256x72xf32, #tpu.memory_space<vmem>>, vector<256x8xf32>
    tpu.vector_store %arg11[%c0_52, %c16], %102 {strides = array<i32>} : memref<256x72xf32, #tpu.memory_space<vmem>>, vector<256x8xf32>,
    %c1_53 = arith.constant 1 : index
    %c0_54 = arith.constant 0 : index
    %c0_55 = arith.constant 0 : index
    %104 = vector.load %arg10[%c1_53, %c0_54, %c0_55] : memref<18x18x8xf32, #tpu.memory_space<vmem>>, vector<16x16x8xf32>
    %105 = vector.shape_cast %104 : vector<16x16x8xf32> to vector<256x8xf32>
    %c0_56 = arith.constant 0 : index
    %c24 = arith.constant 24 : index
    %106 = vector.load %arg11[%c0_56, %c24] : memref<256x72xf32, #tpu.memory_space<vmem>>, vector<256x8xf32>
    tpu.vector_store %arg11[%c0_56, %c24], %105 {strides = array<i32>} : memref<256x72xf32, #tpu.memory_space<vmem>>, vector<256x8xf32>,
    %c1_57 = arith.constant 1 : index
    %c1_58 = arith.constant 1 : index
    %c0_59 = arith.constant 0 : index
    %107 = vector.load %arg10[%c1_57, %c1_58, %c0_59] : memref<18x18x8xf32, #tpu.memory_space<vmem>>, vector<16x16x8xf32>
    %108 = vector.shape_cast %107 : vector<16x16x8xf32> to vector<256x8xf32>
    %c0_60 = arith.constant 0 : index
    %c32 = arith.constant 32 : index
    %109 = vector.load %arg11[%c0_60, %c32] : memref<256x72xf32, #tpu.memory_space<vmem>>, vector<256x8xf32>
    tpu.vector_store %arg11[%c0_60, %c32], %108 {strides = array<i32>} : memref<256x72xf32, #tpu.memory_space<vmem>>, vector<256x8xf32>,
    %c1_61 = arith.constant 1 : index
    %c2_62 = arith.constant 2 : index
    %c0_63 = arith.constant 0 : index
    %110 = vector.load %arg10[%c1_61, %c2_62, %c0_63] : memref<18x18x8xf32, #tpu.memory_space<vmem>>, vector<16x16x8xf32>
    %111 = vector.shape_cast %110 : vector<16x16x8xf32> to vector<256x8xf32>
    %c0_64 = arith.constant 0 : index
    %c40 = arith.constant 40 : index
    %112 = vector.load %arg11[%c0_64, %c40] : memref<256x72xf32, #tpu.memory_space<vmem>>, vector<256x8xf32>
    tpu.vector_store %arg11[%c0_64, %c40], %111 {strides = array<i32>} : memref<256x72xf32, #tpu.memory_space<vmem>>, vector<256x8xf32>,
    %c2_65 = arith.constant 2 : index
    %c0_66 = arith.constant 0 : index
    %c0_67 = arith.constant 0 : index
    %113 = vector.load %arg10[%c2_65, %c0_66, %c0_67] : memref<18x18x8xf32, #tpu.memory_space<vmem>>, vector<16x16x8xf32>
    %114 = vector.shape_cast %113 : vector<16x16x8xf32> to vector<256x8xf32>
    %c0_68 = arith.constant 0 : index
    %c48 = arith.constant 48 : index
    %115 = vector.load %arg11[%c0_68, %c48] : memref<256x72xf32, #tpu.memory_space<vmem>>, vector<256x8xf32>
    tpu.vector_store %arg11[%c0_68, %c48], %114 {strides = array<i32>} : memref<256x72xf32, #tpu.memory_space<vmem>>, vector<256x8xf32>,
    %c2_69 = arith.constant 2 : index
    %c1_70 = arith.constant 1 : index
    %c0_71 = arith.constant 0 : index
    %116 = vector.load %arg10[%c2_69, %c1_70, %c0_71] : memref<18x18x8xf32, #tpu.memory_space<vmem>>, vector<16x16x8xf32>
    %117 = vector.shape_cast %116 : vector<16x16x8xf32> to vector<256x8xf32>
    %c0_72 = arith.constant 0 : index
    %c56 = arith.constant 56 : index
    %118 = vector.load %arg11[%c0_72, %c56] : memref<256x72xf32, #tpu.memory_space<vmem>>, vector<256x8xf32>
    tpu.vector_store %arg11[%c0_72, %c56], %117 {strides = array<i32>} : memref<256x72xf32, #tpu.memory_space<vmem>>, vector<256x8xf32>,
    %c2_73 = arith.constant 2 : index
    %c2_74 = arith.constant 2 : index
    %c0_75 = arith.constant 0 : index
    %119 = vector.load %arg10[%c2_73, %c2_74, %c0_75] : memref<18x18x8xf32, #tpu.memory_space<vmem>>, vector<16x16x8xf32>
    %120 = vector.shape_cast %119 : vector<16x16x8xf32> to vector<256x8xf32>
    %c0_76 = arith.constant 0 : index
    %c64 = arith.constant 64 : index
    %121 = vector.load %arg11[%c0_76, %c64] : memref<256x72xf32, #tpu.memory_space<vmem>>, vector<256x8xf32>
    tpu.vector_store %arg11[%c0_76, %c64], %120 {strides = array<i32>} : memref<256x72xf32, #tpu.memory_space<vmem>>, vector<256x8xf32>,
    %c0_77 = arith.constant 0 : index
    %c0_78 = arith.constant 0 : index
    %122 = vector.load %arg11[%c0_77, %c0_78] : memref<256x72xf32, #tpu.memory_space<vmem>>, vector<256x72xf32>
    %123 = arith.truncf %122 : vector<256x72xf32> to vector<256x72xbf16>
    %c0_79 = arith.constant 0 : index
    %c0_80 = arith.constant 0 : index
    %124 = vector.load %arg5[%c0_79, %c0_80] : memref<72x8xbf16, #tpu.memory_space<vmem>>, vector<72x8xbf16>
    %cst_81 = arith.constant dense<0.000000e+00> : vector<256x8xf32>
    %125 = tpu.matmul %123, %124, %cst_81 {dimension_numbers = #tpu.dot_dimension_numbers<[1], [0], [0], [1], [0, 0, 1, 1], [], []>} : vector<256x72xbf16>, vector<72x8xbf16>, vector<256x8xf32> -> vector<256x8xf32>
    %c0_82 = arith.constant 0 : index
    %c0_83 = arith.constant 0 : index
    %126 = vector.load %arg6[%c0_82, %c0_83] : memref<1x8xf32, #tpu.memory_space<vmem>>, vector<1x8xf32>
    %127 = vector.broadcast %126 : vector<1x8xf32> to vector<256x8xf32>
    %128 = arith.addf %125, %127 : vector<256x8xf32>
    %129 = vector.extract_strided_slice %128 {offsets = [0, 0], sizes = [256, 4], strides = [1, 1]} : vector<256x8xf32> to vector<256x4xf32>
    %cst_84 = arith.constant 0.000000e+00 : f32
    %130 = vector.broadcast %cst_84 : f32 to vector<256x4xf32>
    %131 = arith.cmpf oge, %129, %130 : vector<256x4xf32>
    %cst_85 = arith.constant 2.000000e-01 : f32
    %132 = vector.broadcast %cst_85 : f32 to vector<256x4xf32>
    %133 = arith.mulf %132, %129 : vector<256x4xf32>
    %134 = arith.select %131, %129, %133 : vector<256x4xi1>, vector<256x4xf32>
    %135 = vector.extract_strided_slice %128 {offsets = [0, 4], sizes = [256, 4], strides = [1, 1]} : vector<256x8xf32> to vector<256x4xf32>
    %136 = vector.shape_cast %134 : vector<256x4xf32> to vector<16x16x4xf32>
    %c1_86 = arith.constant 1 : index
    %c1_87 = arith.constant 1 : index
    %c0_88 = arith.constant 0 : index
    %137 = vector.load %arg10[%c1_86, %c1_87, %c0_88] : memref<18x18x8xf32, #tpu.memory_space<vmem>>, vector<16x16x4xf32>
    tpu.vector_store %arg10[%c1_86, %c1_87, %c0_88], %136 {strides = array<i32>} : memref<18x18x8xf32, #tpu.memory_space<vmem>>, vector<16x16x4xf32>,
    %c0_89 = arith.constant 0 : index
    %c0_90 = arith.constant 0 : index
    %c0_91 = arith.constant 0 : index
    %138 = vector.load %arg10[%c0_89, %c0_90, %c0_91] : memref<18x18x8xf32, #tpu.memory_space<vmem>>, vector<16x16x8xf32>
    %139 = vector.shape_cast %138 : vector<16x16x8xf32> to vector<256x8xf32>
    %c0_92 = arith.constant 0 : index
    %c0_93 = arith.constant 0 : index
    %140 = vector.load %arg11[%c0_92, %c0_93] : memref<256x72xf32, #tpu.memory_space<vmem>>, vector<256x8xf32>
    tpu.vector_store %arg11[%c0_92, %c0_93], %139 {strides = array<i32>} : memref<256x72xf32, #tpu.memory_space<vmem>>, vector<256x8xf32>,
    %c0_94 = arith.constant 0 : index
    %c1_95 = arith.constant 1 : index
    %c0_96 = arith.constant 0 : index
    %141 = vector.load %arg10[%c0_94, %c1_95, %c0_96] : memref<18x18x8xf32, #tpu.memory_space<vmem>>, vector<16x16x8xf32>
    %142 = vector.shape_cast %141 : vector<16x16x8xf32> to vector<256x8xf32>
    %c0_97 = arith.constant 0 : index
    %c8_98 = arith.constant 8 : index
    %143 = vector.load %arg11[%c0_97, %c8_98] : memref<256x72xf32, #tpu.memory_space<vmem>>, vector<256x8xf32>
    tpu.vector_store %arg11[%c0_97, %c8_98], %142 {strides = array<i32>} : memref<256x72xf32, #tpu.memory_space<vmem>>, vector<256x8xf32>,
    %c0_99 = arith.constant 0 : index
    %c2_100 = arith.constant 2 : index
    %c0_101 = arith.constant 0 : index
    %144 = vector.load %arg10[%c0_99, %c2_100, %c0_101] : memref<18x18x8xf32, #tpu.memory_space<vmem>>, vector<16x16x8xf32>
    %145 = vector.shape_cast %144 : vector<16x16x8xf32> to vector<256x8xf32>
    %c0_102 = arith.constant 0 : index
    %c16_103 = arith.constant 16 : index
    %146 = vector.load %arg11[%c0_102, %c16_103] : memref<256x72xf32, #tpu.memory_space<vmem>>, vector<256x8xf32>
    tpu.vector_store %arg11[%c0_102, %c16_103], %145 {strides = array<i32>} : memref<256x72xf32, #tpu.memory_space<vmem>>, vector<256x8xf32>,
    %c1_104 = arith.constant 1 : index
    %c0_105 = arith.constant 0 : index
    %c0_106 = arith.constant 0 : index
    %147 = vector.load %arg10[%c1_104, %c0_105, %c0_106] : memref<18x18x8xf32, #tpu.memory_space<vmem>>, vector<16x16x8xf32>
    %148 = vector.shape_cast %147 : vector<16x16x8xf32> to vector<256x8xf32>
    %c0_107 = arith.constant 0 : index
    %c24_108 = arith.constant 24 : index
    %149 = vector.load %arg11[%c0_107, %c24_108] : memref<256x72xf32, #tpu.memory_space<vmem>>, vector<256x8xf32>
    tpu.vector_store %arg11[%c0_107, %c24_108], %148 {strides = array<i32>} : memref<256x72xf32, #tpu.memory_space<vmem>>, vector<256x8xf32>,
    %c1_109 = arith.constant 1 : index
    %c1_110 = arith.constant 1 : index
    %c0_111 = arith.constant 0 : index
    %150 = vector.load %arg10[%c1_109, %c1_110, %c0_111] : memref<18x18x8xf32, #tpu.memory_space<vmem>>, vector<16x16x8xf32>
    %151 = vector.shape_cast %150 : vector<16x16x8xf32> to vector<256x8xf32>
    %c0_112 = arith.constant 0 : index
    %c32_113 = arith.constant 32 : index
    %152 = vector.load %arg11[%c0_112, %c32_113] : memref<256x72xf32, #tpu.memory_space<vmem>>, vector<256x8xf32>
    tpu.vector_store %arg11[%c0_112, %c32_113], %151 {strides = array<i32>} : memref<256x72xf32, #tpu.memory_space<vmem>>, vector<256x8xf32>,
    %c1_114 = arith.constant 1 : index
    %c2_115 = arith.constant 2 : index
    %c0_116 = arith.constant 0 : index
    %153 = vector.load %arg10[%c1_114, %c2_115, %c0_116] : memref<18x18x8xf32, #tpu.memory_space<vmem>>, vector<16x16x8xf32>
    %154 = vector.shape_cast %153 : vector<16x16x8xf32> to vector<256x8xf32>
    %c0_117 = arith.constant 0 : index
    %c40_118 = arith.constant 40 : index
    %155 = vector.load %arg11[%c0_117, %c40_118] : memref<256x72xf32, #tpu.memory_space<vmem>>, vector<256x8xf32>
    tpu.vector_store %arg11[%c0_117, %c40_118], %154 {strides = array<i32>} : memref<256x72xf32, #tpu.memory_space<vmem>>, vector<256x8xf32>,
    %c2_119 = arith.constant 2 : index
    %c0_120 = arith.constant 0 : index
    %c0_121 = arith.constant 0 : index
    %156 = vector.load %arg10[%c2_119, %c0_120, %c0_121] : memref<18x18x8xf32, #tpu.memory_space<vmem>>, vector<16x16x8xf32>
    %157 = vector.shape_cast %156 : vector<16x16x8xf32> to vector<256x8xf32>
    %c0_122 = arith.constant 0 : index
    %c48_123 = arith.constant 48 : index
    %158 = vector.load %arg11[%c0_122, %c48_123] : memref<256x72xf32, #tpu.memory_space<vmem>>, vector<256x8xf32>
    tpu.vector_store %arg11[%c0_122, %c48_123], %157 {strides = array<i32>} : memref<256x72xf32, #tpu.memory_space<vmem>>, vector<256x8xf32>,
    %c2_124 = arith.constant 2 : index
    %c1_125 = arith.constant 1 : index
    %c0_126 = arith.constant 0 : index
    %159 = vector.load %arg10[%c2_124, %c1_125, %c0_126] : memref<18x18x8xf32, #tpu.memory_space<vmem>>, vector<16x16x8xf32>
    %160 = vector.shape_cast %159 : vector<16x16x8xf32> to vector<256x8xf32>
    %c0_127 = arith.constant 0 : index
    %c56_128 = arith.constant 56 : index
    %161 = vector.load %arg11[%c0_127, %c56_128] : memref<256x72xf32, #tpu.memory_space<vmem>>, vector<256x8xf32>
    tpu.vector_store %arg11[%c0_127, %c56_128], %160 {strides = array<i32>} : memref<256x72xf32, #tpu.memory_space<vmem>>, vector<256x8xf32>,
    %c2_129 = arith.constant 2 : index
    %c2_130 = arith.constant 2 : index
    %c0_131 = arith.constant 0 : index
    %162 = vector.load %arg10[%c2_129, %c2_130, %c0_131] : memref<18x18x8xf32, #tpu.memory_space<vmem>>, vector<16x16x8xf32>
    %163 = vector.shape_cast %162 : vector<16x16x8xf32> to vector<256x8xf32>
    %c0_132 = arith.constant 0 : index
    %c64_133 = arith.constant 64 : index
    %164 = vector.load %arg11[%c0_132, %c64_133] : memref<256x72xf32, #tpu.memory_space<vmem>>, vector<256x8xf32>
    tpu.vector_store %arg11[%c0_132, %c64_133], %163 {strides = array<i32>} : memref<256x72xf32, #tpu.memory_space<vmem>>, vector<256x8xf32>,
    %c0_134 = arith.constant 0 : index
    %c0_135 = arith.constant 0 : index
    %165 = vector.load %arg11[%c0_134, %c0_135] : memref<256x72xf32, #tpu.memory_space<vmem>>, vector<256x72xf32>
    %166 = arith.truncf %165 : vector<256x72xf32> to vector<256x72xbf16>
    %c0_136 = arith.constant 0 : index
    %c0_137 = arith.constant 0 : index
    %167 = vector.load %arg7[%c0_136, %c0_137] : memref<72x4xbf16, #tpu.memory_space<vmem>>, vector<72x4xbf16>
    %cst_138 = arith.constant dense<0.000000e+00> : vector<256x4xf32>
    %168 = tpu.matmul %166, %167, %cst_138 {dimension_numbers = #tpu.dot_dimension_numbers<[1], [0], [0], [1], [0, 0, 1, 1], [], []>} : vector<256x72xbf16>, vector<72x4xbf16>, vector<256x4xf32> -> vector<256x4xf32>
    %c0_139 = arith.constant 0 : index
    %c0_140 = arith.constant 0 : index
    %169 = vector.load %arg8[%c0_139, %c0_140] : memref<1x4xf32, #tpu.memory_space<vmem>>, vector<1x4xf32>
    %170 = vector.broadcast %169 : vector<1x4xf32> to vector<256x4xf32>
    %171 = arith.addf %168, %170 : vector<256x4xf32>
    %cst_141 = arith.constant 0.000000e+00 : f32
    %172 = vector.broadcast %cst_141 : f32 to vector<256x4xf32>
    %173 = arith.cmpf oge, %171, %172 : vector<256x4xf32>
    %cst_142 = arith.constant 2.000000e-01 : f32
    %174 = vector.broadcast %cst_142 : f32 to vector<256x4xf32>
    %175 = arith.mulf %174, %171 : vector<256x4xf32>
    %176 = arith.select %173, %171, %175 : vector<256x4xi1>, vector<256x4xf32>
    %177 = arith.addf %176, %135 : vector<256x4xf32>
    %178 = vector.shape_cast %177 : vector<256x4xf32> to vector<16x16x4xf32>
    %c0_143 = arith.constant 0 : index
    %c0_144 = arith.constant 0 : index
    %c0_145 = arith.constant 0 : index
    %c0_146 = arith.constant 0 : index
    %179 = vector.load %arg9[%c0_143, %c0_144, %c0_145, %c0_146] : memref<1x16x16x4xf32, #tpu.memory_space<vmem>>, vector<1x16x16x4xf32>
    %180 = vector.shape_cast %179 : vector<1x16x16x4xf32> to vector<16x16x4xf32>
    %181 = vector.shape_cast %178 : vector<16x16x4xf32> to vector<1x16x16x4xf32>
    tpu.vector_store %arg9[%c0_143, %c0_144, %c0_145, %c0_146], %181 {strides = array<i32>} : memref<1x16x16x4xf32, #tpu.memory_space<vmem>>, vector<1x16x16x4xf32>,
    return
  }
  func.func @transform_0(%arg0: i32) -> (i32, i32, i32, i32) {
    %c0_i32 = arith.constant 0 : i32
    %c0_i32_0 = arith.constant 0 : i32
    %c0_i32_1 = arith.constant 0 : i32
    %c0_i32_2 = arith.constant 0 : i32
    return %arg0, %c0_i32, %c0_i32_0, %c0_i32_1 : i32, i32, i32, i32
  }
  func.func @transform_1(%arg0: i32) -> (i32, i32, i32, i32) {
    %c0_i32 = arith.constant 0 : i32
    %c0_i32_0 = arith.constant 0 : i32
    %c0_i32_1 = arith.constant 0 : i32
    %c0_i32_2 = arith.constant 0 : i32
    return %arg0, %c0_i32, %c0_i32_0, %c0_i32_1 : i32, i32, i32, i32
  }
  func.func @transform_2(%arg0: i32) -> (i32, i32) {
    %c0_i32 = arith.constant 0 : i32
    %c0_i32_0 = arith.constant 0 : i32
    %c0_i32_1 = arith.constant 0 : i32
    return %c0_i32, %c0_i32_0 : i32, i32
  }
  func.func @transform_3(%arg0: i32) -> (i32, i32) {
    %c0_i32 = arith.constant 0 : i32
    %c0_i32_0 = arith.constant 0 : i32
    %c0_i32_1 = arith.constant 0 : i32
    return %c0_i32, %c0_i32_0 : i32, i32
  }
  func.func @transform_4(%arg0: i32) -> (i32, i32) {
    %c0_i32 = arith.constant 0 : i32
    %c0_i32_0 = arith.constant 0 : i32
    %c0_i32_1 = arith.constant 0 : i32
    return %c0_i32, %c0_i32_0 : i32, i32
  }
  func.func @transform_5(%arg0: i32) -> (i32, i32) {
    %c0_i32 = arith.constant 0 : i32
    %c0_i32_0 = arith.constant 0 : i32
    %c0_i32_1 = arith.constant 0 : i32
    return %c0_i32, %c0_i32_0 : i32, i32
  }
  func.func @transform_6(%arg0: i32) -> (i32, i32) {
    %c0_i32 = arith.constant 0 : i32
    %c0_i32_0 = arith.constant 0 : i32
    %c0_i32_1 = arith.constant 0 : i32
    return %c0_i32, %c0_i32_0 : i32, i32
  }
  func.func @transform_7(%arg0: i32) -> (i32, i32) {
    %c0_i32 = arith.constant 0 : i32
    %c0_i32_0 = arith.constant 0 : i32
    %c0_i32_1 = arith.constant 0 : i32
    return %c0_i32, %c0_i32_0 : i32, i32
  }
  func.func @transform_8(%arg0: i32) -> (i32, i32, i32, i32) {
    %c0_i32 = arith.constant 0 : i32
    %c0_i32_0 = arith.constant 0 : i32
    %c0_i32_1 = arith.constant 0 : i32
    %c0_i32_2 = arith.constant 0 : i32
    return %arg0, %c0_i32, %c0_i32_0, %c0_i32_1 : i32, i32, i32, i32
  }
}

</mosaic_0001>

<bundles_post_ra>
// kernel: tpu_custom_call.1
= control target key start
LH: loop header
LB: loop body
LE: loop exit
PB: predicated region body
PF: predicated region fallthrough
CT: control target
= control target key end

     0   :  { %s6682_s27 = smov 0   ;;  %s9588_s0 = inlined_call_operand.vmem [shape: f32[2,8,8,8], index: 0, kind: input, shape index: {}]   ;;  %s9589_s1 = inlined_call_operand.vmem [shape: bf16[2,16,16,4], index: 1, kind: input, shape index: {}]   ;;  %s9590_s2 = inlined_call_operand.vmem [shape: bf16[8,16], index: 2, kind: input, shape index: {}]   ;;  %s9591_s3 = inlined_call_operand.vmem [shape: f32[1,16], index: 3, kind: input, shape index: {}]   ;;  %s9592_s4 = inlined_call_operand.vmem [shape: bf16[72,8], index: 4, kind: input, shape index: {}]   ;;  %s9593_s5 = inlined_call_operand.vmem [shape: f32[1,8], index: 5, kind: input, shape index: {}]   ;;  %s9594_s6 = inlined_call_operand.vmem [shape: bf16[72,4], index: 6, kind: input, shape index: {}]   ;;  %s9595_s7 = inlined_call_operand.vmem [shape: f32[1,4], index: 7, kind: input, shape index: {}]   ;;  %s9596_s8 = inlined_call_operand.vmem [shape: f32[2,16,16,4], index: 8, kind: output, shape index: {}]  }
   0x1 LB: > { %s6213_s28 = sadd.s32 4294967295, %s6620_s27   ;;  %p6217_p0 = scmp.ge.s32.totalorder %s6620_s27, 1  ;;  %s6620_s27 = sphi %s6682_s27, %s18_s27  }
   0x2   : > { %p272_p1 = scmp.lt.s32.totalorder %s6620_s27, 3 }
   0x4   : > { %p273_p2 = pnand %p6217_p0, %p272_p1 }
   0x6   : > { %276 = sbr.rel (%p273_p2) target bundleno = 2026 (0x7ea), region = 52 }
   0xd   : > { %v385_v0 = vld [vmem:[%s9590_s2] sm:$0xf]  ;;  %vm405_vm0 = vcmask 1043456   ;;  %p311_p3 = scmp.lt.s32.totalorder %s6213_s28, 1  ;;  %vm327_vm1 = vcmask 64512   ;;  %s6622_s17 = smov 4  }
   0xe   : > { %6498 = vmatprep.subr.msk.bf16.mxu0 %vm405_vm0, %v385_v0  ;;  %v407_v1 = vsel %vm405_vm0, %v385_v0, 0  ;;  %vm330_vm2 = vcmask 58368   ;;  %vm336_vm3 = vcmask 57344   ;;  %s6624_s18 = smov 8   ;;  %s6625_s19 = smov 16   ;;  %vm2138_vm4 = vcmask 130112  }
   0xf   : > { %6405 = vmatpush3.bf16.msra.mxu0 %v407_v1  ;;  %s9708_s28 = smov (!%p311_p3, %s6213_s28), 1  ;;  %vm2331_vm5 = vcmask 195712   ;;  %s6628_s22 = smov 124   ;;  %vm1656_vm7 = vcmask 31744   ;;  %vm1881_vm8 = vcmask 64544   ;;  %vm2524_vm10 = vcmask 261312  }
  0x10   : > { %s6275_s9 = sshll.u32 %s9708_s28, 6  ;;  %s6276_s10 = sshll.u32 %s9708_s28, 7  ;;  %vm2717_vm11 = vcmask 326912   ;;  %vm2910_vm12 = vcmask 392512   ;;  %vm3104_vm13 = vcmask 458112   ;;  %vm3297_vm14 = vcmask 523712  }
  0x11   : > { %s315_s13 = scalar_lea.vmem %s9588_s0, %s6275_s9  ;;  %s6705_s16 = scalar_lea.vmem %s9589_s1, %s6276_s10  ;;  %vm3490_vm15 = vcmask 589312  }
  0x12   : > { %v373_v2 = vld [vmem:[%s315_s13] sm:$0xff]  ;;  %v374_v3 = vld [vmem:[%s315_s13 + $0x8] sm:$0xff]  ;;  %v375_v4 = vld [vmem:[%s315_s13 + $0x10] sm:$0xff]  ;;  %s6629_s23 = smov 120   ;;  %s6630_s24 = smov 116  }
  0x13   : > { %v381_v5 = vpack.c.bf16 %v374_v3, %v373_v2  ;;  %v376_v6 = vld [vmem:[%s315_s13 + $0x18] sm:$0xff]  ;;  %v377_v7 = vld [vmem:[%s315_s13 + $0x20] sm:$0xff]  ;;  %v378_v8 = vld [vmem:[%s315_s13 + $0x28] sm:$0xff]  ;;  %s6631_s25 = smov 24   ;;  %s6632_s26 = smov 32  }
  0x14   : > { %v382_v9 = vpack.c.bf16 %v376_v6, %v375_v4  ;;  %v383_v10 = vpack.c.bf16 %v378_v8, %v377_v7  ;;  %v6279_v11 = vld [vmem:[%s6705_s16] sm:$0xff]   ;;  %v6342_v14 = vld [vmem:[%s6705_s16 + $0x8] sm:$0xff]   ;;  %v6343_v15 = vld [vmem:[%s6705_s16 + $0x10] sm:$0xff]   ;;  %s6633_s29 = smov 40   ;;  %s6634_s30 = smov 48  }
  0x15   : > { %6406 = vmatprep.mubr.msk.bf16.mxu0 %vm327_vm1, %v381_v5  ;;  %v6280_v12 = vunpack.c.l.bf16 %v6279_v11  ;;  %v6281_v13 = vunpack.c.h.bf16 %v6279_v11  ;;  %v6344_v16 = vld [vmem:[%s6705_s16 + $0x18] sm:$0xff]   ;;  %v6284_v17 = vunpack.c.l.bf16 %v6342_v14  ;;  %v6285_v18 = vunpack.c.h.bf16 %v6342_v14  ;;  %v6345_v21 = vld [vmem:[%s6705_s16 + $0x20] sm:$0xff]   ;;  %v379_v22 = vld [vmem:[%s315_s13 + $0x30] sm:$0xff]  ;;  %s6635_s9 = smov 56  }
  0x16   : > { %6407 = vmatmul.mubr.msk.bf16.vlgmr.msra.gmra.mrb[0].mxu0 %vm327_vm1, %v382_v9  ;;  %v6288_v19 = vunpack.c.l.bf16 %v6343_v15  ;;  %v6289_v20 = vunpack.c.h.bf16 %v6343_v15  ;;  %v380_v23 = vld [vmem:[%s315_s13 + $0x38] sm:$0xff]  ;;  %v6292_v25 = vunpack.c.l.bf16 %v6344_v16  ;;  %v6293_v26 = vunpack.c.h.bf16 %v6344_v16  ;;  %v6346_v27 = vld [vmem:[%s6705_s16 + $0x28] sm:$0xff]   ;;  %v6347_v36 = vld [vmem:[%s6705_s16 + $0x30] sm:$0xff]  }
  0x17   : > { %6410 = vmatprep.mubr.msk.bf16.mxu0 %vm327_vm1, %v383_v10  ;;  %v6524_v24 = vpack.i.bf16 %v6281_v13, %v6280_v12  ;;  %v6529_v28 = vpack.i.bf16 %v6285_v18, %v6284_v17  ;;  %v6296_v30 = vunpack.c.l.bf16 %v6345_v21  ;;  %v6297_v31 = vunpack.c.h.bf16 %v6345_v21  ;;  %v6348_v37 = vld [vmem:[%s6705_s16 + $0x38] sm:$0xff]   ;;  %v6349_v44 = vld [vmem:[%s6705_s16 + $0x40] sm:$0xff]   ;;  %v6350_v45 = vld [vmem:[%s6705_s16 + $0x48] sm:$0xff]  }
  0x18   : > { %v6534_v29 = vpack.i.bf16 %v6289_v20, %v6288_v19  ;;  %v384_v32 = vpack.c.bf16 %v380_v23, %v379_v22  ;;  %v6539_v33 = vpack.i.bf16 %v6293_v26, %v6292_v25  ;;  %v6300_v34 = vunpack.c.l.bf16 %v6346_v27  ;;  %v6351_v52 = vld [vmem:[%s6705_s16 + $0x50] sm:$0xff]   ;;  %v6352_v58 = vld [vmem:[%s6705_s16 + $0x58] sm:$0xff]   ;;  %v6353_v62 = vld [vmem:[%s6705_s16 + $0x60] sm:$0xff]  }
  0x19   : > { %6525 = vrot.lane.b32.xlu0 %v6524_v24, %s6622_s17  ;;  %6530 = vrot.lane.b32.xlu1 %v6529_v28, %s6622_s17  ;;  %v6301_v35 = vunpack.c.h.bf16 %v6346_v27  ;;  %v6544_v38 = vpack.i.bf16 %v6297_v31, %v6296_v30  ;;  %v6304_v39 = vunpack.c.l.bf16 %v6347_v36  ;;  %v6305_v40 = vunpack.c.h.bf16 %v6347_v36  ;;  %v6354_v2 = vld [vmem:[%s6705_s16 + $0x68] sm:$0xff]   ;;  %v6355_v5 = vld [vmem:[%s6705_s16 + $0x70] sm:$0xff]  }
  0x1a   : > { %v6308_v42 = vunpack.c.l.bf16 %v6348_v37  ;;  %v6309_v43 = vunpack.c.h.bf16 %v6348_v37  ;;  %v6312_v47 = vunpack.c.l.bf16 %v6349_v44  ;;  %v6313_v48 = vunpack.c.h.bf16 %v6349_v44  ;;  %v6356_v10 = vld [vmem:[%s6705_s16 + $0x78] sm:$0xff]  }
  0x1b   : > { %v6549_v41 = vpack.i.bf16 %v6301_v35, %v6300_v34  ;;  %v6554_v46 = vpack.i.bf16 %v6305_v40, %v6304_v39  ;;  %v6316_v50 = vunpack.c.l.bf16 %v6350_v45  ;;  %v6317_v51 = vunpack.c.h.bf16 %v6350_v45  ;;  %v6814_v35 = vld [vmem:[%s9591_s3] ss:$0 sm:$0xff] }
  0x1c   : > { %v6559_v49 = vpack.i.bf16 %v6309_v43, %v6308_v42  ;;  %v6564_v53 = vpack.i.bf16 %v6313_v48, %v6312_v47  ;;  %v6320_v54 = vunpack.c.l.bf16 %v6351_v52  ;;  %v6321_v55 = vunpack.c.h.bf16 %v6351_v52 }
  0x1d   : > { %6535 = vrot.lane.b32.xlu0 %v6534_v29, %s6622_s17  ;;  %6540 = vrot.lane.b32.xlu1 %v6539_v33, %s6622_s17  ;;  %v6569_v56 = vpack.i.bf16 %v6317_v51, %v6316_v50  ;;  %v6324_v59 = vunpack.c.l.bf16 %v6352_v58  ;;  %v6325_v60 = vunpack.c.h.bf16 %v6352_v58  ;;  %v6328_v63 = vunpack.c.l.bf16 %v6353_v62 }
  0x1e   : > { %6411 = vmatmul.mubr.msk.bf16.gmra.mrb[4].mxu0 %vm327_vm1, %v384_v32  ;;  %v6574_v57 = vpack.i.bf16 %v6321_v55, %v6320_v54  ;;  %v6329_v0 = vunpack.c.h.bf16 %v6353_v62  ;;  %v6332_v3 = vunpack.c.l.bf16 %v6354_v2  ;;  %v6333_v4 = vunpack.c.h.bf16 %v6354_v2 }
  0x1f   : > { %v6579_v61 = vpack.i.bf16 %v6325_v60, %v6324_v59  ;;  %v6336_v7 = vunpack.c.l.bf16 %v6355_v5  ;;  %v6337_v8 = vunpack.c.h.bf16 %v6355_v5  ;;  %v6623_v9 = vmov 0.0  }
  0x20   : > { %v6584_v1 = vpack.i.bf16 %v6329_v0, %v6328_v63  ;;  %v6589_v6 = vpack.i.bf16 %v6333_v4, %v6332_v3  ;;  %328 = vst.msk [vmem:[#allocation2] sm:$0xff] %vm327_vm1, %v6623_v9  ;;  %329 = vst.msk [vmem:[#allocation2 + $0x8] sm:$0xff] %vm327_vm1, %v6623_v9  ;;  %v6340_v12 = vunpack.c.l.bf16 %v6356_v10  ;;  %v6341_v13 = vunpack.c.h.bf16 %v6356_v10 }
  0x21   : > { %6545 = vrot.lane.b32.xlu0 %v6544_v38, %s6622_s17  ;;  %6550 = vrot.lane.b32.xlu1 %v6549_v41, %s6622_s17  ;;  %333 = vst.msk [vmem:[#allocation2 + $0x198] sm:$0xff] %vm327_vm1, %v6623_v9  ;;  %334 = vst.msk [vmem:[#allocation2 + $0x1a0] sm:$0xff] %vm327_vm1, %v6623_v9  ;;  %v6594_v11 = vpack.i.bf16 %v6337_v8, %v6336_v7  ;;  %v474_v27 = vlaneseq  ;;  %v6626_v28 = vmov 1966171168  }
  0x22   : > { %331 = vst.msk [vmem:[#allocation2 + $0x10] sm:$0x3] %vm330_vm2, %v6623_v9  ;;  %335 = vst.msk [vmem:[#allocation2 + $0x1a8] sm:$0x3] %vm330_vm2, %v6623_v9  ;;  %v6599_v14 = vpack.i.bf16 %v6341_v13, %v6340_v12  ;;  %v513_v29 = vunpack.c.l.s4 %v6626_v28  ;;  %vm3614_vm2 = vcmask 588800  }
  0x23   : > { %355 = vst.msk [vmem:[#allocation2 + $0x11] sm:$0x1] %vm336_vm3, %v6623_v9  ;;  %337 = vst.msk [vmem:[#allocation2] sm:$0x1] %vm336_vm3, %v6623_v9  ;;  %v6807_v32 = vshrl.u32 %v474_v27, 7 }
  0x24   : > { %338 = vst.msk [vmem:[#allocation2 + $0x18] sm:$0x1] %vm336_vm3, %v6623_v9  ;;  %339 = vst.msk [vmem:[#allocation2 + $0x30] sm:$0x1] %vm336_vm3, %v6623_v9  ;;  %v514_v33 = vunpack.c.0.s8 %v513_v29 }
  0x25   : > { %6555 = vrot.lane.b32.xlu0 %v6554_v46, %s6622_s17  ;;  %6560 = vrot.lane.b32.xlu1 %v6559_v49, %s6622_s17  ;;  %340 = vst.msk [vmem:[#allocation2 + $0x48] sm:$0x1] %vm336_vm3, %v6623_v9  ;;  %341 = vst.msk [vmem:[#allocation2 + $0x60] sm:$0x1] %vm336_vm3, %v6623_v9  ;;  %v6843_v4 = vsub.s32 0, %v6807_v32 }
  0x26   : > { %342 = vst.msk [vmem:[#allocation2 + $0x78] sm:$0x1] %vm336_vm3, %v6623_v9  ;;  %343 = vst.msk [vmem:[#allocation2 + $0x90] sm:$0x1] %vm336_vm3, %v6623_v9  ;;  %v6817_v38 = vsub.s32 %v514_v33, %v6807_v32 }
  0x27   : > { %344 = vst.msk [vmem:[#allocation2 + $0xa8] sm:$0x1] %vm336_vm3, %v6623_v9  ;;  %345 = vst.msk [vmem:[#allocation2 + $0xc0] sm:$0x1] %vm336_vm3, %v6623_v9  ;;  %v1978_v15 = vld [vmem:[#allocation2 + $0x1] sm:$0xff] }
  0x28   : > { %346 = vst.msk [vmem:[#allocation2 + $0xd8] sm:$0x1] %vm336_vm3, %v6623_v9  ;;  %347 = vst.msk [vmem:[#allocation2 + $0xf0] sm:$0x1] %vm336_vm3, %v6623_v9  ;;  %v2171_v17 = vld [vmem:[#allocation2 + $0x2] sm:$0xff] }
  0x29   : > { %6565 = vrot.lane.b32.xlu0 %v6564_v53, %s6622_s17  ;;  %6570 = vrot.lane.b32.xlu1 %v6569_v56, %s6622_s17  ;;  %348 = vst.msk [vmem:[#allocation2 + $0x108] sm:$0x1] %vm336_vm3, %v6623_v9  ;;  %349 = vst.msk [vmem:[#allocation2 + $0x120] sm:$0x1] %vm336_vm3, %v6623_v9  ;;  %v1979_v16 = vld [vmem:[#allocation2 + $0x9] sm:$0xff] }
  0x2a   : > { %350 = vst.msk [vmem:[#allocation2 + $0x138] sm:$0x1] %vm336_vm3, %v6623_v9  ;;  %351 = vst.msk [vmem:[#allocation2 + $0x150] sm:$0x1] %vm336_vm3, %v6623_v9  ;;  %v2172_v18 = vld [vmem:[#allocation2 + $0xa] sm:$0xff]  ;;  %v1914_v36 = vld [vmem:[#allocation2] sm:$0xff] }
  0x2b   : > { %352 = vst.msk [vmem:[#allocation2 + $0x168] sm:$0x1] %vm336_vm3, %v6623_v9  ;;  %353 = vst.msk [vmem:[#allocation2 + $0x180] sm:$0x1] %vm336_vm3, %v6623_v9  ;;  %v1915_v37 = vld [vmem:[#allocation2 + $0x8] sm:$0xff] }
  0x2c   : > { %354 = vst.msk [vmem:[#allocation2 + $0x198] sm:$0x1] %vm336_vm3, %v6623_v9  ;;  %356 = vst.msk [vmem:[#allocation2 + $0x29] sm:$0x1] %vm336_vm3, %v6623_v9 }
  0x2d   : > { %6575 = vrot.lane.b32.xlu0 %v6574_v57, %s6622_s17  ;;  %6580 = vrot.lane.b32.xlu1 %v6579_v61, %s6622_s17  ;;  %357 = vst.msk [vmem:[#allocation2 + $0x41] sm:$0x1] %vm336_vm3, %v6623_v9  ;;  %358 = vst.msk [vmem:[#allocation2 + $0x59] sm:$0x1] %vm336_vm3, %v6623_v9  ;;  %v6627_v57 = vmov 1983009808  }
  0x2e   : > { %359 = vst.msk [vmem:[#allocation2 + $0x71] sm:$0x1] %vm336_vm3, %v6623_v9  ;;  %360 = vst.msk [vmem:[#allocation2 + $0x89] sm:$0x1] %vm336_vm3, %v6623_v9  ;;  %v1162_v58 = vunpack.c.l.s4 %v6627_v57 }
  0x2f   : > { %361 = vst.msk [vmem:[#allocation2 + $0xa1] sm:$0x1] %vm336_vm3, %v6623_v9  ;;  %362 = vst.msk [vmem:[#allocation2 + $0xb9] sm:$0x1] %vm336_vm3, %v6623_v9 }
  0x30   : > { %363 = vst.msk [vmem:[#allocation2 + $0xd1] sm:$0x1] %vm336_vm3, %v6623_v9  ;;  %364 = vst.msk [vmem:[#allocation2 + $0xe9] sm:$0x1] %vm336_vm3, %v6623_v9 }
  0x31   : > { %6585 = vrot.lane.b32.xlu0 %v6584_v1, %s6622_s17  ;;  %6590 = vrot.lane.b32.xlu1 %v6589_v6, %s6622_s17  ;;  %365 = vst.msk [vmem:[#allocation2 + $0x101] sm:$0x1] %vm336_vm3, %v6623_v9  ;;  %366 = vst.msk [vmem:[#allocation2 + $0x119] sm:$0x1] %vm336_vm3, %v6623_v9 }
  0x32   : > { %367 = vst.msk [vmem:[#allocation2 + $0x131] sm:$0x1] %vm336_vm3, %v6623_v9  ;;  %368 = vst.msk [vmem:[#allocation2 + $0x149] sm:$0x1] %vm336_vm3, %v6623_v9 }
  0x33   : > { %369 = vst.msk [vmem:[#allocation2 + $0x161] sm:$0x1] %vm336_vm3, %v6623_v9  ;;  %370 = vst.msk [vmem:[#allocation2 + $0x179] sm:$0x1] %vm336_vm3, %v6623_v9 }
  0x34   : > { %371 = vst.msk [vmem:[#allocation2 + $0x191] sm:$0x1] %vm336_vm3, %v6623_v9  ;;  %372 = vst.msk [vmem:[#allocation2 + $0x1a9] sm:$0x1] %vm336_vm3, %v6623_v9  ;;  %v1163_v9 = vunpack.c.0.s8 %v1162_v58 }
  0x35   : > { %6595 = vrot.lane.b32.xlu0 %v6594_v11, %s6622_s17  ;;  %6600 = vrot.lane.b32.xlu1 %v6599_v14, %s6622_s17  ;;  %1946 = vst.msk [vmem:[#allocation3] sm:$0xff] %vm327_vm1, %v1914_v36  ;;  %1947 = vst.msk [vmem:[#allocation3 + $0x8] sm:$0xff] %vm327_vm1, %v1915_v37 }
  0x39   : > { %2042 = vrot.lane.b32.xlu0 %v1978_v15, %s6624_s18  ;;  %2044 = vrot.lane.b32.xlu1 %v1979_v16, %s6624_s18 }
  0x3d   : > { %2235 = vrot.lane.b32.xlu0 %v2171_v17, %s6625_s19  ;;  %2237 = vrot.lane.b32.xlu1 %v2172_v18, %s6625_s19 }
  0x8b   : > { %v6787_v19 = vpop.permute.xlu0 %6525  ;;  %v6789_v20 = vpop.permute.xlu1 %6530 }
  0x8f   : > { %v6791_v21 = vpop.permute.xlu0 %6535  ;;  %v6793_v22 = vpop.permute.xlu1 %6540 }
  0x93   : > { %v6795_v23 = vpop.permute.xlu0 %6545  ;;  %v6797_v24 = vpop.permute.xlu1 %6550 }
  0x97   : > { %v6799_v25 = vpop.permute.xlu0 %6555  ;;  %v6801_v26 = vpop.permute.xlu1 %6560 }
  0x9b   : > { %v6803_v30 = vpop.permute.xlu0 %6565  ;;  %v6805_v31 = vpop.permute.xlu1 %6570 }
  0x9f   : > { %v6809_v34 = vpop.permute.xlu0 %6575  ;;  %v6819_v39 = vpop.permute.xlu1 %6580 }
  0xa3   : > { %v6824_v43 = vpop.permute.xlu0 %6585  ;;  %v6830_v53 = vpop.permute.xlu1 %6590 }
  0xa7   : > { %v6837_v63 = vpop.permute.xlu0 %6595  ;;  %v6847_v6 = vpop.permute.xlu1 %6600 }
  0xab   : > { %v2043_v16 = vpop.permute.xlu0 %2042 }
  0xac   : > { %2139 = vst.msk [vmem:[#allocation3] sm:$0xff] %vm2138_vm4, %v2043_v16 }
  0xe9   : > { %v6408_v40 = vpop.f32.mrb[0].mxu0 }
  0xea   : > { %v452_v41 = vadd.f32 %v6408_v40, %v6814_v35  ;;  %v443_v42 = vpop.f32.mrb[1].mxu0  ;;  %v2045_v40 = vpop.permute.xlu1 %2044 }
  0xeb   : > { %v444_v44 = vadd.f32 %v6814_v35, %v443_v42  ;;  %v6409_v45 = vpop.f32.mrb[2].mxu0  ;;  %2140 = vst.msk [vmem:[#allocation3 + $0x8] sm:$0xff] %vm2138_vm4, %v2045_v40 }
  0xec   : > { %v609_v46 = vcombine.high %v452_v41, %v452_v41  ;;  %v616_v47 = vrot.slane %v452_v41, %v6817_v38  ;;  %v446_v48 = vpop.f32.mrb[3].mxu0  ;;  %v455_v56 = vadd.f32 %v6409_v45, %v6814_v35  ;;  %v6869_v45 = vsub.s32 %v1163_v9, %v6807_v32 }
  0xed   : > { %v511_v49 = vcombine.high %v444_v44, %v444_v44  ;;  %v518_v50 = vrot.slane %v444_v44, %v6817_v38  ;;  %v447_v37 = vadd.f32 %v6814_v35, %v446_v48  ;;  %v2236_v48 = vpop.permute.xlu0 %2235 }
  0xee   : > { %v623_v51 = vrot.slane %v609_v46, %v6817_v38  ;;  %v624_v52 = vcombine.high %v616_v47, %v616_v47  ;;  %v632_v54 = vrot.slane %v616_v47, %v6817_v38  ;;  %v658_v14 = vcombine.high %v455_v56, %v455_v56  ;;  %2332 = vst.msk [vmem:[#allocation3] sm:$0xff] %vm2331_vm5, %v2236_v48 }
  0xef   : > { %v525_v55 = vrot.slane %v511_v49, %v6817_v38  ;;  %v526_v62 = vcombine.high %v518_v50, %v518_v50  ;;  %v534_v8 = vrot.slane %v518_v50, %v6817_v38  ;;  %v665_v28 = vrot.slane %v455_v56, %v6817_v38 }
  0xf0   : > { %v625_v59 = vcombine.high %v623_v51, %v623_v51  ;;  %v639_v60 = vrot.slane %v623_v51, %v6817_v38  ;;  %v646_v61 = vrot.slane %v624_v52, %v6817_v38  ;;  %v654_v7 = vcombine.high %v632_v54, %v632_v54 }
  0xf1   : > { %v527_v0 = vcombine.high %v525_v55, %v525_v55  ;;  %v6839_v1 = vpop.f32.mrb[4].mxu0  ;;  %v548_v13 = vrot.slane %v526_v62, %v6817_v38  ;;  %v541_v18 = vrot.slane %v525_v55, %v6817_v38  ;;  %v970_v29 = vrot.slane %v632_v54, %v6843_v4 }
  0xf2   : > { %v653_v2 = vrot.slane %v625_v59, %v6817_v38  ;;  %v656_v3 = vcombine.high %v646_v61, %v646_v61  ;;  %v6845_v5 = vpop.f32.mrb[5].mxu0  ;;  %v655_v11 = vcombine.high %v639_v60, %v639_v60  ;;  %v974_v12 = vrot.slane %v646_v61, %v6843_v4 }
  0xf3   : > { %v6850_v10 = vpop.f32.mrb[6].mxu0  ;;  %v555_v27 = vrot.slane %v527_v0, %v6817_v38  ;;  %v978_v41 = vrot.slane %v654_v7, %v6843_v4  ;;  %v986_v42 = vrot.slane %v639_v60, %v6843_v4  ;;  %v556_v44 = vcombine.high %v534_v8, %v534_v8  ;;  %v2238_v60 = vpop.permute.xlu1 %2237 }
  0xf4   : > { %v6854_v15 = vpop.f32.mrb[7].mxu0  ;;  %v657_v17 = vcombine.high %v653_v2, %v653_v2  ;;  %v6862_v33 = vrot.slane %v656_v3, %v6843_v4  ;;  %v990_v36 = vrot.slane %v653_v2, %v6843_v4  ;;  %v6873_v46 = vrot.slane %v655_v11, %v6843_v4  ;;  %2333 = vst.msk [vmem:[#allocation3 + $0x8] sm:$0xff] %vm2331_vm5, %v2238_v60 }
  0xf5   : > { %v6875_v47 = vcombine.low %v970_v29, %v974_v12  ;;  %v558_v49 = vcombine.high %v548_v13, %v548_v13  ;;  %v672_v50 = vrot.slane %v658_v14, %v6817_v38  ;;  %v557_v52 = vcombine.high %v541_v18, %v541_v18 }
  0xf6   : > { %v6879_v51 = vrot.slane %v657_v17, %v6843_v4  ;;  %v559_v54 = vcombine.high %v555_v27, %v555_v27  ;;  %v673_v55 = vcombine.high %v665_v28, %v665_v28  ;;  %v1228_v56 = vcombine.low %v978_v41, %v6862_v33 }
  0xf7   : > { %v6883_v57 = vcombine.low %v986_v42, %v990_v36  ;;  %v681_v58 = vrot.slane %v665_v28, %v6817_v38  ;;  %v560_v59 = vcombine.high %v447_v37, %v447_v37  ;;  %v910_v61 = vrot.slane %v548_v13, %v6843_v4 }
  0xf8   : > { %v674_v62 = vcombine.high %v672_v50, %v672_v50  ;;  %v688_v0 = vrot.slane %v672_v50, %v6817_v38  ;;  %v567_v2 = vrot.slane %v447_v37, %v6817_v38  ;;  %v918_v3 = vrot.slane %v558_v49, %v6843_v4 }
  0xf9   : > { %v926_v7 = vrot.slane %v555_v27, %v6843_v4  ;;  %v695_v9 = vrot.slane %v673_v55, %v6817_v38  ;;  %v574_v11 = vrot.slane %v560_v59, %v6817_v38  ;;  %v906_v12 = vrot.slane %v534_v8, %v6843_v4 }
  0xfa   : > { %v914_v14 = vrot.slane %v556_v44, %v6843_v4  ;;  %v922_v13 = vrot.slane %v541_v18, %v6843_v4  ;;  %v575_v16 = vcombine.high %v567_v2, %v567_v2  ;;  %v6898_v17 = vrot.slane %v557_v52, %v6843_v4 }
  0xfb   : > { %v6901_v28 = vrot.slane %v559_v54, %v6843_v4  ;;  %v703_v29 = vcombine.high %v681_v58, %v681_v58  ;;  %v576_v33 = vcombine.high %v574_v11, %v574_v11  ;;  %v6903_v27 = vcombine.low %v906_v12, %v910_v61 }
  0xfc   : > { %v702_v36 = vrot.slane %v674_v62, %v6817_v38  ;;  %v704_v37 = vcombine.high %v688_v0, %v688_v0  ;;  %v583_v8 = vrot.slane %v567_v2, %v6817_v38  ;;  %v1160_v40 = vcombine.low %v914_v14, %v918_v3 }
  0xfd   : > { %v6907_v41 = vcombine.low %v922_v13, %v926_v7  ;;  %v705_v18 = vcombine.high %v695_v9, %v695_v9  ;;  %v597_v42 = vrot.slane %v575_v16, %v6817_v38  ;;  %v1002_v44 = vrot.slane %v681_v58, %v6843_v4 }
  0xfe   : > { %v1018_v49 = vrot.slane %v688_v0, %v6843_v4  ;;  %v590_v50 = vrot.slane %v574_v11, %v6817_v38  ;;  %v604_v48 = vrot.slane %v576_v33, %v6817_v38  ;;  %v1006_v52 = vrot.slane %v695_v9, %v6843_v4 }
  0xff   : > { %v1010_v54 = vrot.slane %v703_v29, %v6843_v4  ;;  %v605_v55 = vcombine.high %v583_v8, %v583_v8  ;;  %v607_v59 = vcombine.high %v597_v42, %v597_v42  ;;  %v706_v60 = vcombine.high %v702_v36, %v702_v36 }
 0x100   : > { %v1022_v61 = vrot.slane %v702_v36, %v6843_v4  ;;  %v1026_v62 = vrot.slane %v704_v37, %v6843_v4  ;;  %v942_v2 = vrot.slane %v597_v42, %v6843_v4  ;;  %v1014_v58 = vrot.slane %v705_v18, %v6843_v4 }
 0x101   : > { %v950_v0 = vrot.slane %v607_v59, %v6843_v4  ;;  %v1235_v3 = vrot.slane %v6875_v47, %v6869_v45  ;;  %v1242_v7 = vrot.slane %v1228_v56, %v6869_v45  ;;  %v606_v9 = vcombine.high %v590_v50, %v590_v50 }
 0x102   : > { %v608_v11 = vcombine.high %v604_v48, %v604_v48  ;;  %v938_v12 = vrot.slane %v583_v8, %v6843_v4  ;;  %v1245_v14 = vcombine.low %v6873_v46, %v6879_v51  ;;  %v1261_v13 = vcombine.low %v1002_v44, %v1006_v52 }
 0x103   : > { %v946_v16 = vrot.slane %v605_v55, %v6843_v4  ;;  %v958_v29 = vrot.slane %v604_v48, %v6843_v4  ;;  %v6929_v33 = vcombine.low %v1235_v3, %v1242_v7  ;;  %v1030_v36 = vrot.slane %v706_v60, %v6843_v4 }
 0x104   : > { %v1193_v37 = vcombine.low %v938_v12, %v942_v2  ;;  %v1252_v47 = vrot.slane %v6883_v57, %v6869_v45  ;;  %v1259_v56 = vrot.slane %v1245_v14, %v6869_v45  ;;  %v1262_v18 = vcombine.low %v1010_v54, %v1014_v58 }
 0x105   : > { %v1278_v8 = vcombine.low %v1018_v49, %v1022_v61  ;;  %v954_v42 = vrot.slane %v590_v50, %v6843_v4  ;;  %v1194_v46 = vcombine.low %v946_v16, %v950_v0  ;;  %1455 = vrot.lane.b32.xlu0 %v6929_v33, %s6628_s22  ;;  %v962_v51 = vrot.slane %v606_v9, %v6843_v4 }
 0x106   : > { %v966_v44 = vrot.slane %v608_v11, %v6843_v4  ;;  %v6940_v48 = vcombine.low %v1252_v47, %v1259_v56  ;;  %v468_v57 = vadd.f32 %v6839_v1, %v6814_v35  ;;  %v1167_v49 = vrot.slane %v6903_v27, %v6869_v45 }
 0x107   : > { %v6944_v52 = vcombine.low %v954_v42, %v958_v29  ;;  %v1174_v50 = vrot.slane %v1160_v40, %v6869_v45  ;;  %v1177_v54 = vcombine.low %v6898_v17, %v6901_v28  ;;  %v1201_v55 = vrot.slane %v1193_v37, %v6869_v45 }
 0x108   : > { %1457 = vrot.lane.b32.xlu1 %v6940_v48, %s6628_s22  ;;  %v1279_v59 = vcombine.low %v1026_v62, %v1030_v36  ;;  %v805_v60 = vcombine.high %v468_v57, %v468_v57  ;;  %v812_v61 = vrot.slane %v468_v57, %v6817_v38  ;;  %v1208_v1 = vrot.slane %v1194_v46, %v6869_v45 }
 0x109   : > { %1519 = vrot.lane.b32.xlu0 %v6929_v33, %s6629_s23  ;;  %v1184_v27 = vrot.slane %v6907_v41, %v6869_v45  ;;  %v460_v17 = vadd.f32 %v6814_v35, %v6845_v5  ;;  %v6964_v28 = vadd.f32 %v6850_v10, %v6814_v35  ;;  %v1276_v40 = vrot.slane %v1262_v18, %v6869_v45 }
 0x10a   : > { %v819_v62 = vrot.slane %v805_v60, %v6817_v38  ;;  %v820_v2 = vcombine.high %v812_v61, %v812_v61  ;;  %v6970_v58 = vadd.f32 %v6814_v35, %v6854_v15  ;;  %v1191_v0 = vrot.slane %v1177_v54, %v6869_v45 }
 0x10b   : > { %v1269_v41 = vrot.slane %v1261_v13, %v6869_v45  ;;  %v707_v3 = vcombine.high %v460_v17, %v460_v17  ;;  %v714_v5 = vrot.slane %v460_v17, %v6817_v38  ;;  %v6977_v10 = vcombine.low %v1167_v49, %v1174_v50 }
 0x10c   : > { %1521 = vrot.lane.b32.xlu1 %v6940_v48, %s6629_s23  ;;  %v1286_v7 = vrot.slane %v1278_v8, %v6869_v45  ;;  %v1293_v9 = vrot.slane %v1279_v59, %v6869_v45  ;;  %v1211_v11 = vcombine.low %v962_v51, %v966_v44  ;;  %v6984_v35 = vrot.slane %v812_v61, %v6817_v38 }
 0x10d   : > { %1567 = vrot.lane.b32.xlu0 %v6929_v33, %s6630_s24  ;;  %v721_v15 = vrot.slane %v707_v3, %v6817_v38  ;;  %v722_v12 = vcombine.high %v714_v5, %v714_v5  ;;  %v730_v14 = vrot.slane %v714_v5, %v6817_v38  ;;  %v6988_v13 = vcombine.low %v1201_v55, %v1208_v1 }
 0x10e   : > { %v6990_v16 = vcombine.low %v1269_v41, %v1276_v40  ;;  %v821_v29 = vcombine.high %v819_v62, %v819_v62  ;;  %v6993_v36 = vrot.slane %v820_v2, %v6817_v38  ;;  %v6995_v37 = vcombine.low %v1184_v27, %v1191_v0 }
 0x10f   : > { %v723_v56 = vcombine.high %v721_v15, %v721_v15  ;;  %v737_v18 = vrot.slane %v721_v15, %v6817_v38  ;;  %v7002_v8 = vcombine.low %v1286_v7, %v1293_v9  ;;  %v7005_v42 = vrot.slane %v819_v62, %v6817_v38 }
 0x110   : > { %1569 = vrot.lane.b32.xlu1 %v6940_v48, %s6630_s24  ;;  %v7008_v46 = vrot.slane %v1211_v11, %v6869_v45  ;;  %v854_v51 = vcombine.high %v6964_v28, %v6964_v28  ;;  %v850_v44 = vcombine.high %v6984_v35, %v6984_v35  ;;  %v744_v57 = vrot.slane %v722_v12, %v6817_v38 }
 0x111   : > { %1447 = vrot.lane.b32.xlu0 %v6977_v10, %s6628_s22  ;;  %v751_v49 = vrot.slane %v723_v56, %v6817_v38  ;;  %v752_v50 = vcombine.high %v730_v14, %v730_v14  ;;  %v7019_v54 = vrot.slane %v821_v29, %v6817_v38  ;;  %v852_v55 = vcombine.high %v6993_v36, %v6993_v36 }
 0x112   : > { %v753_v60 = vcombine.high %v737_v18, %v737_v18  ;;  %v754_v61 = vcombine.high %v744_v57, %v744_v57  ;;  %v1034_v27 = vrot.slane %v730_v14, %v6843_v4  ;;  %v1038_v17 = vrot.slane %v744_v57, %v6843_v4 }
 0x113   : > { %v755_v1 = vcombine.high %v751_v49, %v751_v49  ;;  %v7030_v40 = vrot.slane %v752_v50, %v6843_v4  ;;  %v1050_v62 = vrot.slane %v737_v18, %v6843_v4  ;;  %v1054_v2 = vrot.slane %v751_v49, %v6843_v4 }
 0x114   : > { %1451 = vrot.lane.b32.xlu1 %v6988_v13, %s6628_s22  ;;  %v7035_v0 = vrot.slane %v753_v60, %v6843_v4  ;;  %v7042_v3 = vrot.slane %v754_v61, %v6843_v4  ;;  %v7047_v7 = vcombine.low %v1034_v27, %v1038_v17  ;;  %v7052_v11 = vrot.slane %v850_v44, %v6843_v4 }
 0x115   : > { %1511 = vrot.lane.b32.xlu0 %v6977_v10, %s6629_s23  ;;  %v7045_v5 = vrot.slane %v755_v1, %v6843_v4  ;;  %v7056_v12 = vcombine.low %v1050_v62, %v1054_v2  ;;  %v861_v29 = vrot.slane %v6964_v28, %v6817_v38  ;;  %v868_v56 = vrot.slane %v854_v51, %v6817_v38 }
 0x116   : > { %v1296_v14 = vcombine.low %v7030_v40, %v7042_v3  ;;  %v756_v18 = vcombine.high %v6970_v58, %v6970_v58  ;;  %v7070_v57 = vrot.slane %v852_v55, %v6843_v4  ;;  %v763_v28 = vrot.slane %v6970_v58, %v6817_v38 }
 0x117   : > { %v869_v51 = vcombine.high %v861_v29, %v861_v29  ;;  %v870_v50 = vcombine.high %v868_v56, %v868_v56  ;;  %v877_v60 = vrot.slane %v861_v29, %v6817_v38  ;;  %v884_v61 = vrot.slane %v868_v56, %v6817_v38 }
 0x118   : > { %1513 = vrot.lane.b32.xlu1 %v6995_v37, %s6629_s23  ;;  %v770_v1 = vrot.slane %v756_v18, %v6817_v38  ;;  %v771_v27 = vcombine.high %v763_v28, %v763_v28  ;;  %v779_v55 = vrot.slane %v763_v28, %v6817_v38  ;;  %v1303_v17 = vrot.slane %v7047_v7, %v6869_v45 }
 0x119   : > { %1559 = vrot.lane.b32.xlu0 %v6977_v10, %s6630_s24  ;;  %v891_v40 = vrot.slane %v869_v51, %v6817_v38  ;;  %v898_v58 = vrot.slane %v870_v50, %v6817_v38  ;;  %v899_v62 = vcombine.high %v877_v60, %v877_v60  ;;  %v900_v2 = vcombine.high %v884_v61, %v884_v61 }
 0x11a   : > { %v1130_v3 = vrot.slane %v877_v60, %v6843_v4  ;;  %v1146_v29 = vrot.slane %v884_v61, %v6843_v4  ;;  %v772_v56 = vcombine.high %v770_v1, %v770_v1  ;;  %v786_v18 = vrot.slane %v770_v1, %v6817_v38 }
 0x11b   : > { %v901_v7 = vcombine.high %v891_v40, %v891_v40  ;;  %v902_v28 = vcombine.high %v898_v58, %v898_v58  ;;  %v1134_v51 = vrot.slane %v891_v40, %v6843_v4  ;;  %v1138_v50 = vrot.slane %v899_v62, %v6843_v4 }
 0x11c   : > { %1561 = vrot.lane.b32.xlu1 %v6995_v37, %s6630_s24  ;;  %v1150_v15 = vrot.slane %v898_v58, %v6843_v4  ;;  %v1154_v49 = vrot.slane %v900_v2, %v6843_v4  ;;  %v793_v60 = vrot.slane %v771_v27, %v6817_v38  ;;  %v800_v61 = vrot.slane %v772_v56, %v6817_v38 }
 0x11d   : > { %1459 = vrot.lane.b32.xlu0 %v6990_v16, %s6628_s22  ;;  %v1142_v47 = vrot.slane %v901_v7, %v6843_v4  ;;  %v1158_v1 = vrot.slane %v902_v28, %v6843_v4  ;;  %v1397_v59 = vcombine.low %v1130_v3, %v1134_v51  ;;  %v801_v9 = vcombine.high %v779_v55, %v779_v55 }
 0x11e   : > { %v1414_v40 = vcombine.low %v1146_v29, %v1150_v15  ;;  %v802_v44 = vcombine.high %v786_v18, %v786_v18  ;;  %v803_v62 = vcombine.high %v793_v60, %v793_v60  ;;  %v804_v41 = vcombine.high %v800_v61, %v800_v61 }
 0x11f   : > { %v1398_v58 = vcombine.low %v1138_v50, %v1142_v47  ;;  %v1066_v27 = vrot.slane %v779_v55, %v6843_v4  ;;  %v1070_v38 = vrot.slane %v793_v60, %v6843_v4  ;;  %v1074_v2 = vrot.slane %v801_v9, %v6843_v4 }
 0x120   : > { %1461 = vrot.lane.b32.xlu1 %v7002_v8, %s6628_s22  ;;  %v1078_v3 = vrot.slane %v803_v62, %v6843_v4  ;;  %v1082_v56 = vrot.slane %v786_v18, %v6843_v4  ;;  %v1086_v7 = vrot.slane %v800_v61, %v6843_v4  ;;  %v1090_v15 = vrot.slane %v802_v44, %v6843_v4 }
 0x121   : > { %1523 = vrot.lane.b32.xlu0 %v6990_v16, %s6629_s23  ;;  %v1094_v29 = vrot.slane %v804_v41, %v6843_v4  ;;  %v1329_v28 = vcombine.low %v1066_v27, %v1070_v38  ;;  %v1310_v51 = vrot.slane %v1296_v14, %v6869_v45  ;;  %v1313_v47 = vcombine.low %v7035_v0, %v7045_v5 }
 0x122   : > { %v1330_v9 = vcombine.low %v1074_v2, %v1078_v3  ;;  %v1346_v55 = vcombine.low %v1082_v56, %v1086_v7  ;;  %v1320_v18 = vrot.slane %v7056_v12, %v6869_v45  ;;  %v1405_v50 = vrot.slane %v1397_v59, %v6869_v45 }
 0x123   : > { %v7123_v41 = vcombine.low %v1303_v17, %v1310_v51  ;;  %v1327_v14 = vrot.slane %v1313_v47, %v6869_v45  ;;  %v1412_v44 = vrot.slane %v1398_v58, %v6869_v45  ;;  %v1415_v0 = vcombine.low %v1154_v49, %v1158_v1 }
 0x124   : > { %1525 = vrot.lane.b32.xlu1 %v7002_v8, %s6629_s23  ;;  %v1422_v5 = vrot.slane %v1414_v40, %v6869_v45  ;;  %v1337_v60 = vrot.slane %v1329_v28, %v6869_v45  ;;  %v1344_v61 = vrot.slane %v1330_v9, %v6869_v45  ;;  %v1347_v62 = vcombine.low %v1090_v15, %v1094_v29 }
 0x125   : > { %1571 = vrot.lane.b32.xlu0 %v6990_v16, %s6630_s24  ;;  %v7130_v12 = vcombine.low %v1320_v18, %v1327_v14  ;;  %v7132_v59 = vcombine.low %v1405_v50, %v1412_v44  ;;  %v1429_v27 = vrot.slane %v1415_v0, %v6869_v45  ;;  %v1354_v17 = vrot.slane %v1346_v55, %v6869_v45 }
 0x126   : > { %v9630_v58 = vcombine.high %v7005_v42, %v7005_v42  ;;  %v9631_v1 = vcombine.high %v7019_v54, %v7019_v54  ;;  %v7146_v38 = vcombine.low %v1337_v60, %v1344_v61  ;;  %v1361_v2 = vrot.slane %v1347_v62, %v6869_v45 }
 0x127   : > { %v9632_v3 = vrot.slane %v6993_v36, %v6843_v4  ;;  %v9633_v56 = vrot.slane %v6984_v35, %v6843_v4  ;;  %v1364_v15 = vcombine.low %v7052_v11, %v7070_v57  ;;  %v7159_v29 = vcombine.low %v1422_v5, %v1429_v27 }
 0x128   : > { %v1122_v49 = vrot.slane %v9630_v58, %v6843_v4  ;;  %v1126_v40 = vrot.slane %v9631_v1, %v6843_v4  ;;  %1573 = vrot.lane.b32.xlu1 %v7002_v8, %s6630_s24  ;;  %v9634_v28 = vrot.slane %v6944_v52, %v6869_v45  ;;  %v7167_v47 = vcombine.low %v1354_v17, %v1361_v2 }
 0x129   : > { %v1363_v7 = vcombine.low %v9633_v56, %v9632_v3  ;;  %1449 = vrot.lane.b32.xlu0 %v6995_v37, %s6628_s22  ;;  %v9635_v35 = vrot.slane %v7019_v54, %v6843_v4  ;;  %v9636_v36 = vrot.slane %v7005_v42, %v6843_v4  ;;  %v481_v55 = vand.u32 1, %v6807_v32 }
 0x12a   : > { %v7165_v51 = vcombine.low %v9634_v28, %v7008_v46  ;;  %v1381_v57 = vcombine.low %v1122_v49, %v1126_v40  ;;  %v1378_v46 = vrot.slane %v1364_v15, %v6869_v45  ;;  %v6547_v44 = vunpack.i.l.bf16 %v6795_v23 }
 0x12b   : > { %v1380_v11 = vcombine.low %v9636_v36, %v9635_v35  ;;  %v1371_v52 = vrot.slane %v1363_v7, %v6869_v45  ;;  %vm7243_vm6 = vcmp.eq.s32.totalorder %v481_v55, 0  ;;  %v6548_v60 = vunpack.i.h.bf16 %v6795_v23 }
 0x12c   : > { %1453 = vrot.lane.b32.xlu1 %v7165_v51, %s6628_s22  ;;  %v1395_v9 = vrot.slane %v1381_v57, %v6869_v45  ;;  %v6552_v17 = vunpack.i.l.bf16 %v6797_v24  ;;  %v6553_v1 = vunpack.i.h.bf16 %v6797_v24  ;;  %v6527_v3 = vunpack.i.l.bf16 %v6787_v19 }
 0x12d   : > { %1515 = vrot.lane.b32.xlu0 %v6988_v13, %s6629_s23  ;;  %v1388_v54 = vrot.slane %v1380_v11, %v6869_v45  ;;  %v7187_v4 = vcombine.low %v1371_v52, %v1378_v46  ;;  %v476_v45 = vadd.s32 8, %v6807_v32  ;;  %v6537_v28 = vunpack.i.l.bf16 %v6791_v21 }
 0x12e   : > { %v6532_v46 = vunpack.i.l.bf16 %v6789_v20  ;;  %v6583_v50 = vunpack.i.h.bf16 %v6819_v39 }
 0x12f   : > { %v7191_v42 = vcombine.low %v1388_v54, %v1395_v9  ;;  %v488_v18 = vand.u32 1, %v476_v45 }
 0x130   : > { %1517 = vrot.lane.b32.xlu1 %v7165_v51, %s6629_s23 }
 0x131   : > { %1563 = vrot.lane.b32.xlu0 %v6988_v13, %s6630_s24  ;;  %vm7251_vm9 = vcmp.eq.s32.totalorder %v488_v18, 0  ;;  %v6533_v18 = vunpack.i.h.bf16 %v6789_v20 }
 0x134   : > { %1565 = vrot.lane.b32.xlu1 %v7165_v51, %s6630_s24 }
 0x135   : > { %1471 = vrot.lane.b32.xlu0 %v7187_v4, %s6628_s22 }
 0x138   : > { %1473 = vrot.lane.b32.xlu1 %v7191_v42, %s6628_s22 }
 0x139   : > { %1535 = vrot.lane.b32.xlu0 %v7187_v4, %s6629_s23 }
 0x13c   : > { %1537 = vrot.lane.b32.xlu1 %v7191_v42, %s6629_s23 }
 0x13d   : > { %1583 = vrot.lane.b32.xlu0 %v7187_v4, %s6630_s24 }
 0x140   : > { %1585 = vrot.lane.b32.xlu1 %v7191_v42, %s6630_s24 }
 0x141   : > { %1463 = vrot.lane.b32.xlu0 %v7123_v41, %s6628_s22 }
 0x144   : > { %1465 = vrot.lane.b32.xlu1 %v7130_v12, %s6628_s22 }
 0x145   : > { %1527 = vrot.lane.b32.xlu0 %v7123_v41, %s6629_s23 }
 0x148   : > { %1529 = vrot.lane.b32.xlu1 %v7130_v12, %s6629_s23 }
 0x149   : > { %1575 = vrot.lane.b32.xlu0 %v7123_v41, %s6630_s24 }
 0x14c   : > { %1577 = vrot.lane.b32.xlu1 %v7130_v12, %s6630_s24 }
 0x14d   : > { %1475 = vrot.lane.b32.xlu0 %v7132_v59, %s6628_s22 }
 0x150   : > { %1477 = vrot.lane.b32.xlu1 %v7159_v29, %s6628_s22 }
 0x151   : > { %1539 = vrot.lane.b32.xlu0 %v7132_v59, %s6629_s23 }
 0x154   : > { %1541 = vrot.lane.b32.xlu1 %v7159_v29, %s6629_s23 }
 0x155   : > { %1587 = vrot.lane.b32.xlu0 %v7132_v59, %s6630_s24 }
 0x158   : > { %1589 = vrot.lane.b32.xlu1 %v7159_v29, %s6630_s24 }
 0x159   : > { %1467 = vrot.lane.b32.xlu0 %v7146_v38, %s6628_s22 }
 0x15c   : > { %1469 = vrot.lane.b32.xlu1 %v7167_v47, %s6628_s22 }
 0x15d   : > { %1531 = vrot.lane.b32.xlu0 %v7146_v38, %s6629_s23 }
 0x160   : > { %1533 = vrot.lane.b32.xlu1 %v7167_v47, %s6629_s23  ;;  %s6636_s23 = smov 64  }
 0x161   : > { %1579 = vrot.lane.b32.xlu0 %v7146_v38, %s6630_s24 }
 0x164   : > { %1581 = vrot.lane.b32.xlu1 %v7167_v47, %s6630_s24 }
 0x177   : > { %v1456_v14 = vpop.permute.xlu0 %1455 }
 0x178   : > { %v1499_v0 = vsel %vm7243_vm6, %v6929_v33, %v1456_v14 }
 0x179   : > { %1665 = vst.msk [vmem:[#allocation2 + $0x79] sm:$0xff] %vm1656_vm7, %v1499_v0  ;;  %v6557_v0 = vunpack.i.l.bf16 %v6799_v25 }
 0x17a   : > { %1890 = vst.msk [vmem:[#allocation2 + $0x79] sm:$0xff] %vm1881_vm8, %v6547_v44  ;;  %v1458_v32 = vpop.permute.xlu1 %1457 }
 0x17b   : > { %v1500_v61 = vsel %vm7251_vm9, %v6940_v48, %v1458_v32  ;;  %v1520_v62 = vpop.permute.xlu0 %1519 }
 0x17c   : > { %1666 = vst.msk [vmem:[#allocation2 + $0x81] sm:$0xff] %vm1656_vm7, %v1500_v61 }
 0x17d   : > { %1891 = vst.msk [vmem:[#allocation2 + $0x81] sm:$0xff] %vm1881_vm8, %v6548_v60 }
 0x17e   : > { %v1522_v33 = vpop.permute.xlu1 %1521 }
 0x17f   : > { %v1568_v27 = vpop.permute.xlu0 %1567 }
 0x180   : > { %v1611_v58 = vsel %vm7243_vm6, %v1520_v62, %v1568_v27  ;;  %v6558_v62 = vunpack.i.h.bf16 %v6799_v25 }
 0x181   : > { %1667 = vst.msk [vmem:[#allocation2 + $0x91] sm:$0xff] %vm1656_vm7, %v1611_v58  ;;  %v7267_v49 = vld [vmem:[#allocation2 + $0x79] sm:$0xff] }
 0x182   : > { %v2372_v23 = vld [vmem:[#allocation2 + $0x78] sm:$0xff]  ;;  %1892 = vst.msk [vmem:[#allocation2 + $0x91] sm:$0xff] %vm1881_vm8, %v6552_v17  ;;  %v1570_v48 = vpop.permute.xlu1 %1569  ;;  %2062 = vrot.lane.b32.xlu0 %v7267_v49, %s6624_s18 }
 0x183   : > { %1956 = vst.msk [vmem:[#allocation3 + $0x50] sm:$0xff] %vm327_vm1, %v2372_v23  ;;  %v1612_v40 = vsel %vm7251_vm9, %v1522_v33, %v1570_v48  ;;  %v1448_v2 = vpop.permute.xlu0 %1447 }
 0x184   : > { %1668 = vst.msk [vmem:[#allocation2 + $0x99] sm:$0xff] %vm1656_vm7, %v1612_v40  ;;  %v1495_v56 = vsel %vm7243_vm6, %v6977_v10, %v1448_v2  ;;  %v7281_v7 = vld [vmem:[#allocation2 + $0x81] sm:$0xff]  ;;  %v6563_v40 = vunpack.i.h.bf16 %v6801_v26 }
 0x185   : > { %v7283_v15 = vld [vmem:[#allocation2 + $0x80] sm:$0xff]  ;;  %1893 = vst.msk [vmem:[#allocation2 + $0x99] sm:$0xff] %vm1881_vm8, %v6553_v1  ;;  %2064 = vrot.lane.b32.xlu1 %v7281_v7, %s6624_s18 }
 0x186   : > { %1657 = vst.msk [vmem:[#allocation2 + $0x19] sm:$0xff] %vm1656_vm7, %v1495_v56  ;;  %v1452_v24 = vpop.permute.xlu1 %1451  ;;  %v2182_v60 = vld [vmem:[#allocation2 + $0x82] sm:$0xff]  ;;  %v6528_v56 = vunpack.i.h.bf16 %v6787_v19 }
 0x187   : > { %1957 = vst.msk [vmem:[#allocation3 + $0x58] sm:$0xff] %vm327_vm1, %v7283_v15  ;;  %v1497_v10 = vsel %vm7243_vm6, %v6988_v13, %v1452_v24  ;;  %v1512_v35 = vpop.permute.xlu0 %1511 }
 0x188   : > { %1882 = vst.msk [vmem:[#allocation2 + $0x19] sm:$0xff] %vm1881_vm8, %v6527_v3 }
 0x189   : > { %1661 = vst.msk [vmem:[#allocation2 + $0x49] sm:$0xff] %vm1656_vm7, %v1497_v10  ;;  %v1990_v36 = vld [vmem:[#allocation2 + $0x91] sm:$0xff] }
 0x18a   : > { %1886 = vst.msk [vmem:[#allocation2 + $0x49] sm:$0xff] %vm1881_vm8, %v6537_v28  ;;  %v2374_v11 = vld [vmem:[#allocation2 + $0x90] sm:$0xff]  ;;  %v1514_v57 = vpop.permute.xlu1 %1513  ;;  %2066 = vrot.lane.b32.xlu0 %v1990_v36, %s6624_s18  ;;  %v6538_v28 = vunpack.i.h.bf16 %v6791_v21 }
 0x18b   : > { %1958 = vst.msk [vmem:[#allocation3 + $0x60] sm:$0xff] %vm327_vm1, %v2374_v11  ;;  %v1560_v52 = vpop.permute.xlu0 %1559 }
 0x18c   : > { %v1607_v54 = vsel %vm7243_vm6, %v1512_v35, %v1560_v52  ;;  %v7303_v9 = vld [vmem:[#allocation2 + $0x99] sm:$0xff] }
 0x18d   : > { %v2375_v13 = vld [vmem:[#allocation2 + $0x98] sm:$0xff]  ;;  %1659 = vst.msk [vmem:[#allocation2 + $0x31] sm:$0xff] %vm1656_vm7, %v1607_v54  ;;  %2068 = vrot.lane.b32.xlu1 %v7303_v9, %s6624_s18  ;;  %v6543_v54 = vunpack.i.h.bf16 %v6793_v22 }
 0x18e   : > { %1959 = vst.msk [vmem:[#allocation3 + $0x68] sm:$0xff] %vm327_vm1, %v2375_v13  ;;  %v1562_v55 = vpop.permute.xlu1 %1561  ;;  %2444 = vrot.lane.b32.xlu0 %v2372_v23, %s6631_s25  ;;  %v2184_v27 = vld [vmem:[#allocation2 + $0x9a] sm:$0xff] }
 0x18f   : > { %v7308_v45 = vld [vmem:[#allocation2 + $0x18] sm:$0xff]  ;;  %1884 = vst.msk [vmem:[#allocation2 + $0x31] sm:$0xff] %vm1881_vm8, %v6532_v46  ;;  %v1608_v14 = vsel %vm7251_vm9, %v1514_v57, %v1562_v55  ;;  %v1460_v44 = vpop.permute.xlu0 %1459  ;;  %v6587_v55 = vunpack.i.l.bf16 %v6824_v43 }
 0x190   : > { %1948 = vst.msk [vmem:[#allocation3 + $0x10] sm:$0xff] %vm327_vm1, %v7308_v45  ;;  %v1501_v32 = vsel %vm7243_vm6, %v6990_v16, %v1460_v44 }
 0x191   : > { %1660 = vst.msk [vmem:[#allocation2 + $0x39] sm:$0xff] %vm1656_vm7, %v1608_v14  ;;  %v7323_v61 = vld [vmem:[#allocation2 + $0x48] sm:$0xff]  ;;  %1669 = vst.msk [vmem:[#allocation2 + $0xa9] sm:$0xff] %vm1656_vm7, %v1501_v32  ;;  %2257 = vrot.lane.b32.xlu1 %v2182_v60, %s6625_s19 }
 0x192   : > { %1885 = vst.msk [vmem:[#allocation2 + $0x39] sm:$0xff] %vm1881_vm8, %v6533_v18  ;;  %1894 = vst.msk [vmem:[#allocation2 + $0xa9] sm:$0xff] %vm1881_vm8, %v6557_v0  ;;  %v1462_v20 = vpop.permute.xlu1 %1461  ;;  %2448 = vrot.lane.b32.xlu0 %v2374_v11, %s6631_s25 }
 0x193   : > { %1952 = vst.msk [vmem:[#allocation3 + $0x30] sm:$0xff] %vm327_vm1, %v7323_v61  ;;  %v1502_v16 = vsel %vm7251_vm9, %v7002_v8, %v1462_v20  ;;  %v1524_v33 = vpop.permute.xlu0 %1523  ;;  %v6562_v8 = vunpack.i.l.bf16 %v6801_v26  ;;  %v1980_v26 = vld [vmem:[#allocation2 + $0x19] sm:$0xff] }
 0x194   : > { %1670 = vst.msk [vmem:[#allocation2 + $0xb1] sm:$0xff] %vm1656_vm7, %v1502_v16 }
 0x195   : > { %1895 = vst.msk [vmem:[#allocation2 + $0xb1] sm:$0xff] %vm1881_vm8, %v6558_v62  ;;  %2261 = vrot.lane.b32.xlu1 %v2184_v27, %s6625_s19 }
 0x196   : > { %v7339_v17 = vld [vmem:[#allocation2 + $0x30] sm:$0xff]  ;;  %v1526_v58 = vpop.permute.xlu1 %1525  ;;  %2637 = vrot.lane.b32.xlu0 %v7267_v49, %s6632_s26 }
 0x197   : > { %1950 = vst.msk [vmem:[#allocation3 + $0x20] sm:$0xff] %vm327_vm1, %v7339_v17  ;;  %v1572_v25 = vpop.permute.xlu0 %1571  ;;  %v1982_v35 = vld [vmem:[#allocation2 + $0x31] sm:$0xff] }
 0x198   : > { %v1613_v23 = vsel %vm7243_vm6, %v1524_v33, %v1572_v25 }
 0x199   : > { %v7348_v48 = vld [vmem:[#allocation2 + $0x38] sm:$0xff]  ;;  %1671 = vst.msk [vmem:[#allocation2 + $0xc1] sm:$0xff] %vm1656_vm7, %v1613_v23  ;;  %2446 = vrot.lane.b32.xlu1 %v7283_v15, %s6631_s25  ;;  %v7353_v1 = vld [vmem:[#allocation2 + $0xa8] sm:$0xff]  ;;  %v6567_v23 = vunpack.i.l.bf16 %v6803_v30 }
 0x19a   : > { %1951 = vst.msk [vmem:[#allocation3 + $0x28] sm:$0xff] %vm327_vm1, %v7348_v48  ;;  %v1574_v49 = vpop.permute.xlu1 %1573  ;;  %2641 = vrot.lane.b32.xlu0 %v1990_v36, %s6632_s26  ;;  %1960 = vst.msk [vmem:[#allocation3 + $0x70] sm:$0xff] %vm327_vm1, %v7353_v1  ;;  %v7434_v32 = vld [vmem:[#allocation2 + $0x39] sm:$0xff] }
 0x19b   : > { %1896 = vst.msk [vmem:[#allocation2 + $0xc1] sm:$0xff] %vm1881_vm8, %v6562_v8  ;;  %v1614_v2 = vsel %vm7251_vm9, %v1526_v58, %v1574_v49  ;;  %v1450_v3 = vpop.permute.xlu0 %1449  ;;  %v6593_v58 = vunpack.i.h.bf16 %v6830_v53 }
 0x19c   : > { %1672 = vst.msk [vmem:[#allocation2 + $0xc9] sm:$0xff] %vm1656_vm7, %v1614_v2  ;;  %v1496_v15 = vsel %vm7251_vm9, %v6995_v37, %v1450_v3  ;;  %v7369_v24 = vld [vmem:[#allocation2 + $0xb0] sm:$0xff] }
 0x19d   : > { %1897 = vst.msk [vmem:[#allocation2 + $0xc9] sm:$0xff] %vm1881_vm8, %v6563_v40  ;;  %2450 = vrot.lane.b32.xlu1 %v2375_v13, %s6631_s25  ;;  %v7470_v40 = vld [vmem:[#allocation2 + $0x3a] sm:$0xff] }
 0x19e   : > { %1658 = vst.msk [vmem:[#allocation2 + $0x21] sm:$0xff] %vm1656_vm7, %v1496_v15  ;;  %v1454_v19 = vpop.permute.xlu1 %1453  ;;  %2046 = vrot.lane.b32.xlu0 %v1980_v26, %s6624_s18 }
 0x19f   : > { %1961 = vst.msk [vmem:[#allocation3 + $0x78] sm:$0xff] %vm327_vm1, %v7369_v24  ;;  %v1498_v37 = vsel %vm7251_vm9, %v7165_v51, %v1454_v19  ;;  %v1516_v10 = vpop.permute.xlu0 %1515  ;;  %v6542_v51 = vunpack.i.l.bf16 %v6793_v22 }
 0x1a0   : > { %1883 = vst.msk [vmem:[#allocation2 + $0x21] sm:$0xff] %vm1881_vm8, %v6528_v56 }
 0x1a1   : > { %1662 = vst.msk [vmem:[#allocation2 + $0x51] sm:$0xff] %vm1656_vm7, %v1498_v37  ;;  %2639 = vrot.lane.b32.xlu1 %v7281_v7, %s6632_s26 }
 0x1a2   : > { %1887 = vst.msk [vmem:[#allocation2 + $0x51] sm:$0xff] %vm1881_vm8, %v6538_v28  ;;  %v7386_v36 = vld [vmem:[#allocation2 + $0xc0] sm:$0xff]  ;;  %v1518_v11 = vpop.permute.xlu1 %1517  ;;  %2050 = vrot.lane.b32.xlu0 %v1982_v35, %s6624_s18 }
 0x1a3   : > { %1962 = vst.msk [vmem:[#allocation3 + $0x80] sm:$0xff] %vm327_vm1, %v7386_v36  ;;  %v1564_v21 = vpop.permute.xlu0 %1563 }
 0x1a4   : > { %v1609_v57 = vsel %vm7243_vm6, %v1516_v10, %v1564_v21  ;;  %v7394_v52 = vld [vmem:[#allocation2 + $0xc8] sm:$0xff] }
 0x1a5   : > { %1663 = vst.msk [vmem:[#allocation2 + $0x61] sm:$0xff] %vm1656_vm7, %v1609_v57  ;;  %2643 = vrot.lane.b32.xlu1 %v7303_v9, %s6632_s26 }
 0x1a6   : > { %1963 = vst.msk [vmem:[#allocation3 + $0x88] sm:$0xff] %vm327_vm1, %v7394_v52  ;;  %v1566_v46 = vpop.permute.xlu1 %1565  ;;  %2428 = vrot.lane.b32.xlu0 %v7308_v45, %s6631_s25 }
 0x1a7   : > { %v7399_v7 = vld [vmem:[#allocation2 + $0x20] sm:$0xff]  ;;  %1888 = vst.msk [vmem:[#allocation2 + $0x61] sm:$0xff] %vm1881_vm8, %v6542_v51  ;;  %v1610_v13 = vsel %vm7251_vm9, %v1518_v11, %v1566_v46  ;;  %v1472_v9 = vpop.permute.xlu0 %1471  ;;  %v6573_v51 = vunpack.i.h.bf16 %v6805_v31 }
 0x1a8   : > { %1949 = vst.msk [vmem:[#allocation3 + $0x18] sm:$0xff] %vm327_vm1, %v7399_v7  ;;  %v1507_v18 = vsel %vm7243_vm6, %v7187_v4, %v1472_v9  ;;  %v7416_v14 = vld [vmem:[#allocation2 + $0x21] sm:$0xff]  ;;  %v6588_v4 = vunpack.i.h.bf16 %v6824_v43 }
 0x1a9   : > { %1664 = vst.msk [vmem:[#allocation2 + $0x69] sm:$0xff] %vm1656_vm7, %v1610_v13  ;;  %v7418_v45 = vld [vmem:[#allocation2 + $0x50] sm:$0xff]  ;;  %1681 = vst.msk [vmem:[#allocation2 + $0x139] sm:$0xff] %vm1656_vm7, %v1507_v18  ;;  %2048 = vrot.lane.b32.xlu1 %v7416_v14, %s6624_s18  ;;  %v7447_v16 = vld [vmem:[#allocation2 + $0x22] sm:$0xff] }
 0x1aa   : > { %1889 = vst.msk [vmem:[#allocation2 + $0x69] sm:$0xff] %vm1881_vm8, %v6543_v54  ;;  %1906 = vst.msk [vmem:[#allocation2 + $0x139] sm:$0xff] %vm1881_vm8, %v6587_v55  ;;  %v1474_v22 = vpop.permute.xlu1 %1473  ;;  %2432 = vrot.lane.b32.xlu0 %v7339_v17, %s6631_s25 }
 0x1ab   : > { %1953 = vst.msk [vmem:[#allocation3 + $0x38] sm:$0xff] %vm327_vm1, %v7418_v45  ;;  %v1508_v44 = vsel %vm7251_vm9, %v7191_v42, %v1474_v22  ;;  %v1536_v0 = vpop.permute.xlu0 %1535  ;;  %v6592_v42 = vunpack.i.l.bf16 %v6830_v53  ;;  %v7478_v53 = vld [vmem:[#allocation2 + $0xa9] sm:$0xff] }
 0x1ac   : > { %1682 = vst.msk [vmem:[#allocation2 + $0x141] sm:$0xff] %vm1656_vm7, %v1508_v44 }
 0x1ad   : > { %1907 = vst.msk [vmem:[#allocation2 + $0x141] sm:$0xff] %vm1881_vm8, %v6588_v4  ;;  %2052 = vrot.lane.b32.xlu1 %v7434_v32, %s6624_s18  ;;  %v1993_v4 = vld [vmem:[#allocation2 + $0xb1] sm:$0xff] }
 0x1ae   : > { %v7439_v60 = vld [vmem:[#allocation2 + $0x60] sm:$0xff]  ;;  %v1538_v20 = vpop.permute.xlu1 %1537  ;;  %2621 = vrot.lane.b32.xlu0 %v1980_v26, %s6632_s26 }
 0x1af   : > { %1954 = vst.msk [vmem:[#allocation3 + $0x40] sm:$0xff] %vm327_vm1, %v7439_v60  ;;  %v1584_v43 = vpop.permute.xlu0 %1583  ;;  %v7493_v26 = vld [vmem:[#allocation2 + $0xc1] sm:$0xff] }
 0x1b0   : > { %v1619_v62 = vsel %vm7243_vm6, %v1536_v0, %v1584_v43 }
 0x1b1   : > { %v7449_v33 = vld [vmem:[#allocation2 + $0x68] sm:$0xff]  ;;  %1683 = vst.msk [vmem:[#allocation2 + $0x151] sm:$0xff] %vm1656_vm7, %v1619_v62  ;;  %2241 = vrot.lane.b32.xlu1 %v7447_v16, %s6625_s19  ;;  %v7454_v27 = vld [vmem:[#allocation2 + $0x138] sm:$0xff] }
 0x1b2   : > { %1955 = vst.msk [vmem:[#allocation3 + $0x48] sm:$0xff] %vm327_vm1, %v7449_v33  ;;  %v1586_v17 = vpop.permute.xlu1 %1585  ;;  %2625 = vrot.lane.b32.xlu0 %v1982_v35, %s6632_s26  ;;  %1972 = vst.msk [vmem:[#allocation3 + $0xd0] sm:$0xff] %vm327_vm1, %v7454_v27  ;;  %v7509_v35 = vld [vmem:[#allocation2 + $0x7a] sm:$0xff] }
 0x1b3   : > { %1908 = vst.msk [vmem:[#allocation2 + $0x151] sm:$0xff] %vm1881_vm8, %v6592_v42  ;;  %v1620_v25 = vsel %vm7251_vm9, %v1538_v20, %v1586_v17  ;;  %v1464_v8 = vpop.permute.xlu0 %1463  ;;  %v6577_v42 = vunpack.i.l.bf16 %v6809_v34  ;;  %v1995_v17 = vld [vmem:[#allocation2 + $0xc9] sm:$0xff] }
 0x1b4   : > { %1684 = vst.msk [vmem:[#allocation2 + $0x159] sm:$0xff] %vm1656_vm7, %v1620_v25  ;;  %v1503_v49 = vsel %vm7243_vm6, %v7123_v41, %v1464_v8  ;;  %v7472_v2 = vld [vmem:[#allocation2 + $0x140] sm:$0xff]  ;;  %v6568_v41 = vunpack.i.h.bf16 %v6803_v30  ;;  %v7594_v8 = vld [vmem:[#allocation2 + $0xb2] sm:$0xff] }
 0x1b5   : > { %1909 = vst.msk [vmem:[#allocation2 + $0x159] sm:$0xff] %vm1881_vm8, %v6593_v58  ;;  %2245 = vrot.lane.b32.xlu1 %v7470_v40, %s6625_s19 }
 0x1b6   : > { %1673 = vst.msk [vmem:[#allocation2 + $0xd9] sm:$0xff] %vm1656_vm7, %v1503_v49  ;;  %v1466_v3 = vpop.permute.xlu1 %1465  ;;  %2070 = vrot.lane.b32.xlu0 %v7478_v53, %s6624_s18 }
 0x1b7   : > { %1973 = vst.msk [vmem:[#allocation3 + $0xd8] sm:$0xff] %vm327_vm1, %v7472_v2  ;;  %v1504_v56 = vsel %vm7251_vm9, %v7130_v12, %v1466_v3  ;;  %v1528_v15 = vpop.permute.xlu0 %1527  ;;  %v6572_v12 = vunpack.i.l.bf16 %v6805_v31  ;;  %v7534_v31 = vld [vmem:[#allocation2 + $0x92] sm:$0xff]  ;;  %v1984_v3 = vld [vmem:[#allocation2 + $0x49] sm:$0xff] }
 0x1b8   : > { %1898 = vst.msk [vmem:[#allocation2 + $0xd9] sm:$0xff] %vm1881_vm8, %v6567_v23 }
 0x1b9   : > { %1674 = vst.msk [vmem:[#allocation2 + $0xe1] sm:$0xff] %vm1656_vm7, %v1504_v56  ;;  %2430 = vrot.lane.b32.xlu1 %v7399_v7, %s6631_s25  ;;  %v6597_v7 = vunpack.i.l.bf16 %v6837_v63 }
 0x1ba   : > { %1899 = vst.msk [vmem:[#allocation2 + $0xe1] sm:$0xff] %vm1881_vm8, %v6568_v41  ;;  %v7495_v19 = vld [vmem:[#allocation2 + $0x150] sm:$0xff]  ;;  %v1530_v28 = vpop.permute.xlu1 %1529  ;;  %2074 = vrot.lane.b32.xlu0 %v7493_v26, %s6624_s18 }
 0x1bb   : > { %1974 = vst.msk [vmem:[#allocation3 + $0xe0] sm:$0xff] %vm327_vm1, %v7495_v19  ;;  %v1576_v30 = vpop.permute.xlu0 %1575 }
 0x1bc   : > { %v1615_v37 = vsel %vm7243_vm6, %v1528_v15, %v1576_v30  ;;  %v7504_v10 = vld [vmem:[#allocation2 + $0x158] sm:$0xff] }
 0x1bd   : > { %1675 = vst.msk [vmem:[#allocation2 + $0xf1] sm:$0xff] %vm1656_vm7, %v1615_v37  ;;  %2434 = vrot.lane.b32.xlu1 %v7348_v48, %s6631_s25  ;;  %v7640_v30 = vld [vmem:[#allocation2 + $0x32] sm:$0xff] }
 0x1be   : > { %1975 = vst.msk [vmem:[#allocation3 + $0xe8] sm:$0xff] %vm327_vm1, %v7504_v10  ;;  %v1578_v21 = vpop.permute.xlu1 %1577  ;;  %2255 = vrot.lane.b32.xlu0 %v7509_v35, %s6625_s19  ;;  %v7654_v37 = vld [vmem:[#allocation2 + $0x52] sm:$0xff] }
 0x1bf   : > { %v7511_v11 = vld [vmem:[#allocation2 + $0xd8] sm:$0xff]  ;;  %1900 = vst.msk [vmem:[#allocation2 + $0xf1] sm:$0xff] %vm1881_vm8, %v6572_v12  ;;  %v1616_v48 = vsel %vm7251_vm9, %v1530_v28, %v1578_v21  ;;  %v1476_v57 = vpop.permute.xlu0 %1475  ;;  %v1986_v28 = vld [vmem:[#allocation2 + $0x61] sm:$0xff]  ;;  %v1987_v12 = vld [vmem:[#allocation2 + $0x69] sm:$0xff] }
 0x1c0   : > { %1964 = vst.msk [vmem:[#allocation3 + $0x90] sm:$0xff] %vm327_vm1, %v7511_v11  ;;  %v1509_v46 = vsel %vm7243_vm6, %v7132_v59, %v1476_v57  ;;  %v6598_v59 = vunpack.i.h.bf16 %v6837_v63  ;;  %v7659_v21 = vld [vmem:[#allocation2 + $0x6a] sm:$0xff] }
 0x1c1   : > { %1676 = vst.msk [vmem:[#allocation2 + $0xf9] sm:$0xff] %vm1656_vm7, %v1616_v48  ;;  %v7528_v54 = vld [vmem:[#allocation2 + $0xe0] sm:$0xff]  ;;  %1685 = vst.msk [vmem:[#allocation2 + $0x169] sm:$0xff] %vm1656_vm7, %v1509_v46  ;;  %2623 = vrot.lane.b32.xlu1 %v7416_v14, %s6632_s26  ;;  %v7664_v48 = vld [vmem:[#allocation2 + $0xaa] sm:$0xff] }
 0x1c2   : > { %1901 = vst.msk [vmem:[#allocation2 + $0xf9] sm:$0xff] %vm1881_vm8, %v6573_v51  ;;  %1910 = vst.msk [vmem:[#allocation2 + $0x169] sm:$0xff] %vm1881_vm8, %v6597_v7  ;;  %v1478_v13 = vpop.permute.xlu1 %1477  ;;  %2259 = vrot.lane.b32.xlu0 %v7534_v31, %s6625_s19  ;;  %v7671_v7 = vld [vmem:[#allocation2 + $0xc2] sm:$0xff] }
 0x1c3   : > { %1965 = vst.msk [vmem:[#allocation3 + $0x98] sm:$0xff] %vm327_vm1, %v7528_v54  ;;  %v1510_v9 = vsel %vm7251_vm9, %v7159_v29, %v1478_v13  ;;  %v1540_v55 = vpop.permute.xlu0 %1539  ;;  %v6602_v29 = vunpack.i.l.bf16 %v6847_v6  ;;  %v7678_v13 = vld [vmem:[#allocation2 + $0x4a] sm:$0xff] }
 0x1c4   : > { %1686 = vst.msk [vmem:[#allocation2 + $0x171] sm:$0xff] %vm1656_vm7, %v1510_v9 }
 0x1c5   : > { %1911 = vst.msk [vmem:[#allocation2 + $0x171] sm:$0xff] %vm1881_vm8, %v6598_v59  ;;  %2627 = vrot.lane.b32.xlu1 %v7434_v32, %s6632_s26  ;;  %v6603_v32 = vunpack.i.h.bf16 %v6847_v6 }
 0x1c6   : > { %v7549_v18 = vld [vmem:[#allocation2 + $0xf0] sm:$0xff]  ;;  %v1542_v14 = vpop.permute.xlu1 %1541  ;;  %2452 = vrot.lane.b32.xlu0 %v7353_v1, %s6631_s25 }
 0x1c7   : > { %1966 = vst.msk [vmem:[#allocation3 + $0xa0] sm:$0xff] %vm327_vm1, %v7549_v18  ;;  %v1588_v63 = vpop.permute.xlu0 %1587 }
 0x1c8   : > { %v1621_v22 = vsel %vm7243_vm6, %v1540_v55, %v1588_v63  ;;  %v7686_v55 = vld [vmem:[#allocation2 + $0x62] sm:$0xff] }
 0x1c9   : > { %v7558_v44 = vld [vmem:[#allocation2 + $0xf8] sm:$0xff]  ;;  %1687 = vst.msk [vmem:[#allocation2 + $0x181] sm:$0xff] %vm1656_vm7, %v1621_v22  ;;  %2072 = vrot.lane.b32.xlu1 %v1993_v4, %s6624_s18  ;;  %v7562_v0 = vld [vmem:[#allocation2 + $0x168] sm:$0xff] }
 0x1ca   : > { %1967 = vst.msk [vmem:[#allocation3 + $0xa8] sm:$0xff] %vm327_vm1, %v7558_v44  ;;  %v1590_v1 = vpop.permute.xlu1 %1589  ;;  %2456 = vrot.lane.b32.xlu0 %v7386_v36, %s6631_s25  ;;  %1976 = vst.msk [vmem:[#allocation3 + $0xf0] sm:$0xff] %vm327_vm1, %v7562_v0 }
 0x1cb   : > { %1912 = vst.msk [vmem:[#allocation2 + $0x181] sm:$0xff] %vm1881_vm8, %v6602_v29  ;;  %v1622_v20 = vsel %vm7251_vm9, %v1542_v14, %v1590_v1  ;;  %v1468_v43 = vpop.permute.xlu0 %1467  ;;  %v2004_v29 = vld [vmem:[#allocation2 + $0x139] sm:$0xff] }
 0x1cc   : > { %1688 = vst.msk [vmem:[#allocation2 + $0x189] sm:$0xff] %vm1656_vm7, %v1622_v20  ;;  %v1505_v62 = vsel %vm7243_vm6, %v7146_v38, %v1468_v43  ;;  %v7579_v58 = vld [vmem:[#allocation2 + $0x170] sm:$0xff]  ;;  %v6578_v38 = vunpack.i.h.bf16 %v6809_v34  ;;  %v6582_v34 = vunpack.i.l.bf16 %v6819_v39  ;;  %v7629_v39 = vld [vmem:[#allocation2 + $0x1a] sm:$0xff] }
 0x1cd   : > { %1913 = vst.msk [vmem:[#allocation2 + $0x189] sm:$0xff] %vm1881_vm8, %v6603_v32  ;;  %2076 = vrot.lane.b32.xlu1 %v1995_v17, %s6624_s18  ;;  %v2006_v32 = vld [vmem:[#allocation2 + $0x151] sm:$0xff]  ;;  %v2007_v43 = vld [vmem:[#allocation2 + $0x159] sm:$0xff] }
 0x1ce   : > { %1677 = vst.msk [vmem:[#allocation2 + $0x109] sm:$0xff] %vm1656_vm7, %v1505_v62  ;;  %v1470_v6 = vpop.permute.xlu1 %1469  ;;  %2645 = vrot.lane.b32.xlu0 %v7478_v53, %s6632_s26  ;;  %v7604_v53 = vld [vmem:[#allocation2 + $0xca] sm:$0xff] }
 0x1cf   : > { %1977 = vst.msk [vmem:[#allocation3 + $0xf8] sm:$0xff] %vm327_vm1, %v7579_v58  ;;  %v1506_v36 = vsel %vm7251_vm9, %v7167_v47, %v1470_v6  ;;  %v1532_v25 = vpop.permute.xlu0 %1531 }
 0x1d0   : > { %1902 = vst.msk [vmem:[#allocation2 + $0x109] sm:$0xff] %vm1881_vm8, %v6577_v42 }
 0x1d1   : > { %1678 = vst.msk [vmem:[#allocation2 + $0x111] sm:$0xff] %vm1656_vm7, %v1506_v36  ;;  %2265 = vrot.lane.b32.xlu1 %v7594_v8, %s6625_s19  ;;  %v7717_v36 = vld [vmem:[#allocation2 + $0x15a] sm:$0xff] }
 0x1d2   : > { %1903 = vst.msk [vmem:[#allocation2 + $0x111] sm:$0xff] %vm1881_vm8, %v6578_v38  ;;  %v1534_v23 = vpop.permute.xlu1 %1533  ;;  %2649 = vrot.lane.b32.xlu0 %v7493_v26, %s6632_s26 }
 0x1d3   : > { %v1580_v49 = vpop.permute.xlu0 %1579 }
 0x1d4   : > { %v1617_v47 = vsel %vm7243_vm6, %v1532_v25, %v1580_v49 }
 0x1d5   : > { %1679 = vst.msk [vmem:[#allocation2 + $0x121] sm:$0xff] %vm1656_vm7, %v1617_v47  ;;  %2269 = vrot.lane.b32.xlu1 %v7604_v53, %s6625_s19 }
 0x1d6   : > { %1904 = vst.msk [vmem:[#allocation2 + $0x121] sm:$0xff] %vm1881_vm8, %v6582_v34  ;;  %v1582_v56 = vpop.permute.xlu1 %1581  ;;  %2054 = vrot.lane.b32.xlu0 %v1984_v3, %s6624_s18 }
 0x1d7   : > { %v7609_v41 = vld [vmem:[#allocation2 + $0x108] sm:$0xff]  ;;  %v1618_v15 = vsel %vm7251_vm9, %v1534_v23, %v1582_v56 }
 0x1d8   : > { %1968 = vst.msk [vmem:[#allocation3 + $0xb0] sm:$0xff] %vm327_vm1, %v7609_v41 }
 0x1d9   : > { %1680 = vst.msk [vmem:[#allocation2 + $0x129] sm:$0xff] %vm1656_vm7, %v1618_v15  ;;  %v7619_v26 = vld [vmem:[#allocation2 + $0x110] sm:$0xff]  ;;  %2454 = vrot.lane.b32.xlu1 %v7369_v24, %s6631_s25 }
 0x1da   : > { %1905 = vst.msk [vmem:[#allocation2 + $0x129] sm:$0xff] %vm1881_vm8, %v6583_v50  ;;  %2058 = vrot.lane.b32.xlu0 %v1986_v28, %s6624_s18  ;;  %v1998_v15 = vld [vmem:[#allocation2 + $0xf1] sm:$0xff] }
 0x1db   : > { %1969 = vst.msk [vmem:[#allocation3 + $0xb8] sm:$0xff] %vm327_vm1, %v7619_v26 }
 0x1dd   : > { %2458 = vrot.lane.b32.xlu1 %v7394_v52, %s6631_s25  ;;  %v7631_v5 = vld [vmem:[#allocation2 + $0x120] sm:$0xff]  ;;  %v1985_v52 = vld [vmem:[#allocation2 + $0x51] sm:$0xff] }
 0x1de   : > { %2239 = vrot.lane.b32.xlu0 %v7629_v39, %s6625_s19  ;;  %1970 = vst.msk [vmem:[#allocation3 + $0xc0] sm:$0xff] %vm327_vm1, %v7631_v5 }
 0x1e1   : > { %v7637_v24 = vld [vmem:[#allocation2 + $0x128] sm:$0xff]  ;;  %2647 = vrot.lane.b32.xlu1 %v1993_v4, %s6632_s26 }
 0x1e2   : > { %1971 = vst.msk [vmem:[#allocation3 + $0xc8] sm:$0xff] %vm327_vm1, %v7637_v24  ;;  %2243 = vrot.lane.b32.xlu0 %v7640_v30, %s6625_s19  ;;  %v2005_v4 = vld [vmem:[#allocation2 + $0x141] sm:$0xff] }
 0x1e5   : > { %2651 = vrot.lane.b32.xlu1 %v1995_v17, %s6632_s26  ;;  %v7708_v17 = vld [vmem:[#allocation2 + $0x142] sm:$0xff] }
 0x1e6   : > { %2436 = vrot.lane.b32.xlu0 %v7323_v61, %s6631_s25 }
 0x1e9   : > { %2056 = vrot.lane.b32.xlu1 %v1985_v52, %s6624_s18 }
 0x1ea   : > { %2440 = vrot.lane.b32.xlu0 %v7439_v60, %s6631_s25 }
 0x1ed   : > { %2060 = vrot.lane.b32.xlu1 %v1987_v12, %s6624_s18 }
 0x1ee   : > { %2629 = vrot.lane.b32.xlu0 %v1984_v3, %s6632_s26  ;;  %v1996_v3 = vld [vmem:[#allocation2 + $0xd9] sm:$0xff] }
 0x1f1   : > { %2249 = vrot.lane.b32.xlu1 %v7654_v37, %s6625_s19 }
 0x1f2   : > { %2633 = vrot.lane.b32.xlu0 %v1986_v28, %s6632_s26 }
 0x1f4   : > { %v2063_v51 = vpop.permute.xlu0 %2062 }
 0x1f5   : > { %2253 = vrot.lane.b32.xlu1 %v7659_v21, %s6625_s19  ;;  %2149 = vst.msk [vmem:[#allocation3 + $0x50] sm:$0xff] %vm2138_vm4, %v2063_v51  ;;  %v1997_v51 = vld [vmem:[#allocation2 + $0xe1] sm:$0xff] }
 0x1f6   : > { %2263 = vrot.lane.b32.xlu0 %v7664_v48, %s6625_s19 }
 0x1f7   : > { %v2065_v57 = vpop.permute.xlu1 %2064 }
 0x1f8   : > { %2150 = vst.msk [vmem:[#allocation3 + $0x58] sm:$0xff] %vm2138_vm4, %v2065_v57 }
 0x1f9   : > { %2438 = vrot.lane.b32.xlu1 %v7418_v45, %s6631_s25 }
 0x1fa   : > { %2267 = vrot.lane.b32.xlu0 %v7671_v7, %s6625_s19 }
 0x1fc   : > { %v2067_v46 = vpop.permute.xlu0 %2066 }
 0x1fd   : > { %2442 = vrot.lane.b32.xlu1 %v7449_v33, %s6631_s25  ;;  %2151 = vst.msk [vmem:[#allocation3 + $0x60] sm:$0xff] %vm2138_vm4, %v2067_v46 }
 0x1fe   : > { %2247 = vrot.lane.b32.xlu0 %v7678_v13, %s6625_s19 }
 0x1ff   : > { %v2069_v59 = vpop.permute.xlu1 %2068 }
 0x200   : > { %2152 = vst.msk [vmem:[#allocation3 + $0x68] sm:$0xff] %vm2138_vm4, %v2069_v59  ;;  %v7683_v9 = vpop.permute.xlu0 %2444  ;;  %v1999_v59 = vld [vmem:[#allocation2 + $0xf9] sm:$0xff] }
 0x201   : > { %2631 = vrot.lane.b32.xlu1 %v1985_v52, %s6632_s26 }
 0x202   : > { %2251 = vrot.lane.b32.xlu0 %v7686_v55, %s6625_s19 }
 0x203   : > { %v2258_v14 = vpop.permute.xlu1 %2257 }
 0x204   : > { %2343 = vst.msk [vmem:[#allocation3 + $0x58] sm:$0xff] %vm2331_vm5, %v2258_v14  ;;  %v7691_v63 = vpop.permute.xlu0 %2448 }
 0x205   : > { %2635 = vrot.lane.b32.xlu1 %v1987_v12, %s6632_s26 }
 0x206   : > { %2094 = vrot.lane.b32.xlu0 %v2004_v29, %s6624_s18 }
 0x207   : > { %v2262_v22 = vpop.permute.xlu1 %2261 }
 0x208   : > { %2345 = vst.msk [vmem:[#allocation3 + $0x68] sm:$0xff] %vm2331_vm5, %v2262_v22  ;;  %v7696_v1 = vpop.permute.xlu0 %2637  ;;  %v7754_v22 = vld [vmem:[#allocation2 + $0xe2] sm:$0xff] }
 0x209   : > { %2096 = vrot.lane.b32.xlu1 %v2005_v4, %s6624_s18 }
 0x20a   : > { %2098 = vrot.lane.b32.xlu0 %v2006_v32, %s6624_s18 }
 0x20b   : > { %v7700_v20 = vpop.permute.xlu1 %2446 }
 0x20c   : > { %v7702_v42 = vpop.permute.xlu0 %2641 }
 0x20d   : > { %2100 = vrot.lane.b32.xlu1 %v2007_v43, %s6624_s18 }
 0x20e   : > { %2476 = vrot.lane.b32.xlu0 %v7454_v27, %s6631_s25 }
 0x20f   : > { %v2451_v62 = vpop.permute.xlu1 %2450 }
 0x210   : > { %2536 = vst.msk [vmem:[#allocation3 + $0x58] sm:$0xff] %vm2524_vm10, %v2451_v62  ;;  %v2047_v6 = vpop.permute.xlu0 %2046 }
 0x211   : > { %2289 = vrot.lane.b32.xlu1 %v7708_v17, %s6625_s19  ;;  %2141 = vst.msk [vmem:[#allocation3 + $0x10] sm:$0xff] %vm2138_vm4, %v2047_v6  ;;  %v2008_v6 = vld [vmem:[#allocation2 + $0x169] sm:$0xff] }
 0x212   : > { %2480 = vrot.lane.b32.xlu0 %v7495_v19, %s6631_s25 }
 0x213   : > { %v7715_v38 = vpop.permute.xlu1 %2639 }
 0x214   : > { %v2051_v25 = vpop.permute.xlu0 %2050 }
 0x215   : > { %2293 = vrot.lane.b32.xlu1 %v7717_v36, %s6625_s19  ;;  %2143 = vst.msk [vmem:[#allocation3 + $0x20] sm:$0xff] %vm2138_vm4, %v2051_v25 }
 0x216   : > { %2669 = vrot.lane.b32.xlu0 %v2004_v29, %s6632_s26 }
 0x217   : > { %v2644_v23 = vpop.permute.xlu1 %2643 }
 0x218   : > { %2729 = vst.msk [vmem:[#allocation3 + $0x58] sm:$0xff] %vm2717_vm11, %v2644_v23  ;;  %v2429_v49 = vpop.permute.xlu0 %2428 }
 0x219   : > { %2478 = vrot.lane.b32.xlu1 %v7472_v2, %s6631_s25  ;;  %2525 = vst.msk [vmem:[#allocation3] sm:$0xff] %vm2524_vm10, %v2429_v49 }
 0x21a   : > { %2673 = vrot.lane.b32.xlu0 %v2006_v32, %s6632_s26 }
 0x21b   : > { %v2049_v34 = vpop.permute.xlu1 %2048 }
 0x21c   : > { %2142 = vst.msk [vmem:[#allocation3 + $0x18] sm:$0xff] %vm2138_vm4, %v2049_v34  ;;  %v7729_v47 = vpop.permute.xlu0 %2432  ;;  %v7784_v34 = vld [vmem:[#allocation2 + $0x152] sm:$0xff] }
 0x21d   : > { %2482 = vrot.lane.b32.xlu1 %v7504_v10, %s6631_s25 }
 0x21e   : > { %2078 = vrot.lane.b32.xlu0 %v1996_v3, %s6624_s18 }
 0x21f   : > { %v2053_v56 = vpop.permute.xlu1 %2052 }
 0x220   : > { %2144 = vst.msk [vmem:[#allocation3 + $0x28] sm:$0xff] %vm2138_vm4, %v2053_v56  ;;  %v2622_v50 = vpop.permute.xlu0 %2621 }
 0x221   : > { %2671 = vrot.lane.b32.xlu1 %v2005_v4, %s6632_s26  ;;  %2718 = vst.msk [vmem:[#allocation3] sm:$0xff] %vm2717_vm11, %v2622_v50 }
 0x222   : > { %2082 = vrot.lane.b32.xlu0 %v1998_v15, %s6624_s18 }
 0x223   : > { %v2242_v28 = vpop.permute.xlu1 %2241 }
 0x224   : > { %2335 = vst.msk [vmem:[#allocation3 + $0x18] sm:$0xff] %vm2331_vm5, %v2242_v28  ;;  %v7739_v52 = vpop.permute.xlu0 %2625  ;;  %v7797_v28 = vld [vmem:[#allocation2 + $0x180] sm:$0xff] }
 0x225   : > { %2675 = vrot.lane.b32.xlu1 %v2007_v43, %s6632_s26  ;;  %v7765_v43 = vld [vmem:[#allocation2 + $0xfa] sm:$0xff] }
 0x226   : > { %2460 = vrot.lane.b32.xlu0 %v7511_v11, %s6631_s25 }
 0x227   : > { %v2246_v12 = vpop.permute.xlu1 %2245 }
 0x228   : > { %2337 = vst.msk [vmem:[#allocation3 + $0x28] sm:$0xff] %vm2331_vm5, %v2246_v12  ;;  %v2071_v57 = vpop.permute.xlu0 %2070 }
 0x229   : > { %2080 = vrot.lane.b32.xlu1 %v1997_v51, %s6624_s18  ;;  %2153 = vst.msk [vmem:[#allocation3 + $0x70] sm:$0xff] %vm2138_vm4, %v2071_v57 }
 0x22a   : > { %2464 = vrot.lane.b32.xlu0 %v7549_v18, %s6631_s25 }
 0x22b   : > { %v2431_v46 = vpop.permute.xlu1 %2430 }
 0x22c   : > { %2526 = vst.msk [vmem:[#allocation3 + $0x8] sm:$0xff] %vm2524_vm10, %v2431_v46  ;;  %v2075_v14 = vpop.permute.xlu0 %2074 }
 0x22d   : > { %2084 = vrot.lane.b32.xlu1 %v1999_v59, %s6624_s18  ;;  %2155 = vst.msk [vmem:[#allocation3 + $0x80] sm:$0xff] %vm2138_vm4, %v2075_v14 }
 0x22e   : > { %2653 = vrot.lane.b32.xlu0 %v1996_v3, %s6632_s26 }
 0x22f   : > { %v2435_v29 = vpop.permute.xlu1 %2434 }
 0x230   : > { %2528 = vst.msk [vmem:[#allocation3 + $0x18] sm:$0xff] %vm2524_vm10, %v2435_v29  ;;  %v2256_v4 = vpop.permute.xlu0 %2255  ;;  %v7811_v29 = vld [vmem:[#allocation2 + $0x109] sm:$0xff] }
 0x231   : > { %2273 = vrot.lane.b32.xlu1 %v7754_v22, %s6625_s19  ;;  %2342 = vst.msk [vmem:[#allocation3 + $0x50] sm:$0xff] %vm2331_vm5, %v2256_v4 }
 0x232   : > { %2535 = vst.msk [vmem:[#allocation3 + $0x50] sm:$0xff] %vm2524_vm10, %v7691_v63  ;;  %2657 = vrot.lane.b32.xlu0 %v1998_v15, %s6632_s26 }
 0x233   : > { %2728 = vst.msk [vmem:[#allocation3 + $0x50] sm:$0xff] %vm2717_vm11, %v7702_v42  ;;  %v2624_v32 = vpop.permute.xlu1 %2623  ;;  %v7775_v42 = vld [vmem:[#allocation2 + $0x13a] sm:$0xff] }
 0x234   : > { %2719 = vst.msk [vmem:[#allocation3 + $0x8] sm:$0xff] %vm2717_vm11, %v2624_v32  ;;  %v2260_v62 = vpop.permute.xlu0 %2259 }
 0x235   : > { %2277 = vrot.lane.b32.xlu1 %v7765_v43, %s6625_s19  ;;  %2344 = vst.msk [vmem:[#allocation3 + $0x60] sm:$0xff] %vm2331_vm5, %v2260_v62  ;;  %v7819_v62 = vld [vmem:[#allocation2 + $0x121] sm:$0xff] }
 0x236   : > { %2102 = vrot.lane.b32.xlu0 %v2008_v6, %s6624_s18 }
 0x237   : > { %v2628_v63 = vpop.permute.xlu1 %2627 }
 0x238   : > { %2721 = vst.msk [vmem:[#allocation3 + $0x18] sm:$0xff] %vm2717_vm11, %v2628_v63  ;;  %v2453_v25 = vpop.permute.xlu0 %2452  ;;  %v7828_v63 = vld [vmem:[#allocation2 + $0x188] sm:$0xff] }
 0x239   : > { %2462 = vrot.lane.b32.xlu1 %v7528_v54, %s6631_s25  ;;  %2537 = vst.msk [vmem:[#allocation3 + $0x60] sm:$0xff] %vm2524_vm10, %v2453_v25 }
 0x23a   : > { %2287 = vrot.lane.b32.xlu0 %v7775_v42, %s6625_s19 }
 0x23b   : > { %v2073_v23 = vpop.permute.xlu1 %2072 }
 0x23c   : > { %2154 = vst.msk [vmem:[#allocation3 + $0x78] sm:$0xff] %vm2138_vm4, %v2073_v23  ;;  %v7780_v49 = vpop.permute.xlu0 %2456  ;;  %v7833_v23 = vld [vmem:[#allocation2 + $0xda] sm:$0xff] }
 0x23d   : > { %2466 = vrot.lane.b32.xlu1 %v7558_v44, %s6631_s25 }
 0x23e   : > { %2291 = vrot.lane.b32.xlu0 %v7784_v34, %s6625_s19 }
 0x23f   : > { %v2077_v3 = vpop.permute.xlu1 %2076 }
 0x240   : > { %2156 = vst.msk [vmem:[#allocation3 + $0x88] sm:$0xff] %vm2138_vm4, %v2077_v3  ;;  %v2646_v56 = vpop.permute.xlu0 %2645  ;;  %v7840_v3 = vld [vmem:[#allocation2 + $0xf2] sm:$0xff] }
 0x241   : > { %2655 = vrot.lane.b32.xlu1 %v1997_v51, %s6632_s26  ;;  %2730 = vst.msk [vmem:[#allocation3 + $0x60] sm:$0xff] %vm2717_vm11, %v2646_v56  ;;  %v2009_v51 = vld [vmem:[#allocation2 + $0x171] sm:$0xff] }
 0x242   : > { %2484 = vrot.lane.b32.xlu0 %v7562_v0, %s6631_s25 }
 0x243   : > { %v2266_v50 = vpop.permute.xlu1 %2265 }
 0x244   : > { %2347 = vst.msk [vmem:[#allocation3 + $0x78] sm:$0xff] %vm2331_vm5, %v2266_v50  ;;  %v7794_v15 = vpop.permute.xlu0 %2649  ;;  %v7845_v50 = vld [vmem:[#allocation2 + $0x111] sm:$0xff] }
 0x245   : > { %2659 = vrot.lane.b32.xlu1 %v1999_v59, %s6632_s26  ;;  %v7806_v59 = vld [vmem:[#allocation2 + $0x172] sm:$0xff] }
 0x246   : > { %2488 = vrot.lane.b32.xlu0 %v7797_v28, %s6631_s25 }
 0x247   : > { %v2270_v12 = vpop.permute.xlu1 %2269 }
 0x248   : > { %2349 = vst.msk [vmem:[#allocation3 + $0x88] sm:$0xff] %vm2331_vm5, %v2270_v12  ;;  %v2055_v57 = vpop.permute.xlu0 %2054 }
 0x249   : > { %2104 = vrot.lane.b32.xlu1 %v2009_v51, %s6624_s18  ;;  %2145 = vst.msk [vmem:[#allocation3 + $0x30] sm:$0xff] %vm2138_vm4, %v2055_v57  ;;  %v7852_v57 = vld [vmem:[#allocation2 + $0x129] sm:$0xff] }
 0x24a   : > { %2677 = vrot.lane.b32.xlu0 %v2008_v6, %s6632_s26 }
 0x24b   : > { %v2455_v46 = vpop.permute.xlu1 %2454 }
 0x24c   : > { %2538 = vst.msk [vmem:[#allocation3 + $0x68] sm:$0xff] %vm2524_vm10, %v2455_v46  ;;  %v2059_v14 = vpop.permute.xlu0 %2058 }
 0x24d   : > { %2297 = vrot.lane.b32.xlu1 %v7806_v59, %s6625_s19  ;;  %2147 = vst.msk [vmem:[#allocation3 + $0x40] sm:$0xff] %vm2138_vm4, %v2059_v14 }
 0x24e   : > { %2086 = vrot.lane.b32.xlu0 %v7811_v29, %s6624_s18 }
 0x24f   : > { %v2459_v4 = vpop.permute.xlu1 %2458 }
 0x250   : > { %2540 = vst.msk [vmem:[#allocation3 + $0x78] sm:$0xff] %vm2524_vm10, %v2459_v4  ;;  %v2240_v32 = vpop.permute.xlu0 %2239  ;;  %v7860_v4 = vld [vmem:[#allocation2 + $0x112] sm:$0xff] }
 0x251   : > { %2486 = vrot.lane.b32.xlu1 %v7579_v58, %s6631_s25  ;;  %2334 = vst.msk [vmem:[#allocation3 + $0x10] sm:$0xff] %vm2331_vm5, %v2240_v32 }
 0x252   : > { %2527 = vst.msk [vmem:[#allocation3 + $0x10] sm:$0xff] %vm2524_vm10, %v7729_v47  ;;  %2090 = vrot.lane.b32.xlu0 %v7819_v62, %s6624_s18 }
 0x253   : > { %2720 = vst.msk [vmem:[#allocation3 + $0x10] sm:$0xff] %vm2717_vm11, %v7739_v52  ;;  %v2648_v6 = vpop.permute.xlu1 %2647 }
 0x254   : > { %2731 = vst.msk [vmem:[#allocation3 + $0x68] sm:$0xff] %vm2717_vm11, %v2648_v6  ;;  %v2244_v25 = vpop.permute.xlu0 %2243 }
 0x255   : > { %2490 = vrot.lane.b32.xlu1 %v7828_v63, %s6631_s25  ;;  %2336 = vst.msk [vmem:[#allocation3 + $0x20] sm:$0xff] %vm2331_vm5, %v2244_v25  ;;  %v7867_v25 = vld [vmem:[#allocation2 + $0x12a] sm:$0xff] }
 0x256   : > { %2271 = vrot.lane.b32.xlu0 %v7833_v23, %s6625_s19 }
 0x257   : > { %v2652_v47 = vpop.permute.xlu1 %2651 }
 0x258   : > { %2733 = vst.msk [vmem:[#allocation3 + $0x78] sm:$0xff] %vm2717_vm11, %v2652_v47  ;;  %v2437_v52 = vpop.permute.xlu0 %2436 }
 0x259   : > { %2679 = vrot.lane.b32.xlu1 %v2009_v51, %s6632_s26  ;;  %2529 = vst.msk [vmem:[#allocation3 + $0x20] sm:$0xff] %vm2524_vm10, %v2437_v52 }
 0x25a   : > { %2275 = vrot.lane.b32.xlu0 %v7840_v3, %s6625_s19 }
 0x25b   : > { %v2057_v56 = vpop.permute.xlu1 %2056 }
 0x25c   : > { %2146 = vst.msk [vmem:[#allocation3 + $0x38] sm:$0xff] %vm2138_vm4, %v2057_v56  ;;  %v2441_v12 = vpop.permute.xlu0 %2440  ;;  %v7886_v56 = vld [vmem:[#allocation2 + $0x16a] sm:$0xff] }
 0x25d   : > { %2088 = vrot.lane.b32.xlu1 %v7845_v50, %s6624_s18 }
 0x25e   : > { %2468 = vrot.lane.b32.xlu0 %v7609_v41, %s6631_s25 }
 0x25f   : > { %v2061_v51 = vpop.permute.xlu1 %2060 }
 0x260   : > { %2148 = vst.msk [vmem:[#allocation3 + $0x48] sm:$0xff] %vm2138_vm4, %v2061_v51  ;;  %v2630_v46 = vpop.permute.xlu0 %2629 }
 0x261   : > { %2092 = vrot.lane.b32.xlu1 %v7852_v57, %s6624_s18  ;;  %2722 = vst.msk [vmem:[#allocation3 + $0x20] sm:$0xff] %vm2717_vm11, %v2630_v46 }
 0x262   : > { %2472 = vrot.lane.b32.xlu0 %v7631_v5, %s6631_s25 }
 0x263   : > { %v2250_v14 = vpop.permute.xlu1 %2249 }
 0x264   : > { %2339 = vst.msk [vmem:[#allocation3 + $0x38] sm:$0xff] %vm2331_vm5, %v2250_v14  ;;  %v2634_v32 = vpop.permute.xlu0 %2633  ;;  %v7904_v14 = vld [vmem:[#allocation2 + $0x122] sm:$0xff] }
 0x265   : > { %2281 = vrot.lane.b32.xlu1 %v7860_v4, %s6625_s19 }
 0x266   : > { %2661 = vrot.lane.b32.xlu0 %v7811_v29, %s6632_s26 }
 0x267   : > { %v2254_v6 = vpop.permute.xlu1 %2253 }
 0x268   : > { %2341 = vst.msk [vmem:[#allocation3 + $0x48] sm:$0xff] %vm2331_vm5, %v2254_v6  ;;  %v2264_v47 = vpop.permute.xlu0 %2263  ;;  %v2587_v6 = vld [vmem:[#allocation2 + $0x181] sm:$0xff] }
 0x269   : > { %2534 = vst.msk [vmem:[#allocation3 + $0x48] sm:$0xff] %vm2524_vm10, %v7700_v20  ;;  %2285 = vrot.lane.b32.xlu1 %v7867_v25, %s6625_s19 }
 0x26a   : > { %2346 = vst.msk [vmem:[#allocation3 + $0x70] sm:$0xff] %vm2331_vm5, %v2264_v47  ;;  %2665 = vrot.lane.b32.xlu0 %v7819_v62, %s6632_s26 }
 0x26b   : > { %2727 = vst.msk [vmem:[#allocation3 + $0x48] sm:$0xff] %vm2717_vm11, %v7715_v38  ;;  %v2439_v52 = vpop.permute.xlu1 %2438 }
 0x26c   : > { %2539 = vst.msk [vmem:[#allocation3 + $0x70] sm:$0xff] %vm2524_vm10, %v7780_v49  ;;  %2530 = vst.msk [vmem:[#allocation3 + $0x28] sm:$0xff] %vm2524_vm10, %v2439_v52  ;;  %v2268_v20 = vpop.permute.xlu0 %2267 }
 0x26d   : > { %2732 = vst.msk [vmem:[#allocation3 + $0x70] sm:$0xff] %vm2717_vm11, %v7794_v15  ;;  %2470 = vrot.lane.b32.xlu1 %v7619_v26, %s6631_s25  ;;  %v7894_v15 = vld [vmem:[#allocation2 + $0x10a] sm:$0xff] }
 0x26e   : > { %2348 = vst.msk [vmem:[#allocation3 + $0x80] sm:$0xff] %vm2331_vm5, %v2268_v20  ;;  %2295 = vrot.lane.b32.xlu0 %v7886_v56, %s6625_s19 }
 0x26f   : > { %v2443_v38 = vpop.permute.xlu1 %2442 }
 0x270   : > { %2532 = vst.msk [vmem:[#allocation3 + $0x38] sm:$0xff] %vm2524_vm10, %v2443_v38  ;;  %v2248_v49 = vpop.permute.xlu0 %2247 }
 0x271   : > { %2474 = vrot.lane.b32.xlu1 %v7637_v24, %s6631_s25  ;;  %2338 = vst.msk [vmem:[#allocation3 + $0x30] sm:$0xff] %vm2331_vm5, %v2248_v49 }
 0x272   : > { %2531 = vst.msk [vmem:[#allocation3 + $0x30] sm:$0xff] %vm2524_vm10, %v2441_v12  ;;  %2279 = vrot.lane.b32.xlu0 %v7894_v15, %s6625_s19 }
 0x273   : > { %2724 = vst.msk [vmem:[#allocation3 + $0x30] sm:$0xff] %vm2717_vm11, %v2634_v32  ;;  %v2632_v51 = vpop.permute.xlu1 %2631 }
 0x274   : > { %2723 = vst.msk [vmem:[#allocation3 + $0x28] sm:$0xff] %vm2717_vm11, %v2632_v51  ;;  %v2252_v46 = vpop.permute.xlu0 %2251 }
 0x275   : > { %2663 = vrot.lane.b32.xlu1 %v7845_v50, %s6632_s26  ;;  %2340 = vst.msk [vmem:[#allocation3 + $0x40] sm:$0xff] %vm2331_vm5, %v2252_v46 }
 0x276   : > { %2533 = vst.msk [vmem:[#allocation3 + $0x40] sm:$0xff] %vm2524_vm10, %v7683_v9  ;;  %2283 = vrot.lane.b32.xlu0 %v7904_v14, %s6625_s19  ;;  %v2588_v9 = vld [vmem:[#allocation2 + $0x189] sm:$0xff] }
 0x277   : > { %2726 = vst.msk [vmem:[#allocation3 + $0x40] sm:$0xff] %vm2717_vm11, %v7696_v1  ;;  %v2636_v12 = vpop.permute.xlu1 %2635 }
 0x278   : > { %2725 = vst.msk [vmem:[#allocation3 + $0x38] sm:$0xff] %vm2717_vm11, %v2636_v12  ;;  %v2095_v32 = vpop.permute.xlu0 %2094 }
 0x279   : > { %2667 = vrot.lane.b32.xlu1 %v7852_v57, %s6632_s26  ;;  %2165 = vst.msk [vmem:[#allocation3 + $0xd0] sm:$0xff] %vm2138_vm4, %v2095_v32 }
 0x27a   : > { %2681 = vrot.lane.b32.xlu0 %v2587_v6, %s6632_s26 }
 0x27b   : > { %v2097_v47 = vpop.permute.xlu1 %2096 }
 0x27c   : > { %2166 = vst.msk [vmem:[#allocation3 + $0xd8] sm:$0xff] %vm2138_vm4, %v2097_v47  ;;  %v2099_v52 = vpop.permute.xlu0 %2098 }
 0x27d   : > { %2683 = vrot.lane.b32.xlu1 %v2588_v9, %s6632_s26  ;;  %2167 = vst.msk [vmem:[#allocation3 + $0xe0] sm:$0xff] %vm2138_vm4, %v2099_v52 }
 0x27e   : > { %2814 = vrot.lane.b32.xlu0 %v7629_v39, %s6633_s29 }
 0x27f   : > { %v2101_v1 = vpop.permute.xlu1 %2100 }
 0x280   : > { %2168 = vst.msk [vmem:[#allocation3 + $0xe8] sm:$0xff] %vm2138_vm4, %v2101_v1  ;;  %v7923_v20 = vpop.permute.xlu0 %2476  ;;  %v2945_v1 = vld [vmem:[#allocation2 + $0x38] sm:$0xff] }
 0x281   : > { %2816 = vrot.lane.b32.xlu1 %v7447_v16, %s6633_s29 }
 0x282   : > { %2818 = vrot.lane.b32.xlu0 %v7640_v30, %s6633_s29 }
 0x283   : > { %v2290_v38 = vpop.permute.xlu1 %2289 }
 0x284   : > { %2359 = vst.msk [vmem:[#allocation3 + $0xd8] sm:$0xff] %vm2331_vm5, %v2290_v38  ;;  %v2481_v49 = vpop.permute.xlu0 %2480 }
 0x285   : > { %2820 = vrot.lane.b32.xlu1 %v7470_v40, %s6633_s29 }
 0x286   : > { %2822 = vrot.lane.b32.xlu0 %v7678_v13, %s6633_s29  ;;  %v7948_v13 = vld [vmem:[#allocation2 + $0x82] sm:$0xff] }
 0x287   : > { %v2294_v39 = vpop.permute.xlu1 %2293 }
 0x288   : > { %2361 = vst.msk [vmem:[#allocation3 + $0xe8] sm:$0xff] %vm2331_vm5, %v2294_v39  ;;  %v7935_v51 = vpop.permute.xlu0 %2669 }
 0x289   : > { %2824 = vrot.lane.b32.xlu1 %v7654_v37, %s6633_s29 }
 0x28a   : > { %2826 = vrot.lane.b32.xlu0 %v7686_v55, %s6633_s29 }
 0x28b   : > { %v7941_v16 = vpop.permute.xlu1 %2478 }
 0x28c   : > { %v2674_v30 = vpop.permute.xlu0 %2673 }
 0x28d   : > { %2828 = vrot.lane.b32.xlu1 %v7659_v21, %s6633_s29  ;;  %v7957_v21 = vld [vmem:[#allocation2 + $0x9a] sm:$0xff] }
 0x28e   : > { %2830 = vrot.lane.b32.xlu0 %v7509_v35, %s6633_s29 }
 0x28f   : > { %v2483_v40 = vpop.permute.xlu1 %2482 }
 0x290   : > { %2552 = vst.msk [vmem:[#allocation3 + $0xd8] sm:$0xff] %vm2524_vm10, %v2483_v40  ;;  %v2079_v46 = vpop.permute.xlu0 %2078 }
 0x291   : > { %2832 = vrot.lane.b32.xlu1 %v7948_v13, %s6633_s29  ;;  %2157 = vst.msk [vmem:[#allocation3 + $0x90] sm:$0xff] %vm2138_vm4, %v2079_v46 }
 0x292   : > { %2834 = vrot.lane.b32.xlu0 %v7534_v31, %s6633_s29 }
 0x293   : > { %v7955_v37 = vpop.permute.xlu1 %2671 }
 0x294   : > { %v2083_v55 = vpop.permute.xlu0 %2082 }
 0x295   : > { %2836 = vrot.lane.b32.xlu1 %v7957_v21, %s6633_s29  ;;  %2159 = vst.msk [vmem:[#allocation3 + $0xa0] sm:$0xff] %vm2138_vm4, %v2083_v55 }
 0x296   : > { %2838 = vrot.lane.b32.xlu0 %v7664_v48, %s6633_s29 }
 0x297   : > { %v2676_v35 = vpop.permute.xlu1 %2675 }
 0x298   : > { %2745 = vst.msk [vmem:[#allocation3 + $0xd8] sm:$0xff] %vm2717_vm11, %v2676_v35  ;;  %v2461_v12 = vpop.permute.xlu0 %2460  ;;  %v2953_v35 = vld [vmem:[#allocation2 + $0x98] sm:$0xff] }
 0x299   : > { %2840 = vrot.lane.b32.xlu1 %v7594_v8, %s6633_s29  ;;  %2541 = vst.msk [vmem:[#allocation3 + $0x80] sm:$0xff] %vm2524_vm10, %v2461_v12 }
 0x29a   : > { %2842 = vrot.lane.b32.xlu0 %v7671_v7, %s6633_s29 }
 0x29b   : > { %v2081_v31 = vpop.permute.xlu1 %2080 }
 0x29c   : > { %2158 = vst.msk [vmem:[#allocation3 + $0x98] sm:$0xff] %vm2138_vm4, %v2081_v31  ;;  %v7971_v32 = vpop.permute.xlu0 %2464  ;;  %v2954_v31 = vld [vmem:[#allocation2 + $0xa8] sm:$0xff] }
 0x29d   : > { %2844 = vrot.lane.b32.xlu1 %v7604_v53, %s6633_s29 }
 0x29e   : > { %2846 = vrot.lane.b32.xlu0 %v7833_v23, %s6633_s29 }
 0x29f   : > { %v2085_v48 = vpop.permute.xlu1 %2084 }
 0x2a0   : > { %2160 = vst.msk [vmem:[#allocation3 + $0xa8] sm:$0xff] %vm2138_vm4, %v2085_v48  ;;  %v2654_v8 = vpop.permute.xlu0 %2653  ;;  %v2955_v48 = vld [vmem:[#allocation2 + $0xb0] sm:$0xff] }
 0x2a1   : > { %2848 = vrot.lane.b32.xlu1 %v7754_v22, %s6633_s29  ;;  %2734 = vst.msk [vmem:[#allocation3 + $0x80] sm:$0xff] %vm2717_vm11, %v2654_v8 }
 0x2a2   : > { %2850 = vrot.lane.b32.xlu0 %v7840_v3, %s6633_s29 }
 0x2a3   : > { %v2274_v7 = vpop.permute.xlu1 %2273 }
 0x2a4   : > { %2351 = vst.msk [vmem:[#allocation3 + $0x98] sm:$0xff] %vm2331_vm5, %v2274_v7  ;;  %v7984_v6 = vpop.permute.xlu0 %2657  ;;  %v2956_v7 = vld [vmem:[#allocation2 + $0xc0] sm:$0xff] }
 0x2a5   : > { %2852 = vrot.lane.b32.xlu1 %v7765_v43, %s6633_s29 }
 0x2a6   : > { %2854 = vrot.lane.b32.xlu0 %v7894_v15, %s6633_s29 }
 0x2a7   : > { %v2278_v53 = vpop.permute.xlu1 %2277 }
 0x2a8   : > { %2353 = vst.msk [vmem:[#allocation3 + $0xa8] sm:$0xff] %vm2331_vm5, %v2278_v53  ;;  %v2103_v22 = vpop.permute.xlu0 %2102  ;;  %v2957_v53 = vld [vmem:[#allocation2 + $0xc8] sm:$0xff] }
 0x2a9   : > { %2856 = vrot.lane.b32.xlu1 %v7860_v4, %s6633_s29  ;;  %2169 = vst.msk [vmem:[#allocation3 + $0xf0] sm:$0xff] %vm2138_vm4, %v2103_v22 }
 0x2aa   : > { %2858 = vrot.lane.b32.xlu0 %v7904_v14, %s6633_s29 }
 0x2ab   : > { %v2463_v23 = vpop.permute.xlu1 %2462 }
 0x2ac   : > { %2542 = vst.msk [vmem:[#allocation3 + $0x88] sm:$0xff] %vm2524_vm10, %v2463_v23  ;;  %v2288_v3 = vpop.permute.xlu0 %2287 }
 0x2ad   : > { %2860 = vrot.lane.b32.xlu1 %v7867_v25, %s6633_s29  ;;  %2358 = vst.msk [vmem:[#allocation3 + $0xd0] sm:$0xff] %vm2331_vm5, %v2288_v3 }
 0x2ae   : > { %2551 = vst.msk [vmem:[#allocation3 + $0xd0] sm:$0xff] %vm2524_vm10, %v2481_v49  ;;  %2862 = vrot.lane.b32.xlu0 %v7775_v42, %s6633_s29 }
 0x2af   : > { %2744 = vst.msk [vmem:[#allocation3 + $0xd0] sm:$0xff] %vm2717_vm11, %v2674_v30  ;;  %v2467_v43 = vpop.permute.xlu1 %2466 }
 0x2b0   : > { %2544 = vst.msk [vmem:[#allocation3 + $0x98] sm:$0xff] %vm2524_vm10, %v2467_v43  ;;  %v2292_v4 = vpop.permute.xlu0 %2291 }
 0x2b1   : > { %2864 = vrot.lane.b32.xlu1 %v7708_v17, %s6633_s29  ;;  %2360 = vst.msk [vmem:[#allocation3 + $0xe0] sm:$0xff] %vm2331_vm5, %v2292_v4 }
 0x2b2   : > { %2866 = vrot.lane.b32.xlu0 %v7784_v34, %s6633_s29  ;;  %v8021_v34 = vld [vmem:[#allocation2 + $0x182] sm:$0xff] }
 0x2b3   : > { %v2656_v25 = vpop.permute.xlu1 %2655 }
 0x2b4   : > { %2735 = vst.msk [vmem:[#allocation3 + $0x88] sm:$0xff] %vm2717_vm11, %v2656_v25  ;;  %v2485_v47 = vpop.permute.xlu0 %2484  ;;  %v3139_v25 = vld [vmem:[#allocation2 + $0x49] sm:$0xff] }
 0x2b5   : > { %2868 = vrot.lane.b32.xlu1 %v7717_v36, %s6633_s29  ;;  %2553 = vst.msk [vmem:[#allocation3 + $0xe0] sm:$0xff] %vm2524_vm10, %v2485_v47  ;;  %v8026_v36 = vld [vmem:[#allocation2 + $0x18a] sm:$0xff] }
 0x2b6   : > { %2870 = vrot.lane.b32.xlu0 %v7886_v56, %s6633_s29  ;;  %v2944_v56 = vld [vmem:[#allocation2 + $0x30] sm:$0xff] }
 0x2b7   : > { %v2660_v42 = vpop.permute.xlu1 %2659 }
 0x2b8   : > { %2737 = vst.msk [vmem:[#allocation3 + $0x98] sm:$0xff] %vm2717_vm11, %v2660_v42  ;;  %v8017_v17 = vpop.permute.xlu0 %2488  ;;  %v3140_v42 = vld [vmem:[#allocation2 + $0x51] sm:$0xff] }
 0x2b9   : > { %2872 = vrot.lane.b32.xlu1 %v7806_v59, %s6633_s29 }
 0x2ba   : > { %2874 = vrot.lane.b32.xlu0 %v8021_v34, %s6633_s29 }
 0x2bb   : > { %v2105_v9 = vpop.permute.xlu1 %2104 }
 0x2bc   : > { %2170 = vst.msk [vmem:[#allocation3 + $0xf8] sm:$0xff] %vm2138_vm4, %v2105_v9  ;;  %v2678_v52 = vpop.permute.xlu0 %2677  ;;  %v3141_v9 = vld [vmem:[#allocation2 + $0x61] sm:$0xff] }
 0x2bd   : > { %2876 = vrot.lane.b32.xlu1 %v8026_v36, %s6633_s29  ;;  %2746 = vst.msk [vmem:[#allocation3 + $0xe0] sm:$0xff] %vm2717_vm11, %v2678_v52 }
 0x2be   : > { %3008 = vrot.lane.b32.xlu0 %v2944_v56, %s6634_s30  ;;  %v3142_v56 = vld [vmem:[#allocation2 + $0x69] sm:$0xff] }
 0x2bf   : > { %v2298_v59 = vpop.permute.xlu1 %2297 }
 0x2c0   : > { %2363 = vst.msk [vmem:[#allocation3 + $0xf8] sm:$0xff] %vm2331_vm5, %v2298_v59  ;;  %v2087_v38 = vpop.permute.xlu0 %2086 }
 0x2c1   : > { %3010 = vrot.lane.b32.xlu1 %v2945_v1, %s6634_s30  ;;  %2161 = vst.msk [vmem:[#allocation3 + $0xb0] sm:$0xff] %vm2138_vm4, %v2087_v38  ;;  %v3143_v1 = vld [vmem:[#allocation2 + $0x79] sm:$0xff] }
 0x2c2   : > { %3012 = vrot.lane.b32.xlu0 %v7323_v61, %s6634_s30  ;;  %v2950_v61 = vld [vmem:[#allocation2 + $0x78] sm:$0xff] }
 0x2c3   : > { %v2487_v49 = vpop.permute.xlu1 %2486 }
 0x2c4   : > { %2554 = vst.msk [vmem:[#allocation3 + $0xe8] sm:$0xff] %vm2524_vm10, %v2487_v49  ;;  %v2091_v39 = vpop.permute.xlu0 %2090  ;;  %v3144_v49 = vld [vmem:[#allocation2 + $0x81] sm:$0xff] }
 0x2c5   : > { %3014 = vrot.lane.b32.xlu1 %v7418_v45, %s6634_s30  ;;  %2163 = vst.msk [vmem:[#allocation3 + $0xc0] sm:$0xff] %vm2138_vm4, %v2091_v39 }
 0x2c6   : > { %3016 = vrot.lane.b32.xlu0 %v7439_v60, %s6634_s30  ;;  %v2951_v60 = vld [vmem:[#allocation2 + $0x80] sm:$0xff] }
 0x2c7   : > { %v2491_v30 = vpop.permute.xlu1 %2490 }
 0x2c8   : > { %2556 = vst.msk [vmem:[#allocation3 + $0xf8] sm:$0xff] %vm2524_vm10, %v2491_v30  ;;  %v2272_v40 = vpop.permute.xlu0 %2271  ;;  %v3145_v30 = vld [vmem:[#allocation2 + $0x91] sm:$0xff] }
 0x2c9   : > { %3018 = vrot.lane.b32.xlu1 %v7449_v33, %s6634_s30  ;;  %2350 = vst.msk [vmem:[#allocation3 + $0x90] sm:$0xff] %vm2331_vm5, %v2272_v40  ;;  %v2952_v33 = vld [vmem:[#allocation2 + $0x90] sm:$0xff] }
 0x2ca   : > { %2543 = vst.msk [vmem:[#allocation3 + $0x90] sm:$0xff] %vm2524_vm10, %v7971_v32  ;;  %3020 = vrot.lane.b32.xlu0 %v2950_v61, %s6634_s30  ;;  %v3146_v61 = vld [vmem:[#allocation2 + $0x99] sm:$0xff] }
 0x2cb   : > { %2736 = vst.msk [vmem:[#allocation3 + $0x90] sm:$0xff] %vm2717_vm11, %v7984_v6  ;;  %v2680_v45 = vpop.permute.xlu1 %2679 }
 0x2cc   : > { %2747 = vst.msk [vmem:[#allocation3 + $0xe8] sm:$0xff] %vm2717_vm11, %v2680_v45  ;;  %v2276_v46 = vpop.permute.xlu0 %2275 }
 0x2cd   : > { %3022 = vrot.lane.b32.xlu1 %v2951_v60, %s6634_s30  ;;  %2352 = vst.msk [vmem:[#allocation3 + $0xa0] sm:$0xff] %vm2331_vm5, %v2276_v46  ;;  %v3147_v60 = vld [vmem:[#allocation2 + $0xa9] sm:$0xff] }
 0x2ce   : > { %3024 = vrot.lane.b32.xlu0 %v2952_v33, %s6634_s30  ;;  %v3148_v33 = vld [vmem:[#allocation2 + $0xb1] sm:$0xff] }
 0x2cf   : > { %v2089_v55 = vpop.permute.xlu1 %2088 }
 0x2d0   : > { %2162 = vst.msk [vmem:[#allocation3 + $0xb8] sm:$0xff] %vm2138_vm4, %v2089_v55  ;;  %v2469_v12 = vpop.permute.xlu0 %2468 }
 0x2d1   : > { %3026 = vrot.lane.b32.xlu1 %v2953_v35, %s6634_s30  ;;  %2545 = vst.msk [vmem:[#allocation3 + $0xa0] sm:$0xff] %vm2524_vm10, %v2469_v12  ;;  %v3149_v35 = vld [vmem:[#allocation2 + $0xc1] sm:$0xff] }
 0x2d2   : > { %3028 = vrot.lane.b32.xlu0 %v2954_v31, %s6634_s30  ;;  %v3150_v31 = vld [vmem:[#allocation2 + $0xc9] sm:$0xff] }
 0x2d3   : > { %v2093_v32 = vpop.permute.xlu1 %2092 }
 0x2d4   : > { %2164 = vst.msk [vmem:[#allocation3 + $0xc8] sm:$0xff] %vm2138_vm4, %v2093_v32  ;;  %v2473_v8 = vpop.permute.xlu0 %2472 }
 0x2d5   : > { %3030 = vrot.lane.b32.xlu1 %v2955_v48, %s6634_s30  ;;  %v3151_v48 = vld [vmem:[#allocation2 + $0xd9] sm:$0xff] }
 0x2d6   : > { %3032 = vrot.lane.b32.xlu0 %v2956_v7, %s6634_s30  ;;  %v3152_v7 = vld [vmem:[#allocation2 + $0xe1] sm:$0xff] }
 0x2d7   : > { %v2282_v6 = vpop.permute.xlu1 %2281 }
 0x2d8   : > { %2355 = vst.msk [vmem:[#allocation3 + $0xb8] sm:$0xff] %vm2331_vm5, %v2282_v6  ;;  %v2662_v22 = vpop.permute.xlu0 %2661 }
 0x2d9   : > { %3034 = vrot.lane.b32.xlu1 %v2957_v53, %s6634_s30  ;;  %2738 = vst.msk [vmem:[#allocation3 + $0xa0] sm:$0xff] %vm2717_vm11, %v2662_v22  ;;  %v3153_v53 = vld [vmem:[#allocation2 + $0xf1] sm:$0xff] }
 0x2da   : > { %3036 = vrot.lane.b32.xlu0 %v7511_v11, %s6634_s30 }
 0x2db   : > { %v2286_v23 = vpop.permute.xlu1 %2285 }
 0x2dc   : > { %2357 = vst.msk [vmem:[#allocation3 + $0xc8] sm:$0xff] %vm2331_vm5, %v2286_v23  ;;  %v2666_v3 = vpop.permute.xlu0 %2665  ;;  %v3154_v23 = vld [vmem:[#allocation2 + $0xf9] sm:$0xff] }
 0x2dd   : > { %2550 = vst.msk [vmem:[#allocation3 + $0xc8] sm:$0xff] %vm2524_vm10, %v7941_v16  ;;  %3038 = vrot.lane.b32.xlu1 %v7528_v54, %s6634_s30 }
 0x2de   : > { %2743 = vst.msk [vmem:[#allocation3 + $0xc8] sm:$0xff] %vm2717_vm11, %v7955_v37  ;;  %3040 = vrot.lane.b32.xlu0 %v7549_v18, %s6634_s30 }
 0x2df   : > { %v2471_v43 = vpop.permute.xlu1 %2470 }
 0x2e0   : > { %2546 = vst.msk [vmem:[#allocation3 + $0xa8] sm:$0xff] %vm2524_vm10, %v2471_v43  ;;  %v2296_v11 = vpop.permute.xlu0 %2295  ;;  %v6604_v43 = vld [vmem:[%s9592_s4] sm:$0xff]  }
 0x2e1   : > { %3042 = vrot.lane.b32.xlu1 %v7558_v44, %s6634_s30  ;;  %2362 = vst.msk [vmem:[#allocation3 + $0xf0] sm:$0xff] %vm2331_vm5, %v2296_v11  ;;  %6414 = vmatprep.subr.bf16.mxu1 %v6604_v43 }
 0x2e2   : > { %2555 = vst.msk [vmem:[#allocation3 + $0xf0] sm:$0xff] %vm2524_vm10, %v8017_v17  ;;  %3044 = vrot.lane.b32.xlu0 %v7609_v41, %s6634_s30  ;;  %6415 = vmatpush3.bf16.msra.mxu1 %v6604_v43 }
 0x2e3   : > { %v2475_v54 = vpop.permute.xlu1 %2474 }
 0x2e4   : > { %2548 = vst.msk [vmem:[#allocation3 + $0xb8] sm:$0xff] %vm2524_vm10, %v2475_v54  ;;  %v2280_v16 = vpop.permute.xlu0 %2279 }
 0x2e5   : > { %3046 = vrot.lane.b32.xlu1 %v7619_v26, %s6634_s30  ;;  %2354 = vst.msk [vmem:[#allocation3 + $0xb0] sm:$0xff] %vm2331_vm5, %v2280_v16  ;;  %v6605_v16 = vld [vmem:[%s9592_s4 + $0x8] sm:$0xff]  }
 0x2e6   : > { %2547 = vst.msk [vmem:[#allocation3 + $0xb0] sm:$0xff] %vm2524_vm10, %v2473_v8  ;;  %3048 = vrot.lane.b32.xlu0 %v7631_v5, %s6634_s30  ;;  %6416 = vmatprep.subr.bf16.mxu1 %v6605_v16 }
 0x2e7   : > { %2740 = vst.msk [vmem:[#allocation3 + $0xb0] sm:$0xff] %vm2717_vm11, %v2666_v3  ;;  %v2664_v18 = vpop.permute.xlu1 %2663  ;;  %6417 = vmatpush3.bf16.msra.mxu1 %v6605_v16 }
 0x2e8   : > { %2739 = vst.msk [vmem:[#allocation3 + $0xa8] sm:$0xff] %vm2717_vm11, %v2664_v18  ;;  %v2284_v44 = vpop.permute.xlu0 %2283 }
 0x2e9   : > { %3050 = vrot.lane.b32.xlu1 %v7637_v24, %s6634_s30  ;;  %2356 = vst.msk [vmem:[#allocation3 + $0xc0] sm:$0xff] %vm2331_vm5, %v2284_v44  ;;  %v6606_v44 = vld [vmem:[%s9592_s4 + $0x10] sm:$0xff]  }
 0x2ea   : > { %2549 = vst.msk [vmem:[#allocation3 + $0xc0] sm:$0xff] %vm2524_vm10, %v7923_v20  ;;  %3052 = vrot.lane.b32.xlu0 %v7454_v27, %s6634_s30  ;;  %v2974_v20 = vld [vmem:[#allocation2 + $0x198] sm:$0xff]  ;;  %6418 = vmatprep.subr.bf16.mxu1 %v6606_v44 }
 0x2eb   : > { %2742 = vst.msk [vmem:[#allocation3 + $0xc0] sm:$0xff] %vm2717_vm11, %v7935_v51  ;;  %v2668_v41 = vpop.permute.xlu1 %2667  ;;  %6419 = vmatpush3.bf16.msra.mxu1 %v6606_v44 }
 0x2ec   : > { %2741 = vst.msk [vmem:[#allocation3 + $0xb8] sm:$0xff] %vm2717_vm11, %v2668_v41  ;;  %v2682_v26 = vpop.permute.xlu0 %2681 }
 0x2ed   : > { %3054 = vrot.lane.b32.xlu1 %v7472_v2, %s6634_s30  ;;  %2748 = vst.msk [vmem:[#allocation3 + $0xf0] sm:$0xff] %vm2717_vm11, %v2682_v26 }
 0x2ee   : > { %3056 = vrot.lane.b32.xlu0 %v7495_v19, %s6634_s30 }
 0x2ef   : > { %v2684_v5 = vpop.permute.xlu1 %2683 }
 0x2f0   : > { %2749 = vst.msk [vmem:[#allocation3 + $0xf8] sm:$0xff] %vm2717_vm11, %v2684_v5  ;;  %v2815_v27 = vpop.permute.xlu0 %2814  ;;  %v6607_v5 = vld [vmem:[%s9592_s4 + $0x18] sm:$0xff]  }
 0x2f1   : > { %3058 = vrot.lane.b32.xlu1 %v7504_v10, %s6634_s30  ;;  %2911 = vst.msk [vmem:[#allocation3] sm:$0xff] %vm2910_vm12, %v2815_v27  ;;  %6420 = vmatprep.subr.bf16.mxu1 %v6607_v5 }
 0x2f2   : > { %3060 = vrot.lane.b32.xlu0 %v7562_v0, %s6634_s30  ;;  %v2975_v0 = vld [vmem:[#allocation2 + $0x1a0] sm:$0xff]  ;;  %6421 = vmatpush3.bf16.msra.mxu1 %v6607_v5 }
 0x2f3   : > { %v2817_v24 = vpop.permute.xlu1 %2816  ;;  %v3165_v5 = vld [vmem:[#allocation2 + $0x181] sm:$0xff] }
 0x2f4   : > { %2912 = vst.msk [vmem:[#allocation3 + $0x8] sm:$0xff] %vm2910_vm12, %v2817_v24  ;;  %v2819_v2 = vpop.permute.xlu0 %2818  ;;  %v3162_v24 = vld [vmem:[#allocation2 + $0x159] sm:$0xff] }
 0x2f5   : > { %3062 = vrot.lane.b32.xlu1 %v7579_v58, %s6634_s30  ;;  %2913 = vst.msk [vmem:[#allocation3 + $0x10] sm:$0xff] %vm2910_vm12, %v2819_v2 }
 0x2f6   : > { %3064 = vrot.lane.b32.xlu0 %v7797_v28, %s6634_s30  ;;  %v3137_v28 = vld [vmem:[#allocation2 + $0x31] sm:$0xff] }
 0x2f7   : > { %v2821_v19 = vpop.permute.xlu1 %2820 }
 0x2f8   : > { %2914 = vst.msk [vmem:[#allocation3 + $0x18] sm:$0xff] %vm2910_vm12, %v2821_v19  ;;  %v2823_v10 = vpop.permute.xlu0 %2822  ;;  %v3330_v19 = vld [vmem:[#allocation2 + $0x32] sm:$0xff] }
 0x2f9   : > { %3066 = vrot.lane.b32.xlu1 %v7828_v63, %s6634_s30  ;;  %2915 = vst.msk [vmem:[#allocation3 + $0x20] sm:$0xff] %vm2910_vm12, %v2823_v10  ;;  %v3138_v63 = vld [vmem:[#allocation2 + $0x39] sm:$0xff] }
 0x2fa   : > { %3068 = vrot.lane.b32.xlu0 %v2974_v20, %s6634_s30  ;;  %v6608_v20 = vld [vmem:[%s9592_s4 + $0x20] ss:$0 sps:$4 sm:$0xff]  }
 0x2fb   : > { %v2825_v51 = vpop.permute.xlu1 %2824  ;;  %6499 = vmatprep.subr.msk.bf16.mxu1 %vm405_vm0, %v6608_v20 }
 0x2fc   : > { %2916 = vst.msk [vmem:[#allocation3 + $0x28] sm:$0xff] %vm2910_vm12, %v2825_v51  ;;  %v2827_v58 = vpop.permute.xlu0 %2826  ;;  %v3331_v51 = vld [vmem:[#allocation2 + $0x3a] sm:$0xff] }
 0x2fd   : > { %3070 = vrot.lane.b32.xlu1 %v2975_v0, %s6634_s30  ;;  %2917 = vst.msk [vmem:[#allocation3 + $0x30] sm:$0xff] %vm2910_vm12, %v2827_v58  ;;  %v3664_v0 = vsel %vm405_vm0, %v6608_v20, 0  ;;  %v3168_v20 = vld [vmem:[#allocation2 + $0x1a1] sm:$0xff] }
 0x2fe   : > { %3201 = vrot.lane.b32.xlu0 %v3137_v28, %s6635_s9  ;;  %6423 = vmatpush3.bf16.msra.mxu1 %v3664_v0  ;;  %v3332_v28 = vld [vmem:[#allocation2 + $0x4a] sm:$0xff] }
 0x2ff   : > { %v2829_v37 = vpop.permute.xlu1 %2828 }
 0x300   : > { %2918 = vst.msk [vmem:[#allocation3 + $0x38] sm:$0xff] %vm2910_vm12, %v2829_v37  ;;  %v2831_v4 = vpop.permute.xlu0 %2830 }
 0x301   : > { %3203 = vrot.lane.b32.xlu1 %v3138_v63, %s6635_s9  ;;  %2919 = vst.msk [vmem:[#allocation3 + $0x40] sm:$0xff] %vm2910_vm12, %v2831_v4  ;;  %v3333_v63 = vld [vmem:[#allocation2 + $0x52] sm:$0xff] }
 0x302   : > { %3205 = vrot.lane.b32.xlu0 %v3139_v25, %s6635_s9  ;;  %v3334_v25 = vld [vmem:[#allocation2 + $0x62] sm:$0xff] }
 0x303   : > { %v2833_v47 = vpop.permute.xlu1 %2832 }
 0x304   : > { %2920 = vst.msk [vmem:[#allocation3 + $0x48] sm:$0xff] %vm2910_vm12, %v2833_v47  ;;  %v2835_v17 = vpop.permute.xlu0 %2834 }
 0x305   : > { %3207 = vrot.lane.b32.xlu1 %v3140_v42, %s6635_s9  ;;  %2921 = vst.msk [vmem:[#allocation3 + $0x50] sm:$0xff] %vm2910_vm12, %v2835_v17  ;;  %v3335_v42 = vld [vmem:[#allocation2 + $0x6a] sm:$0xff] }
 0x306   : > { %3209 = vrot.lane.b32.xlu0 %v3141_v9, %s6635_s9  ;;  %v3336_v9 = vld [vmem:[#allocation2 + $0x7a] sm:$0xff] }
 0x307   : > { %v2837_v52 = vpop.permute.xlu1 %2836 }
 0x308   : > { %2922 = vst.msk [vmem:[#allocation3 + $0x58] sm:$0xff] %vm2910_vm12, %v2837_v52  ;;  %v2839_v59 = vpop.permute.xlu0 %2838 }
 0x309   : > { %3211 = vrot.lane.b32.xlu1 %v3142_v56, %s6635_s9  ;;  %2923 = vst.msk [vmem:[#allocation3 + $0x60] sm:$0xff] %vm2910_vm12, %v2839_v59  ;;  %v3338_v59 = vld [vmem:[#allocation2 + $0x92] sm:$0xff] }
 0x30a   : > { %3213 = vrot.lane.b32.xlu0 %v3143_v1, %s6635_s9 }
 0x30b   : > { %v2841_v38 = vpop.permute.xlu1 %2840 }
 0x30c   : > { %2924 = vst.msk [vmem:[#allocation3 + $0x68] sm:$0xff] %vm2910_vm12, %v2841_v38  ;;  %v2843_v39 = vpop.permute.xlu0 %2842 }
 0x30d   : > { %3215 = vrot.lane.b32.xlu1 %v3144_v49, %s6635_s9  ;;  %2925 = vst.msk [vmem:[#allocation3 + $0x70] sm:$0xff] %vm2910_vm12, %v2843_v39  ;;  %v3340_v49 = vld [vmem:[#allocation2 + $0xaa] sm:$0xff] }
 0x30e   : > { %3217 = vrot.lane.b32.xlu0 %v3145_v30, %s6635_s9 }
 0x30f   : > { %v2845_v40 = vpop.permute.xlu1 %2844 }
 0x310   : > { %2926 = vst.msk [vmem:[#allocation3 + $0x78] sm:$0xff] %vm2910_vm12, %v2845_v40  ;;  %v2847_v45 = vpop.permute.xlu0 %2846  ;;  %v3342_v40 = vld [vmem:[#allocation2 + $0xc2] sm:$0xff] }
 0x311   : > { %3219 = vrot.lane.b32.xlu1 %v3146_v61, %s6635_s9  ;;  %2927 = vst.msk [vmem:[#allocation3 + $0x80] sm:$0xff] %vm2910_vm12, %v2847_v45 }
 0x312   : > { %3221 = vrot.lane.b32.xlu0 %v3147_v60, %s6635_s9  ;;  %v3344_v60 = vld [vmem:[#allocation2 + $0xda] sm:$0xff] }
 0x313   : > { %v2849_v46 = vpop.permute.xlu1 %2848 }
 0x314   : > { %2928 = vst.msk [vmem:[#allocation3 + $0x88] sm:$0xff] %vm2910_vm12, %v2849_v46  ;;  %v2851_v55 = vpop.permute.xlu0 %2850 }
 0x315   : > { %3223 = vrot.lane.b32.xlu1 %v3148_v33, %s6635_s9  ;;  %2929 = vst.msk [vmem:[#allocation3 + $0x90] sm:$0xff] %vm2910_vm12, %v2851_v55  ;;  %v3345_v33 = vld [vmem:[#allocation2 + $0xe2] sm:$0xff] }
 0x316   : > { %3225 = vrot.lane.b32.xlu0 %v3149_v35, %s6635_s9  ;;  %v3346_v35 = vld [vmem:[#allocation2 + $0xf2] sm:$0xff] }
 0x317   : > { %v2853_v12 = vpop.permute.xlu1 %2852 }
 0x318   : > { %2930 = vst.msk [vmem:[#allocation3 + $0x98] sm:$0xff] %vm2910_vm12, %v2853_v12  ;;  %v2855_v32 = vpop.permute.xlu0 %2854 }
 0x319   : > { %3227 = vrot.lane.b32.xlu1 %v3150_v31, %s6635_s9  ;;  %2931 = vst.msk [vmem:[#allocation3 + $0xa0] sm:$0xff] %vm2910_vm12, %v2855_v32  ;;  %v3347_v31 = vld [vmem:[#allocation2 + $0xfa] sm:$0xff] }
 0x31a   : > { %3229 = vrot.lane.b32.xlu0 %v3151_v48, %s6635_s9 }
 0x31b   : > { %v2857_v8 = vpop.permute.xlu1 %2856 }
 0x31c   : > { %2932 = vst.msk [vmem:[#allocation3 + $0xa8] sm:$0xff] %vm2910_vm12, %v2857_v8  ;;  %v2859_v6 = vpop.permute.xlu0 %2858  ;;  %v3349_v8 = vld [vmem:[#allocation2 + $0x112] sm:$0xff] }
 0x31d   : > { %3231 = vrot.lane.b32.xlu1 %v3152_v7, %s6635_s9  ;;  %2933 = vst.msk [vmem:[#allocation3 + $0xb0] sm:$0xff] %vm2910_vm12, %v2859_v6 }
 0x31e   : > { %3233 = vrot.lane.b32.xlu0 %v3153_v53, %s6635_s9  ;;  %v3351_v53 = vld [vmem:[#allocation2 + $0x12a] sm:$0xff] }
 0x31f   : > { %v2861_v22 = vpop.permute.xlu1 %2860 }
 0x320   : > { %2934 = vst.msk [vmem:[#allocation3 + $0xb8] sm:$0xff] %vm2910_vm12, %v2861_v22  ;;  %v2863_v3 = vpop.permute.xlu0 %2862 }
 0x321   : > { %3235 = vrot.lane.b32.xlu1 %v3154_v23, %s6635_s9  ;;  %2935 = vst.msk [vmem:[#allocation3 + $0xc0] sm:$0xff] %vm2910_vm12, %v2863_v3  ;;  %v3353_v3 = vld [vmem:[#allocation2 + $0x142] sm:$0xff] }
 0x322   : > { %3237 = vrot.lane.b32.xlu0 %v7811_v29, %s6635_s9 }
 0x323   : > { %v2865_v11 = vpop.permute.xlu1 %2864 }
 0x324   : > { %2936 = vst.msk [vmem:[#allocation3 + $0xc8] sm:$0xff] %vm2910_vm12, %v2865_v11  ;;  %v2867_v54 = vpop.permute.xlu0 %2866 }
 0x325   : > { %3239 = vrot.lane.b32.xlu1 %v7845_v50, %s6635_s9  ;;  %2937 = vst.msk [vmem:[#allocation3 + $0xd0] sm:$0xff] %vm2910_vm12, %v2867_v54  ;;  %v3159_v50 = vld [vmem:[#allocation2 + $0x139] sm:$0xff]  ;;  %v3164_v54 = vld [vmem:[#allocation2 + $0x171] sm:$0xff] }
 0x326   : > { %3241 = vrot.lane.b32.xlu0 %v7819_v62, %s6635_s9  ;;  %v3160_v62 = vld [vmem:[#allocation2 + $0x141] sm:$0xff] }
 0x327   : > { %v2869_v18 = vpop.permute.xlu1 %2868 }
 0x328   : > { %2938 = vst.msk [vmem:[#allocation3 + $0xd8] sm:$0xff] %vm2910_vm12, %v2869_v18  ;;  %v2871_v29 = vpop.permute.xlu0 %2870  ;;  %v3354_v18 = vld [vmem:[#allocation2 + $0x152] sm:$0xff] }
 0x329   : > { %3243 = vrot.lane.b32.xlu1 %v7852_v57, %s6635_s9  ;;  %2939 = vst.msk [vmem:[#allocation3 + $0xe0] sm:$0xff] %vm2910_vm12, %v2871_v29  ;;  %v3161_v57 = vld [vmem:[#allocation2 + $0x151] sm:$0xff] }
 0x32a   : > { %3245 = vrot.lane.b32.xlu0 %v3159_v50, %s6635_s9  ;;  %v3355_v50 = vld [vmem:[#allocation2 + $0x15a] sm:$0xff] }
 0x32b   : > { %v2873_v41 = vpop.permute.xlu1 %2872 }
 0x32c   : > { %2940 = vst.msk [vmem:[#allocation3 + $0xe8] sm:$0xff] %vm2910_vm12, %v2873_v41  ;;  %v2875_v26 = vpop.permute.xlu0 %2874  ;;  %v3356_v41 = vld [vmem:[#allocation2 + $0x16a] sm:$0xff] }
 0x32d   : > { %3247 = vrot.lane.b32.xlu1 %v3160_v62, %s6635_s9  ;;  %2941 = vst.msk [vmem:[#allocation3 + $0xf0] sm:$0xff] %vm2910_vm12, %v2875_v26  ;;  %v3357_v26 = vld [vmem:[#allocation2 + $0x172] sm:$0xff] }
 0x32e   : > { %3249 = vrot.lane.b32.xlu0 %v3161_v57, %s6635_s9 }
 0x32f   : > { %v2877_v27 = vpop.permute.xlu1 %2876 }
 0x330   : > { %2942 = vst.msk [vmem:[#allocation3 + $0xf8] sm:$0xff] %vm2910_vm12, %v2877_v27  ;;  %v3009_v2 = vpop.permute.xlu0 %3008 }
 0x331   : > { %3251 = vrot.lane.b32.xlu1 %v3162_v24, %s6635_s9  ;;  %3105 = vst.msk [vmem:[#allocation3] sm:$0xff] %vm3104_vm13, %v3009_v2  ;;  %v3167_v24 = vld [vmem:[#allocation2 + $0x199] sm:$0xff]  ;;  %v3166_v2 = vld [vmem:[#allocation2 + $0x189] sm:$0xff] }
 0x332   : > { %3394 = vrot.lane.b32.xlu0 %v3330_v19, %s6636_s23 }
 0x333   : > { %v3011_v10 = vpop.permute.xlu1 %3010 }
 0x334   : > { %3106 = vst.msk [vmem:[#allocation3 + $0x8] sm:$0xff] %vm3104_vm13, %v3011_v10  ;;  %v3013_v58 = vpop.permute.xlu0 %3012 }
 0x335   : > { %3396 = vrot.lane.b32.xlu1 %v3331_v51, %s6636_s23  ;;  %3107 = vst.msk [vmem:[#allocation3 + $0x10] sm:$0xff] %vm3104_vm13, %v3013_v58  ;;  %v3360_v58 = vld [vmem:[#allocation2 + $0x19a] sm:$0xff] }
 0x336   : > { %3398 = vrot.lane.b32.xlu0 %v3332_v28, %s6636_s23 }
 0x337   : > { %v3015_v37 = vpop.permute.xlu1 %3014 }
 0x338   : > { %3108 = vst.msk [vmem:[#allocation3 + $0x18] sm:$0xff] %vm3104_vm13, %v3015_v37  ;;  %v3017_v4 = vpop.permute.xlu0 %3016  ;;  %v3361_v37 = vld [vmem:[#allocation2 + $0x1a2] sm:$0xff] }
 0x339   : > { %3400 = vrot.lane.b32.xlu1 %v3333_v63, %s6636_s23  ;;  %3109 = vst.msk [vmem:[#allocation3 + $0x20] sm:$0xff] %vm3104_vm13, %v3017_v4 }
 0x33a   : > { %3402 = vrot.lane.b32.xlu0 %v3334_v25, %s6636_s23 }
 0x33b   : > { %v3019_v47 = vpop.permute.xlu1 %3018 }
 0x33c   : > { %3110 = vst.msk [vmem:[#allocation3 + $0x28] sm:$0xff] %vm3104_vm13, %v3019_v47  ;;  %v3021_v17 = vpop.permute.xlu0 %3020 }
 0x33d   : > { %3404 = vrot.lane.b32.xlu1 %v3335_v42, %s6636_s23  ;;  %3111 = vst.msk [vmem:[#allocation3 + $0x30] sm:$0xff] %vm3104_vm13, %v3021_v17 }
 0x33e   : > { %3406 = vrot.lane.b32.xlu0 %v3336_v9, %s6636_s23 }
 0x33f   : > { %v3023_v52 = vpop.permute.xlu1 %3022 }
 0x340   : > { %3112 = vst.msk [vmem:[#allocation3 + $0x38] sm:$0xff] %vm3104_vm13, %v3023_v52  ;;  %v3025_v56 = vpop.permute.xlu0 %3024 }
 0x341   : > { %3408 = vrot.lane.b32.xlu1 %v7948_v13, %s6636_s23  ;;  %3113 = vst.msk [vmem:[#allocation3 + $0x40] sm:$0xff] %vm3104_vm13, %v3025_v56  ;;  %v3341_v13 = vld [vmem:[#allocation2 + $0xb2] sm:$0xff] }
 0x342   : > { %3410 = vrot.lane.b32.xlu0 %v3338_v59, %s6636_s23 }
 0x343   : > { %v3027_v1 = vpop.permute.xlu1 %3026 }
 0x344   : > { %3114 = vst.msk [vmem:[#allocation3 + $0x48] sm:$0xff] %vm3104_vm13, %v3027_v1  ;;  %v3029_v38 = vpop.permute.xlu0 %3028 }
 0x345   : > { %3412 = vrot.lane.b32.xlu1 %v7957_v21, %s6636_s23  ;;  %3115 = vst.msk [vmem:[#allocation3 + $0x50] sm:$0xff] %vm3104_vm13, %v3029_v38  ;;  %v3343_v21 = vld [vmem:[#allocation2 + $0xca] sm:$0xff] }
 0x346   : > { %3414 = vrot.lane.b32.xlu0 %v3340_v49, %s6636_s23 }
 0x347   : > { %v3031_v39 = vpop.permute.xlu1 %3030 }
 0x348   : > { %3116 = vst.msk [vmem:[#allocation3 + $0x58] sm:$0xff] %vm3104_vm13, %v3031_v39  ;;  %v3033_v30 = vpop.permute.xlu0 %3032 }
 0x349   : > { %3416 = vrot.lane.b32.xlu1 %v3341_v13, %s6636_s23  ;;  %3117 = vst.msk [vmem:[#allocation3 + $0x60] sm:$0xff] %vm3104_vm13, %v3033_v30 }
 0x34a   : > { %3418 = vrot.lane.b32.xlu0 %v3342_v40, %s6636_s23 }
 0x34b   : > { %v3035_v61 = vpop.permute.xlu1 %3034 }
 0x34c   : > { %3118 = vst.msk [vmem:[#allocation3 + $0x68] sm:$0xff] %vm3104_vm13, %v3035_v61  ;;  %v3037_v45 = vpop.permute.xlu0 %3036 }
 0x34d   : > { %3420 = vrot.lane.b32.xlu1 %v3343_v21, %s6636_s23  ;;  %3119 = vst.msk [vmem:[#allocation3 + $0x70] sm:$0xff] %vm3104_vm13, %v3037_v45 }
 0x34e   : > { %3422 = vrot.lane.b32.xlu0 %v3344_v60, %s6636_s23 }
 0x34f   : > { %v3039_v46 = vpop.permute.xlu1 %3038 }
 0x350   : > { %3120 = vst.msk [vmem:[#allocation3 + $0x78] sm:$0xff] %vm3104_vm13, %v3039_v46  ;;  %v3041_v55 = vpop.permute.xlu0 %3040 }
 0x351   : > { %3424 = vrot.lane.b32.xlu1 %v3345_v33, %s6636_s23  ;;  %3121 = vst.msk [vmem:[#allocation3 + $0x80] sm:$0xff] %vm3104_vm13, %v3041_v55 }
 0x352   : > { %3426 = vrot.lane.b32.xlu0 %v3346_v35, %s6636_s23 }
 0x353   : > { %v3043_v12 = vpop.permute.xlu1 %3042 }
 0x354   : > { %3122 = vst.msk [vmem:[#allocation3 + $0x88] sm:$0xff] %vm3104_vm13, %v3043_v12  ;;  %v3045_v32 = vpop.permute.xlu0 %3044 }
 0x355   : > { %3428 = vrot.lane.b32.xlu1 %v3347_v31, %s6636_s23  ;;  %3123 = vst.msk [vmem:[#allocation3 + $0x90] sm:$0xff] %vm3104_vm13, %v3045_v32 }
 0x356   : > { %3430 = vrot.lane.b32.xlu0 %v7894_v15, %s6636_s23  ;;  %v3352_v15 = vld [vmem:[#allocation2 + $0x13a] sm:$0xff] }
 0x357   : > { %v3047_v48 = vpop.permute.xlu1 %3046 }
 0x358   : > { %3124 = vst.msk [vmem:[#allocation3 + $0x98] sm:$0xff] %vm3104_vm13, %v3047_v48  ;;  %v3049_v7 = vpop.permute.xlu0 %3048 }
 0x359   : > { %3432 = vrot.lane.b32.xlu1 %v3349_v8, %s6636_s23  ;;  %3125 = vst.msk [vmem:[#allocation3 + $0xa0] sm:$0xff] %vm3104_vm13, %v3049_v7 }
 0x35a   : > { %3434 = vrot.lane.b32.xlu0 %v7904_v14, %s6636_s23  ;;  %v3163_v14 = vld [vmem:[#allocation2 + $0x169] sm:$0xff] }
 0x35b   : > { %v3051_v6 = vpop.permute.xlu1 %3050 }
 0x35c   : > { %3126 = vst.msk [vmem:[#allocation3 + $0xa8] sm:$0xff] %vm3104_vm13, %v3051_v6  ;;  %v3053_v22 = vpop.permute.xlu0 %3052 }
 0x35d   : > { %3436 = vrot.lane.b32.xlu1 %v3351_v53, %s6636_s23  ;;  %3127 = vst.msk [vmem:[#allocation3 + $0xb0] sm:$0xff] %vm3104_vm13, %v3053_v22 }
 0x35e   : > { %3438 = vrot.lane.b32.xlu0 %v3352_v15, %s6636_s23 }
 0x35f   : > { %v3055_v23 = vpop.permute.xlu1 %3054 }
 0x360   : > { %3128 = vst.msk [vmem:[#allocation3 + $0xb8] sm:$0xff] %vm3104_vm13, %v3055_v23  ;;  %v3057_v43 = vpop.permute.xlu0 %3056 }
 0x361   : > { %3440 = vrot.lane.b32.xlu1 %v3353_v3, %s6636_s23  ;;  %3129 = vst.msk [vmem:[#allocation3 + $0xc0] sm:$0xff] %vm3104_vm13, %v3057_v43 }
 0x362   : > { %3253 = vrot.lane.b32.xlu0 %v3163_v14, %s6635_s9 }
 0x363   : > { %v3059_v11 = vpop.permute.xlu1 %3058 }
 0x364   : > { %3130 = vst.msk [vmem:[#allocation3 + $0xc8] sm:$0xff] %vm3104_vm13, %v3059_v11  ;;  %v3061_v16 = vpop.permute.xlu0 %3060 }
 0x365   : > { %3255 = vrot.lane.b32.xlu1 %v3164_v54, %s6635_s9  ;;  %3131 = vst.msk [vmem:[#allocation3 + $0xd0] sm:$0xff] %vm3104_vm13, %v3061_v16 }
 0x366   : > { %3442 = vrot.lane.b32.xlu0 %v3354_v18, %s6636_s23 }
 0x367   : > { %v3063_v29 = vpop.permute.xlu1 %3062 }
 0x368   : > { %3132 = vst.msk [vmem:[#allocation3 + $0xd8] sm:$0xff] %vm3104_vm13, %v3063_v29  ;;  %v3065_v44 = vpop.permute.xlu0 %3064 }
 0x369   : > { %3444 = vrot.lane.b32.xlu1 %v3355_v50, %s6636_s23  ;;  %3133 = vst.msk [vmem:[#allocation3 + $0xe0] sm:$0xff] %vm3104_vm13, %v3065_v44 }
 0x36a   : > { %3446 = vrot.lane.b32.xlu0 %v3356_v41, %s6636_s23 }
 0x36b   : > { %v3067_v62 = vpop.permute.xlu1 %3066 }
 0x36c   : > { %3134 = vst.msk [vmem:[#allocation3 + $0xe8] sm:$0xff] %vm3104_vm13, %v3067_v62  ;;  %v3069_v57 = vpop.permute.xlu0 %3068 }
 0x36d   : > { %3448 = vrot.lane.b32.xlu1 %v3357_v26, %s6636_s23  ;;  %3135 = vst.msk [vmem:[#allocation3 + $0xf0] sm:$0xff] %vm3104_vm13, %v3069_v57 }
 0x36e   : > { %3257 = vrot.lane.b32.xlu0 %v3165_v5, %s6635_s9 }
 0x36f   : > { %v3071_v27 = vpop.permute.xlu1 %3070 }
 0x370   : > { %3136 = vst.msk [vmem:[#allocation3 + $0xf8] sm:$0xff] %vm3104_vm13, %v3071_v27  ;;  %v3202_v19 = vpop.permute.xlu0 %3201 }
 0x371   : > { %3259 = vrot.lane.b32.xlu1 %v3166_v2, %s6635_s9  ;;  %3298 = vst.msk [vmem:[#allocation3] sm:$0xff] %vm3297_vm14, %v3202_v19 }
 0x372   : > { %3261 = vrot.lane.b32.xlu0 %v3167_v24, %s6635_s9 }
 0x373   : > { %v3204_v10 = vpop.permute.xlu1 %3203 }
 0x374   : > { %3299 = vst.msk [vmem:[#allocation3 + $0x8] sm:$0xff] %vm3297_vm14, %v3204_v10  ;;  %v3206_v0 = vpop.permute.xlu0 %3205 }
 0x375   : > { %3263 = vrot.lane.b32.xlu1 %v3168_v20, %s6635_s9  ;;  %3300 = vst.msk [vmem:[#allocation3 + $0x10] sm:$0xff] %vm3297_vm14, %v3206_v0 }
 0x376   : > { %3450 = vrot.lane.b32.xlu0 %v8021_v34, %s6636_s23 }
 0x377   : > { %v3208_v51 = vpop.permute.xlu1 %3207 }
 0x378   : > { %3301 = vst.msk [vmem:[#allocation3 + $0x18] sm:$0xff] %vm3297_vm14, %v3208_v51  ;;  %v3210_v28 = vpop.permute.xlu0 %3209 }
 0x379   : > { %3452 = vrot.lane.b32.xlu1 %v8026_v36, %s6636_s23  ;;  %3302 = vst.msk [vmem:[#allocation3 + $0x20] sm:$0xff] %vm3297_vm14, %v3210_v28 }
 0x37a   : > { %3454 = vrot.lane.b32.xlu0 %v3360_v58, %s6636_s23 }
 0x37b   : > { %v3212_v63 = vpop.permute.xlu1 %3211 }
 0x37c   : > { %3303 = vst.msk [vmem:[#allocation3 + $0x28] sm:$0xff] %vm3297_vm14, %v3212_v63  ;;  %v3214_v4 = vpop.permute.xlu0 %3213 }
 0x37d   : > { %3304 = vst.msk [vmem:[#allocation3 + $0x30] sm:$0xff] %vm3297_vm14, %v3214_v4  ;;  %3456 = vrot.lane.b32.xlu1 %v3361_v37, %s6636_s23 }
 0x37f   : > { %v3216_v34 = vpop.permute.xlu1 %3215 }
 0x380   : > { %3305 = vst.msk [vmem:[#allocation3 + $0x38] sm:$0xff] %vm3297_vm14, %v3216_v34  ;;  %v3218_v25 = vpop.permute.xlu0 %3217 }
 0x381   : > { %3306 = vst.msk [vmem:[#allocation3 + $0x40] sm:$0xff] %vm3297_vm14, %v3218_v25 }
 0x383   : > { %v3220_v36 = vpop.permute.xlu1 %3219 }
 0x384   : > { %3307 = vst.msk [vmem:[#allocation3 + $0x48] sm:$0xff] %vm3297_vm14, %v3220_v36  ;;  %v3222_v47 = vpop.permute.xlu0 %3221 }
 0x385   : > { %3308 = vst.msk [vmem:[#allocation3 + $0x50] sm:$0xff] %vm3297_vm14, %v3222_v47 }
 0x387   : > { %v3224_v42 = vpop.permute.xlu1 %3223 }
 0x388   : > { %3309 = vst.msk [vmem:[#allocation3 + $0x58] sm:$0xff] %vm3297_vm14, %v3224_v42  ;;  %v3226_v17 = vpop.permute.xlu0 %3225 }
 0x389   : > { %3310 = vst.msk [vmem:[#allocation3 + $0x60] sm:$0xff] %vm3297_vm14, %v3226_v17 }
 0x38b   : > { %v3228_v9 = vpop.permute.xlu1 %3227 }
 0x38c   : > { %3311 = vst.msk [vmem:[#allocation3 + $0x68] sm:$0xff] %vm3297_vm14, %v3228_v9  ;;  %v3230_v52 = vpop.permute.xlu0 %3229 }
 0x38d   : > { %3312 = vst.msk [vmem:[#allocation3 + $0x70] sm:$0xff] %vm3297_vm14, %v3230_v52 }
 0x38f   : > { %v3232_v56 = vpop.permute.xlu1 %3231 }
 0x390   : > { %3313 = vst.msk [vmem:[#allocation3 + $0x78] sm:$0xff] %vm3297_vm14, %v3232_v56  ;;  %v3234_v59 = vpop.permute.xlu0 %3233 }
 0x391   : > { %3314 = vst.msk [vmem:[#allocation3 + $0x80] sm:$0xff] %vm3297_vm14, %v3234_v59 }
 0x393   : > { %v3236_v1 = vpop.permute.xlu1 %3235 }
 0x394   : > { %3315 = vst.msk [vmem:[#allocation3 + $0x88] sm:$0xff] %vm3297_vm14, %v3236_v1  ;;  %v3238_v38 = vpop.permute.xlu0 %3237 }
 0x395   : > { %3316 = vst.msk [vmem:[#allocation3 + $0x90] sm:$0xff] %vm3297_vm14, %v3238_v38 }
 0x397   : > { %v3240_v49 = vpop.permute.xlu1 %3239 }
 0x398   : > { %3317 = vst.msk [vmem:[#allocation3 + $0x98] sm:$0xff] %vm3297_vm14, %v3240_v49  ;;  %v3242_v39 = vpop.permute.xlu0 %3241 }
 0x399   : > { %3318 = vst.msk [vmem:[#allocation3 + $0xa0] sm:$0xff] %vm3297_vm14, %v3242_v39 }
 0x39b   : > { %v3244_v13 = vpop.permute.xlu1 %3243 }
 0x39c   : > { %3319 = vst.msk [vmem:[#allocation3 + $0xa8] sm:$0xff] %vm3297_vm14, %v3244_v13  ;;  %v3246_v30 = vpop.permute.xlu0 %3245 }
 0x39d   : > { %3320 = vst.msk [vmem:[#allocation3 + $0xb0] sm:$0xff] %vm3297_vm14, %v3246_v30 }
 0x39f   : > { %v3248_v40 = vpop.permute.xlu1 %3247 }
 0x3a0   : > { %3321 = vst.msk [vmem:[#allocation3 + $0xb8] sm:$0xff] %vm3297_vm14, %v3248_v40  ;;  %v3250_v61 = vpop.permute.xlu0 %3249 }
 0x3a1   : > { %3322 = vst.msk [vmem:[#allocation3 + $0xc0] sm:$0xff] %vm3297_vm14, %v3250_v61 }
 0x3a3   : > { %v3252_v21 = vpop.permute.xlu1 %3251 }
 0x3a4   : > { %3323 = vst.msk [vmem:[#allocation3 + $0xc8] sm:$0xff] %vm3297_vm14, %v3252_v21  ;;  %v3395_v45 = vpop.permute.xlu0 %3394 }
 0x3a5   : > { %3491 = vst.msk [vmem:[#allocation3] sm:$0xff] %vm3490_vm15, %v3395_v45 }
 0x3a7   : > { %v3397_v60 = vpop.permute.xlu1 %3396 }
 0x3a8   : > { %3492 = vst.msk [vmem:[#allocation3 + $0x8] sm:$0xff] %vm3490_vm15, %v3397_v60  ;;  %v3399_v46 = vpop.permute.xlu0 %3398 }
 0x3a9   : > { %3493 = vst.msk [vmem:[#allocation3 + $0x10] sm:$0xff] %vm3490_vm15, %v3399_v46 }
 0x3ab   : > { %v3401_v33 = vpop.permute.xlu1 %3400 }
 0x3ac   : > { %3494 = vst.msk [vmem:[#allocation3 + $0x18] sm:$0xff] %vm3490_vm15, %v3401_v33  ;;  %v3403_v55 = vpop.permute.xlu0 %3402  ;;  %v3523_v12 = vld [vmem:[#allocation3] sm:$0xff] }
 0x3ad   : > { %3495 = vst.msk [vmem:[#allocation3 + $0x20] sm:$0xff] %vm3490_vm15, %v3403_v55 }
 0x3af   : > { %v3405_v35 = vpop.permute.xlu1 %3404  ;;  %v3524_v31 = vld [vmem:[#allocation3 + $0x8] sm:$0xff] }
 0x3b0   : > { %3496 = vst.msk [vmem:[#allocation3 + $0x28] sm:$0xff] %vm3490_vm15, %v3405_v35  ;;  %v3407_v32 = vpop.permute.xlu0 %3406  ;;  %v3555_v48 = vpack.c.bf16 %v3524_v31, %v3523_v12  ;;  %v3525_v7 = vld [vmem:[#allocation3 + $0x10] sm:$0xff] }
 0x3b1   : > { %3497 = vst.msk [vmem:[#allocation3 + $0x30] sm:$0xff] %vm3490_vm15, %v3407_v32 }
 0x3b2   : > { %6424 = vmatprep.mubr.msk.bf16.mxu1 %vm3614_vm2, %v3555_v48 }
 0x3b3   : > { %v3409_v8 = vpop.permute.xlu1 %3408  ;;  %v3526_v6 = vld [vmem:[#allocation3 + $0x18] sm:$0xff] }
 0x3b4   : > { %3498 = vst.msk [vmem:[#allocation3 + $0x38] sm:$0xff] %vm3490_vm15, %v3409_v8  ;;  %v3411_v53 = vpop.permute.xlu0 %3410  ;;  %v3556_v22 = vpack.c.bf16 %v3526_v6, %v3525_v7  ;;  %v3527_v23 = vld [vmem:[#allocation3 + $0x20] sm:$0xff] }
 0x3b5   : > { %3499 = vst.msk [vmem:[#allocation3 + $0x40] sm:$0xff] %vm3490_vm15, %v3411_v53 }
 0x3b6   : > { %6425 = vmatmul.mubr.msk.bf16.vlgmr.msra.gmra.mrb[0].mxu1 %vm3614_vm2, %v3556_v22 }
 0x3b7   : > { %v3413_v15 = vpop.permute.xlu1 %3412  ;;  %v3528_v3 = vld [vmem:[#allocation3 + $0x28] sm:$0xff] }
 0x3b8   : > { %3500 = vst.msk [vmem:[#allocation3 + $0x48] sm:$0xff] %vm3490_vm15, %v3413_v15  ;;  %v3415_v43 = vpop.permute.xlu0 %3414  ;;  %v3557_v14 = vpack.c.bf16 %v3528_v3, %v3527_v23  ;;  %v3529_v54 = vld [vmem:[#allocation3 + $0x30] sm:$0xff] }
 0x3b9   : > { %3501 = vst.msk [vmem:[#allocation3 + $0x50] sm:$0xff] %vm3490_vm15, %v3415_v43 }
 0x3ba   : > { %6428 = vmatprep.mubr.msk.bf16.mxu1 %vm3614_vm2, %v3557_v14 }
 0x3bb   : > { %v3417_v11 = vpop.permute.xlu1 %3416  ;;  %v3530_v16 = vld [vmem:[#allocation3 + $0x38] sm:$0xff] }
 0x3bc   : > { %3502 = vst.msk [vmem:[#allocation3 + $0x58] sm:$0xff] %vm3490_vm15, %v3417_v11  ;;  %v3419_v18 = vpop.permute.xlu0 %3418  ;;  %v3558_v29 = vpack.c.bf16 %v3530_v16, %v3529_v54  ;;  %v3531_v44 = vld [vmem:[#allocation3 + $0x40] sm:$0xff]  ;;  %v4019_v16 = vld [vmem:[#allocation2 + $0x1] sm:$0xff] }
 0x3bd   : > { %3503 = vst.msk [vmem:[#allocation3 + $0x60] sm:$0xff] %vm3490_vm15, %v3419_v18  ;;  %4083 = vrot.lane.b32.xlu0 %v4019_v16, %s6624_s18  ;;  %v4020_v18 = vld [vmem:[#allocation2 + $0x9] sm:$0xff] }
 0x3be   : > { %6429 = vmatmul.mubr.msk.bf16.gmra.mrb[4].mxu1 %vm3614_vm2, %v3558_v29  ;;  %4085 = vrot.lane.b32.xlu1 %v4020_v18, %s6624_s18  ;;  %v4211_v29 = vld [vmem:[#allocation2 + $0x2] sm:$0xff] }
 0x3bf   : > { %v3421_v50 = vpop.permute.xlu1 %3420  ;;  %v3532_v41 = vld [vmem:[#allocation3 + $0x48] sm:$0xff] }
 0x3c0   : > { %3504 = vst.msk [vmem:[#allocation3 + $0x68] sm:$0xff] %vm3490_vm15, %v3421_v50  ;;  %v3423_v62 = vpop.permute.xlu0 %3422  ;;  %v3559_v26 = vpack.c.bf16 %v3532_v41, %v3531_v44  ;;  %v3533_v5 = vld [vmem:[#allocation3 + $0x50] sm:$0xff]  ;;  %v4212_v50 = vld [vmem:[#allocation2 + $0xa] sm:$0xff] }
 0x3c1   : > { %3505 = vst.msk [vmem:[#allocation3 + $0x70] sm:$0xff] %vm3490_vm15, %v3423_v62  ;;  %4275 = vrot.lane.b32.xlu0 %v4211_v29, %s6625_s19  ;;  %v3955_v44 = vld [vmem:[#allocation2] sm:$0xff]  ;;  %v3956_v41 = vld [vmem:[#allocation2 + $0x8] sm:$0xff] }
 0x3c2   : > { %6432 = vmatprep.mubr.msk.bf16.mxu1 %vm3614_vm2, %v3559_v26  ;;  %4277 = vrot.lane.b32.xlu1 %v4212_v50, %s6625_s19  ;;  %3987 = vst.msk [vmem:[#allocation3] sm:$0xff] %vm327_vm1, %v3955_v44  ;;  %3988 = vst.msk [vmem:[#allocation3 + $0x8] sm:$0xff] %vm327_vm1, %v3956_v41 }
 0x3c3   : > { %v3425_v57 = vpop.permute.xlu1 %3424  ;;  %v3534_v27 = vld [vmem:[#allocation3 + $0x58] sm:$0xff] }
 0x3c4   : > { %3506 = vst.msk [vmem:[#allocation3 + $0x78] sm:$0xff] %vm3490_vm15, %v3425_v57  ;;  %v3427_v24 = vpop.permute.xlu0 %3426  ;;  %v3560_v2 = vpack.c.bf16 %v3534_v27, %v3533_v5  ;;  %v3535_v20 = vld [vmem:[#allocation3 + $0x60] sm:$0xff]  ;;  %v8368_v57 = vld [vmem:[%s9593_s5] ss:$0 sm:$0xff] }
 0x3c5   : > { %3507 = vst.msk [vmem:[#allocation3 + $0x80] sm:$0xff] %vm3490_vm15, %v3427_v24 }
 0x3c6   : > { %6433 = vmatmul.mubr.msk.bf16.gmra.mrb[8].mxu1 %vm3614_vm2, %v3560_v2 }
 0x3c7   : > { %v3429_v19 = vpop.permute.xlu1 %3428  ;;  %v3536_v10 = vld [vmem:[#allocation3 + $0x68] sm:$0xff] }
 0x3c8   : > { %3508 = vst.msk [vmem:[#allocation3 + $0x88] sm:$0xff] %vm3490_vm15, %v3429_v19  ;;  %v3431_v0 = vpop.permute.xlu0 %3430  ;;  %v3561_v51 = vpack.c.bf16 %v3536_v10, %v3535_v20  ;;  %v3537_v28 = vld [vmem:[#allocation3 + $0x70] sm:$0xff] }
 0x3c9   : > { %3509 = vst.msk [vmem:[#allocation3 + $0x90] sm:$0xff] %vm3490_vm15, %v3431_v0 }
 0x3ca   : > { %6436 = vmatprep.mubr.msk.bf16.mxu1 %vm3614_vm2, %v3561_v51 }
 0x3cb   : > { %v3433_v58 = vpop.permute.xlu1 %3432  ;;  %v3538_v37 = vld [vmem:[#allocation3 + $0x78] sm:$0xff] }
 0x3cc   : > { %3510 = vst.msk [vmem:[#allocation3 + $0x98] sm:$0xff] %vm3490_vm15, %v3433_v58  ;;  %v3435_v63 = vpop.permute.xlu0 %3434  ;;  %v3562_v4 = vpack.c.bf16 %v3538_v37, %v3537_v28  ;;  %v3539_v25 = vld [vmem:[#allocation3 + $0x80] sm:$0xff] }
 0x3cd   : > { %3511 = vst.msk [vmem:[#allocation3 + $0xa0] sm:$0xff] %vm3490_vm15, %v3435_v63 }
 0x3ce   : > { %6437 = vmatmul.mubr.msk.bf16.gmra.mrb[12].mxu1 %vm3614_vm2, %v3562_v4 }
 0x3cf   : > { %v3437_v34 = vpop.permute.xlu1 %3436  ;;  %v3540_v36 = vld [vmem:[#allocation3 + $0x88] sm:$0xff] }
 0x3d0   : > { %3512 = vst.msk [vmem:[#allocation3 + $0xa8] sm:$0xff] %vm3490_vm15, %v3437_v34  ;;  %v3439_v47 = vpop.permute.xlu0 %3438  ;;  %v3563_v42 = vpack.c.bf16 %v3540_v36, %v3539_v25  ;;  %v3541_v9 = vld [vmem:[#allocation3 + $0x90] sm:$0xff] }
 0x3d1   : > { %3513 = vst.msk [vmem:[#allocation3 + $0xb0] sm:$0xff] %vm3490_vm15, %v3439_v47 }
 0x3d2   : > { %6440 = vmatprep.mubr.msk.bf16.mxu1 %vm3614_vm2, %v3563_v42 }
 0x3d3   : > { %v3441_v17 = vpop.permute.xlu1 %3440  ;;  %v3542_v52 = vld [vmem:[#allocation3 + $0x98] sm:$0xff] }
 0x3d4   : > { %3514 = vst.msk [vmem:[#allocation3 + $0xb8] sm:$0xff] %vm3490_vm15, %v3441_v17  ;;  %v3254_v56 = vpop.permute.xlu0 %3253  ;;  %v3564_v59 = vpack.c.bf16 %v3542_v52, %v3541_v9  ;;  %v3543_v38 = vld [vmem:[#allocation3 + $0xa0] sm:$0xff] }
 0x3d5   : > { %3324 = vst.msk [vmem:[#allocation3 + $0xd0] sm:$0xff] %vm3297_vm14, %v3254_v56 }
 0x3d6   : > { %6441 = vmatmul.mubr.msk.bf16.gmra.mrb[16].mxu1 %vm3614_vm2, %v3564_v59 }
 0x3d7   : > { %v3256_v1 = vpop.permute.xlu1 %3255  ;;  %v3544_v49 = vld [vmem:[#allocation3 + $0xa8] sm:$0xff] }
 0x3d8   : > { %3325 = vst.msk [vmem:[#allocation3 + $0xd8] sm:$0xff] %vm3297_vm14, %v3256_v1  ;;  %v3443_v39 = vpop.permute.xlu0 %3442  ;;  %v3565_v13 = vpack.c.bf16 %v3544_v49, %v3543_v38  ;;  %v3545_v40 = vld [vmem:[#allocation3 + $0xb0] sm:$0xff] }
 0x3d9   : > { %3515 = vst.msk [vmem:[#allocation3 + $0xc0] sm:$0xff] %vm3490_vm15, %v3443_v39 }
 0x3da   : > { %6444 = vmatprep.mubr.msk.bf16.mxu1 %vm3614_vm2, %v3565_v13 }
 0x3db   : > { %v3445_v30 = vpop.permute.xlu1 %3444  ;;  %v3546_v61 = vld [vmem:[#allocation3 + $0xb8] sm:$0xff] }
 0x3dc   : > { %3516 = vst.msk [vmem:[#allocation3 + $0xc8] sm:$0xff] %vm3490_vm15, %v3445_v30  ;;  %v3447_v21 = vpop.permute.xlu0 %3446  ;;  %v3566_v45 = vpack.c.bf16 %v3546_v61, %v3545_v40 }
 0x3dd   : > { %3517 = vst.msk [vmem:[#allocation3 + $0xd0] sm:$0xff] %vm3490_vm15, %v3447_v21 }
 0x3de   : > { %6445 = vmatmul.mubr.msk.bf16.gmra.mrb[20].mxu1 %vm3614_vm2, %v3566_v45 }
 0x3df   : > { %v3449_v60 = vpop.permute.xlu1 %3448 }
 0x3e0   : > { %3518 = vst.msk [vmem:[#allocation3 + $0xd8] sm:$0xff] %vm3490_vm15, %v3449_v60  ;;  %v3258_v46 = vpop.permute.xlu0 %3257  ;;  %v3547_v55 = vld [vmem:[#allocation3 + $0xc0] sm:$0xff] }
 0x3e1   : > { %3326 = vst.msk [vmem:[#allocation3 + $0xe0] sm:$0xff] %vm3297_vm14, %v3258_v46 }
 0x3e3   : > { %v3260_v33 = vpop.permute.xlu1 %3259  ;;  %v3548_v35 = vld [vmem:[#allocation3 + $0xc8] sm:$0xff] }
 0x3e4   : > { %3327 = vst.msk [vmem:[#allocation3 + $0xe8] sm:$0xff] %vm3297_vm14, %v3260_v33  ;;  %v3262_v12 = vpop.permute.xlu0 %3261  ;;  %v3567_v31 = vpack.c.bf16 %v3548_v35, %v3547_v55  ;;  %v3549_v48 = vld [vmem:[#allocation3 + $0xd0] sm:$0xff] }
 0x3e5   : > { %3328 = vst.msk [vmem:[#allocation3 + $0xf0] sm:$0xff] %vm3297_vm14, %v3262_v12 }
 0x3e6   : > { %6448 = vmatprep.mubr.msk.bf16.mxu1 %vm3614_vm2, %v3567_v31 }
 0x3e7   : > { %v3264_v32 = vpop.permute.xlu1 %3263  ;;  %v3550_v8 = vld [vmem:[#allocation3 + $0xd8] sm:$0xff] }
 0x3e8   : > { %3329 = vst.msk [vmem:[#allocation3 + $0xf8] sm:$0xff] %vm3297_vm14, %v3264_v32  ;;  %v3451_v7 = vpop.permute.xlu0 %3450  ;;  %v3568_v6 = vpack.c.bf16 %v3550_v8, %v3549_v48 }
 0x3e9   : > { %3519 = vst.msk [vmem:[#allocation3 + $0xe0] sm:$0xff] %vm3490_vm15, %v3451_v7 }
 0x3ea   : > { %6449 = vmatmul.mubr.msk.bf16.gmra.mrb[24].mxu1 %vm3614_vm2, %v3568_v6 }
 0x3eb   : > { %v3453_v53 = vpop.permute.xlu1 %3452 }
 0x3ec   : > { %3520 = vst.msk [vmem:[#allocation3 + $0xe8] sm:$0xff] %vm3490_vm15, %v3453_v53  ;;  %v3455_v22 = vpop.permute.xlu0 %3454 }
 0x3ed   : > { %3521 = vst.msk [vmem:[#allocation3 + $0xf0] sm:$0xff] %vm3490_vm15, %v3455_v22 }
 0x3ef   : > { %v3457_v15 = vpop.permute.xlu1 %3456 }
 0x3f0   : > { %3522 = vst.msk [vmem:[#allocation3 + $0xf8] sm:$0xff] %vm3490_vm15, %v3457_v15  ;;  %v3551_v23 = vld [vmem:[#allocation3 + $0xe0] sm:$0xff] }
 0x3f3   : > { %v3552_v3 = vld [vmem:[#allocation3 + $0xe8] sm:$0xff] }
 0x3f4   : > { %v3569_v43 = vpack.c.bf16 %v3552_v3, %v3551_v23  ;;  %v3553_v14 = vld [vmem:[#allocation3 + $0xf0] sm:$0xff] }
 0x3f6   : > { %6452 = vmatprep.mubr.msk.bf16.mxu1 %vm3614_vm2, %v3569_v43 }
 0x3f7   : > { %v3554_v11 = vld [vmem:[#allocation3 + $0xf8] sm:$0xff] }
 0x3f8   : > { %v3570_v54 = vpack.c.bf16 %v3554_v11, %v3553_v14 }
 0x3fa   : > { %6453 = vmatmul.mubr.msk.bf16.gmra.mrb[28].mxu1 %vm3614_vm2, %v3570_v54 }
 0x42f   : > { %v4084_v62 = vpop.permute.xlu0 %4083 }
 0x430   : > { %4179 = vst.msk [vmem:[#allocation3] sm:$0xff] %vm2138_vm4, %v4084_v62  ;;  %v4086_v26 = vpop.permute.xlu1 %4085 }
 0x431   : > { %4180 = vst.msk [vmem:[#allocation3 + $0x8] sm:$0xff] %vm2138_vm4, %v4086_v26 }
 0x433   : > { %v4276_v5 = vpop.permute.xlu0 %4275 }
 0x434   : > { %4371 = vst.msk [vmem:[#allocation3] sm:$0xff] %vm2331_vm5, %v4276_v5  ;;  %v4278_v19 = vpop.permute.xlu1 %4277 }
 0x435   : > { %4372 = vst.msk [vmem:[#allocation3 + $0x8] sm:$0xff] %vm2331_vm5, %v4278_v19 }
 0x489   : > { %v6426_v27 = vpop.f32.mrb[0].mxu1 }
 0x48a   : > { %v8372_v24 = vadd.f32 %v6426_v27, %v8368_v57  ;;  %v3700_v2 = vpop.f32.mrb[1].mxu1 }
 0x48b   : > { %v8375_v20 = vadd.f32 %v8368_v57, %v3700_v2  ;;  %v6427_v10 = vpop.f32.mrb[2].mxu1 }
 0x48c   : > { %9641 = vst [vmem:[#allocation4_spill] sm:$0xff] %v8372_v24  ;;  %vm3829_vm3 = vcmp.ge.f32.partialorder %v8372_v24, 0.0  ;;  %v3861_v0 = vmul.f32 0.2, %v8372_v24  ;;  %v8381_v51 = vadd.f32 %v6427_v10, %v8368_v57  ;;  %v3703_v58 = vpop.f32.mrb[3].mxu1 }
 0x48d   : > { %9642 = vst [vmem:[#allocation5_spill] sm:$0xff] %v8375_v20  ;;  %vm3827_vm6 = vcmp.ge.f32.partialorder %v8375_v20, 0.0  ;;  %v3859_v28 = vmul.f32 0.2, %v8375_v20  ;;  %v8386_v37 = vadd.f32 %v8368_v57, %v3703_v58 }
 0x48e   : > { %9643 = vst [vmem:[#allocation6_spill] sm:$0xff] %v8381_v51  ;;  %v3893_v63 = vsel %vm3829_vm3, %v8372_v24, %v3861_v0  ;;  %vm3830_vm8 = vcmp.ge.f32.partialorder %v8381_v51, 0.0  ;;  %v3862_v4 = vmul.f32 0.2, %v8381_v51 }
 0x48f   : > { %9644 = vst [vmem:[#allocation7_spill] sm:$0xff] %v8386_v37  ;;  %3925 = vst.msk [vmem:[#allocation2 + $0x31] sm:$0xff] %vm1656_vm7, %v3893_v63  ;;  %v3891_v34 = vsel %vm3827_vm6, %v8375_v20, %v3859_v28  ;;  %vm3828_vm9 = vcmp.ge.f32.partialorder %v8386_v37, 0.0  ;;  %v3860_v25 = vmul.f32 0.2, %v8386_v37 }
 0x490   : > { %3923 = vst.msk [vmem:[#allocation2 + $0x19] sm:$0xff] %vm1656_vm7, %v3891_v34  ;;  %v3894_v36 = vsel %vm3830_vm8, %v8381_v51, %v3862_v4 }
 0x491   : > { %3926 = vst.msk [vmem:[#allocation2 + $0x39] sm:$0xff] %vm1656_vm7, %v3894_v36  ;;  %v3892_v47 = vsel %vm3828_vm9, %v8386_v37, %v3860_v25  ;;  %v6430_v42 = vpop.f32.mrb[4].mxu1 }
 0x492   : > { %3924 = vst.msk [vmem:[#allocation2 + $0x21] sm:$0xff] %vm1656_vm7, %v3892_v47  ;;  %v8401_v17 = vadd.f32 %v6430_v42, %v8368_v57  ;;  %v3716_v9 = vpop.f32.mrb[5].mxu1 }
 0x493   : > { %v8404_v52 = vadd.f32 %v8368_v57, %v3716_v9  ;;  %v6431_v56 = vpop.f32.mrb[6].mxu1 }
 0x494   : > { %9645 = vst [vmem:[#allocation8_spill] sm:$0xff] %v8401_v17  ;;  %vm3833_vm3 = vcmp.ge.f32.partialorder %v8401_v17, 0.0  ;;  %v3865_v59 = vmul.f32 0.2, %v8401_v17  ;;  %v8409_v1 = vadd.f32 %v6431_v56, %v8368_v57  ;;  %v3719_v38 = vpop.f32.mrb[7].mxu1 }
 0x495   : > { %9646 = vst [vmem:[#allocation9_spill] sm:$0xff] %v8404_v52  ;;  %vm3831_vm6 = vcmp.ge.f32.partialorder %v8404_v52, 0.0  ;;  %v3863_v49 = vmul.f32 0.2, %v8404_v52  ;;  %v8414_v39 = vadd.f32 %v8368_v57, %v3719_v38 }
 0x496   : > { %9647 = vst [vmem:[#allocation10_spill] sm:$0xff] %v8409_v1  ;;  %v3897_v13 = vsel %vm3833_vm3, %v8401_v17, %v3865_v59  ;;  %vm3834_vm8 = vcmp.ge.f32.partialorder %v8409_v1, 0.0  ;;  %v3866_v30 = vmul.f32 0.2, %v8409_v1  ;;  %v8419_v40 = vld [vmem:[#allocation2 + $0x31] sm:$0xff] }
 0x497   : > { %9648 = vst [vmem:[#allocation11_spill] sm:$0xff] %v8414_v39  ;;  %v4405_v61 = vld [vmem:[#allocation2 + $0x30] sm:$0xff]  ;;  %3929 = vst.msk [vmem:[#allocation2 + $0x61] sm:$0xff] %vm1656_vm7, %v3897_v13  ;;  %v3895_v21 = vsel %vm3831_vm6, %v8404_v52, %v3863_v49  ;;  %vm3832_vm9 = vcmp.ge.f32.partialorder %v8414_v39, 0.0  ;;  %v3864_v45 = vmul.f32 0.2, %v8414_v39  ;;  %4091 = vrot.lane.b32.xlu0 %v8419_v40, %s6624_s18 }
 0x498   : > { %v4403_v60 = vld [vmem:[#allocation2 + $0x18] sm:$0xff]  ;;  %3991 = vst.msk [vmem:[#allocation3 + $0x20] sm:$0xff] %vm327_vm1, %v4405_v61  ;;  %v3898_v46 = vsel %vm3834_vm8, %v8409_v1, %v3866_v30 }
 0x499   : > { %3927 = vst.msk [vmem:[#allocation2 + $0x49] sm:$0xff] %vm1656_vm7, %v3895_v21  ;;  %v8430_v33 = vld [vmem:[#allocation2 + $0x39] sm:$0xff]  ;;  %3930 = vst.msk [vmem:[#allocation2 + $0x69] sm:$0xff] %vm1656_vm7, %v3898_v46  ;;  %v3896_v35 = vsel %vm3832_vm9, %v8414_v39, %v3864_v45  ;;  %v6434_v12 = vpop.f32.mrb[8].mxu1  ;;  %v8509_v28 = vld [vmem:[#allocation2 + $0x21] sm:$0xff] }
 0x49a   : > { %v4406_v55 = vld [vmem:[#allocation2 + $0x38] sm:$0xff]  ;;  %3989 = vst.msk [vmem:[#allocation3 + $0x10] sm:$0xff] %vm327_vm1, %v4403_v60  ;;  %4093 = vrot.lane.b32.xlu1 %v8430_v33, %s6624_s18  ;;  %v8440_v31 = vadd.f32 %v6434_v12, %v8368_v57  ;;  %v3732_v32 = vpop.f32.mrb[9].mxu1  ;;  %v8442_v48 = vld [vmem:[#allocation2 + $0x20] sm:$0xff] }
 0x49b   : > { %3992 = vst.msk [vmem:[#allocation3 + $0x28] sm:$0xff] %vm327_vm1, %v4406_v55  ;;  %v8445_v8 = vadd.f32 %v8368_v57, %v3732_v32  ;;  %4471 = vrot.lane.b32.xlu0 %v4405_v61, %s6631_s25  ;;  %v6435_v7 = vpop.f32.mrb[10].mxu1  ;;  %3990 = vst.msk [vmem:[#allocation3 + $0x18] sm:$0xff] %vm327_vm1, %v8442_v48  ;;  %v8455_v15 = vld [vmem:[#allocation2 + $0x3a] sm:$0xff]  ;;  %v8521_v36 = vld [vmem:[#allocation2 + $0x32] sm:$0xff] }
 0x49c   : > { %3928 = vst.msk [vmem:[#allocation2 + $0x51] sm:$0xff] %vm1656_vm7, %v3896_v35  ;;  %9649 = vst [vmem:[#allocation12_spill] sm:$0xff] %v8440_v31  ;;  %vm3837_vm3 = vcmp.ge.f32.partialorder %v8440_v31, 0.0  ;;  %v3869_v6 = vmul.f32 0.2, %v8440_v31  ;;  %v8453_v53 = vadd.f32 %v6435_v7, %v8368_v57  ;;  %v3735_v22 = vpop.f32.mrb[11].mxu1 }
 0x49d   : > { %9650 = vst [vmem:[#allocation13_spill] sm:$0xff] %v8445_v8  ;;  %vm3835_vm6 = vcmp.ge.f32.partialorder %v8445_v8, 0.0  ;;  %v3867_v23 = vmul.f32 0.2, %v8445_v8  ;;  %v8460_v3 = vadd.f32 %v8368_v57, %v3735_v22  ;;  %v8467_v11 = vld [vmem:[#allocation2 + $0x19] sm:$0xff]  ;;  %v8537_v38 = vld [vmem:[#allocation2 + $0x22] sm:$0xff] }
 0x49e   : > { %9651 = vst [vmem:[#allocation14_spill] sm:$0xff] %v8453_v53  ;;  %4285 = vrot.lane.b32.xlu1 %v8455_v15, %s6625_s19  ;;  %v3901_v43 = vsel %vm3837_vm3, %v8440_v31, %v3869_v6  ;;  %vm3838_vm8 = vcmp.ge.f32.partialorder %v8453_v53, 0.0  ;;  %v3870_v14 = vmul.f32 0.2, %v8453_v53  ;;  %v8469_v54 = vld [vmem:[#allocation2 + $0x60] sm:$0xff] }
 0x49f   : > { %9652 = vst [vmem:[#allocation15_spill] sm:$0xff] %v8460_v3  ;;  %3933 = vst.msk [vmem:[#allocation2 + $0x91] sm:$0xff] %vm1656_vm7, %v3901_v43  ;;  %v3899_v16 = vsel %vm3835_vm6, %v8445_v8, %v3867_v23  ;;  %vm3836_vm9 = vcmp.ge.f32.partialorder %v8460_v3, 0.0  ;;  %v3868_v18 = vmul.f32 0.2, %v8460_v3  ;;  %4087 = vrot.lane.b32.xlu0 %v8467_v11, %s6624_s18  ;;  %v8549_v21 = vld [vmem:[#allocation2 + $0x1a] sm:$0xff] }
 0x4a0   : > { %v8477_v29 = vld [vmem:[#allocation2 + $0x48] sm:$0xff]  ;;  %3995 = vst.msk [vmem:[#allocation3 + $0x40] sm:$0xff] %vm327_vm1, %v8469_v54  ;;  %v3902_v50 = vsel %vm3838_vm8, %v8453_v53, %v3870_v14 }
 0x4a1   : > { %3931 = vst.msk [vmem:[#allocation2 + $0x79] sm:$0xff] %vm1656_vm7, %v3899_v16  ;;  %v8483_v44 = vld [vmem:[#allocation2 + $0x68] sm:$0xff]  ;;  %3934 = vst.msk [vmem:[#allocation2 + $0x99] sm:$0xff] %vm1656_vm7, %v3902_v50  ;;  %v3900_v41 = vsel %vm3836_vm9, %v8460_v3, %v3868_v18  ;;  %v6438_v62 = vpop.f32.mrb[12].mxu1 }
 0x4a2   : > { %3993 = vst.msk [vmem:[#allocation3 + $0x30] sm:$0xff] %vm327_vm1, %v8477_v29  ;;  %4473 = vrot.lane.b32.xlu1 %v4406_v55, %s6631_s25  ;;  %3996 = vst.msk [vmem:[#allocation3 + $0x48] sm:$0xff] %vm327_vm1, %v8483_v44  ;;  %v8494_v26 = vadd.f32 %v6438_v62, %v8368_v57  ;;  %v3748_v5 = vpop.f32.mrb[13].mxu1  ;;  %v8579_v43 = vld [vmem:[#allocation2 + $0x61] sm:$0xff] }
 0x4a3   : > { %3932 = vst.msk [vmem:[#allocation2 + $0x81] sm:$0xff] %vm1656_vm7, %v3900_v41  ;;  %v8496_v27 = vld [vmem:[#allocation2 + $0x50] sm:$0xff]  ;;  %v8499_v2 = vadd.f32 %v8368_v57, %v3748_v5  ;;  %4467 = vrot.lane.b32.xlu0 %v4403_v60, %s6631_s25  ;;  %v6439_v19 = vpop.f32.mrb[14].mxu1 }
 0x4a4   : > { %9653 = vst [vmem:[#allocation16_spill] sm:$0xff] %v8494_v26  ;;  %3994 = vst.msk [vmem:[#allocation3 + $0x38] sm:$0xff] %vm327_vm1, %v8496_v27  ;;  %vm3841_vm3 = vcmp.ge.f32.partialorder %v8494_v26, 0.0  ;;  %v3873_v10 = vmul.f32 0.2, %v8494_v26  ;;  %v8507_v0 = vadd.f32 %v6439_v19, %v8368_v57  ;;  %v3751_v58 = vpop.f32.mrb[15].mxu1 }
 0x4a5   : > { %9654 = vst [vmem:[#allocation17_spill] sm:$0xff] %v8499_v2  ;;  %vm3839_vm6 = vcmp.ge.f32.partialorder %v8499_v2, 0.0  ;;  %v3871_v63 = vmul.f32 0.2, %v8499_v2  ;;  %v8514_v4 = vadd.f32 %v8368_v57, %v3751_v58  ;;  %v8595_v41 = vld [vmem:[#allocation2 + $0x69] sm:$0xff] }
 0x4a6   : > { %9655 = vst [vmem:[#allocation18_spill] sm:$0xff] %v8507_v0  ;;  %4089 = vrot.lane.b32.xlu1 %v8509_v28, %s6624_s18  ;;  %v3905_v34 = vsel %vm3841_vm3, %v8494_v26, %v3873_v10  ;;  %vm3842_vm8 = vcmp.ge.f32.partialorder %v8507_v0, 0.0  ;;  %v3874_v25 = vmul.f32 0.2, %v8507_v0  ;;  %v8523_v47 = vld [vmem:[#allocation2 + $0x90] sm:$0xff] }
 0x4a7   : > { %9656 = vst [vmem:[#allocation19_spill] sm:$0xff] %v8514_v4  ;;  %3937 = vst.msk [vmem:[#allocation2 + $0xc1] sm:$0xff] %vm1656_vm7, %v3905_v34  ;;  %v3903_v42 = vsel %vm3839_vm6, %v8499_v2, %v3871_v63  ;;  %vm3840_vm9 = vcmp.ge.f32.partialorder %v8514_v4, 0.0  ;;  %v3872_v9 = vmul.f32 0.2, %v8514_v4  ;;  %4283 = vrot.lane.b32.xlu0 %v8521_v36, %s6625_s19 }
 0x4a8   : > { %v8531_v56 = vld [vmem:[#allocation2 + $0x78] sm:$0xff]  ;;  %3999 = vst.msk [vmem:[#allocation3 + $0x60] sm:$0xff] %vm327_vm1, %v8523_v47  ;;  %v3906_v59 = vsel %vm3842_vm8, %v8507_v0, %v3874_v25 }
 0x4a9   : > { %3935 = vst.msk [vmem:[#allocation2 + $0xa9] sm:$0xff] %vm1656_vm7, %v3903_v42  ;;  %3938 = vst.msk [vmem:[#allocation2 + $0xc9] sm:$0xff] %vm1656_vm7, %v3906_v59  ;;  %v3904_v49 = vsel %vm3840_vm9, %v8514_v4, %v3872_v9  ;;  %v6442_v13 = vpop.f32.mrb[16].mxu1  ;;  %v8553_v60 = vld [vmem:[#allocation2 + $0x98] sm:$0xff] }
 0x4aa   : > { %3997 = vst.msk [vmem:[#allocation3 + $0x50] sm:$0xff] %vm327_vm1, %v8531_v56  ;;  %4281 = vrot.lane.b32.xlu1 %v8537_v38, %s6625_s19  ;;  %v8547_v30 = vadd.f32 %v6442_v13, %v8368_v57  ;;  %v3764_v61 = vpop.f32.mrb[17].mxu1  ;;  %v8551_v45 = vld [vmem:[#allocation2 + $0x80] sm:$0xff]  ;;  %4000 = vst.msk [vmem:[#allocation3 + $0x68] sm:$0xff] %vm327_vm1, %v8553_v60  ;;  %v8786_v3 = vld [vmem:[#allocation2 + $0x92] sm:$0xff] }
 0x4ab   : > { %3936 = vst.msk [vmem:[#allocation2 + $0xb1] sm:$0xff] %vm1656_vm7, %v3904_v49  ;;  %v8556_v46 = vadd.f32 %v8368_v57, %v3764_v61  ;;  %4279 = vrot.lane.b32.xlu0 %v8549_v21, %s6625_s19  ;;  %v6443_v55 = vpop.f32.mrb[18].mxu1  ;;  %v8625_v49 = vld [vmem:[#allocation2 + $0x6a] sm:$0xff] }
 0x4ac   : > { %9657 = vst [vmem:[#allocation20_spill] sm:$0xff] %v8547_v30  ;;  %3998 = vst.msk [vmem:[#allocation3 + $0x58] sm:$0xff] %vm327_vm1, %v8551_v45  ;;  %vm3845_vm3 = vcmp.ge.f32.partialorder %v8547_v30, 0.0  ;;  %v3877_v35 = vmul.f32 0.2, %v8547_v30  ;;  %v8567_v12 = vadd.f32 %v6443_v55, %v8368_v57  ;;  %v3767_v32 = vpop.f32.mrb[19].mxu1 }
 0x4ad   : > { %9658 = vst [vmem:[#allocation21_spill] sm:$0xff] %v8556_v46  ;;  %vm3843_vm6 = vcmp.ge.f32.partialorder %v8556_v46, 0.0  ;;  %v3875_v7 = vmul.f32 0.2, %v8556_v46  ;;  %v8572_v6 = vadd.f32 %v8368_v57, %v3767_v32  ;;  %v8637_v32 = vld [vmem:[#allocation2 + $0x49] sm:$0xff] }
 0x4ae   : > { %9659 = vst [vmem:[#allocation22_spill] sm:$0xff] %v8567_v12  ;;  %4469 = vrot.lane.b32.xlu1 %v8442_v48, %s6631_s25  ;;  %v3909_v22 = vsel %vm3845_vm3, %v8547_v30, %v3877_v35  ;;  %vm3846_vm8 = vcmp.ge.f32.partialorder %v8567_v12, 0.0  ;;  %v3878_v23 = vmul.f32 0.2, %v8567_v12  ;;  %v8581_v14 = vld [vmem:[#allocation2 + $0xc0] sm:$0xff] }
 0x4af   : > { %9660 = vst [vmem:[#allocation23_spill] sm:$0xff] %v8572_v6  ;;  %3941 = vst.msk [vmem:[#allocation2 + $0xf1] sm:$0xff] %vm1656_vm7, %v3909_v22  ;;  %v3907_v16 = vsel %vm3843_vm6, %v8556_v46, %v3875_v7  ;;  %vm3844_vm9 = vcmp.ge.f32.partialorder %v8572_v6, 0.0  ;;  %v3876_v18 = vmul.f32 0.2, %v8572_v6  ;;  %4099 = vrot.lane.b32.xlu0 %v8579_v43, %s6624_s18 }
 0x4b0   : > { %v8589_v48 = vld [vmem:[#allocation2 + $0xa8] sm:$0xff]  ;;  %4003 = vst.msk [vmem:[#allocation3 + $0x80] sm:$0xff] %vm327_vm1, %v8581_v14  ;;  %v3910_v50 = vsel %vm3846_vm8, %v8567_v12, %v3878_v23 }
 0x4b1   : > { %3939 = vst.msk [vmem:[#allocation2 + $0xd9] sm:$0xff] %vm1656_vm7, %v3907_v16  ;;  %3942 = vst.msk [vmem:[#allocation2 + $0xf9] sm:$0xff] %vm1656_vm7, %v3910_v50  ;;  %v3908_v62 = vsel %vm3844_vm9, %v8572_v6, %v3876_v18  ;;  %v6446_v5 = vpop.f32.mrb[20].mxu1  ;;  %v8609_v63 = vld [vmem:[#allocation2 + $0xc8] sm:$0xff] }
 0x4b2   : > { %4001 = vst.msk [vmem:[#allocation3 + $0x70] sm:$0xff] %vm327_vm1, %v8589_v48  ;;  %4101 = vrot.lane.b32.xlu1 %v8595_v41, %s6624_s18  ;;  %v8605_v19 = vadd.f32 %v6446_v5, %v8368_v57  ;;  %v3780_v10 = vpop.f32.mrb[21].mxu1  ;;  %v8607_v58 = vld [vmem:[#allocation2 + $0xb0] sm:$0xff]  ;;  %4004 = vst.msk [vmem:[#allocation3 + $0x88] sm:$0xff] %vm327_vm1, %v8609_v63 }
 0x4b3   : > { %3940 = vst.msk [vmem:[#allocation2 + $0xe1] sm:$0xff] %vm1656_vm7, %v3908_v62  ;;  %v8612_v34 = vadd.f32 %v8368_v57, %v3780_v10  ;;  %4479 = vrot.lane.b32.xlu0 %v8469_v54, %s6631_s25  ;;  %v6447_v25 = vpop.f32.mrb[22].mxu1  ;;  %v8670_v10 = vld [vmem:[#allocation2 + $0x51] sm:$0xff] }
 0x4b4   : > { %9661 = vst [vmem:[#allocation24_spill] sm:$0xff] %v8605_v19  ;;  %4002 = vst.msk [vmem:[#allocation3 + $0x78] sm:$0xff] %vm327_vm1, %v8607_v58  ;;  %vm3849_vm3 = vcmp.ge.f32.partialorder %v8605_v19, 0.0  ;;  %v3881_v42 = vmul.f32 0.2, %v8605_v19  ;;  %v8623_v9 = vadd.f32 %v6447_v25, %v8368_v57  ;;  %v3783_v59 = vpop.f32.mrb[23].mxu1 }
 0x4b5   : > { %9662 = vst [vmem:[#allocation25_spill] sm:$0xff] %v8612_v34  ;;  %vm3847_vm6 = vcmp.ge.f32.partialorder %v8612_v34, 0.0  ;;  %v3879_v13 = vmul.f32 0.2, %v8612_v34  ;;  %v8630_v61 = vadd.f32 %v8368_v57, %v3783_v59  ;;  %v4226_v17 = vld [vmem:[#allocation2 + $0xb2] sm:$0xff] }
 0x4b6   : > { %9663 = vst [vmem:[#allocation26_spill] sm:$0xff] %v8623_v9  ;;  %4293 = vrot.lane.b32.xlu1 %v8625_v49, %s6625_s19  ;;  %v3913_v55 = vsel %vm3849_vm3, %v8605_v19, %v3881_v42  ;;  %vm3850_vm8 = vcmp.ge.f32.partialorder %v8623_v9, 0.0  ;;  %v3882_v35 = vmul.f32 0.2, %v8623_v9  ;;  %v8639_v7 = vld [vmem:[#allocation2 + $0xf0] sm:$0xff] }
 0x4b7   : > { %9664 = vst [vmem:[#allocation27_spill] sm:$0xff] %v8630_v61  ;;  %3945 = vst.msk [vmem:[#allocation2 + $0x121] sm:$0xff] %vm1656_vm7, %v3913_v55  ;;  %v3911_v22 = vsel %vm3847_vm6, %v8612_v34, %v3879_v13  ;;  %vm3848_vm9 = vcmp.ge.f32.partialorder %v8630_v61, 0.0  ;;  %v3880_v23 = vmul.f32 0.2, %v8630_v61  ;;  %4095 = vrot.lane.b32.xlu0 %v8637_v32, %s6624_s18  ;;  %v8677_v13 = vld [vmem:[#allocation2 + $0x62] sm:$0xff] }
 0x4b8   : > { %v8647_v16 = vld [vmem:[#allocation2 + $0xd8] sm:$0xff]  ;;  %4007 = vst.msk [vmem:[#allocation3 + $0xa0] sm:$0xff] %vm327_vm1, %v8639_v7  ;;  %v3914_v18 = vsel %vm3850_vm8, %v8623_v9, %v3882_v35  ;;  %v8709_v34 = vld [vmem:[#allocation2 + $0x4a] sm:$0xff] }
 0x4b9   : > { %3943 = vst.msk [vmem:[#allocation2 + $0x109] sm:$0xff] %vm1656_vm7, %v3911_v22  ;;  %3946 = vst.msk [vmem:[#allocation2 + $0x129] sm:$0xff] %vm1656_vm7, %v3914_v18  ;;  %v3912_v50 = vsel %vm3848_vm9, %v8630_v61, %v3880_v23  ;;  %v8662_v5 = vld [vmem:[#allocation2 + $0xf8] sm:$0xff] }
 0x4ba   : > { %4005 = vst.msk [vmem:[#allocation3 + $0x90] sm:$0xff] %vm327_vm1, %v8647_v16  ;;  %4481 = vrot.lane.b32.xlu1 %v8483_v44, %s6631_s25  ;;  %v8660_v62 = vld [vmem:[#allocation2 + $0xe0] sm:$0xff]  ;;  %4008 = vst.msk [vmem:[#allocation3 + $0xa8] sm:$0xff] %vm327_vm1, %v8662_v5  ;;  %v8695_v9 = vld [vmem:[#allocation2 + $0x52] sm:$0xff] }
 0x4bb   : > { %3944 = vst.msk [vmem:[#allocation2 + $0x111] sm:$0xff] %vm1656_vm7, %v3912_v50  ;;  %4475 = vrot.lane.b32.xlu0 %v8477_v29, %s6631_s25  ;;  %v4039_v39 = vld [vmem:[#allocation2 + $0xf1] sm:$0xff]  ;;  %v4040_v52 = vld [vmem:[#allocation2 + $0xf9] sm:$0xff] }
 0x4bc   : > { %4006 = vst.msk [vmem:[#allocation3 + $0x98] sm:$0xff] %vm327_vm1, %v8660_v62  ;;  %v4231_v51 = vld [vmem:[#allocation2 + $0xf2] sm:$0xff] }
 0x4bd   : > { %v6450_v25 = vpop.f32.mrb[24].mxu1 }
 0x4be   : > { %4097 = vrot.lane.b32.xlu1 %v8670_v10, %s6624_s18  ;;  %v8675_v42 = vadd.f32 %v6450_v25, %v8368_v57  ;;  %v3796_v59 = vpop.f32.mrb[25].mxu1  ;;  %v8679_v55 = vld [vmem:[#allocation2 + $0x120] sm:$0xff] }
 0x4bf   : > { %v8682_v35 = vadd.f32 %v8368_v57, %v3796_v59  ;;  %4291 = vrot.lane.b32.xlu0 %v8677_v13, %s6625_s19  ;;  %v6451_v22 = vpop.f32.mrb[26].mxu1  ;;  %4011 = vst.msk [vmem:[#allocation3 + $0xc0] sm:$0xff] %vm327_vm1, %v8679_v55 }
 0x4c0   : > { %9665 = vst [vmem:[#allocation28_spill] sm:$0xff] %v8675_v42  ;;  %v8686_v23 = vld [vmem:[#allocation2 + $0x108] sm:$0xff]  ;;  %vm3853_vm3 = vcmp.ge.f32.partialorder %v8675_v42, 0.0  ;;  %v3885_v18 = vmul.f32 0.2, %v8675_v42  ;;  %v8693_v50 = vadd.f32 %v6451_v22, %v8368_v57  ;;  %v3799_v25 = vpop.f32.mrb[27].mxu1 }
 0x4c1   : > { %9666 = vst [vmem:[#allocation29_spill] sm:$0xff] %v8682_v35  ;;  %4009 = vst.msk [vmem:[#allocation3 + $0xb0] sm:$0xff] %vm327_vm1, %v8686_v23  ;;  %vm3851_vm6 = vcmp.ge.f32.partialorder %v8682_v35, 0.0  ;;  %v3883_v59 = vmul.f32 0.2, %v8682_v35  ;;  %v8702_v19 = vadd.f32 %v8368_v57, %v3799_v25  ;;  %v8713_v30 = vld [vmem:[#allocation2 + $0x128] sm:$0xff] }
 0x4c2   : > { %9667 = vst [vmem:[#allocation30_spill] sm:$0xff] %v8693_v50  ;;  %4289 = vrot.lane.b32.xlu1 %v8695_v9, %s6625_s19  ;;  %v3917_v61 = vsel %vm3853_vm3, %v8675_v42, %v3885_v18  ;;  %vm3854_vm8 = vcmp.ge.f32.partialorder %v8693_v50, 0.0  ;;  %v3886_v22 = vmul.f32 0.2, %v8693_v50  ;;  %v8711_v12 = vld [vmem:[#allocation2 + $0x110] sm:$0xff]  ;;  %4012 = vst.msk [vmem:[#allocation3 + $0xc8] sm:$0xff] %vm327_vm1, %v8713_v30 }
 0x4c3   : > { %9668 = vst [vmem:[#allocation31_spill] sm:$0xff] %v8702_v19  ;;  %3949 = vst.msk [vmem:[#allocation2 + $0x151] sm:$0xff] %vm1656_vm7, %v3917_v61  ;;  %v3915_v25 = vsel %vm3851_vm6, %v8682_v35, %v3883_v59  ;;  %vm3852_vm9 = vcmp.ge.f32.partialorder %v8702_v19, 0.0  ;;  %v3884_v6 = vmul.f32 0.2, %v8702_v19  ;;  %4287 = vrot.lane.b32.xlu0 %v8709_v34, %s6625_s19  ;;  %v8732_v59 = vld [vmem:[#allocation2 + $0x91] sm:$0xff] }
 0x4c4   : > { %4010 = vst.msk [vmem:[#allocation3 + $0xb8] sm:$0xff] %vm327_vm1, %v8711_v12  ;;  %v3918_v18 = vsel %vm3854_vm8, %v8693_v50, %v3886_v22  ;;  %v8736_v42 = vld [vmem:[#allocation2 + $0x99] sm:$0xff]  ;;  %v4044_v24 = vld [vmem:[#allocation2 + $0x129] sm:$0xff] }
 0x4c5   : > { %3947 = vst.msk [vmem:[#allocation2 + $0x139] sm:$0xff] %vm1656_vm7, %v3915_v25  ;;  %3950 = vst.msk [vmem:[#allocation2 + $0x159] sm:$0xff] %vm1656_vm7, %v3918_v18  ;;  %v3916_v61 = vsel %vm3852_vm9, %v8702_v19, %v3884_v6  ;;  %v8740_v22 = vld [vmem:[#allocation2 + $0x79] sm:$0xff]  ;;  %v4041_v37 = vld [vmem:[#allocation2 + $0x109] sm:$0xff] }
 0x4c6   : > { %4477 = vrot.lane.b32.xlu1 %v8496_v27, %s6631_s25  ;;  %3948 = vst.msk [vmem:[#allocation2 + $0x141] sm:$0xff] %vm1656_vm7, %v3916_v61  ;;  %v8750_v18 = vld [vmem:[#allocation2 + $0x9a] sm:$0xff] }
 0x4c7   : > { %4107 = vrot.lane.b32.xlu0 %v8732_v59, %s6624_s18  ;;  %9669 = vst [vmem:[#allocation32_spill] sm:$0xff] %v8750_v18 }
 0x4ca   : > { %4109 = vrot.lane.b32.xlu1 %v8736_v42, %s6624_s18  ;;  %v8742_v25 = vld [vmem:[#allocation2 + $0x150] sm:$0xff] }
 0x4cb   : > { %4103 = vrot.lane.b32.xlu0 %v8740_v22, %s6624_s18  ;;  %4015 = vst.msk [vmem:[#allocation3 + $0xe0] sm:$0xff] %vm327_vm1, %v8742_v25 }
 0x4cc   : > { %v8746_v6 = vld [vmem:[#allocation2 + $0x138] sm:$0xff] }
 0x4cd   : > { %4013 = vst.msk [vmem:[#allocation3 + $0xd0] sm:$0xff] %vm327_vm1, %v8746_v6  ;;  %v6454_v61 = vpop.f32.mrb[28].mxu1  ;;  %v8759_v35 = vld [vmem:[#allocation2 + $0x140] sm:$0xff]  ;;  %v8761_v46 = vld [vmem:[#allocation2 + $0x158] sm:$0xff] }
 0x4ce   : > { %4301 = vrot.lane.b32.xlu1 %v8750_v18, %s6625_s19  ;;  %v8757_v50 = vadd.f32 %v6454_v61, %v8368_v57  ;;  %v3812_v19 = vpop.f32.mrb[29].mxu1  ;;  %4016 = vst.msk [vmem:[#allocation3 + $0xe8] sm:$0xff] %vm327_vm1, %v8761_v46  ;;  %4014 = vst.msk [vmem:[#allocation3 + $0xd8] sm:$0xff] %vm327_vm1, %v8759_v35  ;;  %v8772_v61 = vld [vmem:[#allocation2 + $0x81] sm:$0xff] }
 0x4cf   : > { %4483 = vrot.lane.b32.xlu0 %v8531_v56, %s6631_s25  ;;  %v8766_v0 = vadd.f32 %v8368_v57, %v3812_v19  ;;  %v6455_v26 = vpop.f32.mrb[30].mxu1  ;;  %v4237_v18 = vld [vmem:[#allocation2 + $0x13a] sm:$0xff] }
 0x4d0   : > { %9670 = vst [vmem:[#allocation33_spill] sm:$0xff] %v8757_v50  ;;  %vm3857_vm3 = vcmp.ge.f32.partialorder %v8757_v50, 0.0  ;;  %v3889_v4 = vmul.f32 0.2, %v8757_v50  ;;  %v8777_v2 = vadd.f32 %v6455_v26, %v8368_v57  ;;  %v3815_v53 = vpop.f32.mrb[31].mxu1 }
 0x4d1   : > { %9671 = vst [vmem:[#allocation34_spill] sm:$0xff] %v8766_v0  ;;  %vm3855_vm6 = vcmp.ge.f32.partialorder %v8766_v0, 0.0  ;;  %v3887_v19 = vmul.f32 0.2, %v8766_v0  ;;  %v8784_v31 = vadd.f32 %v8368_v57, %v3815_v53  ;;  %v8797_v53 = vld [vmem:[#allocation2 + $0x82] sm:$0xff] }
 0x4d2   : > { %9672 = vst [vmem:[#allocation35_spill] sm:$0xff] %v8777_v2  ;;  %4105 = vrot.lane.b32.xlu1 %v8772_v61, %s6624_s18  ;;  %v3921_v8 = vsel %vm3857_vm3, %v8757_v50, %v3889_v4  ;;  %vm3858_vm8 = vcmp.ge.f32.partialorder %v8777_v2, 0.0  ;;  %v3890_v26 = vmul.f32 0.2, %v8777_v2 }
 0x4d3   : > { %9673 = vst [vmem:[#allocation36_spill] sm:$0xff] %v8784_v31  ;;  %4299 = vrot.lane.b32.xlu0 %v8786_v3, %s6625_s19  ;;  %3953 = vst.msk [vmem:[#allocation2 + $0x181] sm:$0xff] %vm1656_vm7, %v3921_v8  ;;  %v3919_v1 = vsel %vm3855_vm6, %v8766_v0, %v3887_v19  ;;  %vm3856_vm9 = vcmp.ge.f32.partialorder %v8784_v31, 0.0  ;;  %v3888_v57 = vmul.f32 0.2, %v8784_v31  ;;  %v8805_v8 = vld [vmem:[#allocation2 + $0x7a] sm:$0xff] }
 0x4d4   : > { %3951 = vst.msk [vmem:[#allocation2 + $0x169] sm:$0xff] %vm1656_vm7, %v3919_v1  ;;  %v3922_v4 = vsel %vm3858_vm8, %v8777_v2, %v3890_v26  ;;  %v8812_v1 = vld [vmem:[#allocation2 + $0xc1] sm:$0xff]  ;;  %v8818_v26 = vld [vmem:[#allocation2 + $0xc9] sm:$0xff] }
 0x4d5   : > { %3954 = vst.msk [vmem:[#allocation2 + $0x189] sm:$0xff] %vm1656_vm7, %v3922_v4  ;;  %v3920_v50 = vsel %vm3856_vm9, %v8784_v31, %v3888_v57  ;;  %v4228_v4 = vld [vmem:[#allocation2 + $0xca] sm:$0xff]  ;;  %v4227_v2 = vld [vmem:[#allocation2 + $0xc2] sm:$0xff] }
 0x4d6   : > { %4297 = vrot.lane.b32.xlu1 %v8797_v53, %s6625_s19  ;;  %3952 = vst.msk [vmem:[#allocation2 + $0x171] sm:$0xff] %vm1656_vm7, %v3920_v50  ;;  %v8824_v50 = vld [vmem:[#allocation2 + $0xa9] sm:$0xff]  ;;  %v8834_v31 = vld [vmem:[#allocation2 + $0xb1] sm:$0xff] }
 0x4d7   : > { %4295 = vrot.lane.b32.xlu0 %v8805_v8, %s6625_s19  ;;  %v4225_v0 = vld [vmem:[#allocation2 + $0xaa] sm:$0xff] }
 0x4da   : > { %4485 = vrot.lane.b32.xlu1 %v8551_v45, %s6631_s25 }
 0x4db   : > { %4115 = vrot.lane.b32.xlu0 %v8812_v1, %s6624_s18  ;;  %v8816_v19 = vld [vmem:[#allocation2 + $0x168] sm:$0xff] }
 0x4dc   : > { %4017 = vst.msk [vmem:[#allocation3 + $0xf0] sm:$0xff] %vm327_vm1, %v8816_v19 }
 0x4dd   : > { %v8826_v57 = vld [vmem:[#allocation2 + $0x170] sm:$0xff] }
 0x4de   : > { %4117 = vrot.lane.b32.xlu1 %v8818_v26, %s6624_s18  ;;  %4018 = vst.msk [vmem:[#allocation3 + $0xf8] sm:$0xff] %vm327_vm1, %v8826_v57 }
 0x4df   : > { %4111 = vrot.lane.b32.xlu0 %v8824_v50, %s6624_s18 }
 0x4e2   : > { %4309 = vrot.lane.b32.xlu1 %v4228_v4, %s6625_s19  ;;  %v8842_v4 = vld [vmem:[#allocation2 + $0xd9] sm:$0xff] }
 0x4e3   : > { %4307 = vrot.lane.b32.xlu0 %v4227_v2, %s6625_s19  ;;  %v4232_v2 = vld [vmem:[#allocation2 + $0xfa] sm:$0xff] }
 0x4e6   : > { %4113 = vrot.lane.b32.xlu1 %v8834_v31, %s6624_s18 }
 0x4e7   : > { %4303 = vrot.lane.b32.xlu0 %v4225_v0, %s6625_s19  ;;  %v4038_v0 = vld [vmem:[#allocation2 + $0xe1] sm:$0xff] }
 0x4ea   : > { %4305 = vrot.lane.b32.xlu1 %v4226_v17, %s6625_s19  ;;  %v4229_v17 = vld [vmem:[#allocation2 + $0xda] sm:$0xff] }
 0x4eb   : > { %4123 = vrot.lane.b32.xlu0 %v4039_v39, %s6624_s18  ;;  %v4230_v39 = vld [vmem:[#allocation2 + $0xe2] sm:$0xff] }
 0x4ee   : > { %4125 = vrot.lane.b32.xlu1 %v4040_v52, %s6624_s18  ;;  %v4043_v52 = vld [vmem:[#allocation2 + $0x121] sm:$0xff] }
 0x4ef   : > { %4119 = vrot.lane.b32.xlu0 %v8842_v4, %s6624_s18 }
 0x4f2   : > { %4317 = vrot.lane.b32.xlu1 %v4232_v2, %s6625_s19  ;;  %v4236_v2 = vld [vmem:[#allocation2 + $0x12a] sm:$0xff] }
 0x4f3   : > { %4315 = vrot.lane.b32.xlu0 %v4231_v51, %s6625_s19  ;;  %v4235_v51 = vld [vmem:[#allocation2 + $0x122] sm:$0xff] }
 0x4f6   : > { %4121 = vrot.lane.b32.xlu1 %v4038_v0, %s6624_s18  ;;  %v4042_v0 = vld [vmem:[#allocation2 + $0x111] sm:$0xff] }
 0x4f7   : > { %4311 = vrot.lane.b32.xlu0 %v4229_v17, %s6625_s19  ;;  %v4233_v17 = vld [vmem:[#allocation2 + $0x10a] sm:$0xff] }
 0x4fa   : > { %4313 = vrot.lane.b32.xlu1 %v4230_v39, %s6625_s19  ;;  %v4234_v39 = vld [vmem:[#allocation2 + $0x112] sm:$0xff] }
 0x4fb   : > { %4131 = vrot.lane.b32.xlu0 %v4043_v52, %s6624_s18 }
 0x4fe   : > { %4133 = vrot.lane.b32.xlu1 %v4044_v24, %s6624_s18  ;;  %v4047_v24 = vld [vmem:[#allocation2 + $0x151] sm:$0xff] }
 0x4ff   : > { %4127 = vrot.lane.b32.xlu0 %v4041_v37, %s6624_s18 }
 0x502   : > { %4325 = vrot.lane.b32.xlu1 %v4236_v2, %s6625_s19  ;;  %v4048_v2 = vld [vmem:[#allocation2 + $0x159] sm:$0xff] }
 0x503   : > { %4323 = vrot.lane.b32.xlu0 %v4235_v51, %s6625_s19 }
 0x506   : > { %4129 = vrot.lane.b32.xlu1 %v4042_v0, %s6624_s18  ;;  %v4045_v0 = vld [vmem:[#allocation2 + $0x139] sm:$0xff] }
 0x507   : > { %4319 = vrot.lane.b32.xlu0 %v4233_v17, %s6625_s19  ;;  %v4240_v17 = vld [vmem:[#allocation2 + $0x15a] sm:$0xff] }
 0x509   : > { %v4092_v52 = vpop.permute.xlu0 %4091 }
 0x50a   : > { %4321 = vrot.lane.b32.xlu1 %v4234_v39, %s6625_s19  ;;  %4183 = vst.msk [vmem:[#allocation3 + $0x20] sm:$0xff] %vm2138_vm4, %v4092_v52  ;;  %v4239_v52 = vld [vmem:[#allocation2 + $0x152] sm:$0xff] }
 0x50b   : > { %4139 = vrot.lane.b32.xlu0 %v4047_v24, %s6624_s18 }
 0x50c   : > { %v4094_v37 = vpop.permute.xlu1 %4093 }
 0x50d   : > { %4184 = vst.msk [vmem:[#allocation3 + $0x28] sm:$0xff] %vm2138_vm4, %v4094_v37  ;;  %v4472_v51 = vpop.permute.xlu0 %4471  ;;  %v4046_v37 = vld [vmem:[#allocation2 + $0x141] sm:$0xff] }
 0x50e   : > { %4141 = vrot.lane.b32.xlu1 %v4048_v2, %s6624_s18 }
 0x50f   : > { %4135 = vrot.lane.b32.xlu0 %v4045_v0, %s6624_s18 }
 0x510   : > { %v4286_v20 = vpop.permute.xlu1 %4285 }
 0x511   : > { %4376 = vst.msk [vmem:[#allocation3 + $0x28] sm:$0xff] %vm2331_vm5, %v4286_v20  ;;  %v4088_v39 = vpop.permute.xlu0 %4087  ;;  %v4238_v20 = vld [vmem:[#allocation2 + $0x142] sm:$0xff] }
 0x512   : > { %4333 = vrot.lane.b32.xlu1 %v4240_v17, %s6625_s19  ;;  %4181 = vst.msk [vmem:[#allocation3 + $0x10] sm:$0xff] %vm2138_vm4, %v4088_v39  ;;  %v4049_v39 = vld [vmem:[#allocation2 + $0x169] sm:$0xff] }
 0x513   : > { %4331 = vrot.lane.b32.xlu0 %v4239_v52, %s6625_s19 }
 0x514   : > { %v4474_v24 = vpop.permute.xlu1 %4473 }
 0x515   : > { %v4468_v2 = vpop.permute.xlu0 %4467 }
 0x516   : > { %4137 = vrot.lane.b32.xlu1 %v4046_v37, %s6624_s18  ;;  %4563 = vst.msk [vmem:[#allocation3] sm:$0xff] %vm2524_vm10, %v4468_v2  ;;  %v4050_v37 = vld [vmem:[#allocation2 + $0x171] sm:$0xff] }
 0x517   : > { %4327 = vrot.lane.b32.xlu0 %v4237_v18, %s6625_s19  ;;  %v4241_v2 = vld [vmem:[#allocation2 + $0x16a] sm:$0xff] }
 0x518   : > { %v4090_v0 = vpop.permute.xlu1 %4089 }
 0x519   : > { %4182 = vst.msk [vmem:[#allocation3 + $0x18] sm:$0xff] %vm2138_vm4, %v4090_v0  ;;  %v4284_v17 = vpop.permute.xlu0 %4283 }
 0x51a   : > { %4329 = vrot.lane.b32.xlu1 %v4238_v20, %s6625_s19  ;;  %4375 = vst.msk [vmem:[#allocation3 + $0x20] sm:$0xff] %vm2331_vm5, %v4284_v17  ;;  %v4242_v20 = vld [vmem:[#allocation2 + $0x172] sm:$0xff] }
 0x51b   : > { %4143 = vrot.lane.b32.xlu0 %v4049_v39, %s6624_s18 }
 0x51c   : > { %v4282_v52 = vpop.permute.xlu1 %4281 }
 0x51d   : > { %4374 = vst.msk [vmem:[#allocation3 + $0x18] sm:$0xff] %vm2331_vm5, %v4282_v52  ;;  %v4280_v18 = vpop.permute.xlu0 %4279 }
 0x51e   : > { %4566 = vst.msk [vmem:[#allocation3 + $0x18] sm:$0xff] %vm2524_vm10, %v4474_v24  ;;  %4145 = vrot.lane.b32.xlu1 %v4050_v37, %s6624_s18 }
 0x51f   : > { %4373 = vst.msk [vmem:[#allocation3 + $0x10] sm:$0xff] %vm2331_vm5, %v4280_v18  ;;  %4335 = vrot.lane.b32.xlu0 %v4241_v2, %s6625_s19 }
 0x520   : > { %4565 = vst.msk [vmem:[#allocation3 + $0x10] sm:$0xff] %vm2524_vm10, %v4472_v51  ;;  %v4470_v0 = vpop.permute.xlu1 %4469 }
 0x521   : > { %4564 = vst.msk [vmem:[#allocation3 + $0x8] sm:$0xff] %vm2524_vm10, %v4470_v0  ;;  %v4100_v17 = vpop.permute.xlu0 %4099 }
 0x522   : > { %4337 = vrot.lane.b32.xlu1 %v4242_v20, %s6625_s19  ;;  %4187 = vst.msk [vmem:[#allocation3 + $0x40] sm:$0xff] %vm2138_vm4, %v4100_v17 }
 0x523   : > { %4487 = vrot.lane.b32.xlu0 %v8523_v47, %s6631_s25 }
 0x524   : > { %v4102_v24 = vpop.permute.xlu1 %4101 }
 0x525   : > { %4188 = vst.msk [vmem:[#allocation3 + $0x48] sm:$0xff] %vm2138_vm4, %v4102_v24  ;;  %v4480_v51 = vpop.permute.xlu0 %4479 }
 0x526   : > { %4489 = vrot.lane.b32.xlu1 %v8553_v60, %s6631_s25 }
 0x527   : > { %4491 = vrot.lane.b32.xlu0 %v8589_v48, %s6631_s25 }
 0x528   : > { %v4294_v39 = vpop.permute.xlu1 %4293 }
 0x529   : > { %4380 = vst.msk [vmem:[#allocation3 + $0x48] sm:$0xff] %vm2331_vm5, %v4294_v39  ;;  %v4096_v52 = vpop.permute.xlu0 %4095 }
 0x52a   : > { %4493 = vrot.lane.b32.xlu1 %v8607_v58, %s6631_s25  ;;  %4185 = vst.msk [vmem:[#allocation3 + $0x30] sm:$0xff] %vm2138_vm4, %v4096_v52 }
 0x52b   : > { %4495 = vrot.lane.b32.xlu0 %v8581_v14, %s6631_s25 }
 0x52c   : > { %v4482_v37 = vpop.permute.xlu1 %4481 }
 0x52d   : > { %v4476_v18 = vpop.permute.xlu0 %4475 }
 0x52e   : > { %4497 = vrot.lane.b32.xlu1 %v8609_v63, %s6631_s25  ;;  %4567 = vst.msk [vmem:[#allocation3 + $0x20] sm:$0xff] %vm2524_vm10, %v4476_v18 }
 0x52f   : > { %4499 = vrot.lane.b32.xlu0 %v8647_v16, %s6631_s25 }
 0x530   : > { %v4098_v2 = vpop.permute.xlu1 %4097 }
 0x531   : > { %4186 = vst.msk [vmem:[#allocation3 + $0x38] sm:$0xff] %vm2138_vm4, %v4098_v2  ;;  %v4292_v0 = vpop.permute.xlu0 %4291 }
 0x532   : > { %4501 = vrot.lane.b32.xlu1 %v8660_v62, %s6631_s25  ;;  %4379 = vst.msk [vmem:[#allocation3 + $0x40] sm:$0xff] %vm2331_vm5, %v4292_v0 }
 0x533   : > { %4503 = vrot.lane.b32.xlu0 %v8639_v7, %s6631_s25 }
 0x534   : > { %v4290_v20 = vpop.permute.xlu1 %4289 }
 0x535   : > { %4378 = vst.msk [vmem:[#allocation3 + $0x38] sm:$0xff] %vm2331_vm5, %v4290_v20  ;;  %v4288_v17 = vpop.permute.xlu0 %4287 }
 0x536   : > { %4570 = vst.msk [vmem:[#allocation3 + $0x38] sm:$0xff] %vm2524_vm10, %v4482_v37  ;;  %4505 = vrot.lane.b32.xlu1 %v8662_v5, %s6631_s25 }
 0x537   : > { %4377 = vst.msk [vmem:[#allocation3 + $0x30] sm:$0xff] %vm2331_vm5, %v4288_v17  ;;  %4507 = vrot.lane.b32.xlu0 %v8686_v23, %s6631_s25 }
 0x538   : > { %4569 = vst.msk [vmem:[#allocation3 + $0x30] sm:$0xff] %vm2524_vm10, %v4480_v51  ;;  %v4478_v24 = vpop.permute.xlu1 %4477 }
 0x539   : > { %4568 = vst.msk [vmem:[#allocation3 + $0x28] sm:$0xff] %vm2524_vm10, %v4478_v24  ;;  %v4108_v39 = vpop.permute.xlu0 %4107 }
 0x53a   : > { %4509 = vrot.lane.b32.xlu1 %v8711_v12, %s6631_s25  ;;  %4191 = vst.msk [vmem:[#allocation3 + $0x60] sm:$0xff] %vm2138_vm4, %v4108_v39 }
 0x53b   : > { %4511 = vrot.lane.b32.xlu0 %v8679_v55, %s6631_s25 }
 0x53c   : > { %v4110_v52 = vpop.permute.xlu1 %4109 }
 0x53d   : > { %4192 = vst.msk [vmem:[#allocation3 + $0x68] sm:$0xff] %vm2138_vm4, %v4110_v52  ;;  %v4104_v51 = vpop.permute.xlu0 %4103 }
 0x53e   : > { %4513 = vrot.lane.b32.xlu1 %v8713_v30, %s6631_s25  ;;  %4189 = vst.msk [vmem:[#allocation3 + $0x50] sm:$0xff] %vm2138_vm4, %v4104_v51 }
 0x53f   : > { %4515 = vrot.lane.b32.xlu0 %v8746_v6, %s6631_s25 }
 0x540   : > { %v4302_v37 = vpop.permute.xlu1 %4301 }
 0x541   : > { %4384 = vst.msk [vmem:[#allocation3 + $0x68] sm:$0xff] %vm2331_vm5, %v4302_v37  ;;  %v4484_v18 = vpop.permute.xlu0 %4483  ;;  %v6609_v37 = vld [vmem:[%s9594_s6] sm:$0xff]  }
 0x542   : > { %4517 = vrot.lane.b32.xlu1 %v8759_v35, %s6631_s25  ;;  %4571 = vst.msk [vmem:[#allocation3 + $0x40] sm:$0xff] %vm2524_vm10, %v4484_v18  ;;  %6456 = vmatprep.subr.bf16.mxu0 %v6609_v37 }
 0x543   : > { %4519 = vrot.lane.b32.xlu0 %v8742_v25, %s6631_s25  ;;  %v4433_v25 = vld [vmem:[#allocation2 + $0x180] sm:$0xff]  ;;  %6457 = vmatpush3.bf16.msra.mxu0 %v6609_v37 }
 0x544   : > { %v4106_v55 = vpop.permute.xlu1 %4105 }
 0x545   : > { %4190 = vst.msk [vmem:[#allocation3 + $0x58] sm:$0xff] %vm2138_vm4, %v4106_v55  ;;  %v4300_v30 = vpop.permute.xlu0 %4299 }
 0x546   : > { %4521 = vrot.lane.b32.xlu1 %v8761_v46, %s6631_s25  ;;  %4383 = vst.msk [vmem:[#allocation3 + $0x60] sm:$0xff] %vm2331_vm5, %v4300_v30  ;;  %v4434_v46 = vld [vmem:[#allocation2 + $0x188] sm:$0xff] }
 0x547   : > { %4523 = vrot.lane.b32.xlu0 %v8816_v19, %s6631_s25 }
 0x548   : > { %v4298_v6 = vpop.permute.xlu1 %4297 }
 0x549   : > { %4382 = vst.msk [vmem:[#allocation3 + $0x58] sm:$0xff] %vm2331_vm5, %v4298_v6  ;;  %v4296_v35 = vpop.permute.xlu0 %4295  ;;  %v5171_v6 = vld [vmem:[#allocation2 + $0x31] sm:$0xff] }
 0x54a   : > { %4525 = vrot.lane.b32.xlu1 %v8826_v57, %s6631_s25  ;;  %4381 = vst.msk [vmem:[#allocation3 + $0x50] sm:$0xff] %vm2331_vm5, %v4296_v35  ;;  %v6611_v35 = vld [vmem:[%s9594_s6 + $0x10] sm:$0xff]  }
 0x54b   : > { %4527 = vrot.lane.b32.xlu0 %v4433_v25, %s6631_s25 }
 0x54c   : > { %v4486_v2 = vpop.permute.xlu1 %4485 }
 0x54d   : > { %4572 = vst.msk [vmem:[#allocation3 + $0x48] sm:$0xff] %vm2524_vm10, %v4486_v2  ;;  %v4116_v0 = vpop.permute.xlu0 %4115 }
 0x54e   : > { %4529 = vrot.lane.b32.xlu1 %v4434_v46, %s6631_s25  ;;  %4195 = vst.msk [vmem:[#allocation3 + $0x80] sm:$0xff] %vm2138_vm4, %v4116_v0 }
 0x54f   : > { %4659 = vrot.lane.b32.xlu0 %v8467_v11, %s6632_s26 }
 0x550   : > { %v4118_v19 = vpop.permute.xlu1 %4117 }
 0x551   : > { %4196 = vst.msk [vmem:[#allocation3 + $0x88] sm:$0xff] %vm2138_vm4, %v4118_v19  ;;  %v4112_v57 = vpop.permute.xlu0 %4111  ;;  %v5363_v19 = vld [vmem:[#allocation2 + $0x32] sm:$0xff] }
 0x552   : > { %4661 = vrot.lane.b32.xlu1 %v8509_v28, %s6632_s26  ;;  %4193 = vst.msk [vmem:[#allocation3 + $0x70] sm:$0xff] %vm2138_vm4, %v4112_v57  ;;  %v6613_v57 = vld [vmem:[%s9594_s6 + $0x20] ss:$0 sps:$4 sm:$0xff]  }
 0x553   : > { %4663 = vrot.lane.b32.xlu0 %v8419_v40, %s6632_s26 }
 0x554   : > { %v4310_v20 = vpop.permute.xlu1 %4309 }
 0x555   : > { %4388 = vst.msk [vmem:[#allocation3 + $0x88] sm:$0xff] %vm2331_vm5, %v4310_v20  ;;  %v4308_v17 = vpop.permute.xlu0 %4307 }
 0x556   : > { %4665 = vrot.lane.b32.xlu1 %v8430_v33, %s6632_s26  ;;  %4387 = vst.msk [vmem:[#allocation3 + $0x80] sm:$0xff] %vm2331_vm5, %v4308_v17  ;;  %v5695_v17 = vsel %vm405_vm0, %v6613_v57, 0 }
 0x557   : > { %4667 = vrot.lane.b32.xlu0 %v8637_v32, %s6632_s26 }
 0x558   : > { %v4114_v11 = vpop.permute.xlu1 %4113 }
 0x559   : > { %4194 = vst.msk [vmem:[#allocation3 + $0x78] sm:$0xff] %vm2138_vm4, %v4114_v11  ;;  %v4304_v28 = vpop.permute.xlu0 %4303 }
 0x55a   : > { %4669 = vrot.lane.b32.xlu1 %v8670_v10, %s6632_s26  ;;  %4385 = vst.msk [vmem:[#allocation3 + $0x70] sm:$0xff] %vm2331_vm5, %v4304_v28 }
 0x55b   : > { %4671 = vrot.lane.b32.xlu0 %v8579_v43, %s6632_s26 }
 0x55c   : > { %v4306_v40 = vpop.permute.xlu1 %4305 }
 0x55d   : > { %4386 = vst.msk [vmem:[#allocation3 + $0x78] sm:$0xff] %vm2331_vm5, %v4306_v40  ;;  %v4124_v33 = vpop.permute.xlu0 %4123 }
 0x55e   : > { %4673 = vrot.lane.b32.xlu1 %v8595_v41, %s6632_s26  ;;  %4199 = vst.msk [vmem:[#allocation3 + $0xa0] sm:$0xff] %vm2138_vm4, %v4124_v33 }
 0x55f   : > { %4675 = vrot.lane.b32.xlu0 %v8740_v22, %s6632_s26 }
 0x560   : > { %v4126_v24 = vpop.permute.xlu1 %4125 }
 0x561   : > { %4200 = vst.msk [vmem:[#allocation3 + $0xa8] sm:$0xff] %vm2138_vm4, %v4126_v24  ;;  %v4120_v39 = vpop.permute.xlu0 %4119 }
 0x562   : > { %4677 = vrot.lane.b32.xlu1 %v8772_v61, %s6632_s26  ;;  %4197 = vst.msk [vmem:[#allocation3 + $0x90] sm:$0xff] %vm2138_vm4, %v4120_v39 }
 0x563   : > { %4679 = vrot.lane.b32.xlu0 %v8732_v59, %s6632_s26 }
 0x564   : > { %v4318_v43 = vpop.permute.xlu1 %4317 }
 0x565   : > { %4392 = vst.msk [vmem:[#allocation3 + $0xa8] sm:$0xff] %vm2331_vm5, %v4318_v43  ;;  %v4316_v41 = vpop.permute.xlu0 %4315 }
 0x566   : > { %4681 = vrot.lane.b32.xlu1 %v8736_v42, %s6632_s26  ;;  %4391 = vst.msk [vmem:[#allocation3 + $0xa0] sm:$0xff] %vm2331_vm5, %v4316_v41 }
 0x567   : > { %4683 = vrot.lane.b32.xlu0 %v8824_v50, %s6632_s26 }
 0x568   : > { %v4122_v52 = vpop.permute.xlu1 %4121 }
 0x569   : > { %4198 = vst.msk [vmem:[#allocation3 + $0x98] sm:$0xff] %vm2138_vm4, %v4122_v52  ;;  %v4312_v51 = vpop.permute.xlu0 %4311 }
 0x56a   : > { %4685 = vrot.lane.b32.xlu1 %v8834_v31, %s6632_s26  ;;  %4389 = vst.msk [vmem:[#allocation3 + $0x90] sm:$0xff] %vm2331_vm5, %v4312_v51 }
 0x56b   : > { %4687 = vrot.lane.b32.xlu0 %v8812_v1, %s6632_s26 }
 0x56c   : > { %v4314_v59 = vpop.permute.xlu1 %4313 }
 0x56d   : > { %4390 = vst.msk [vmem:[#allocation3 + $0x98] sm:$0xff] %vm2331_vm5, %v4314_v59  ;;  %v4132_v42 = vpop.permute.xlu0 %4131  ;;  %v5368_v59 = vld [vmem:[#allocation2 + $0x6a] sm:$0xff] }
 0x56e   : > { %4689 = vrot.lane.b32.xlu1 %v8818_v26, %s6632_s26  ;;  %4203 = vst.msk [vmem:[#allocation3 + $0xc0] sm:$0xff] %vm2138_vm4, %v4132_v42 }
 0x56f   : > { %4691 = vrot.lane.b32.xlu0 %v8842_v4, %s6632_s26 }
 0x570   : > { %v4134_v50 = vpop.permute.xlu1 %4133 }
 0x571   : > { %4204 = vst.msk [vmem:[#allocation3 + $0xc8] sm:$0xff] %vm2138_vm4, %v4134_v50  ;;  %v4128_v31 = vpop.permute.xlu0 %4127 }
 0x572   : > { %4851 = vrot.lane.b32.xlu1 %v8549_v21, %s6633_s29  ;;  %4201 = vst.msk [vmem:[#allocation3 + $0xb0] sm:$0xff] %vm2138_vm4, %v4128_v31  ;;  %v4979_v21 = vld [vmem:[#allocation2 + $0x30] sm:$0xff] }
 0x573   : > { %4853 = vrot.lane.b32.xlu0 %v8537_v38, %s6633_s29 }
 0x574   : > { %v4326_v1 = vpop.permute.xlu1 %4325 }
 0x575   : > { %4396 = vst.msk [vmem:[#allocation3 + $0xc8] sm:$0xff] %vm2331_vm5, %v4326_v1  ;;  %v4324_v26 = vpop.permute.xlu0 %4323 }
 0x576   : > { %4855 = vrot.lane.b32.xlu1 %v8521_v36, %s6633_s29  ;;  %4395 = vst.msk [vmem:[#allocation3 + $0xc0] sm:$0xff] %vm2331_vm5, %v4324_v26  ;;  %v4980_v36 = vld [vmem:[#allocation2 + $0x38] sm:$0xff]  ;;  %v9674_v26 = vld [vmem:[#allocation32_spill] sm:$0xff] }
 0x577   : > { %4857 = vrot.lane.b32.xlu0 %v8455_v15, %s6633_s29  ;;  %v6610_v15 = vld [vmem:[%s9594_s6 + $0x8] sm:$0xff]  }
 0x578   : > { %v4130_v4 = vpop.permute.xlu1 %4129  ;;  %6458 = vmatprep.subr.bf16.mxu0 %v6610_v15 }
 0x579   : > { %4202 = vst.msk [vmem:[#allocation3 + $0xb8] sm:$0xff] %vm2138_vm4, %v4130_v4  ;;  %v4320_v38 = vpop.permute.xlu0 %4319  ;;  %6459 = vmatpush3.bf16.msra.mxu0 %v6610_v15 }
 0x57a   : > { %5043 = vrot.lane.b32.xlu1 %v4979_v21, %s6634_s30  ;;  %4393 = vst.msk [vmem:[#allocation3 + $0xb0] sm:$0xff] %vm2331_vm5, %v4320_v38  ;;  %6460 = vmatprep.subr.bf16.mxu0 %v6611_v35 }
 0x57b   : > { %5045 = vrot.lane.b32.xlu0 %v4980_v36, %s6634_s30 }
 0x57c   : > { %v4322_v18 = vpop.permute.xlu1 %4321 }
 0x57d   : > { %4394 = vst.msk [vmem:[#allocation3 + $0xb8] sm:$0xff] %vm2331_vm5, %v4322_v18  ;;  %v4140_v55 = vpop.permute.xlu0 %4139  ;;  %6461 = vmatpush3.bf16.msra.mxu0 %v6611_v35  ;;  %v5371_v18 = vld [vmem:[#allocation2 + $0x92] sm:$0xff] }
 0x57e   : > { %5047 = vrot.lane.b32.xlu1 %v8477_v29, %s6634_s30  ;;  %4207 = vst.msk [vmem:[#allocation3 + $0xe0] sm:$0xff] %vm2138_vm4, %v4140_v55  ;;  %v5172_v29 = vld [vmem:[#allocation2 + $0x39] sm:$0xff] }
 0x57f   : > { %5049 = vrot.lane.b32.xlu0 %v8496_v27, %s6634_s30  ;;  %v6612_v27 = vld [vmem:[%s9594_s6 + $0x18] sm:$0xff]  }
 0x580   : > { %v4142_v30 = vpop.permute.xlu1 %4141  ;;  %6462 = vmatprep.subr.bf16.mxu0 %v6612_v27  ;;  %v5372_v55 = vld [vmem:[#allocation2 + $0x9a] sm:$0xff] }
 0x581   : > { %4208 = vst.msk [vmem:[#allocation3 + $0xe8] sm:$0xff] %vm2138_vm4, %v4142_v30  ;;  %v4136_v25 = vpop.permute.xlu0 %4135  ;;  %6463 = vmatpush3.bf16.msra.mxu0 %v6612_v27 }
 0x582   : > { %5235 = vrot.lane.b32.xlu1 %v5171_v6, %s6635_s9  ;;  %4205 = vst.msk [vmem:[#allocation3 + $0xd0] sm:$0xff] %vm2138_vm4, %v4136_v25  ;;  %6500 = vmatprep.subr.msk.bf16.mxu0 %vm405_vm0, %v6613_v57  ;;  %v5373_v6 = vld [vmem:[#allocation2 + $0xaa] sm:$0xff]  ;;  %v5374_v25 = vld [vmem:[#allocation2 + $0xb2] sm:$0xff] }
 0x583   : > { %5237 = vrot.lane.b32.xlu0 %v5172_v29, %s6635_s9 }
 0x584   : > { %v4334_v2 = vpop.permute.xlu1 %4333 }
 0x585   : > { %4400 = vst.msk [vmem:[#allocation3 + $0xe8] sm:$0xff] %vm2331_vm5, %v4334_v2  ;;  %v4332_v46 = vpop.permute.xlu0 %4331  ;;  %6465 = vmatpush3.bf16.msra.mxu0 %v5695_v17 }
 0x586   : > { %5239 = vrot.lane.b32.xlu1 %v8637_v32, %s6635_s9  ;;  %4399 = vst.msk [vmem:[#allocation3 + $0xe0] sm:$0xff] %vm2331_vm5, %v4332_v46  ;;  %v5364_v32 = vld [vmem:[#allocation2 + $0x3a] sm:$0xff]  ;;  %v4801_v46 = vld [vmem:[#allocation2 + $0xc2] sm:$0xff] }
 0x587   : > { %5241 = vrot.lane.b32.xlu0 %v8670_v10, %s6635_s9 }
 0x588   : > { %v4138_v0 = vpop.permute.xlu1 %4137 }
 0x589   : > { %4206 = vst.msk [vmem:[#allocation3 + $0xd8] sm:$0xff] %vm2138_vm4, %v4138_v0  ;;  %v4328_v20 = vpop.permute.xlu0 %4327 }
 0x58a   : > { %5427 = vrot.lane.b32.xlu1 %v5363_v19, %s6636_s23  ;;  %4397 = vst.msk [vmem:[#allocation3 + $0xd0] sm:$0xff] %vm2331_vm5, %v4328_v20  ;;  %v4802_v19 = vld [vmem:[#allocation2 + $0xca] sm:$0xff] }
 0x58b   : > { %5429 = vrot.lane.b32.xlu0 %v5364_v32, %s6636_s23 }
 0x58c   : > { %v4330_v11 = vpop.permute.xlu1 %4329 }
 0x58d   : > { %4398 = vst.msk [vmem:[#allocation3 + $0xd8] sm:$0xff] %vm2331_vm5, %v4330_v11  ;;  %v4144_v10 = vpop.permute.xlu0 %4143 }
 0x58e   : > { %5431 = vrot.lane.b32.xlu1 %v8709_v34, %s6636_s23  ;;  %4209 = vst.msk [vmem:[#allocation3 + $0xf0] sm:$0xff] %vm2138_vm4, %v4144_v10 }
 0x58f   : > { %5433 = vrot.lane.b32.xlu0 %v8695_v9, %s6636_s23 }
 0x590   : > { %v4146_v28 = vpop.permute.xlu1 %4145 }
 0x591   : > { %4210 = vst.msk [vmem:[#allocation3 + $0xf8] sm:$0xff] %vm2138_vm4, %v4146_v28  ;;  %v4336_v40 = vpop.permute.xlu0 %4335 }
 0x592   : > { %4859 = vrot.lane.b32.xlu1 %v8709_v34, %s6633_s29  ;;  %4401 = vst.msk [vmem:[#allocation3 + $0xf0] sm:$0xff] %vm2331_vm5, %v4336_v40 }
 0x593   : > { %4861 = vrot.lane.b32.xlu0 %v8695_v9, %s6633_s29 }
 0x594   : > { %v4338_v33 = vpop.permute.xlu1 %4337 }
 0x595   : > { %4402 = vst.msk [vmem:[#allocation3 + $0xf8] sm:$0xff] %vm2331_vm5, %v4338_v33  ;;  %v4488_v24 = vpop.permute.xlu0 %4487 }
 0x596   : > { %4863 = vrot.lane.b32.xlu1 %v8677_v13, %s6633_s29  ;;  %4573 = vst.msk [vmem:[#allocation3 + $0x50] sm:$0xff] %vm2524_vm10, %v4488_v24 }
 0x597   : > { %4865 = vrot.lane.b32.xlu0 %v8625_v49, %s6633_s29 }
 0x598   : > { %v4490_v39 = vpop.permute.xlu1 %4489 }
 0x599   : > { %4574 = vst.msk [vmem:[#allocation3 + $0x58] sm:$0xff] %vm2524_vm10, %v4490_v39  ;;  %v4492_v34 = vpop.permute.xlu0 %4491 }
 0x59a   : > { %5051 = vrot.lane.b32.xlu1 %v8469_v54, %s6634_s30  ;;  %4575 = vst.msk [vmem:[#allocation3 + $0x60] sm:$0xff] %vm2524_vm10, %v4492_v34  ;;  %v5175_v54 = vld [vmem:[#allocation2 + $0x61] sm:$0xff] }
 0x59b   : > { %5053 = vrot.lane.b32.xlu0 %v8483_v44, %s6634_s30  ;;  %v5176_v44 = vld [vmem:[#allocation2 + $0x69] sm:$0xff]  ;;  %v5377_v34 = vld [vmem:[#allocation2 + $0xda] sm:$0xff] }
 0x59c   : > { %v4494_v9 = vpop.permute.xlu1 %4493 }
 0x59d   : > { %4576 = vst.msk [vmem:[#allocation3 + $0x68] sm:$0xff] %vm2524_vm10, %v4494_v9  ;;  %v4496_v43 = vpop.permute.xlu0 %4495 }
 0x59e   : > { %5055 = vrot.lane.b32.xlu1 %v8531_v56, %s6634_s30  ;;  %4577 = vst.msk [vmem:[#allocation3 + $0x70] sm:$0xff] %vm2524_vm10, %v4496_v43  ;;  %v5378_v43 = vld [vmem:[#allocation2 + $0xe2] sm:$0xff] }
 0x59f   : > { %5057 = vrot.lane.b32.xlu0 %v8551_v45, %s6634_s30 }
 0x5a0   : > { %v4498_v49 = vpop.permute.xlu1 %4497 }
 0x5a1   : > { %4578 = vst.msk [vmem:[#allocation3 + $0x78] sm:$0xff] %vm2524_vm10, %v4498_v49  ;;  %v4500_v41 = vpop.permute.xlu0 %4499 }
 0x5a2   : > { %5243 = vrot.lane.b32.xlu1 %v5175_v54, %s6635_s9  ;;  %4579 = vst.msk [vmem:[#allocation3 + $0x80] sm:$0xff] %vm2524_vm10, %v4500_v41  ;;  %v4613_v41 = vld [vmem:[#allocation2 + $0xf1] sm:$0xff] }
 0x5a3   : > { %5245 = vrot.lane.b32.xlu0 %v5176_v44, %s6635_s9 }
 0x5a4   : > { %v4502_v52 = vpop.permute.xlu1 %4501 }
 0x5a5   : > { %4580 = vst.msk [vmem:[#allocation3 + $0x88] sm:$0xff] %vm2524_vm10, %v4502_v52  ;;  %v4504_v56 = vpop.permute.xlu0 %4503  ;;  %v4614_v52 = vld [vmem:[#allocation2 + $0xf9] sm:$0xff] }
 0x5a6   : > { %5247 = vrot.lane.b32.xlu1 %v8740_v22, %s6635_s9  ;;  %4581 = vst.msk [vmem:[#allocation3 + $0x90] sm:$0xff] %vm2524_vm10, %v4504_v56 }
 0x5a7   : > { %5249 = vrot.lane.b32.xlu0 %v8772_v61, %s6635_s9 }
 0x5a8   : > { %v4506_v45 = vpop.permute.xlu1 %4505 }
 0x5a9   : > { %4582 = vst.msk [vmem:[#allocation3 + $0x98] sm:$0xff] %vm2524_vm10, %v4506_v45  ;;  %v4508_v51 = vpop.permute.xlu0 %4507 }
 0x5aa   : > { %5435 = vrot.lane.b32.xlu1 %v8677_v13, %s6636_s23  ;;  %4583 = vst.msk [vmem:[#allocation3 + $0xa0] sm:$0xff] %vm2524_vm10, %v4508_v51 }
 0x5ab   : > { %5437 = vrot.lane.b32.xlu0 %v5368_v59, %s6636_s23  ;;  %v4805_v59 = vld [vmem:[#allocation2 + $0xf2] sm:$0xff] }
 0x5ac   : > { %v4510_v42 = vpop.permute.xlu1 %4509 }
 0x5ad   : > { %4584 = vst.msk [vmem:[#allocation3 + $0xa8] sm:$0xff] %vm2524_vm10, %v4510_v42  ;;  %v4512_v22 = vpop.permute.xlu0 %4511 }
 0x5ae   : > { %5439 = vrot.lane.b32.xlu1 %v8805_v8, %s6636_s23  ;;  %4585 = vst.msk [vmem:[#allocation3 + $0xb0] sm:$0xff] %vm2524_vm10, %v4512_v22  ;;  %v4806_v22 = vld [vmem:[#allocation2 + $0xfa] sm:$0xff] }
 0x5af   : > { %5441 = vrot.lane.b32.xlu0 %v8797_v53, %s6636_s23 }
 0x5b0   : > { %v4514_v61 = vpop.permute.xlu1 %4513 }
 0x5b1   : > { %4586 = vst.msk [vmem:[#allocation3 + $0xb8] sm:$0xff] %vm2524_vm10, %v4514_v61  ;;  %v4516_v13 = vpop.permute.xlu0 %4515 }
 0x5b2   : > { %4867 = vrot.lane.b32.xlu1 %v8805_v8, %s6633_s29  ;;  %4587 = vst.msk [vmem:[#allocation3 + $0xc0] sm:$0xff] %vm2524_vm10, %v4516_v13 }
 0x5b3   : > { %4869 = vrot.lane.b32.xlu0 %v8797_v53, %s6633_s29 }
 0x5b4   : > { %v4518_v50 = vpop.permute.xlu1 %4517 }
 0x5b5   : > { %4588 = vst.msk [vmem:[#allocation3 + $0xc8] sm:$0xff] %vm2524_vm10, %v4518_v50  ;;  %v4520_v31 = vpop.permute.xlu0 %4519 }
 0x5b6   : > { %4871 = vrot.lane.b32.xlu1 %v8786_v3, %s6633_s29  ;;  %4589 = vst.msk [vmem:[#allocation3 + $0xd0] sm:$0xff] %vm2524_vm10, %v4520_v31 }
 0x5b7   : > { %4873 = vrot.lane.b32.xlu0 %v9674_v26, %s6633_s29 }
 0x5b8   : > { %v4522_v1 = vpop.permute.xlu1 %4521 }
 0x5b9   : > { %4590 = vst.msk [vmem:[#allocation3 + $0xd8] sm:$0xff] %vm2524_vm10, %v4522_v1  ;;  %v4524_v8 = vpop.permute.xlu0 %4523 }
 0x5ba   : > { %5059 = vrot.lane.b32.xlu1 %v8523_v47, %s6634_s30  ;;  %4591 = vst.msk [vmem:[#allocation3 + $0xe0] sm:$0xff] %vm2524_vm10, %v4524_v8  ;;  %v5179_v47 = vld [vmem:[#allocation2 + $0x91] sm:$0xff] }
 0x5bb   : > { %5061 = vrot.lane.b32.xlu0 %v8553_v60, %s6634_s30  ;;  %v5180_v60 = vld [vmem:[#allocation2 + $0x99] sm:$0xff] }
 0x5bc   : > { %v4526_v53 = vpop.permute.xlu1 %4525 }
 0x5bd   : > { %4592 = vst.msk [vmem:[#allocation3 + $0xe8] sm:$0xff] %vm2524_vm10, %v4526_v53  ;;  %v4528_v3 = vpop.permute.xlu0 %4527 }
 0x5be   : > { %5063 = vrot.lane.b32.xlu1 %v8589_v48, %s6634_s30  ;;  %4593 = vst.msk [vmem:[#allocation3 + $0xf0] sm:$0xff] %vm2524_vm10, %v4528_v3  ;;  %v5181_v48 = vld [vmem:[#allocation2 + $0xa9] sm:$0xff] }
 0x5bf   : > { %5065 = vrot.lane.b32.xlu0 %v8607_v58, %s6634_s30  ;;  %v5182_v58 = vld [vmem:[#allocation2 + $0xb1] sm:$0xff] }
 0x5c0   : > { %v4530_v4 = vpop.permute.xlu1 %4529 }
 0x5c1   : > { %4594 = vst.msk [vmem:[#allocation3 + $0xf8] sm:$0xff] %vm2524_vm10, %v4530_v4  ;;  %v4660_v21 = vpop.permute.xlu0 %4659 }
 0x5c2   : > { %5251 = vrot.lane.b32.xlu1 %v5179_v47, %s6635_s9  ;;  %4755 = vst.msk [vmem:[#allocation3] sm:$0xff] %vm2717_vm11, %v4660_v21  ;;  %v5190_v21 = vld [vmem:[#allocation2 + $0x111] sm:$0xff] }
 0x5c3   : > { %5253 = vrot.lane.b32.xlu0 %v5180_v60, %s6635_s9 }
 0x5c4   : > { %v4662_v37 = vpop.permute.xlu1 %4661 }
 0x5c5   : > { %4756 = vst.msk [vmem:[#allocation3 + $0x8] sm:$0xff] %vm2717_vm11, %v4662_v37  ;;  %v4664_v38 = vpop.permute.xlu0 %4663 }
 0x5c6   : > { %5255 = vrot.lane.b32.xlu1 %v5181_v48, %s6635_s9  ;;  %4757 = vst.msk [vmem:[#allocation3 + $0x10] sm:$0xff] %vm2717_vm11, %v4664_v38  ;;  %v5381_v38 = vld [vmem:[#allocation2 + $0x10a] sm:$0xff] }
 0x5c7   : > { %5257 = vrot.lane.b32.xlu0 %v5182_v58, %s6635_s9 }
 0x5c8   : > { %v4666_v36 = vpop.permute.xlu1 %4665 }
 0x5c9   : > { %4758 = vst.msk [vmem:[#allocation3 + $0x18] sm:$0xff] %vm2717_vm11, %v4666_v36  ;;  %v4668_v15 = vpop.permute.xlu0 %4667  ;;  %v5382_v36 = vld [vmem:[#allocation2 + $0x112] sm:$0xff] }
 0x5ca   : > { %5443 = vrot.lane.b32.xlu1 %v5371_v18, %s6636_s23  ;;  %4759 = vst.msk [vmem:[#allocation3 + $0x20] sm:$0xff] %vm2717_vm11, %v4668_v15 }
 0x5cb   : > { %5445 = vrot.lane.b32.xlu0 %v5372_v55, %s6636_s23 }
 0x5cc   : > { %v4670_v30 = vpop.permute.xlu1 %4669 }
 0x5cd   : > { %4760 = vst.msk [vmem:[#allocation3 + $0x28] sm:$0xff] %vm2717_vm11, %v4670_v30  ;;  %v4672_v35 = vpop.permute.xlu0 %4671  ;;  %v4617_v30 = vld [vmem:[#allocation2 + $0x121] sm:$0xff] }
 0x5ce   : > { %5447 = vrot.lane.b32.xlu1 %v5373_v6, %s6636_s23  ;;  %4761 = vst.msk [vmem:[#allocation3 + $0x30] sm:$0xff] %vm2717_vm11, %v4672_v35  ;;  %v4618_v35 = vld [vmem:[#allocation2 + $0x129] sm:$0xff] }
 0x5cf   : > { %5449 = vrot.lane.b32.xlu0 %v5374_v25, %s6636_s23 }
 0x5d0   : > { %v4674_v29 = vpop.permute.xlu1 %4673 }
 0x5d1   : > { %4762 = vst.msk [vmem:[#allocation3 + $0x38] sm:$0xff] %vm2717_vm11, %v4674_v29  ;;  %v4676_v2 = vpop.permute.xlu0 %4675 }
 0x5d2   : > { %4875 = vrot.lane.b32.xlu1 %v5373_v6, %s6633_s29  ;;  %4763 = vst.msk [vmem:[#allocation3 + $0x40] sm:$0xff] %vm2717_vm11, %v4676_v2 }
 0x5d3   : > { %4877 = vrot.lane.b32.xlu0 %v5374_v25, %s6633_s29 }
 0x5d4   : > { %v4678_v27 = vpop.permute.xlu1 %4677 }
 0x5d5   : > { %4764 = vst.msk [vmem:[#allocation3 + $0x48] sm:$0xff] %vm2717_vm11, %v4678_v27  ;;  %v4680_v0 = vpop.permute.xlu0 %4679  ;;  %v4809_v27 = vld [vmem:[#allocation2 + $0x122] sm:$0xff] }
 0x5d6   : > { %4879 = vrot.lane.b32.xlu1 %v4801_v46, %s6633_s29  ;;  %4765 = vst.msk [vmem:[#allocation3 + $0x50] sm:$0xff] %vm2717_vm11, %v4680_v0  ;;  %v4810_v0 = vld [vmem:[#allocation2 + $0x12a] sm:$0xff] }
 0x5d7   : > { %4881 = vrot.lane.b32.xlu0 %v4802_v19, %s6633_s29 }
 0x5d8   : > { %v4682_v57 = vpop.permute.xlu1 %4681 }
 0x5d9   : > { %4766 = vst.msk [vmem:[#allocation3 + $0x58] sm:$0xff] %vm2717_vm11, %v4682_v57  ;;  %v4684_v20 = vpop.permute.xlu0 %4683 }
 0x5da   : > { %5067 = vrot.lane.b32.xlu1 %v8581_v14, %s6634_s30  ;;  %4767 = vst.msk [vmem:[#allocation3 + $0x60] sm:$0xff] %vm2717_vm11, %v4684_v20  ;;  %v5183_v14 = vld [vmem:[#allocation2 + $0xc1] sm:$0xff] }
 0x5db   : > { %5069 = vrot.lane.b32.xlu0 %v8609_v63, %s6634_s30  ;;  %v5184_v63 = vld [vmem:[#allocation2 + $0xc9] sm:$0xff] }
 0x5dc   : > { %v4686_v32 = vpop.permute.xlu1 %4685 }
 0x5dd   : > { %4768 = vst.msk [vmem:[#allocation3 + $0x68] sm:$0xff] %vm2717_vm11, %v4686_v32  ;;  %v4688_v17 = vpop.permute.xlu0 %4687  ;;  %v4999_v32 = vld [vmem:[#allocation2 + $0x120] sm:$0xff] }
 0x5de   : > { %5071 = vrot.lane.b32.xlu1 %v8647_v16, %s6634_s30  ;;  %4769 = vst.msk [vmem:[#allocation3 + $0x70] sm:$0xff] %vm2717_vm11, %v4688_v17  ;;  %v5185_v16 = vld [vmem:[#allocation2 + $0xd9] sm:$0xff] }
 0x5df   : > { %5073 = vrot.lane.b32.xlu0 %v8660_v62, %s6634_s30  ;;  %v5186_v62 = vld [vmem:[#allocation2 + $0xe1] sm:$0xff] }
 0x5e0   : > { %v4690_v11 = vpop.permute.xlu1 %4689 }
 0x5e1   : > { %4770 = vst.msk [vmem:[#allocation3 + $0x78] sm:$0xff] %vm2717_vm11, %v4690_v11  ;;  %v4692_v10 = vpop.permute.xlu0 %4691 }
 0x5e2   : > { %5259 = vrot.lane.b32.xlu1 %v5183_v14, %s6635_s9  ;;  %4771 = vst.msk [vmem:[#allocation3 + $0x80] sm:$0xff] %vm2717_vm11, %v4692_v10  ;;  %v5000_v14 = vld [vmem:[#allocation2 + $0x128] sm:$0xff] }
 0x5e3   : > { %5261 = vrot.lane.b32.xlu0 %v5184_v63, %s6635_s9 }
 0x5e4   : > { %v4852_v28 = vpop.permute.xlu1 %4851 }
 0x5e5   : > { %4947 = vst.msk [vmem:[#allocation3] sm:$0xff] %vm2910_vm12, %v4852_v28  ;;  %v4854_v40 = vpop.permute.xlu0 %4853 }
 0x5e6   : > { %5263 = vrot.lane.b32.xlu1 %v5185_v16, %s6635_s9  ;;  %4948 = vst.msk [vmem:[#allocation3 + $0x8] sm:$0xff] %vm2910_vm12, %v4854_v40  ;;  %v5001_v16 = vld [vmem:[#allocation2 + $0x138] sm:$0xff] }
 0x5e7   : > { %5265 = vrot.lane.b32.xlu0 %v5186_v62, %s6635_s9 }
 0x5e8   : > { %v4856_v33 = vpop.permute.xlu1 %4855 }
 0x5e9   : > { %4949 = vst.msk [vmem:[#allocation3 + $0x10] sm:$0xff] %vm2910_vm12, %v4856_v33  ;;  %v4858_v24 = vpop.permute.xlu0 %4857  ;;  %v5002_v33 = vld [vmem:[#allocation2 + $0x140] sm:$0xff] }
 0x5ea   : > { %5451 = vrot.lane.b32.xlu1 %v4801_v46, %s6636_s23  ;;  %4950 = vst.msk [vmem:[#allocation3 + $0x18] sm:$0xff] %vm2910_vm12, %v4858_v24 }
 0x5eb   : > { %5453 = vrot.lane.b32.xlu0 %v4802_v19, %s6636_s23 }
 0x5ec   : > { %v5044_v39 = vpop.permute.xlu1 %5043 }
 0x5ed   : > { %5139 = vst.msk [vmem:[#allocation3] sm:$0xff] %vm3104_vm13, %v5044_v39  ;;  %v5046_v9 = vpop.permute.xlu0 %5045 }
 0x5ee   : > { %5455 = vrot.lane.b32.xlu1 %v5377_v34, %s6636_s23  ;;  %5140 = vst.msk [vmem:[#allocation3 + $0x8] sm:$0xff] %vm3104_vm13, %v5046_v9  ;;  %v5193_v9 = vld [vmem:[#allocation2 + $0x139] sm:$0xff] }
 0x5ef   : > { %5457 = vrot.lane.b32.xlu0 %v5378_v43, %s6636_s23 }
 0x5f0   : > { %v5048_v49 = vpop.permute.xlu1 %5047 }
 0x5f1   : > { %5141 = vst.msk [vmem:[#allocation3 + $0x10] sm:$0xff] %vm3104_vm13, %v5048_v49  ;;  %v5050_v54 = vpop.permute.xlu0 %5049  ;;  %v5194_v49 = vld [vmem:[#allocation2 + $0x141] sm:$0xff] }
 0x5f2   : > { %4693 = vrot.lane.b32.xlu1 %v5186_v62, %s6632_s26  ;;  %5142 = vst.msk [vmem:[#allocation3 + $0x18] sm:$0xff] %vm3104_vm13, %v5050_v54 }
 0x5f3   : > { %4695 = vrot.lane.b32.xlu0 %v4613_v41, %s6632_s26 }
 0x5f4   : > { %v5236_v44 = vpop.permute.xlu1 %5235 }
 0x5f5   : > { %5331 = vst.msk [vmem:[#allocation3] sm:$0xff] %vm3297_vm14, %v5236_v44  ;;  %v5238_v56 = vpop.permute.xlu0 %5237 }
 0x5f6   : > { %4697 = vrot.lane.b32.xlu1 %v4614_v52, %s6632_s26  ;;  %5332 = vst.msk [vmem:[#allocation3 + $0x8] sm:$0xff] %vm3297_vm14, %v5238_v56 }
 0x5f7   : > { %4883 = vrot.lane.b32.xlu0 %v5377_v34, %s6633_s29 }
 0x5f8   : > { %v5240_v45 = vpop.permute.xlu1 %5239 }
 0x5f9   : > { %5333 = vst.msk [vmem:[#allocation3 + $0x10] sm:$0xff] %vm3297_vm14, %v5240_v45  ;;  %v5242_v51 = vpop.permute.xlu0 %5241  ;;  %v5386_v45 = vld [vmem:[#allocation2 + $0x142] sm:$0xff] }
 0x5fa   : > { %4885 = vrot.lane.b32.xlu1 %v5378_v43, %s6633_s29  ;;  %5334 = vst.msk [vmem:[#allocation3 + $0x18] sm:$0xff] %vm3297_vm14, %v5242_v51 }
 0x5fb   : > { %4887 = vrot.lane.b32.xlu0 %v4805_v59, %s6633_s29 }
 0x5fc   : > { %v5428_v42 = vpop.permute.xlu1 %5427 }
 0x5fd   : > { %5523 = vst.msk [vmem:[#allocation3] sm:$0xff] %vm3490_vm15, %v5428_v42  ;;  %v5430_v61 = vpop.permute.xlu0 %5429 }
 0x5fe   : > { %4889 = vrot.lane.b32.xlu1 %v4806_v22, %s6633_s29  ;;  %5524 = vst.msk [vmem:[#allocation3 + $0x8] sm:$0xff] %vm3490_vm15, %v5430_v61 }
 0x5ff   : > { %5075 = vrot.lane.b32.xlu0 %v8639_v7, %s6634_s30 }
 0x600   : > { %v5432_v13 = vpop.permute.xlu1 %5431 }
 0x601   : > { %5525 = vst.msk [vmem:[#allocation3 + $0x10] sm:$0xff] %vm3490_vm15, %v5432_v13  ;;  %v5434_v50 = vpop.permute.xlu0 %5433  ;;  %v4622_v13 = vld [vmem:[#allocation2 + $0x159] sm:$0xff] }
 0x602   : > { %5077 = vrot.lane.b32.xlu1 %v8662_v5, %s6634_s30  ;;  %5526 = vst.msk [vmem:[#allocation3 + $0x18] sm:$0xff] %vm3490_vm15, %v5434_v50 }
 0x603   : > { %5079 = vrot.lane.b32.xlu0 %v8686_v23, %s6634_s30 }
 0x604   : > { %v4860_v31 = vpop.permute.xlu1 %4859  ;;  %v5555_v26 = vld [vmem:[#allocation3] sm:$0xff] }
 0x605   : > { %4951 = vst.msk [vmem:[#allocation3 + $0x20] sm:$0xff] %vm2910_vm12, %v4860_v31  ;;  %v4862_v1 = vpop.permute.xlu0 %4861  ;;  %v5556_v7 = vld [vmem:[#allocation3 + $0x8] sm:$0xff] }
 0x606   : > { %5081 = vrot.lane.b32.xlu1 %v8711_v12, %s6634_s30  ;;  %4952 = vst.msk [vmem:[#allocation3 + $0x28] sm:$0xff] %vm2910_vm12, %v4862_v1  ;;  %v5587_v8 = vpack.c.bf16 %v5556_v7, %v5555_v26  ;;  %v5189_v12 = vld [vmem:[#allocation2 + $0x109] sm:$0xff] }
 0x607   : > { %5267 = vrot.lane.b32.xlu0 %v4613_v41, %s6635_s9 }
 0x608   : > { %v4864_v53 = vpop.permute.xlu1 %4863  ;;  %6466 = vmatprep.mubr.msk.bf16.mxu0 %vm3614_vm2, %v5587_v8  ;;  %v5557_v23 = vld [vmem:[#allocation3 + $0x10] sm:$0xff] }
 0x609   : > { %4953 = vst.msk [vmem:[#allocation3 + $0x30] sm:$0xff] %vm2910_vm12, %v4864_v53  ;;  %v4866_v5 = vpop.permute.xlu0 %4865  ;;  %v5558_v3 = vld [vmem:[#allocation3 + $0x18] sm:$0xff] }
 0x60a   : > { %5269 = vrot.lane.b32.xlu1 %v4614_v52, %s6635_s9  ;;  %4954 = vst.msk [vmem:[#allocation3 + $0x38] sm:$0xff] %vm2910_vm12, %v4866_v5  ;;  %v5588_v4 = vpack.c.bf16 %v5558_v3, %v5557_v23  ;;  %v5385_v52 = vld [vmem:[#allocation2 + $0x13a] sm:$0xff]  ;;  %v4813_v23 = vld [vmem:[#allocation2 + $0x152] sm:$0xff] }
 0x60b   : > { %5271 = vrot.lane.b32.xlu0 %v5189_v12, %s6635_s9 }
 0x60c   : > { %v5052_v47 = vpop.permute.xlu1 %5051  ;;  %6467 = vmatmul.mubr.msk.bf16.vlgmr.msra.gmra.mrb[8].mxu0 %vm3614_vm2, %v5588_v4  ;;  %v4814_v4 = vld [vmem:[#allocation2 + $0x15a] sm:$0xff] }
 0x60d   : > { %5143 = vst.msk [vmem:[#allocation3 + $0x20] sm:$0xff] %vm3104_vm13, %v5052_v47  ;;  %v5054_v60 = vpop.permute.xlu0 %5053 }
 0x60e   : > { %5273 = vrot.lane.b32.xlu1 %v5190_v21, %s6635_s9  ;;  %5144 = vst.msk [vmem:[#allocation3 + $0x28] sm:$0xff] %vm3104_vm13, %v5054_v60 }
 0x60f   : > { %5459 = vrot.lane.b32.xlu0 %v4805_v59, %s6636_s23 }
 0x610   : > { %v5056_v37 = vpop.permute.xlu1 %5055 }
 0x611   : > { %5145 = vst.msk [vmem:[#allocation3 + $0x30] sm:$0xff] %vm3104_vm13, %v5056_v37  ;;  %v5058_v48 = vpop.permute.xlu0 %5057  ;;  %v5004_v37 = vld [vmem:[#allocation2 + $0x158] sm:$0xff] }
 0x612   : > { %5461 = vrot.lane.b32.xlu1 %v4806_v22, %s6636_s23  ;;  %5146 = vst.msk [vmem:[#allocation3 + $0x38] sm:$0xff] %vm3104_vm13, %v5058_v48  ;;  %v4621_v22 = vld [vmem:[#allocation2 + $0x151] sm:$0xff] }
 0x613   : > { %5463 = vrot.lane.b32.xlu0 %v5381_v38, %s6636_s23 }
 0x614   : > { %v5244_v58 = vpop.permute.xlu1 %5243 }
 0x615   : > { %5335 = vst.msk [vmem:[#allocation3 + $0x20] sm:$0xff] %vm3297_vm14, %v5244_v58  ;;  %v5246_v18 = vpop.permute.xlu0 %5245 }
 0x616   : > { %5465 = vrot.lane.b32.xlu1 %v5382_v36, %s6636_s23  ;;  %5336 = vst.msk [vmem:[#allocation3 + $0x28] sm:$0xff] %vm3297_vm14, %v5246_v18 }
 0x617   : > { %4699 = vrot.lane.b32.xlu0 %v5189_v12, %s6632_s26 }
 0x618   : > { %v5248_v15 = vpop.permute.xlu1 %5247 }
 0x619   : > { %5337 = vst.msk [vmem:[#allocation3 + $0x30] sm:$0xff] %vm3297_vm14, %v5248_v15  ;;  %v5250_v55 = vpop.permute.xlu0 %5249 }
 0x61a   : > { %4701 = vrot.lane.b32.xlu1 %v5190_v21, %s6632_s26  ;;  %5338 = vst.msk [vmem:[#allocation3 + $0x38] sm:$0xff] %vm3297_vm14, %v5250_v55  ;;  %v5003_v21 = vld [vmem:[#allocation2 + $0x150] sm:$0xff] }
 0x61b   : > { %4703 = vrot.lane.b32.xlu0 %v4617_v30, %s6632_s26 }
 0x61c   : > { %v5436_v6 = vpop.permute.xlu1 %5435 }
 0x61d   : > { %5527 = vst.msk [vmem:[#allocation3 + $0x20] sm:$0xff] %vm3490_vm15, %v5436_v6  ;;  %v5438_v25 = vpop.permute.xlu0 %5437 }
 0x61e   : > { %4705 = vrot.lane.b32.xlu1 %v4618_v35, %s6632_s26  ;;  %5528 = vst.msk [vmem:[#allocation3 + $0x28] sm:$0xff] %vm3490_vm15, %v5438_v25 }
 0x61f   : > { %4891 = vrot.lane.b32.xlu0 %v5381_v38, %s6633_s29  ;;  %v5005_v38 = vld [vmem:[#allocation2 + $0x168] sm:$0xff] }
 0x620   : > { %v5440_v29 = vpop.permute.xlu1 %5439 }
 0x621   : > { %5529 = vst.msk [vmem:[#allocation3 + $0x30] sm:$0xff] %vm3490_vm15, %v5440_v29  ;;  %v5442_v2 = vpop.permute.xlu0 %5441 }
 0x622   : > { %4893 = vrot.lane.b32.xlu1 %v5382_v36, %s6633_s29  ;;  %5530 = vst.msk [vmem:[#allocation3 + $0x38] sm:$0xff] %vm3490_vm15, %v5442_v2  ;;  %v5006_v36 = vld [vmem:[#allocation2 + $0x170] sm:$0xff] }
 0x623   : > { %4895 = vrot.lane.b32.xlu0 %v4809_v27, %s6633_s29 }
 0x624   : > { %v4868_v46 = vpop.permute.xlu1 %4867  ;;  %v5559_v57 = vld [vmem:[#allocation3 + $0x20] sm:$0xff] }
 0x625   : > { %4955 = vst.msk [vmem:[#allocation3 + $0x40] sm:$0xff] %vm2910_vm12, %v4868_v46  ;;  %v4870_v19 = vpop.permute.xlu0 %4869  ;;  %v5560_v20 = vld [vmem:[#allocation3 + $0x28] sm:$0xff] }
 0x626   : > { %4897 = vrot.lane.b32.xlu1 %v4810_v0, %s6633_s29  ;;  %4956 = vst.msk [vmem:[#allocation3 + $0x48] sm:$0xff] %vm2910_vm12, %v4870_v19  ;;  %v5589_v17 = vpack.c.bf16 %v5560_v20, %v5559_v57 }
 0x627   : > { %5083 = vrot.lane.b32.xlu0 %v4999_v32, %s6634_s30 }
 0x628   : > { %v4872_v11 = vpop.permute.xlu1 %4871  ;;  %6470 = vmatprep.mubr.msk.bf16.mxu0 %vm3614_vm2, %v5589_v17  ;;  %v5561_v63 = vld [vmem:[#allocation3 + $0x30] sm:$0xff] }
 0x629   : > { %4957 = vst.msk [vmem:[#allocation3 + $0x50] sm:$0xff] %vm2910_vm12, %v4872_v11  ;;  %v4874_v10 = vpop.permute.xlu0 %4873  ;;  %v5562_v28 = vld [vmem:[#allocation3 + $0x38] sm:$0xff] }
 0x62a   : > { %5085 = vrot.lane.b32.xlu1 %v5000_v14, %s6634_s30  ;;  %4958 = vst.msk [vmem:[#allocation3 + $0x58] sm:$0xff] %vm2910_vm12, %v4874_v10  ;;  %v5590_v40 = vpack.c.bf16 %v5562_v28, %v5561_v63  ;;  %v4625_v63 = vld [vmem:[#allocation2 + $0x181] sm:$0xff] }
 0x62b   : > { %5087 = vrot.lane.b32.xlu0 %v5001_v16, %s6634_s30 }
 0x62c   : > { %v5060_v62 = vpop.permute.xlu1 %5059  ;;  %6471 = vmatmul.mubr.msk.bf16.gmra.mrb[12].mxu0 %vm3614_vm2, %v5590_v40  ;;  %v4626_v40 = vld [vmem:[#allocation2 + $0x189] sm:$0xff] }
 0x62d   : > { %5147 = vst.msk [vmem:[#allocation3 + $0x40] sm:$0xff] %vm3104_vm13, %v5060_v62  ;;  %v5062_v24 = vpop.permute.xlu0 %5061 }
 0x62e   : > { %5089 = vrot.lane.b32.xlu1 %v5002_v33, %s6634_s30  ;;  %5148 = vst.msk [vmem:[#allocation3 + $0x48] sm:$0xff] %vm3104_vm13, %v5062_v24 }
 0x62f   : > { %5275 = vrot.lane.b32.xlu0 %v4617_v30, %s6635_s9  ;;  %v5197_v30 = vld [vmem:[#allocation2 + $0x169] sm:$0xff] }
 0x630   : > { %v5064_v39 = vpop.permute.xlu1 %5063 }
 0x631   : > { %5149 = vst.msk [vmem:[#allocation3 + $0x50] sm:$0xff] %vm3104_vm13, %v5064_v39  ;;  %v5066_v34 = vpop.permute.xlu0 %5065  ;;  %v4817_v39 = vld [vmem:[#allocation2 + $0x182] sm:$0xff] }
 0x632   : > { %5277 = vrot.lane.b32.xlu1 %v4618_v35, %s6635_s9  ;;  %5150 = vst.msk [vmem:[#allocation3 + $0x58] sm:$0xff] %vm3104_vm13, %v5066_v34  ;;  %v5198_v35 = vld [vmem:[#allocation2 + $0x171] sm:$0xff] }
 0x633   : > { %5279 = vrot.lane.b32.xlu0 %v5193_v9, %s6635_s9 }
 0x634   : > { %v5252_v43 = vpop.permute.xlu1 %5251 }
 0x635   : > { %5339 = vst.msk [vmem:[#allocation3 + $0x40] sm:$0xff] %vm3297_vm14, %v5252_v43  ;;  %v5254_v54 = vpop.permute.xlu0 %5253 }
 0x636   : > { %5281 = vrot.lane.b32.xlu1 %v5194_v49, %s6635_s9  ;;  %5340 = vst.msk [vmem:[#allocation3 + $0x48] sm:$0xff] %vm3297_vm14, %v5254_v54 }
 0x637   : > { %5467 = vrot.lane.b32.xlu0 %v4809_v27, %s6636_s23  ;;  %v5389_v27 = vld [vmem:[#allocation2 + $0x16a] sm:$0xff] }
 0x638   : > { %v5256_v41 = vpop.permute.xlu1 %5255 }
 0x639   : > { %5341 = vst.msk [vmem:[#allocation3 + $0x50] sm:$0xff] %vm3297_vm14, %v5256_v41  ;;  %v5258_v44 = vpop.permute.xlu0 %5257  ;;  %v5008_v41 = vld [vmem:[#allocation2 + $0x188] sm:$0xff] }
 0x63a   : > { %5469 = vrot.lane.b32.xlu1 %v4810_v0, %s6636_s23  ;;  %5342 = vst.msk [vmem:[#allocation3 + $0x58] sm:$0xff] %vm3297_vm14, %v5258_v44  ;;  %v5390_v0 = vld [vmem:[#allocation2 + $0x172] sm:$0xff] }
 0x63b   : > { %5471 = vrot.lane.b32.xlu0 %v5385_v52, %s6636_s23  ;;  %v5009_v44 = vld [vmem:[#allocation2 + $0x198] sm:$0xff] }
 0x63c   : > { %v5444_v56 = vpop.permute.xlu1 %5443 }
 0x63d   : > { %5531 = vst.msk [vmem:[#allocation3 + $0x40] sm:$0xff] %vm3490_vm15, %v5444_v56  ;;  %v5446_v51 = vpop.permute.xlu0 %5445  ;;  %v5010_v56 = vld [vmem:[#allocation2 + $0x1a0] sm:$0xff] }
 0x63e   : > { %5473 = vrot.lane.b32.xlu1 %v5386_v45, %s6636_s23  ;;  %5532 = vst.msk [vmem:[#allocation3 + $0x48] sm:$0xff] %vm3490_vm15, %v5446_v51 }
 0x63f   : > { %4707 = vrot.lane.b32.xlu0 %v5193_v9, %s6632_s26  ;;  %v4818_v9 = vld [vmem:[#allocation2 + $0x18a] sm:$0xff] }
 0x640   : > { %v5448_v59 = vpop.permute.xlu1 %5447 }
 0x641   : > { %5533 = vst.msk [vmem:[#allocation3 + $0x50] sm:$0xff] %vm3490_vm15, %v5448_v59  ;;  %v5450_v42 = vpop.permute.xlu0 %5449 }
 0x642   : > { %4709 = vrot.lane.b32.xlu1 %v5194_v49, %s6632_s26  ;;  %5534 = vst.msk [vmem:[#allocation3 + $0x58] sm:$0xff] %vm3490_vm15, %v5450_v42  ;;  %v5007_v49 = vld [vmem:[#allocation2 + $0x180] sm:$0xff] }
 0x643   : > { %4711 = vrot.lane.b32.xlu0 %v4621_v22, %s6632_s26  ;;  %v5201_v42 = vld [vmem:[#allocation2 + $0x199] sm:$0xff] }
 0x644   : > { %v4876_v61 = vpop.permute.xlu1 %4875  ;;  %v5563_v31 = vld [vmem:[#allocation3 + $0x40] sm:$0xff] }
 0x645   : > { %4959 = vst.msk [vmem:[#allocation3 + $0x60] sm:$0xff] %vm2910_vm12, %v4876_v61  ;;  %v4878_v50 = vpop.permute.xlu0 %4877  ;;  %v5564_v1 = vld [vmem:[#allocation3 + $0x48] sm:$0xff]  ;;  %v5202_v61 = vld [vmem:[#allocation2 + $0x1a1] sm:$0xff] }
 0x646   : > { %4713 = vrot.lane.b32.xlu1 %v4622_v13, %s6632_s26  ;;  %4960 = vst.msk [vmem:[#allocation3 + $0x68] sm:$0xff] %vm2910_vm12, %v4878_v50  ;;  %v5591_v26 = vpack.c.bf16 %v5564_v1, %v5563_v31  ;;  %v5393_v1 = vld [vmem:[#allocation2 + $0x19a] sm:$0xff] }
 0x647   : > { %4899 = vrot.lane.b32.xlu0 %v5385_v52, %s6633_s29 }
 0x648   : > { %v4880_v7 = vpop.permute.xlu1 %4879  ;;  %6474 = vmatprep.mubr.msk.bf16.mxu0 %vm3614_vm2, %v5591_v26  ;;  %v5565_v53 = vld [vmem:[#allocation3 + $0x50] sm:$0xff] }
 0x649   : > { %4961 = vst.msk [vmem:[#allocation3 + $0x70] sm:$0xff] %vm2910_vm12, %v4880_v7  ;;  %v4882_v8 = vpop.permute.xlu0 %4881  ;;  %v5566_v5 = vld [vmem:[#allocation3 + $0x58] sm:$0xff] }
 0x64a   : > { %4901 = vrot.lane.b32.xlu1 %v5386_v45, %s6633_s29  ;;  %4962 = vst.msk [vmem:[#allocation3 + $0x78] sm:$0xff] %vm2910_vm12, %v4882_v8  ;;  %v5592_v3 = vpack.c.bf16 %v5566_v5, %v5565_v53  ;;  %v5394_v7 = vld [vmem:[#allocation2 + $0x1a2] sm:$0xff] }
 0x64b   : > { %4903 = vrot.lane.b32.xlu0 %v4813_v23, %s6633_s29 }
 0x64c   : > { %v5068_v12 = vpop.permute.xlu1 %5067  ;;  %6475 = vmatmul.mubr.msk.bf16.gmra.mrb[16].mxu0 %vm3614_vm2, %v5592_v3 }
 0x64d   : > { %5151 = vst.msk [vmem:[#allocation3 + $0x60] sm:$0xff] %vm3104_vm13, %v5068_v12  ;;  %v5070_v47 = vpop.permute.xlu0 %5069 }
 0x64e   : > { %4905 = vrot.lane.b32.xlu1 %v4814_v4, %s6633_s29  ;;  %5152 = vst.msk [vmem:[#allocation3 + $0x68] sm:$0xff] %vm3104_vm13, %v5070_v47 }
 0x64f   : > { %5091 = vrot.lane.b32.xlu0 %v5003_v21, %s6634_s30 }
 0x650   : > { %v5072_v60 = vpop.permute.xlu1 %5071 }
 0x651   : > { %5153 = vst.msk [vmem:[#allocation3 + $0x70] sm:$0xff] %vm3104_vm13, %v5072_v60  ;;  %v5074_v48 = vpop.permute.xlu0 %5073 }
 0x652   : > { %5093 = vrot.lane.b32.xlu1 %v5004_v37, %s6634_s30  ;;  %5154 = vst.msk [vmem:[#allocation3 + $0x78] sm:$0xff] %vm3104_vm13, %v5074_v48  ;;  %v9676_v37 = vld [vmem:[#allocation7_spill] sm:$0xff] }
 0x653   : > { %5095 = vrot.lane.b32.xlu0 %v5005_v38, %s6634_s30 }
 0x654   : > { %v5260_v58 = vpop.permute.xlu1 %5259 }
 0x655   : > { %5343 = vst.msk [vmem:[#allocation3 + $0x60] sm:$0xff] %vm3297_vm14, %v5260_v58  ;;  %v5262_v18 = vpop.permute.xlu0 %5261  ;;  %v9677_v58 = vld [vmem:[#allocation4_spill] sm:$0xff] }
 0x656   : > { %5097 = vrot.lane.b32.xlu1 %v5006_v36, %s6634_s30  ;;  %5344 = vst.msk [vmem:[#allocation3 + $0x68] sm:$0xff] %vm3297_vm14, %v5262_v18  ;;  %v9678_v36 = vld [vmem:[#allocation6_spill] sm:$0xff] }
 0x657   : > { %5283 = vrot.lane.b32.xlu0 %v4621_v22, %s6635_s9 }
 0x658   : > { %v5264_v15 = vpop.permute.xlu1 %5263 }
 0x659   : > { %5345 = vst.msk [vmem:[#allocation3 + $0x70] sm:$0xff] %vm3297_vm14, %v5264_v15  ;;  %v5266_v55 = vpop.permute.xlu0 %5265 }
 0x65a   : > { %5285 = vrot.lane.b32.xlu1 %v4622_v13, %s6635_s9  ;;  %5346 = vst.msk [vmem:[#allocation3 + $0x78] sm:$0xff] %vm3297_vm14, %v5266_v55  ;;  %v9679_v55 = vld [vmem:[#allocation9_spill] sm:$0xff] }
 0x65b   : > { %5287 = vrot.lane.b32.xlu0 %v5197_v30, %s6635_s9 }
 0x65c   : > { %v5452_v6 = vpop.permute.xlu1 %5451 }
 0x65d   : > { %5535 = vst.msk [vmem:[#allocation3 + $0x60] sm:$0xff] %vm3490_vm15, %v5452_v6  ;;  %v5454_v25 = vpop.permute.xlu0 %5453 }
 0x65e   : > { %5289 = vrot.lane.b32.xlu1 %v5198_v35, %s6635_s9  ;;  %5536 = vst.msk [vmem:[#allocation3 + $0x68] sm:$0xff] %vm3490_vm15, %v5454_v25  ;;  %v9681_v25 = vld [vmem:[#allocation8_spill] sm:$0xff] }
 0x65f   : > { %5475 = vrot.lane.b32.xlu0 %v4813_v23, %s6636_s23 }
 0x660   : > { %v5456_v29 = vpop.permute.xlu1 %5455 }
 0x661   : > { %5537 = vst.msk [vmem:[#allocation3 + $0x70] sm:$0xff] %vm3490_vm15, %v5456_v29  ;;  %v5458_v2 = vpop.permute.xlu0 %5457  ;;  %v9682_v29 = vld [vmem:[#allocation10_spill] sm:$0xff] }
 0x662   : > { %5477 = vrot.lane.b32.xlu1 %v4814_v4, %s6636_s23  ;;  %5538 = vst.msk [vmem:[#allocation3 + $0x78] sm:$0xff] %vm3490_vm15, %v5458_v2  ;;  %v9675_v4 = vld [vmem:[#allocation5_spill] sm:$0xff] }
 0x663   : > { %5479 = vrot.lane.b32.xlu0 %v5389_v27, %s6636_s23 }
 0x664   : > { %v4694_v46 = vpop.permute.xlu1 %4693  ;;  %v5567_v57 = vld [vmem:[#allocation3 + $0x60] sm:$0xff] }
 0x665   : > { %4772 = vst.msk [vmem:[#allocation3 + $0x88] sm:$0xff] %vm2717_vm11, %v4694_v46  ;;  %v4696_v19 = vpop.permute.xlu0 %4695  ;;  %v5568_v20 = vld [vmem:[#allocation3 + $0x68] sm:$0xff] }
 0x666   : > { %5481 = vrot.lane.b32.xlu1 %v5390_v0, %s6636_s23  ;;  %4773 = vst.msk [vmem:[#allocation3 + $0x90] sm:$0xff] %vm2717_vm11, %v4696_v19  ;;  %v5593_v32 = vpack.c.bf16 %v5568_v20, %v5567_v57  ;;  %v9683_v46 = vld [vmem:[#allocation13_spill] sm:$0xff]  ;;  %v9685_v20 = vld [vmem:[#allocation12_spill] sm:$0xff] }
 0x667   : > { %4715 = vrot.lane.b32.xlu0 %v5197_v30, %s6632_s26  ;;  %v9680_v30 = vld [vmem:[#allocation11_spill] sm:$0xff] }
 0x668   : > { %v4698_v17 = vpop.permute.xlu1 %4697  ;;  %6478 = vmatprep.mubr.msk.bf16.mxu0 %vm3614_vm2, %v5593_v32  ;;  %v5569_v14 = vld [vmem:[#allocation3 + $0x70] sm:$0xff] }
 0x669   : > { %4774 = vst.msk [vmem:[#allocation3 + $0x98] sm:$0xff] %vm2717_vm11, %v4698_v17  ;;  %v4884_v11 = vpop.permute.xlu0 %4883  ;;  %v5570_v10 = vld [vmem:[#allocation3 + $0x78] sm:$0xff]  ;;  %v9686_v32 = vld [vmem:[#allocation14_spill] sm:$0xff] }
 0x66a   : > { %4717 = vrot.lane.b32.xlu1 %v5198_v35, %s6632_s26  ;;  %4963 = vst.msk [vmem:[#allocation3 + $0x80] sm:$0xff] %vm2910_vm12, %v4884_v11  ;;  %v5594_v28 = vpack.c.bf16 %v5570_v10, %v5569_v14  ;;  %v9687_v14 = vld [vmem:[#allocation17_spill] sm:$0xff]  ;;  %v9688_v10 = vld [vmem:[#allocation19_spill] sm:$0xff] }
 0x66b   : > { %4719 = vrot.lane.b32.xlu0 %v4625_v63, %s6632_s26 }
 0x66c   : > { %v4886_v16 = vpop.permute.xlu1 %4885  ;;  %6479 = vmatmul.mubr.msk.bf16.gmra.mrb[20].mxu0 %vm3614_vm2, %v5594_v28 }
 0x66d   : > { %4964 = vst.msk [vmem:[#allocation3 + $0x88] sm:$0xff] %vm2910_vm12, %v4886_v16  ;;  %v4888_v62 = vpop.permute.xlu0 %4887  ;;  %v9689_v16 = vld [vmem:[#allocation16_spill] sm:$0xff] }
 0x66e   : > { %4721 = vrot.lane.b32.xlu1 %v4626_v40, %s6632_s26  ;;  %4965 = vst.msk [vmem:[#allocation3 + $0x90] sm:$0xff] %vm2910_vm12, %v4888_v62 }
 0x66f   : > { %4907 = vrot.lane.b32.xlu0 %v5389_v27, %s6633_s29 }
 0x670   : > { %v4890_v33 = vpop.permute.xlu1 %4889 }
 0x671   : > { %4966 = vst.msk [vmem:[#allocation3 + $0x98] sm:$0xff] %vm2910_vm12, %v4890_v33  ;;  %v5076_v24 = vpop.permute.xlu0 %5075 }
 0x672   : > { %4909 = vrot.lane.b32.xlu1 %v5390_v0, %s6633_s29  ;;  %5155 = vst.msk [vmem:[#allocation3 + $0x80] sm:$0xff] %vm3104_vm13, %v5076_v24  ;;  %v9684_v0 = vld [vmem:[#allocation15_spill] sm:$0xff]  ;;  %v9691_v24 = vld [vmem:[#allocation21_spill] sm:$0xff] }
 0x673   : > { %4911 = vrot.lane.b32.xlu0 %v4817_v39, %s6633_s29 }
 0x674   : > { %v5078_v34 = vpop.permute.xlu1 %5077 }
 0x675   : > { %5156 = vst.msk [vmem:[#allocation3 + $0x88] sm:$0xff] %vm3104_vm13, %v5078_v34  ;;  %v5080_v43 = vpop.permute.xlu0 %5079 }
 0x676   : > { %4913 = vrot.lane.b32.xlu1 %v4818_v9, %s6633_s29  ;;  %5157 = vst.msk [vmem:[#allocation3 + $0x90] sm:$0xff] %vm3104_vm13, %v5080_v43  ;;  %v9693_v43 = vld [vmem:[#allocation20_spill] sm:$0xff]  ;;  %s6277_s29 = sshll.u32 %s9708_s28, 8 }
 0x677   : > { %5099 = vrot.lane.b32.xlu0 %v5007_v49, %s6634_s30  ;;  %s9489_s20 = scalar_lea.vmem %s9596_s8, %s6277_s29 }
 0x678   : > { %v5082_v54 = vpop.permute.xlu1 %5081 }
 0x679   : > { %5158 = vst.msk [vmem:[#allocation3 + $0x98] sm:$0xff] %vm3104_vm13, %v5082_v54  ;;  %v5268_v52 = vpop.permute.xlu0 %5267 }
 0x67a   : > { %5101 = vrot.lane.b32.xlu1 %v5008_v41, %s6634_s30  ;;  %5347 = vst.msk [vmem:[#allocation3 + $0x80] sm:$0xff] %vm3297_vm14, %v5268_v52 }
 0x67b   : > { %5103 = vrot.lane.b32.xlu0 %v5009_v44, %s6634_s30  ;;  %v9694_v44 = vld [vmem:[#allocation22_spill] sm:$0xff] }
 0x67c   : > { %v5270_v45 = vpop.permute.xlu1 %5269 }
 0x67d   : > { %5348 = vst.msk [vmem:[#allocation3 + $0x88] sm:$0xff] %vm3297_vm14, %v5270_v45  ;;  %v5272_v51 = vpop.permute.xlu0 %5271  ;;  %v9695_v45 = vld [vmem:[#allocation25_spill] sm:$0xff] }
 0x67e   : > { %5105 = vrot.lane.b32.xlu1 %v5010_v56, %s6634_s30  ;;  %5349 = vst.msk [vmem:[#allocation3 + $0x90] sm:$0xff] %vm3297_vm14, %v5272_v51 }
 0x67f   : > { %5291 = vrot.lane.b32.xlu0 %v4625_v63, %s6635_s9 }
 0x680   : > { %v5274_v59 = vpop.permute.xlu1 %5273 }
 0x681   : > { %5350 = vst.msk [vmem:[#allocation3 + $0x98] sm:$0xff] %vm3297_vm14, %v5274_v59  ;;  %v5460_v22 = vpop.permute.xlu0 %5459 }
 0x682   : > { %5293 = vrot.lane.b32.xlu1 %v4626_v40, %s6635_s9  ;;  %5539 = vst.msk [vmem:[#allocation3 + $0x80] sm:$0xff] %vm3490_vm15, %v5460_v22  ;;  %v9690_v40 = vld [vmem:[#allocation18_spill] sm:$0xff]  ;;  %v9696_v22 = vld [vmem:[#allocation27_spill] sm:$0xff] }
 0x683   : > { %5295 = vrot.lane.b32.xlu0 %v5201_v42, %s6635_s9 }
 0x684   : > { %v5462_v13 = vpop.permute.xlu1 %5461 }
 0x685   : > { %5540 = vst.msk [vmem:[#allocation3 + $0x88] sm:$0xff] %vm3490_vm15, %v5462_v13  ;;  %v5464_v50 = vpop.permute.xlu0 %5463 }
 0x686   : > { %5297 = vrot.lane.b32.xlu1 %v5202_v61, %s6635_s9  ;;  %5541 = vst.msk [vmem:[#allocation3 + $0x90] sm:$0xff] %vm3490_vm15, %v5464_v50  ;;  %v9697_v50 = vld [vmem:[#allocation24_spill] sm:$0xff] }
 0x687   : > { %5483 = vrot.lane.b32.xlu0 %v4817_v39, %s6636_s23  ;;  %v9692_v39 = vld [vmem:[#allocation23_spill] sm:$0xff] }
 0x688   : > { %v5466_v31 = vpop.permute.xlu1 %5465 }
 0x689   : > { %5542 = vst.msk [vmem:[#allocation3 + $0x98] sm:$0xff] %vm3490_vm15, %v5466_v31  ;;  %v4700_v26 = vpop.permute.xlu0 %4699  ;;  %v5571_v53 = vld [vmem:[#allocation3 + $0x80] sm:$0xff]  ;;  %v9698_v31 = vld [vmem:[#allocation26_spill] sm:$0xff] }
 0x68a   : > { %5485 = vrot.lane.b32.xlu1 %v4818_v9, %s6636_s23  ;;  %4775 = vst.msk [vmem:[#allocation3 + $0xa0] sm:$0xff] %vm2717_vm11, %v4700_v26 }
 0x68b   : > { %5487 = vrot.lane.b32.xlu0 %v5393_v1, %s6636_s23 }
 0x68c   : > { %v4702_v8 = vpop.permute.xlu1 %4701  ;;  %v5572_v5 = vld [vmem:[#allocation3 + $0x88] sm:$0xff] }
 0x68d   : > { %4776 = vst.msk [vmem:[#allocation3 + $0xa8] sm:$0xff] %vm2717_vm11, %v4702_v8  ;;  %v5595_v23 = vpack.c.bf16 %v5572_v5, %v5571_v53  ;;  %v4704_v3 = vpop.permute.xlu0 %4703  ;;  %v5573_v47 = vld [vmem:[#allocation3 + $0x90] sm:$0xff]  ;;  %v9700_v8 = vld [vmem:[#allocation31_spill] sm:$0xff] }
 0x68e   : > { %5489 = vrot.lane.b32.xlu1 %v5394_v7, %s6636_s23  ;;  %4777 = vst.msk [vmem:[#allocation3 + $0xb0] sm:$0xff] %vm2717_vm11, %v4704_v3  ;;  %v9699_v7 = vld [vmem:[#allocation29_spill] sm:$0xff]  ;;  %v9702_v3 = vld [vmem:[#allocation30_spill] sm:$0xff] }
 0x68f   : > { %6482 = vmatprep.mubr.msk.bf16.mxu0 %vm3614_vm2, %v5595_v23  ;;  %5986 = vrot.lane.b32.xlu0 %v9675_v4, %s6628_s22  ;;  %v9701_v23 = vld [vmem:[#allocation28_spill] sm:$0xff] }
 0x690   : > { %v4706_v12 = vpop.permute.xlu1 %4705  ;;  %v5574_v21 = vld [vmem:[#allocation3 + $0x98] sm:$0xff] }
 0x691   : > { %4778 = vst.msk [vmem:[#allocation3 + $0xb8] sm:$0xff] %vm2717_vm11, %v4706_v12  ;;  %v5596_v60 = vpack.c.bf16 %v5574_v21, %v5573_v47  ;;  %v4892_v48 = vpop.permute.xlu0 %4891  ;;  %v9703_v47 = vld [vmem:[#allocation34_spill] sm:$0xff]  ;;  %v9704_v21 = vld [vmem:[#allocation36_spill] sm:$0xff] }
 0x692   : > { %5988 = vrot.lane.b32.xlu1 %v9676_v37, %s6628_s22  ;;  %4967 = vst.msk [vmem:[#allocation3 + $0xa0] sm:$0xff] %vm2910_vm12, %v4892_v48  ;;  %v9705_v48 = vld [vmem:[#allocation33_spill] sm:$0xff] }
 0x693   : > { %6483 = vmatmul.mubr.msk.bf16.gmra.mrb[24].mxu0 %vm3614_vm2, %v5596_v60  ;;  %5990 = vrot.lane.b32.xlu0 %v9677_v58, %s6628_s22 }
 0x694   : > { %v4894_v38 = vpop.permute.xlu1 %4893 }
 0x695   : > { %4968 = vst.msk [vmem:[#allocation3 + $0xa8] sm:$0xff] %vm2910_vm12, %v4894_v38  ;;  %v4896_v18 = vpop.permute.xlu0 %4895  ;;  %v9706_v38 = vld [vmem:[#allocation35_spill] sm:$0xff] }
 0x696   : > { %5992 = vrot.lane.b32.xlu1 %v9678_v36, %s6628_s22  ;;  %4969 = vst.msk [vmem:[#allocation3 + $0xb0] sm:$0xff] %vm2910_vm12, %v4896_v18 }
 0x697   : > { %5994 = vrot.lane.b32.xlu0 %v9679_v55, %s6628_s22 }
 0x698   : > { %v4898_v15 = vpop.permute.xlu1 %4897 }
 0x699   : > { %4970 = vst.msk [vmem:[#allocation3 + $0xb8] sm:$0xff] %vm2910_vm12, %v4898_v15  ;;  %v5084_v6 = vpop.permute.xlu0 %5083 }
 0x69a   : > { %5996 = vrot.lane.b32.xlu1 %v9680_v30, %s6628_s22  ;;  %5159 = vst.msk [vmem:[#allocation3 + $0xa0] sm:$0xff] %vm3104_vm13, %v5084_v6 }
 0x69b   : > { %5998 = vrot.lane.b32.xlu0 %v9681_v25, %s6628_s22 }
 0x69c   : > { %v5086_v35 = vpop.permute.xlu1 %5085 }
 0x69d   : > { %5160 = vst.msk [vmem:[#allocation3 + $0xa8] sm:$0xff] %vm3104_vm13, %v5086_v35  ;;  %v5088_v2 = vpop.permute.xlu0 %5087 }
 0x69e   : > { %6000 = vrot.lane.b32.xlu1 %v9682_v29, %s6628_s22  ;;  %5161 = vst.msk [vmem:[#allocation3 + $0xb0] sm:$0xff] %vm3104_vm13, %v5088_v2 }
 0x69f   : > { %6002 = vrot.lane.b32.xlu0 %v9683_v46, %s6628_s22 }
 0x6a0   : > { %v5090_v27 = vpop.permute.xlu1 %5089 }
 0x6a1   : > { %5162 = vst.msk [vmem:[#allocation3 + $0xb8] sm:$0xff] %vm3104_vm13, %v5090_v27  ;;  %v5276_v19 = vpop.permute.xlu0 %5275 }
 0x6a2   : > { %6004 = vrot.lane.b32.xlu1 %v9684_v0, %s6628_s22  ;;  %5351 = vst.msk [vmem:[#allocation3 + $0xa0] sm:$0xff] %vm3297_vm14, %v5276_v19 }
 0x6a3   : > { %6006 = vrot.lane.b32.xlu0 %v9685_v20, %s6628_s22 }
 0x6a4   : > { %v5278_v57 = vpop.permute.xlu1 %5277 }
 0x6a5   : > { %5352 = vst.msk [vmem:[#allocation3 + $0xa8] sm:$0xff] %vm3297_vm14, %v5278_v57  ;;  %v5280_v17 = vpop.permute.xlu0 %5279 }
 0x6a6   : > { %6008 = vrot.lane.b32.xlu1 %v9686_v32, %s6628_s22  ;;  %5353 = vst.msk [vmem:[#allocation3 + $0xb0] sm:$0xff] %vm3297_vm14, %v5280_v17 }
 0x6a7   : > { %6010 = vrot.lane.b32.xlu0 %v9687_v14, %s6628_s22 }
 0x6a8   : > { %v5282_v11 = vpop.permute.xlu1 %5281 }
 0x6a9   : > { %5354 = vst.msk [vmem:[#allocation3 + $0xb8] sm:$0xff] %vm3297_vm14, %v5282_v11  ;;  %v5468_v63 = vpop.permute.xlu0 %5467 }
 0x6aa   : > { %6012 = vrot.lane.b32.xlu1 %v9688_v10, %s6628_s22  ;;  %5543 = vst.msk [vmem:[#allocation3 + $0xa0] sm:$0xff] %vm3490_vm15, %v5468_v63 }
 0x6ab   : > { %6014 = vrot.lane.b32.xlu0 %v9689_v16, %s6628_s22 }
 0x6ac   : > { %v5470_v28 = vpop.permute.xlu1 %5469 }
 0x6ad   : > { %5544 = vst.msk [vmem:[#allocation3 + $0xa8] sm:$0xff] %vm3490_vm15, %v5470_v28  ;;  %v5472_v62 = vpop.permute.xlu0 %5471 }
 0x6ae   : > { %6016 = vrot.lane.b32.xlu1 %v9690_v40, %s6628_s22  ;;  %5545 = vst.msk [vmem:[#allocation3 + $0xb0] sm:$0xff] %vm3490_vm15, %v5472_v62 }
 0x6af   : > { %6018 = vrot.lane.b32.xlu0 %v9691_v24, %s6628_s22 }
 0x6b0   : > { %v5474_v33 = vpop.permute.xlu1 %5473 }
 0x6b1   : > { %5546 = vst.msk [vmem:[#allocation3 + $0xb8] sm:$0xff] %vm3490_vm15, %v5474_v33  ;;  %v4708_v34 = vpop.permute.xlu0 %4707  ;;  %v5575_v49 = vld [vmem:[#allocation3 + $0xa0] sm:$0xff] }
 0x6b2   : > { %6020 = vrot.lane.b32.xlu1 %v9692_v39, %s6628_s22  ;;  %4779 = vst.msk [vmem:[#allocation3 + $0xc0] sm:$0xff] %vm2717_vm11, %v4708_v34 }
 0x6b3   : > { %6022 = vrot.lane.b32.xlu0 %v9693_v43, %s6628_s22 }
 0x6b4   : > { %v4710_v9 = vpop.permute.xlu1 %4709  ;;  %v5576_v54 = vld [vmem:[#allocation3 + $0xa8] sm:$0xff] }
 0x6b5   : > { %4780 = vst.msk [vmem:[#allocation3 + $0xc8] sm:$0xff] %vm2717_vm11, %v4710_v9  ;;  %v5597_v41 = vpack.c.bf16 %v5576_v54, %v5575_v49  ;;  %v4712_v52 = vpop.permute.xlu0 %4711  ;;  %v5577_v51 = vld [vmem:[#allocation3 + $0xb0] sm:$0xff] }
 0x6b6   : > { %6024 = vrot.lane.b32.xlu1 %v9694_v44, %s6628_s22  ;;  %4781 = vst.msk [vmem:[#allocation3 + $0xd0] sm:$0xff] %vm2717_vm11, %v4712_v52  ;;  %v9473_v9 = vld [vmem:[%s9595_s7] ss:$0 sm:$0xff] }
 0x6b7   : > { %6486 = vmatprep.mubr.msk.bf16.mxu0 %vm3614_vm2, %v5597_v41  ;;  %6026 = vrot.lane.b32.xlu0 %v9695_v45, %s6628_s22 }
 0x6b8   : > { %v4714_v56 = vpop.permute.xlu1 %4713  ;;  %v5578_v59 = vld [vmem:[#allocation3 + $0xb8] sm:$0xff] }
 0x6b9   : > { %4782 = vst.msk [vmem:[#allocation3 + $0xd8] sm:$0xff] %vm2717_vm11, %v4714_v56  ;;  %v5598_v42 = vpack.c.bf16 %v5578_v59, %v5577_v51  ;;  %v4900_v61 = vpop.permute.xlu0 %4899 }
 0x6ba   : > { %6028 = vrot.lane.b32.xlu1 %v9696_v22, %s6628_s22  ;;  %4971 = vst.msk [vmem:[#allocation3 + $0xc0] sm:$0xff] %vm2910_vm12, %v4900_v61 }
 0x6bb   : > { %6487 = vmatmul.mubr.msk.bf16.gmra.mrb[28].mxu0 %vm3614_vm2, %v5598_v42  ;;  %6030 = vrot.lane.b32.xlu0 %v9697_v50, %s6628_s22 }
 0x6bc   : > { %v4902_v13 = vpop.permute.xlu1 %4901 }
 0x6bd   : > { %4972 = vst.msk [vmem:[#allocation3 + $0xc8] sm:$0xff] %vm2910_vm12, %v4902_v13  ;;  %v4904_v1 = vpop.permute.xlu0 %4903 }
 0x6be   : > { %6032 = vrot.lane.b32.xlu1 %v9698_v31, %s6628_s22  ;;  %4973 = vst.msk [vmem:[#allocation3 + $0xd0] sm:$0xff] %vm2910_vm12, %v4904_v1 }
 0x6bf   : > { %6034 = vrot.lane.b32.xlu0 %v9699_v7, %s6628_s22 }
 0x6c0   : > { %v4906_v26 = vpop.permute.xlu1 %4905 }
 0x6c1   : > { %4974 = vst.msk [vmem:[#allocation3 + $0xd8] sm:$0xff] %vm2910_vm12, %v4906_v26  ;;  %v5092_v53 = vpop.permute.xlu0 %5091 }
 0x6c2   : > { %6036 = vrot.lane.b32.xlu1 %v9700_v8, %s6628_s22  ;;  %5163 = vst.msk [vmem:[#allocation3 + $0xc0] sm:$0xff] %vm3104_vm13, %v5092_v53 }
 0x6c3   : > { %6038 = vrot.lane.b32.xlu0 %v9701_v23, %s6628_s22 }
 0x6c4   : > { %v5094_v5 = vpop.permute.xlu1 %5093 }
 0x6c5   : > { %5164 = vst.msk [vmem:[#allocation3 + $0xc8] sm:$0xff] %vm3104_vm13, %v5094_v5  ;;  %v5096_v12 = vpop.permute.xlu0 %5095 }
 0x6c6   : > { %6040 = vrot.lane.b32.xlu1 %v9702_v3, %s6628_s22  ;;  %5165 = vst.msk [vmem:[#allocation3 + $0xd0] sm:$0xff] %vm3104_vm13, %v5096_v12 }
 0x6c7   : > { %6042 = vrot.lane.b32.xlu0 %v9703_v47, %s6628_s22 }
 0x6c8   : > { %v5098_v4 = vpop.permute.xlu1 %5097 }
 0x6c9   : > { %5166 = vst.msk [vmem:[#allocation3 + $0xd8] sm:$0xff] %vm3104_vm13, %v5098_v4  ;;  %v5284_v60 = vpop.permute.xlu0 %5283 }
 0x6ca   : > { %6044 = vrot.lane.b32.xlu1 %v9704_v21, %s6628_s22  ;;  %5355 = vst.msk [vmem:[#allocation3 + $0xc0] sm:$0xff] %vm3297_vm14, %v5284_v60 }
 0x6cb   : > { %6046 = vrot.lane.b32.xlu0 %v9705_v48, %s6628_s22 }
 0x6cc   : > { %v5286_v37 = vpop.permute.xlu1 %5285 }
 0x6cd   : > { %5356 = vst.msk [vmem:[#allocation3 + $0xc8] sm:$0xff] %vm3297_vm14, %v5286_v37  ;;  %v5288_v58 = vpop.permute.xlu0 %5287 }
 0x6ce   : > { %6048 = vrot.lane.b32.xlu1 %v9706_v38, %s6628_s22  ;;  %5357 = vst.msk [vmem:[#allocation3 + $0xd0] sm:$0xff] %vm3297_vm14, %v5288_v58 }
 0x6d0   : > { %v5290_v36 = vpop.permute.xlu1 %5289 }
 0x6d1   : > { %5358 = vst.msk [vmem:[#allocation3 + $0xd8] sm:$0xff] %vm3297_vm14, %v5290_v36  ;;  %v5476_v18 = vpop.permute.xlu0 %5475 }
 0x6d2   : > { %5547 = vst.msk [vmem:[#allocation3 + $0xc0] sm:$0xff] %vm3490_vm15, %v5476_v18 }
 0x6d4   : > { %v5478_v15 = vpop.permute.xlu1 %5477 }
 0x6d5   : > { %5548 = vst.msk [vmem:[#allocation3 + $0xc8] sm:$0xff] %vm3490_vm15, %v5478_v15  ;;  %v5480_v55 = vpop.permute.xlu0 %5479 }
 0x6d6   : > { %5549 = vst.msk [vmem:[#allocation3 + $0xd0] sm:$0xff] %vm3490_vm15, %v5480_v55 }
 0x6d8   : > { %v5482_v30 = vpop.permute.xlu1 %5481 }
 0x6d9   : > { %5550 = vst.msk [vmem:[#allocation3 + $0xd8] sm:$0xff] %vm3490_vm15, %v5482_v30  ;;  %v4716_v6 = vpop.permute.xlu0 %4715  ;;  %v5579_v25 = vld [vmem:[#allocation3 + $0xc0] sm:$0xff] }
 0x6da   : > { %4783 = vst.msk [vmem:[#allocation3 + $0xe0] sm:$0xff] %vm2717_vm11, %v4716_v6 }
 0x6dc   : > { %v4718_v35 = vpop.permute.xlu1 %4717  ;;  %v5580_v29 = vld [vmem:[#allocation3 + $0xc8] sm:$0xff] }
 0x6dd   : > { %4784 = vst.msk [vmem:[#allocation3 + $0xe8] sm:$0xff] %vm2717_vm11, %v4718_v35  ;;  %v5599_v2 = vpack.c.bf16 %v5580_v29, %v5579_v25  ;;  %v4720_v27 = vpop.permute.xlu0 %4719  ;;  %v5581_v19 = vld [vmem:[#allocation3 + $0xd0] sm:$0xff] }
 0x6de   : > { %4785 = vst.msk [vmem:[#allocation3 + $0xf0] sm:$0xff] %vm2717_vm11, %v4720_v27 }
 0x6df   : > { %6490 = vmatprep.mubr.msk.bf16.mxu0 %vm3614_vm2, %v5599_v2  ;;  %v6468_v0 = vpop.f32.mrb[8].mxu0 }
 0x6e0   : > { %v4722_v46 = vpop.permute.xlu1 %4721  ;;  %v5582_v57 = vld [vmem:[#allocation3 + $0xd8] sm:$0xff]  ;;  %v5731_v20 = vpop.f32.mrb[9].mxu0  ;;  %v5740_v52 = vadd.f32 %v6468_v0, %v9473_v9 }
 0x6e1   : > { %4786 = vst.msk [vmem:[#allocation3 + $0xf8] sm:$0xff] %vm2717_vm11, %v4722_v46  ;;  %v5600_v32 = vpack.c.bf16 %v5582_v57, %v5581_v19  ;;  %v6469_v17 = vpop.f32.mrb[10].mxu0  ;;  %v4908_v11 = vpop.permute.xlu0 %4907  ;;  %v5732_v49 = vadd.f32 %v9473_v9, %v5731_v20 }
 0x6e2   : > { %4975 = vst.msk [vmem:[#allocation3 + $0xe0] sm:$0xff] %vm2910_vm12, %v4908_v11  ;;  %v5734_v14 = vpop.f32.mrb[11].mxu0  ;;  %v5743_v51 = vadd.f32 %v6469_v17, %v9473_v9  ;;  %v5892_v13 = vmul.f32 0.2, %v5740_v52  ;;  %vm5860_vm4 = vcmp.ge.f32.partialorder %v5740_v52, 0.0 }
 0x6e3   : > { %6491 = vmatmul.mubr.msk.bf16.gmra.mrb[32].mxu0 %vm3614_vm2, %v5600_v32  ;;  %v5735_v41 = vadd.f32 %v9473_v9, %v5734_v14  ;;  %v5890_v56 = vmul.f32 0.2, %v5732_v49  ;;  %vm5858_vm0 = vcmp.ge.f32.partialorder %v5732_v49, 0.0 }
 0x6e4   : > { %v4910_v10 = vpop.permute.xlu1 %4909  ;;  %v5893_v53 = vmul.f32 0.2, %v5743_v51  ;;  %vm5861_vm5 = vcmp.ge.f32.partialorder %v5743_v51, 0.0  ;;  %v5924_v48 = vsel %vm5860_vm4, %v5740_v52, %v5892_v13 }
 0x6e5   : > { %4976 = vst.msk [vmem:[#allocation3 + $0xe8] sm:$0xff] %vm2910_vm12, %v4910_v10  ;;  %v4912_v63 = vpop.permute.xlu0 %4911  ;;  %v5891_v59 = vmul.f32 0.2, %v5735_v41  ;;  %vm5859_vm1 = vcmp.ge.f32.partialorder %v5735_v41, 0.0  ;;  %v5922_v1 = vsel %vm5858_vm0, %v5732_v49, %v5890_v56 }
 0x6e6   : > { %4977 = vst.msk [vmem:[#allocation3 + $0xf0] sm:$0xff] %vm2910_vm12, %v4912_v63  ;;  %v5925_v30 = vsel %vm5861_vm5, %v5743_v51, %v5893_v53 }
 0x6e7   : > { %v5923_v3 = vsel %vm5859_vm1, %v5735_v41, %v5891_v59 }
 0x6e8   : > { %v4914_v28 = vpop.permute.xlu1 %4913 }
 0x6e9   : > { %4978 = vst.msk [vmem:[#allocation3 + $0xf8] sm:$0xff] %vm2910_vm12, %v4914_v28  ;;  %v5100_v16 = vpop.permute.xlu0 %5099 }
 0x6ea   : > { %5167 = vst.msk [vmem:[#allocation3 + $0xe0] sm:$0xff] %vm3104_vm13, %v5100_v16 }
 0x6ec   : > { %v5102_v40 = vpop.permute.xlu1 %5101 }
 0x6ed   : > { %5168 = vst.msk [vmem:[#allocation3 + $0xe8] sm:$0xff] %vm3104_vm13, %v5102_v40  ;;  %v5104_v62 = vpop.permute.xlu0 %5103 }
 0x6ee   : > { %5169 = vst.msk [vmem:[#allocation3 + $0xf0] sm:$0xff] %vm3104_vm13, %v5104_v62 }
 0x6f0   : > { %v5106_v33 = vpop.permute.xlu1 %5105 }
 0x6f1   : > { %5170 = vst.msk [vmem:[#allocation3 + $0xf8] sm:$0xff] %vm3104_vm13, %v5106_v33  ;;  %v5292_v24 = vpop.permute.xlu0 %5291 }
 0x6f2   : > { %5359 = vst.msk [vmem:[#allocation3 + $0xe0] sm:$0xff] %vm3297_vm14, %v5292_v24 }
 0x6f4   : > { %v5294_v39 = vpop.permute.xlu1 %5293 }
 0x6f5   : > { %5360 = vst.msk [vmem:[#allocation3 + $0xe8] sm:$0xff] %vm3297_vm14, %v5294_v39  ;;  %v5296_v34 = vpop.permute.xlu0 %5295 }
 0x6f6   : > { %5361 = vst.msk [vmem:[#allocation3 + $0xf0] sm:$0xff] %vm3297_vm14, %v5296_v34 }
 0x6f8   : > { %v5298_v43 = vpop.permute.xlu1 %5297 }
 0x6f9   : > { %5362 = vst.msk [vmem:[#allocation3 + $0xf8] sm:$0xff] %vm3297_vm14, %v5298_v43  ;;  %v5484_v54 = vpop.permute.xlu0 %5483 }
 0x6fa   : > { %5551 = vst.msk [vmem:[#allocation3 + $0xe0] sm:$0xff] %vm3490_vm15, %v5484_v54 }
 0x6fc   : > { %v5486_v44 = vpop.permute.xlu1 %5485 }
 0x6fd   : > { %5552 = vst.msk [vmem:[#allocation3 + $0xe8] sm:$0xff] %vm3490_vm15, %v5486_v44  ;;  %v5488_v45 = vpop.permute.xlu0 %5487 }
 0x6fe   : > { %5553 = vst.msk [vmem:[#allocation3 + $0xf0] sm:$0xff] %vm3490_vm15, %v5488_v45 }
 0x6ff   : > { %v6472_v22 = vpop.f32.mrb[12].mxu0 }
 0x700   : > { %v5490_v42 = vpop.permute.xlu1 %5489  ;;  %v5747_v61 = vpop.f32.mrb[13].mxu0  ;;  %v5756_v60 = vadd.f32 %v6472_v22, %v9473_v9 }
 0x701   : > { %5554 = vst.msk [vmem:[#allocation3 + $0xf8] sm:$0xff] %vm3490_vm15, %v5490_v42  ;;  %v5748_v50 = vadd.f32 %v9473_v9, %v5747_v61  ;;  %v6473_v31 = vpop.f32.mrb[14].mxu0  ;;  %v5987_v26 = vpop.permute.xlu0 %5986  ;;  %v5583_v12 = vld [vmem:[#allocation3 + $0xe0] sm:$0xff] }
 0x702   : > { %v6082_v7 = vadd.f32 %v5987_v26, %v5922_v1  ;;  %v5750_v8 = vpop.f32.mrb[15].mxu0  ;;  %v5759_v18 = vadd.f32 %v6473_v31, %v9473_v9  ;;  %v5896_v29 = vmul.f32 0.2, %v5756_v60  ;;  %vm5864_vm12 = vcmp.ge.f32.partialorder %v5756_v60, 0.0 }
 0x703   : > { %v5751_v5 = vadd.f32 %v9473_v9, %v5750_v8  ;;  %v5894_v37 = vmul.f32 0.2, %v5748_v50  ;;  %vm5862_vm10 = vcmp.ge.f32.partialorder %v5748_v50, 0.0 }
 0x704   : > { %v5989_v23 = vpop.permute.xlu1 %5988  ;;  %v5584_v4 = vld [vmem:[#allocation3 + $0xe8] sm:$0xff]  ;;  %6114 = vst.msk [vmem:[%s9489_s20] sm:$0xff] %vm1656_vm7, %v6082_v7  ;;  %v5897_v0 = vmul.f32 0.2, %v5759_v18  ;;  %vm5865_vm13 = vcmp.ge.f32.partialorder %v5759_v18, 0.0  ;;  %v5928_v32 = vsel %vm5864_vm12, %v5756_v60, %v5896_v29 }
 0x705   : > { %v6083_v47 = vadd.f32 %v5989_v23, %v5923_v3  ;;  %v5601_v21 = vpack.c.bf16 %v5584_v4, %v5583_v12  ;;  %v5991_v38 = vpop.permute.xlu0 %5990  ;;  %v5585_v58 = vld [vmem:[#allocation3 + $0xf0] sm:$0xff]  ;;  %v5895_v15 = vmul.f32 0.2, %v5751_v5  ;;  %vm5863_vm11 = vcmp.ge.f32.partialorder %v5751_v5, 0.0 }
 0x706   : > { %v6084_v36 = vadd.f32 %v5991_v38, %v5924_v48  ;;  %v5926_v2 = vsel %vm5862_vm10, %v5748_v50, %v5894_v37  ;;  %v5929_v10 = vsel %vm5865_vm13, %v5759_v18, %v5897_v0 }
 0x707   : > { %6115 = vst.msk [vmem:[%s9489_s20 + $0x8] sm:$0xff] %vm1656_vm7, %v6083_v47  ;;  %6494 = vmatprep.mubr.msk.bf16.mxu0 %vm3614_vm2, %v5601_v21  ;;  %v5927_v57 = vsel %vm5863_vm11, %v5751_v5, %v5895_v15 }
 0x708   : > { %v5993_v55 = vpop.permute.xlu1 %5992  ;;  %v5586_v6 = vld [vmem:[#allocation3 + $0xf8] sm:$0xff]  ;;  %6116 = vst.msk [vmem:[%s9489_s20 + $0x10] sm:$0xff] %vm1656_vm7, %v6084_v36 }
 0x709   : > { %v6085_v35 = vadd.f32 %v5993_v55, %v5925_v30  ;;  %v5602_v25 = vpack.c.bf16 %v5586_v6, %v5585_v58  ;;  %v5995_v27 = vpop.permute.xlu0 %5994 }
 0x70a   : > { %v6086_v46 = vadd.f32 %v5995_v27, %v5926_v2 }
 0x70b   : > { %6117 = vst.msk [vmem:[%s9489_s20 + $0x18] sm:$0xff] %vm1656_vm7, %v6085_v35  ;;  %6495 = vmatmul.mubr.msk.bf16.gmra.mrb[36].mxu0 %vm3614_vm2, %v5602_v25 }
 0x70c   : > { %v5997_v19 = vpop.permute.xlu1 %5996  ;;  %6118 = vst.msk [vmem:[%s9489_s20 + $0x20] sm:$0xff] %vm1656_vm7, %v6086_v46 }
 0x70d   : > { %v6087_v20 = vadd.f32 %v5997_v19, %v5927_v57  ;;  %v5999_v17 = vpop.permute.xlu0 %5998 }
 0x70e   : > { %v6088_v11 = vadd.f32 %v5999_v17, %v5928_v32 }
 0x70f   : > { %6119 = vst.msk [vmem:[%s9489_s20 + $0x28] sm:$0xff] %vm1656_vm7, %v6087_v20 }
 0x710   : > { %v6001_v14 = vpop.permute.xlu1 %6000  ;;  %6120 = vst.msk [vmem:[%s9489_s20 + $0x30] sm:$0xff] %vm1656_vm7, %v6088_v11 }
 0x711   : > { %v6089_v63 = vadd.f32 %v6001_v14, %v5929_v10  ;;  %v6003_v28 = vpop.permute.xlu0 %6002 }
 0x713   : > { %6121 = vst.msk [vmem:[%s9489_s20 + $0x38] sm:$0xff] %vm1656_vm7, %v6089_v63 }
 0x714   : > { %v6005_v40 = vpop.permute.xlu1 %6004 }
 0x715   : > { %v6007_v44 = vpop.permute.xlu0 %6006 }
 0x718   : > { %v6009_v42 = vpop.permute.xlu1 %6008 }
 0x719   : > { %v6011_v1 = vpop.permute.xlu0 %6010 }
 0x71c   : > { %v6013_v7 = vpop.permute.xlu1 %6012 }
 0x71d   : > { %v6015_v60 = vpop.permute.xlu0 %6014 }
 0x71f   : > { %v6476_v16 = vpop.f32.mrb[16].mxu0 }
 0x720   : > { %v5772_v62 = vadd.f32 %v6476_v16, %v9473_v9  ;;  %v5763_v33 = vpop.f32.mrb[17].mxu0  ;;  %v6017_v18 = vpop.permute.xlu1 %6016 }
 0x721   : > { %v5764_v24 = vadd.f32 %v9473_v9, %v5763_v33  ;;  %v6477_v39 = vpop.f32.mrb[18].mxu0  ;;  %v6019_v25 = vpop.permute.xlu0 %6018 }
 0x722   : > { %vm5868_vm14 = vcmp.ge.f32.partialorder %v5772_v62, 0.0  ;;  %v5900_v34 = vmul.f32 0.2, %v5772_v62  ;;  %v5775_v43 = vadd.f32 %v6477_v39, %v9473_v9  ;;  %v5766_v49 = vpop.f32.mrb[19].mxu0 }
 0x723   : > { %vm5866_vm15 = vcmp.ge.f32.partialorder %v5764_v24, 0.0  ;;  %v5898_v54 = vmul.f32 0.2, %v5764_v24  ;;  %v5767_v41 = vadd.f32 %v9473_v9, %v5766_v49 }
 0x724   : > { %v5932_v52 = vsel %vm5868_vm14, %v5772_v62, %v5900_v34  ;;  %vm5869_vm2 = vcmp.ge.f32.partialorder %v5775_v43, 0.0  ;;  %v5901_v56 = vmul.f32 0.2, %v5775_v43  ;;  %v6021_v2 = vpop.permute.xlu1 %6020 }
 0x725   : > { %v6092_v45 = vadd.f32 %v6007_v44, %v5932_v52  ;;  %v5930_v51 = vsel %vm5866_vm15, %v5764_v24, %v5898_v54  ;;  %vm5867_vm3 = vcmp.ge.f32.partialorder %v5767_v41, 0.0  ;;  %v5899_v59 = vmul.f32 0.2, %v5767_v41  ;;  %v6023_v14 = vpop.permute.xlu0 %6022 }
 0x726   : > { %v6090_v22 = vadd.f32 %v6003_v28, %v5930_v51  ;;  %v5933_v61 = vsel %vm5869_vm2, %v5775_v43, %v5901_v56 }
 0x727   : > { %6124 = vst.msk [vmem:[%s9489_s20 + $0x50] sm:$0xff] %vm1656_vm7, %v6092_v45  ;;  %v6093_v13 = vadd.f32 %v6009_v42, %v5933_v61  ;;  %v5931_v50 = vsel %vm5867_vm3, %v5767_v41, %v5899_v59 }
 0x728   : > { %6122 = vst.msk [vmem:[%s9489_s20 + $0x40] sm:$0xff] %vm1656_vm7, %v6090_v22  ;;  %v6091_v31 = vadd.f32 %v6005_v40, %v5931_v50  ;;  %v6025_v62 = vpop.permute.xlu1 %6024 }
 0x729   : > { %6125 = vst.msk [vmem:[%s9489_s20 + $0x58] sm:$0xff] %vm1656_vm7, %v6093_v13  ;;  %v6027_v49 = vpop.permute.xlu0 %6026 }
 0x72a   : > { %6123 = vst.msk [vmem:[%s9489_s20 + $0x48] sm:$0xff] %vm1656_vm7, %v6091_v31 }
 0x72c   : > { %v6029_v41 = vpop.permute.xlu1 %6028 }
 0x72d   : > { %v6031_v13 = vpop.permute.xlu0 %6030 }
 0x73f   : > { %v6480_v26 = vpop.f32.mrb[20].mxu0 }
 0x740   : > { %v5788_v8 = vadd.f32 %v6480_v26, %v9473_v9  ;;  %v5779_v53 = vpop.f32.mrb[21].mxu0 }
 0x741   : > { %v5780_v5 = vadd.f32 %v9473_v9, %v5779_v53  ;;  %v6481_v23 = vpop.f32.mrb[22].mxu0 }
 0x742   : > { %vm5872_vm6 = vcmp.ge.f32.partialorder %v5788_v8, 0.0  ;;  %v5904_v3 = vmul.f32 0.2, %v5788_v8  ;;  %v5791_v12 = vadd.f32 %v6481_v23, %v9473_v9  ;;  %v5782_v4 = vpop.f32.mrb[23].mxu0 }
 0x743   : > { %vm5870_vm8 = vcmp.ge.f32.partialorder %v5780_v5, 0.0  ;;  %v5902_v47 = vmul.f32 0.2, %v5780_v5  ;;  %v5783_v21 = vadd.f32 %v9473_v9, %v5782_v4  ;;  %v6035_v4 = vpop.permute.xlu0 %6034 }
 0x744   : > { %v5936_v37 = vsel %vm5872_vm6, %v5788_v8, %v5904_v3  ;;  %vm5873_vm9 = vcmp.ge.f32.partialorder %v5791_v12, 0.0  ;;  %v5905_v48 = vmul.f32 0.2, %v5791_v12  ;;  %v6033_v8 = vpop.permute.xlu1 %6032 }
 0x745   : > { %v6096_v38 = vadd.f32 %v6015_v60, %v5936_v37  ;;  %v5934_v58 = vsel %vm5870_vm8, %v5780_v5, %v5902_v47  ;;  %vm5871_vm0 = vcmp.ge.f32.partialorder %v5783_v21, 0.0  ;;  %v5903_v36 = vmul.f32 0.2, %v5783_v21 }
 0x746   : > { %v6094_v15 = vadd.f32 %v6011_v1, %v5934_v58  ;;  %v5937_v55 = vsel %vm5873_vm9, %v5791_v12, %v5905_v48 }
 0x747   : > { %6128 = vst.msk [vmem:[%s9489_s20 + $0x70] sm:$0xff] %vm1656_vm7, %v6096_v38  ;;  %v6097_v30 = vadd.f32 %v6017_v18, %v5937_v55  ;;  %v5935_v6 = vsel %vm5871_vm0, %v5783_v21, %v5903_v36 }
 0x748   : > { %6126 = vst.msk [vmem:[%s9489_s20 + $0x60] sm:$0xff] %vm1656_vm7, %v6094_v15  ;;  %v6095_v35 = vadd.f32 %v6013_v7, %v5935_v6  ;;  %v6037_v21 = vpop.permute.xlu1 %6036 }
 0x749   : > { %6129 = vst.msk [vmem:[%s9489_s20 + $0x78] sm:$0xff] %vm1656_vm7, %v6097_v30  ;;  %v6039_v30 = vpop.permute.xlu0 %6038 }
 0x74a   : > { %6127 = vst.msk [vmem:[%s9489_s20 + $0x68] sm:$0xff] %vm1656_vm7, %v6095_v35 }
 0x766   : > { %v6484_v29 = vpop.f32.mrb[24].mxu0 }
 0x767   : > { %v5804_v27 = vadd.f32 %v6484_v29, %v9473_v9  ;;  %v5795_v46 = vpop.f32.mrb[25].mxu0 }
 0x768   : > { %v5796_v0 = vadd.f32 %v9473_v9, %v5795_v46  ;;  %v6485_v19 = vpop.f32.mrb[26].mxu0 }
 0x769   : > { %vm5876_vm1 = vcmp.ge.f32.partialorder %v5804_v27, 0.0  ;;  %v5908_v57 = vmul.f32 0.2, %v5804_v27  ;;  %v5807_v20 = vadd.f32 %v6485_v19, %v9473_v9  ;;  %v5798_v32 = vpop.f32.mrb[27].mxu0 }
 0x76a   : > { %vm5874_vm4 = vcmp.ge.f32.partialorder %v5796_v0, 0.0  ;;  %v5906_v17 = vmul.f32 0.2, %v5796_v0  ;;  %v5799_v11 = vadd.f32 %v9473_v9, %v5798_v32  ;;  %v6043_v32 = vpop.permute.xlu0 %6042 }
 0x76b   : > { %v5940_v10 = vsel %vm5876_vm1, %v5804_v27, %v5908_v57  ;;  %vm5877_vm5 = vcmp.ge.f32.partialorder %v5807_v20, 0.0  ;;  %v5909_v63 = vmul.f32 0.2, %v5807_v20  ;;  %v6041_v27 = vpop.permute.xlu1 %6040 }
 0x76c   : > { %v6100_v28 = vadd.f32 %v6023_v14, %v5940_v10  ;;  %v5938_v16 = vsel %vm5874_vm4, %v5796_v0, %v5906_v17  ;;  %vm5875_vm10 = vcmp.ge.f32.partialorder %v5799_v11, 0.0  ;;  %v5907_v40 = vmul.f32 0.2, %v5799_v11 }
 0x76d   : > { %v6098_v33 = vadd.f32 %v6019_v25, %v5938_v16  ;;  %v5941_v24 = vsel %vm5877_vm5, %v5807_v20, %v5909_v63 }
 0x76e   : > { %6132 = vst.msk [vmem:[%s9489_s20 + $0x90] sm:$0xff] %vm1656_vm7, %v6100_v28  ;;  %v6101_v39 = vadd.f32 %v6025_v62, %v5941_v24  ;;  %v5939_v34 = vsel %vm5875_vm10, %v5799_v11, %v5907_v40 }
 0x76f   : > { %6130 = vst.msk [vmem:[%s9489_s20 + $0x80] sm:$0xff] %vm1656_vm7, %v6098_v33  ;;  %v6099_v43 = vadd.f32 %v6021_v2, %v5939_v34  ;;  %v6045_v11 = vpop.permute.xlu1 %6044 }
 0x770   : > { %6133 = vst.msk [vmem:[%s9489_s20 + $0x98] sm:$0xff] %vm1656_vm7, %v6101_v39  ;;  %v6047_v39 = vpop.permute.xlu0 %6046 }
 0x771   : > { %6131 = vst.msk [vmem:[%s9489_s20 + $0x88] sm:$0xff] %vm1656_vm7, %v6099_v43 }
 0x78e   : > { %v6488_v54 = vpop.f32.mrb[28].mxu0 }
 0x78f   : > { %v5820_v44 = vadd.f32 %v6488_v54, %v9473_v9  ;;  %v5811_v52 = vpop.f32.mrb[29].mxu0 }
 0x790   : > { %v5812_v56 = vadd.f32 %v9473_v9, %v5811_v52  ;;  %v6489_v45 = vpop.f32.mrb[30].mxu0 }
 0x791   : > { %vm5880_vm11 = vcmp.ge.f32.partialorder %v5820_v44, 0.0  ;;  %v5912_v51 = vmul.f32 0.2, %v5820_v44  ;;  %v5823_v59 = vadd.f32 %v6489_v45, %v9473_v9  ;;  %v5814_v42 = vpop.f32.mrb[31].mxu0 }
 0x792   : > { %vm5878_vm12 = vcmp.ge.f32.partialorder %v5812_v56, 0.0  ;;  %v5910_v22 = vmul.f32 0.2, %v5812_v56  ;;  %v5815_v61 = vadd.f32 %v9473_v9, %v5814_v42 }
 0x793   : > { %v5944_v50 = vsel %vm5880_vm11, %v5820_v44, %v5912_v51  ;;  %vm5881_vm13 = vcmp.ge.f32.partialorder %v5823_v59, 0.0  ;;  %v5913_v31 = vmul.f32 0.2, %v5823_v59  ;;  %v6049_v44 = vpop.permute.xlu1 %6048 }
 0x794   : > { %v6104_v1 = vadd.f32 %v6031_v13, %v5944_v50  ;;  %v5942_v26 = vsel %vm5878_vm12, %v5812_v56, %v5910_v22  ;;  %vm5879_vm14 = vcmp.ge.f32.partialorder %v5815_v61, 0.0  ;;  %v5911_v7 = vmul.f32 0.2, %v5815_v61 }
 0x795   : > { %v6102_v53 = vadd.f32 %v6027_v49, %v5942_v26  ;;  %v5945_v5 = vsel %vm5881_vm13, %v5823_v59, %v5913_v31 }
 0x796   : > { %6136 = vst.msk [vmem:[%s9489_s20 + $0xb0] sm:$0xff] %vm1656_vm7, %v6104_v1  ;;  %v6105_v23 = vadd.f32 %v6033_v8, %v5945_v5  ;;  %v5943_v3 = vsel %vm5879_vm14, %v5815_v61, %v5911_v7 }
 0x797   : > { %6134 = vst.msk [vmem:[%s9489_s20 + $0xa0] sm:$0xff] %vm1656_vm7, %v6102_v53  ;;  %v6103_v12 = vadd.f32 %v6029_v41, %v5943_v3 }
 0x798   : > { %6137 = vst.msk [vmem:[%s9489_s20 + $0xb8] sm:$0xff] %vm1656_vm7, %v6105_v23 }
 0x799   : > { %6135 = vst.msk [vmem:[%s9489_s20 + $0xa8] sm:$0xff] %vm1656_vm7, %v6103_v12 }
 0x7b6   : > { %v6492_v47 = vpop.f32.mrb[32].mxu0 }
 0x7b7   : > { %v5836_v60 = vadd.f32 %v6492_v47, %v9473_v9  ;;  %v5827_v37 = vpop.f32.mrb[33].mxu0 }
 0x7b8   : > { %v5828_v48 = vadd.f32 %v9473_v9, %v5827_v37  ;;  %v6493_v38 = vpop.f32.mrb[34].mxu0 }
 0x7b9   : > { %vm5884_vm15 = vcmp.ge.f32.partialorder %v5836_v60, 0.0  ;;  %v5916_v58 = vmul.f32 0.2, %v5836_v60  ;;  %v5839_v36 = vadd.f32 %v6493_v38, %v9473_v9  ;;  %v5830_v18 = vpop.f32.mrb[35].mxu0 }
 0x7ba   : > { %vm5882_vm2 = vcmp.ge.f32.partialorder %v5828_v48, 0.0  ;;  %v5914_v15 = vmul.f32 0.2, %v5828_v48  ;;  %v5831_v55 = vadd.f32 %v9473_v9, %v5830_v18 }
 0x7bb   : > { %v5948_v6 = vsel %vm5884_vm15, %v5836_v60, %v5916_v58  ;;  %vm5885_vm3 = vcmp.ge.f32.partialorder %v5839_v36, 0.0  ;;  %v5917_v35 = vmul.f32 0.2, %v5839_v36 }
 0x7bc   : > { %v6108_v25 = vadd.f32 %v6039_v30, %v5948_v6  ;;  %v5946_v29 = vsel %vm5882_vm2, %v5828_v48, %v5914_v15  ;;  %vm5883_vm6 = vcmp.ge.f32.partialorder %v5831_v55, 0.0  ;;  %v5915_v2 = vmul.f32 0.2, %v5831_v55 }
 0x7bd   : > { %v6106_v46 = vadd.f32 %v6035_v4, %v5946_v29  ;;  %v5949_v0 = vsel %vm5885_vm3, %v5839_v36, %v5917_v35 }
 0x7be   : > { %6140 = vst.msk [vmem:[%s9489_s20 + $0xd0] sm:$0xff] %vm1656_vm7, %v6108_v25  ;;  %v6109_v19 = vadd.f32 %v6041_v27, %v5949_v0  ;;  %v5947_v57 = vsel %vm5883_vm6, %v5831_v55, %v5915_v2 }
 0x7bf   : > { %6138 = vst.msk [vmem:[%s9489_s20 + $0xc0] sm:$0xff] %vm1656_vm7, %v6106_v46  ;;  %v6107_v20 = vadd.f32 %v6037_v21, %v5947_v57 }
 0x7c0   : > { %6141 = vst.msk [vmem:[%s9489_s20 + $0xd8] sm:$0xff] %vm1656_vm7, %v6109_v19 }
 0x7c1   : > { %6139 = vst.msk [vmem:[%s9489_s20 + $0xc8] sm:$0xff] %vm1656_vm7, %v6107_v20 }
 0x7de   : > { %v6496_v17 = vpop.f32.mrb[36].mxu0 }
 0x7df   : > { %v5852_v14 = vadd.f32 %v6496_v17, %v9473_v9  ;;  %v5843_v10 = vpop.f32.mrb[37].mxu0 }
 0x7e0   : > { %v5844_v63 = vadd.f32 %v9473_v9, %v5843_v10  ;;  %v6497_v28 = vpop.f32.mrb[38].mxu0 }
 0x7e1   : > { %vm5888_vm8 = vcmp.ge.f32.partialorder %v5852_v14, 0.0  ;;  %v5920_v16 = vmul.f32 0.2, %v5852_v14  ;;  %v5855_v40 = vadd.f32 %v6497_v28, %v9473_v9  ;;  %v5846_v62 = vpop.f32.mrb[39].mxu0 }
 0x7e2   : > { %vm5886_vm9 = vcmp.ge.f32.partialorder %v5844_v63, 0.0  ;;  %v5918_v33 = vmul.f32 0.2, %v5844_v63  ;;  %v5847_v24 = vadd.f32 %v9473_v9, %v5846_v62 }
 0x7e3   : > { %v5952_v34 = vsel %vm5888_vm8, %v5852_v14, %v5920_v16  ;;  %vm5889_vm0 = vcmp.ge.f32.partialorder %v5855_v40, 0.0  ;;  %v5921_v43 = vmul.f32 0.2, %v5855_v40 }
 0x7e4   : > { %v6112_v49 = vadd.f32 %v6047_v39, %v5952_v34  ;;  %v5950_v54 = vsel %vm5886_vm9, %v5844_v63, %v5918_v33  ;;  %vm5887_vm1 = vcmp.ge.f32.partialorder %v5847_v24, 0.0  ;;  %v5919_v41 = vmul.f32 0.2, %v5847_v24 }
 0x7e5   : > { %v6110_v52 = vadd.f32 %v6043_v32, %v5950_v54  ;;  %v5953_v56 = vsel %vm5889_vm0, %v5855_v40, %v5921_v43 }
 0x7e6   : > { %6144 = vst.msk [vmem:[%s9489_s20 + $0xf0] sm:$0xff] %vm1656_vm7, %v6112_v49  ;;  %v6113_v45 = vadd.f32 %v6049_v44, %v5953_v56  ;;  %v5951_v51 = vsel %vm5887_vm1, %v5847_v24, %v5919_v41 }
 0x7e7   : > { %6142 = vst.msk [vmem:[%s9489_s20 + $0xe0] sm:$0xff] %vm1656_vm7, %v6110_v52  ;;  %v6111_v9 = vadd.f32 %v6045_v11, %v5951_v51 }
 0x7e8   : > { %6145 = vst.msk [vmem:[%s9489_s20 + $0xf8] sm:$0xff] %vm1656_vm7, %v6113_v45 }
 0x7e9   : > { %6143 = vst.msk [vmem:[%s9489_s20 + $0xe8] sm:$0xff] %vm1656_vm7, %v6111_v9 }
 0x7ea PF: > { %s18_s27 = sadd.s32 1, %s6620_s27  }
 0x7eb   : > { %p15_p4 = scmp.ge.s32.totalorder %s18_s27, 4  }
 0x7ed   :  { %17 = sbr.rel (!%p15_p4) target bundleno = 1 (0x1), region = 88 }

</bundles_post_ra>
